<compile_context>
chip_gen: v7x
topology: tpu7x:2x2x1
jax: 0.10.0
libtpu: 0.0.40
codegen_flags: <defaults>
</compile_context>

<pallas_src>
import jax
import jax.numpy as jnp
from jax import lax
from jax.experimental import pallas as pl
from jax.experimental.pallas import tpu as pltpu


C = 128          # lane-padded channel width of all VMEM-resident activations
COL0 = 8         # column where image data starts inside the halo buffers
                 # (col COL0-1 = zero left halo, col COL0+W = zero right halo)
POOL_ROWS = 4    # output rows handled per max-pool chunk


# ----------------------------------------------------------------------------
# Fused kernel builder
# ----------------------------------------------------------------------------
def _build_kernel(H, W, cout_final):
    """conv-relu x2, pool, conv-relu x2, pool, conv-relu for one image,
    entirely VMEM-resident."""
    H2, W2, H4, W4 = H // 2, W // 2, H // 4, W // 4
    rc_full = min(H, max(1, 128 // W))     # conv row-chunk at full res
    rc_half = min(H2, max(1, 128 // W2))   # conv row-chunk at half res

    assert W % 8 == 0 and W2 % 8 == 0 and W4 % 8 == 0
    assert H % rc_full == 0 and H2 % rc_half == 0
    assert H2 % POOL_ROWS == 0 and H4 % POOL_ROWS == 0
    assert H4 * W4 <= 256                  # final conv fits one chunk

    def kernel(x_ref, w1, b1, w2, b2, w3, b3, w4, b4, w5, b5,
               sel_e, sel_o, o_ref, buf_a, buf_b, buf_c, buf_d, buf_e):
        f32 = jnp.float32

        # Zero scratch every image: halo ring, spare columns and the
        # lane-padded channels must be exact zeros (safe under "parallel").
        for buf in (buf_a, buf_b, buf_c, buf_d, buf_e):
            buf[...] = jnp.zeros(buf.shape, buf.dtype)

        # Stage the input image (channels pre-padded to 8 lanes in HBM).
        buf_a[1:1 + H, COL0:COL0 + W, 0:x_ref.shape[3]] = (
            x_ref[0].astype(buf_a.dtype))

        def conv3x3_relu(src, dst, w_ref, b_ref, hin, win, rows):
            """3x3 same-padding conv + bias + ReLU between halo buffers."""
            m = rows * win                         # matmul M per chunk (~128)

            def chunk(ci, carry):
                h0 = ci * rows
                acc = jnp.zeros((m, C), f32)
                for dx in range(3):
                    # rows h0..h0+rows+1, columns shifted by (dx - 1)
                    cols = src[pl.ds(h0, rows + 2),
                               pl.ds(COL0 - 1 + dx, win), :]
                    for dy in range(3):
                        mat = cols[dy:dy + rows].reshape(m, C)
                        acc += jnp.dot(mat, w_ref[dy * 3 + dx],
                                       preferred_element_type=f32)
                y = jnp.maximum(acc + b_ref[...], 0.0)       # f32 epilogue
                dst[pl.ds(1 + h0, rows), pl.ds(COL0, win), :] = (
                    y.reshape(rows, win, C).astype(dst.dtype))
                return carry

            lax.fori_loop(0, hin // rows, chunk, 0)

        def maxpool2x2(src, dst, hin, win):
            """2x2 stride-2 max pool.  Row pairs reduce via a free leading-axis
            reshape; column pairs are compacted with exact one-hot matmuls."""
            ho, wo = hin // 2, win // 2
            for ci in range(ho // POOL_ROWS):
                r0, o0 = 2 * POOL_ROWS * ci, POOL_ROWS * ci
                v = src[1 + r0:1 + r0 + 2 * POOL_ROWS, COL0:COL0 + win, :]
                v = v.reshape(POOL_ROWS, 2, win, C)
                rmax = jnp.maximum(v[:, 0], v[:, 1])          # (PR, win, C)
                flat = rmax.reshape(POOL_ROWS * win, C)
                ev = jnp.dot(sel_e[0:POOL_ROWS * wo, 0:POOL_ROWS * win],
                             flat, preferred_element_type=f32)
                od = jnp.dot(sel_o[0:POOL_ROWS * wo, 0:POOL_ROWS * win],
                             flat, preferred_element_type=f32)
                pooled = jnp.maximum(ev, od).reshape(POOL_ROWS, wo, C)
                dst[1 + o0:1 + o0 + POOL_ROWS, COL0:COL0 + wo, :] = (
                    pooled.astype(dst.dtype))

        # ----------------------- fused network -----------------------
        conv3x3_relu(buf_a, buf_b, w1, b1, H, W, rc_full)     # conv1
        conv3x3_relu(buf_b, buf_a, w2, b2, H, W, rc_full)     # conv2
        maxpool2x2(buf_a, buf_c, H, W)                        # pool1
        conv3x3_relu(buf_c, buf_d, w3, b3, H2, W2, rc_half)   # conv3
        conv3x3_relu(buf_d, buf_c, w4, b4, H2, W2, rc_half)   # conv4
        maxpool2x2(buf_c, buf_e, H2, W2)                      # pool2

        # conv5 -> o_ref (single chunk; real Cout sliced out of 128 lanes)
        m5 = H4 * W4
        acc = jnp.zeros((m5, C), f32)
        for dx in range(3):
            cols = buf_e[:, COL0 - 1 + dx:COL0 - 1 + dx + W4, :]
            for dy in range(3):
                mat = cols[dy:dy + H4].reshape(m5, C)
                acc += jnp.dot(mat, w5[dy * 3 + dx],
                               preferred_element_type=f32)
        y = jnp.maximum(acc + b5[...], 0.0)
        o_ref[0] = y[:, 0:cout_final].reshape(H4, W4, cout_final).astype(
            o_ref.dtype)

    return kernel


# ----------------------------------------------------------------------------
# Wrapper (parameter packing + pallas_call plumbing)
# ----------------------------------------------------------------------------
def _pad_weight(w):
    """(3,3,cin,cout) HWIO -> (9, 128, 128) bf16, zero padded."""
    cin, cout = w.shape[2], w.shape[3]
    wp = jnp.zeros((3, 3, C, C), jnp.float32).at[:, :, :cin, :cout].set(w)
    return wp.reshape(9, C, C).astype(jnp.bfloat16)


def _pad_bias(b):
    return jnp.zeros((1, C), jnp.float32).at[0, :b.shape[0]].set(b)


def _pool_selectors(rows, cols):
    k = jnp.arange(rows)
    sel_e = jax.nn.one_hot(2 * k, cols, dtype=jnp.bfloat16)
    sel_o = jax.nn.one_hot(2 * k + 1, cols, dtype=jnp.bfloat16)
    return sel_e, sel_o


@jax.jit
def feature_extractor(x_nchw, params):
    """Pallas equivalent of FeatureExtractor(cnn=VGG-like, feature_layer=11):
    conv-relu, conv-relu, maxpool, conv-relu, conv-relu, maxpool, conv-relu
    fused into one VMEM-resident pallas_call.  NCHW in / NCHW out."""
    N, _, H, W = x_nchw.shape
    cout_final = params[-1][0].shape[-1]
    assert H % 4 == 0 and W % 4 == 0
    assert all(w.shape[2] <= C and w.shape[3] <= C for w, _ in params)

    x = jnp.transpose(x_nchw, (0, 2, 3, 1))                  # NCHW -> NHWC
    cin_pad = 8
    x = jnp.pad(x, ((0, 0), (0, 0), (0, 0), (0, cin_pad - x.shape[3])))

    flat_params = []
    for w, b in params:
        flat_params += [_pad_weight(w), _pad_bias(b)]

    sel_rows, sel_cols = POOL_ROWS * (W // 2), POOL_ROWS * W
    sel_e, sel_o = _pool_selectors(sel_rows, sel_cols)

    H4, W4 = H // 4, W // 4
    kernel = _build_kernel(H, W, cout_final)

    wspec = pl.BlockSpec((9, C, C), lambda n: (0, 0, 0))
    bspec = pl.BlockSpec((1, C), lambda n: (0, 0))
    sspec = pl.BlockSpec((sel_rows, sel_cols), lambda n: (0, 0))

    out = pl.pallas_call(
        kernel,
        out_shape=jax.ShapeDtypeStruct((N, H4, W4, cout_final), x_nchw.dtype),
        grid=(N,),
        in_specs=[pl.BlockSpec((1, H, W, cin_pad), lambda n: (n, 0, 0, 0))]
                 + [wspec, bspec] * 5 + [sspec, sspec],
        out_specs=pl.BlockSpec((1, H4, W4, cout_final),
                               lambda n: (n, 0, 0, 0)),
        scratch_shapes=[
            pltpu.VMEM((H + 2, W + 16, C), jnp.bfloat16),          # buf_a
            pltpu.VMEM((H + 2, W + 16, C), jnp.bfloat16),          # buf_b
            pltpu.VMEM((H // 2 + 2, W // 2 + 16, C), jnp.bfloat16),  # buf_c
            pltpu.VMEM((H // 2 + 2, W // 2 + 16, C), jnp.bfloat16),  # buf_d
            pltpu.VMEM((H4 + 2, W4 + 16, C), jnp.bfloat16),        # buf_e
        ],
        compiler_params=pltpu.CompilerParams(
            dimension_semantics=("parallel",)),
    )(x, *flat_params, sel_e, sel_o)

    return jnp.transpose(out, (0, 3, 1, 2))                  # NHWC -> NCHW


# ----------------------------------------------------------------------------
# Pure-JAX reference with the SAME bf16 quantization points as the kernel
# (bf16 conv operands, f32 accumulation and epilogue, bf16 inter-layer acts).
# ----------------------------------------------------------------------------
def feature_extractor_ref(x_nchw, params):
    bf16 = jnp.bfloat16

    def conv(x, w, b):
        y = lax.conv_general_dilated(
            x.astype(bf16), w.astype(bf16), (1, 1), "SAME",
            dimension_numbers=("NHWC", "HWIO", "NHWC"),
            preferred_element_type=jnp.float32)
        return jnp.maximum(y + b, 0.0)

    def pool(x):
        n, h, w, c = x.shape
        return x.reshape(n, h // 2, 2, w // 2, 2, c).max(axis=(2, 4))

    (w1, b1), (w2, b2), (w3, b3), (w4, b4), (w5, b5) = params
    x = jnp.transpose(x_nchw, (0, 2, 3, 1))
    x = conv(x, w1, b1).astype(bf16)
    x = conv(x, w2, b2).astype(bf16)
    x = pool(x)
    x = conv(x, w3, b3).astype(bf16)
    x = conv(x, w4, b4).astype(bf16)
    x = pool(x)
    x = conv(x, w5, b5)
    return jnp.transpose(x, (0, 3, 1, 2))


# ----------------------------------------------------------------------------
def make_params(key):
    """Deterministic synthetic weights (scaled-down VGG channel plan)."""
    plan = [(3, 16), (16, 16), (16, 32), (32, 32), (32, 64)]
    params = []
    for i, (cin, cout) in enumerate(plan):
        kw, kb = jax.random.split(jax.random.fold_in(key, i))
        w = 0.1 * jax.random.normal(kw, (3, 3, cin, cout), jnp.float32)
        b = 0.05 * jax.random.normal(kb, (cout,), jnp.float32)
        params.append((w, b))
    return params


if __name__ == "__main__":
    key = jax.random.PRNGKey(0)
    N, CIN, H, W = 2, 3, 32, 32
    x = jax.random.normal(jax.random.fold_in(key, 100), (N, CIN, H, W),
                          jnp.float32)
    params = make_params(key)

    out = jax.block_until_ready(feature_extractor(x, params))
    ref = feature_extractor_ref(x, params)

    assert out.shape == (N, 64, H // 4, W // 4), out.shape
    assert out.dtype == jnp.float32
    err = float(jnp.max(jnp.abs(out - ref)))
    assert err < 2e-2, err
    print("KERNEL_OK")
</pallas_src>

<mosaic_0001>
module attributes {stable_mosaic.version = 11 : i64} {
  func.func @kernel(%arg0: i32, %arg1: memref<1x32x32x8xf32, #tpu.memory_space<vmem>>, %arg2: memref<9x128x128xbf16, #tpu.memory_space<vmem>>, %arg3: memref<1x128xf32, #tpu.memory_space<vmem>>, %arg4: memref<9x128x128xbf16, #tpu.memory_space<vmem>>, %arg5: memref<1x128xf32, #tpu.memory_space<vmem>>, %arg6: memref<9x128x128xbf16, #tpu.memory_space<vmem>>, %arg7: memref<1x128xf32, #tpu.memory_space<vmem>>, %arg8: memref<9x128x128xbf16, #tpu.memory_space<vmem>>, %arg9: memref<1x128xf32, #tpu.memory_space<vmem>>, %arg10: memref<9x128x128xbf16, #tpu.memory_space<vmem>>, %arg11: memref<1x128xf32, #tpu.memory_space<vmem>>, %arg12: memref<64x128xbf16, #tpu.memory_space<vmem>>, %arg13: memref<64x128xbf16, #tpu.memory_space<vmem>>, %arg14: memref<1x8x8x64xf32, #tpu.memory_space<vmem>>, %arg15: memref<34x48x128xbf16, #tpu.memory_space<vmem>>, %arg16: memref<34x48x128xbf16, #tpu.memory_space<vmem>>, %arg17: memref<18x32x128xbf16, #tpu.memory_space<vmem>>, %arg18: memref<18x32x128xbf16, #tpu.memory_space<vmem>>, %arg19: memref<10x24x128xbf16, #tpu.memory_space<vmem>>) attributes {dimension_semantics = [#tpu.dimension_semantics<parallel>], iteration_bounds = array<i64: 2>, scalar_prefetch = 0 : i64, scratch_operands = 5 : i64, tpu.core_type = #tpu.core_type<tc>, window_params = [{transform_indices = @transform_0, window_bounds = array<i64: 1, 32, 32, 8>}, {pipeline_mode = #tpu.pipeline_mode<synchronous>, transform_indices = @transform_1, window_bounds = array<i64: 9, 128, 128>}, {pipeline_mode = #tpu.pipeline_mode<synchronous>, transform_indices = @transform_2, window_bounds = array<i64: 1, 128>}, {pipeline_mode = #tpu.pipeline_mode<synchronous>, transform_indices = @transform_3, window_bounds = array<i64: 9, 128, 128>}, {pipeline_mode = #tpu.pipeline_mode<synchronous>, transform_indices = @transform_4, window_bounds = array<i64: 1, 128>}, {pipeline_mode = #tpu.pipeline_mode<synchronous>, transform_indices = @transform_5, window_bounds = array<i64: 9, 128, 128>}, {pipeline_mode = #tpu.pipeline_mode<synchronous>, transform_indices = @transform_6, window_bounds = array<i64: 1, 128>}, {pipeline_mode = #tpu.pipeline_mode<synchronous>, transform_indices = @transform_7, window_bounds = array<i64: 9, 128, 128>}, {pipeline_mode = #tpu.pipeline_mode<synchronous>, transform_indices = @transform_8, window_bounds = array<i64: 1, 128>}, {pipeline_mode = #tpu.pipeline_mode<synchronous>, transform_indices = @transform_9, window_bounds = array<i64: 9, 128, 128>}, {pipeline_mode = #tpu.pipeline_mode<synchronous>, transform_indices = @transform_10, window_bounds = array<i64: 1, 128>}, {pipeline_mode = #tpu.pipeline_mode<synchronous>, transform_indices = @transform_11, window_bounds = array<i64: 64, 128>}, {pipeline_mode = #tpu.pipeline_mode<synchronous>, transform_indices = @transform_12, window_bounds = array<i64: 64, 128>}, {transform_indices = @transform_13, window_bounds = array<i64: 1, 8, 8, 64>}]} {
    %cst = arith.constant 0.000000e+00 : bf16
    %0 = vector.broadcast %cst : bf16 to vector<34x48x128xbf16>
    %c0 = arith.constant 0 : index
    %c0_0 = arith.constant 0 : index
    %c0_1 = arith.constant 0 : index
    %1 = vector.load %arg15[%c0, %c0_0, %c0_1] : memref<34x48x128xbf16, #tpu.memory_space<vmem>>, vector<34x48x128xbf16>
    tpu.vector_store %arg15[%c0, %c0_0, %c0_1], %0 {strides = array<i32>} : memref<34x48x128xbf16, #tpu.memory_space<vmem>>, vector<34x48x128xbf16>,
    %cst_2 = arith.constant 0.000000e+00 : bf16
    %2 = vector.broadcast %cst_2 : bf16 to vector<34x48x128xbf16>
    %c0_3 = arith.constant 0 : index
    %c0_4 = arith.constant 0 : index
    %c0_5 = arith.constant 0 : index
    %3 = vector.load %arg16[%c0_3, %c0_4, %c0_5] : memref<34x48x128xbf16, #tpu.memory_space<vmem>>, vector<34x48x128xbf16>
    tpu.vector_store %arg16[%c0_3, %c0_4, %c0_5], %2 {strides = array<i32>} : memref<34x48x128xbf16, #tpu.memory_space<vmem>>, vector<34x48x128xbf16>,
    %cst_6 = arith.constant 0.000000e+00 : bf16
    %4 = vector.broadcast %cst_6 : bf16 to vector<18x32x128xbf16>
    %c0_7 = arith.constant 0 : index
    %c0_8 = arith.constant 0 : index
    %c0_9 = arith.constant 0 : index
    %5 = vector.load %arg17[%c0_7, %c0_8, %c0_9] : memref<18x32x128xbf16, #tpu.memory_space<vmem>>, vector<18x32x128xbf16>
    tpu.vector_store %arg17[%c0_7, %c0_8, %c0_9], %4 {strides = array<i32>} : memref<18x32x128xbf16, #tpu.memory_space<vmem>>, vector<18x32x128xbf16>,
    %cst_10 = arith.constant 0.000000e+00 : bf16
    %6 = vector.broadcast %cst_10 : bf16 to vector<18x32x128xbf16>
    %c0_11 = arith.constant 0 : index
    %c0_12 = arith.constant 0 : index
    %c0_13 = arith.constant 0 : index
    %7 = vector.load %arg18[%c0_11, %c0_12, %c0_13] : memref<18x32x128xbf16, #tpu.memory_space<vmem>>, vector<18x32x128xbf16>
    tpu.vector_store %arg18[%c0_11, %c0_12, %c0_13], %6 {strides = array<i32>} : memref<18x32x128xbf16, #tpu.memory_space<vmem>>, vector<18x32x128xbf16>,
    %cst_14 = arith.constant 0.000000e+00 : bf16
    %8 = vector.broadcast %cst_14 : bf16 to vector<10x24x128xbf16>
    %c0_15 = arith.constant 0 : index
    %c0_16 = arith.constant 0 : index
    %c0_17 = arith.constant 0 : index
    %9 = vector.load %arg19[%c0_15, %c0_16, %c0_17] : memref<10x24x128xbf16, #tpu.memory_space<vmem>>, vector<10x24x128xbf16>
    tpu.vector_store %arg19[%c0_15, %c0_16, %c0_17], %8 {strides = array<i32>} : memref<10x24x128xbf16, #tpu.memory_space<vmem>>, vector<10x24x128xbf16>,
    %c0_18 = arith.constant 0 : index
    %c0_19 = arith.constant 0 : index
    %c0_20 = arith.constant 0 : index
    %c0_21 = arith.constant 0 : index
    %10 = vector.load %arg1[%c0_18, %c0_19, %c0_20, %c0_21] : memref<1x32x32x8xf32, #tpu.memory_space<vmem>>, vector<1x32x32x8xf32>
    %11 = vector.shape_cast %10 : vector<1x32x32x8xf32> to vector<32x32x8xf32>
    %12 = arith.truncf %11 : vector<32x32x8xf32> to vector<32x32x8xbf16>
    %c1 = arith.constant 1 : index
    %c8 = arith.constant 8 : index
    %c0_22 = arith.constant 0 : index
    %13 = vector.load %arg15[%c1, %c8, %c0_22] : memref<34x48x128xbf16, #tpu.memory_space<vmem>>, vector<32x32x8xbf16>
    tpu.vector_store %arg15[%c1, %c8, %c0_22], %12 {strides = array<i32>} : memref<34x48x128xbf16, #tpu.memory_space<vmem>>, vector<32x32x8xbf16>,
    %c0_i32 = arith.constant 0 : i32
    %c8_i32 = arith.constant 8 : i32
    %14 = arith.addi %c0_i32, %c8_i32 : i32
    %c1_i32 = arith.constant 1 : i32
    scf.for %arg20 = %c0_i32 to %14 step %c1_i32  : i32 {
      %c4_i32 = arith.constant 4 : i32
      %182 = arith.muli %arg20, %c4_i32 : i32
      %cst_150 = arith.constant 0.000000e+00 : f32
      %183 = vector.broadcast %cst_150 : f32 to vector<128x128xf32>
      %184 = arith.index_cast %182 : i32 to index
      %c7_151 = arith.constant 7 : index
      %c0_152 = arith.constant 0 : index
      %185 = vector.load %arg15[%184, %c7_151, %c0_152] : memref<34x48x128xbf16, #tpu.memory_space<vmem>>, vector<6x32x128xbf16>
      %186 = vector.extract_strided_slice %185 {offsets = [0, 0, 0], sizes = [4, 32, 128], strides = [1, 1, 1]} : vector<6x32x128xbf16> to vector<4x32x128xbf16>
      %187 = vector.shape_cast %186 : vector<4x32x128xbf16> to vector<128x128xbf16>
      %c0_153 = arith.constant 0 : index
      %c0_154 = arith.constant 0 : index
      %c0_155 = arith.constant 0 : index
      %188 = vector.load %arg2[%c0_153, %c0_154, %c0_155] : memref<9x128x128xbf16, #tpu.memory_space<vmem>>, vector<1x128x128xbf16>
      %189 = vector.shape_cast %188 : vector<1x128x128xbf16> to vector<128x128xbf16>
      %cst_156 = arith.constant dense<0.000000e+00> : vector<128x128xf32>
      %190 = tpu.matmul %187, %189, %cst_156 {dimension_numbers = #tpu.dot_dimension_numbers<[1], [0], [0], [1], [0, 0, 1, 1], [], []>} : vector<128x128xbf16>, vector<128x128xbf16>, vector<128x128xf32> -> vector<128x128xf32>
      %191 = arith.addf %183, %190 : vector<128x128xf32>
      %192 = vector.extract_strided_slice %185 {offsets = [1, 0, 0], sizes = [4, 32, 128], strides = [1, 1, 1]} : vector<6x32x128xbf16> to vector<4x32x128xbf16>
      %193 = vector.shape_cast %192 : vector<4x32x128xbf16> to vector<128x128xbf16>
      %c3_157 = arith.constant 3 : index
      %c0_158 = arith.constant 0 : index
      %c0_159 = arith.constant 0 : index
      %194 = vector.load %arg2[%c3_157, %c0_158, %c0_159] : memref<9x128x128xbf16, #tpu.memory_space<vmem>>, vector<1x128x128xbf16>
      %195 = vector.shape_cast %194 : vector<1x128x128xbf16> to vector<128x128xbf16>
      %cst_160 = arith.constant dense<0.000000e+00> : vector<128x128xf32>
      %196 = tpu.matmul %193, %195, %cst_160 {dimension_numbers = #tpu.dot_dimension_numbers<[1], [0], [0], [1], [0, 0, 1, 1], [], []>} : vector<128x128xbf16>, vector<128x128xbf16>, vector<128x128xf32> -> vector<128x128xf32>
      %197 = arith.addf %191, %196 : vector<128x128xf32>
      %198 = vector.extract_strided_slice %185 {offsets = [2, 0, 0], sizes = [4, 32, 128], strides = [1, 1, 1]} : vector<6x32x128xbf16> to vector<4x32x128xbf16>
      %199 = vector.shape_cast %198 : vector<4x32x128xbf16> to vector<128x128xbf16>
      %c6_161 = arith.constant 6 : index
      %c0_162 = arith.constant 0 : index
      %c0_163 = arith.constant 0 : index
      %200 = vector.load %arg2[%c6_161, %c0_162, %c0_163] : memref<9x128x128xbf16, #tpu.memory_space<vmem>>, vector<1x128x128xbf16>
      %201 = vector.shape_cast %200 : vector<1x128x128xbf16> to vector<128x128xbf16>
      %cst_164 = arith.constant dense<0.000000e+00> : vector<128x128xf32>
      %202 = tpu.matmul %199, %201, %cst_164 {dimension_numbers = #tpu.dot_dimension_numbers<[1], [0], [0], [1], [0, 0, 1, 1], [], []>} : vector<128x128xbf16>, vector<128x128xbf16>, vector<128x128xf32> -> vector<128x128xf32>
      %203 = arith.addf %197, %202 : vector<128x128xf32>
      %204 = arith.index_cast %182 : i32 to index
      %c8_165 = arith.constant 8 : index
      %c0_166 = arith.constant 0 : index
      %205 = vector.load %arg15[%204, %c8_165, %c0_166] : memref<34x48x128xbf16, #tpu.memory_space<vmem>>, vector<6x32x128xbf16>
      %206 = vector.extract_strided_slice %205 {offsets = [0, 0, 0], sizes = [4, 32, 128], strides = [1, 1, 1]} : vector<6x32x128xbf16> to vector<4x32x128xbf16>
      %207 = vector.shape_cast %206 : vector<4x32x128xbf16> to vector<128x128xbf16>
      %c1_167 = arith.constant 1 : index
      %c0_168 = arith.constant 0 : index
      %c0_169 = arith.constant 0 : index
      %208 = vector.load %arg2[%c1_167, %c0_168, %c0_169] : memref<9x128x128xbf16, #tpu.memory_space<vmem>>, vector<1x128x128xbf16>
      %209 = vector.shape_cast %208 : vector<1x128x128xbf16> to vector<128x128xbf16>
      %cst_170 = arith.constant dense<0.000000e+00> : vector<128x128xf32>
      %210 = tpu.matmul %207, %209, %cst_170 {dimension_numbers = #tpu.dot_dimension_numbers<[1], [0], [0], [1], [0, 0, 1, 1], [], []>} : vector<128x128xbf16>, vector<128x128xbf16>, vector<128x128xf32> -> vector<128x128xf32>
      %211 = arith.addf %203, %210 : vector<128x128xf32>
      %212 = vector.extract_strided_slice %205 {offsets = [1, 0, 0], sizes = [4, 32, 128], strides = [1, 1, 1]} : vector<6x32x128xbf16> to vector<4x32x128xbf16>
      %213 = vector.shape_cast %212 : vector<4x32x128xbf16> to vector<128x128xbf16>
      %c4_171 = arith.constant 4 : index
      %c0_172 = arith.constant 0 : index
      %c0_173 = arith.constant 0 : index
      %214 = vector.load %arg2[%c4_171, %c0_172, %c0_173] : memref<9x128x128xbf16, #tpu.memory_space<vmem>>, vector<1x128x128xbf16>
      %215 = vector.shape_cast %214 : vector<1x128x128xbf16> to vector<128x128xbf16>
      %cst_174 = arith.constant dense<0.000000e+00> : vector<128x128xf32>
      %216 = tpu.matmul %213, %215, %cst_174 {dimension_numbers = #tpu.dot_dimension_numbers<[1], [0], [0], [1], [0, 0, 1, 1], [], []>} : vector<128x128xbf16>, vector<128x128xbf16>, vector<128x128xf32> -> vector<128x128xf32>
      %217 = arith.addf %211, %216 : vector<128x128xf32>
      %218 = vector.extract_strided_slice %205 {offsets = [2, 0, 0], sizes = [4, 32, 128], strides = [1, 1, 1]} : vector<6x32x128xbf16> to vector<4x32x128xbf16>
      %219 = vector.shape_cast %218 : vector<4x32x128xbf16> to vector<128x128xbf16>
      %c7_175 = arith.constant 7 : index
      %c0_176 = arith.constant 0 : index
      %c0_177 = arith.constant 0 : index
      %220 = vector.load %arg2[%c7_175, %c0_176, %c0_177] : memref<9x128x128xbf16, #tpu.memory_space<vmem>>, vector<1x128x128xbf16>
      %221 = vector.shape_cast %220 : vector<1x128x128xbf16> to vector<128x128xbf16>
      %cst_178 = arith.constant dense<0.000000e+00> : vector<128x128xf32>
      %222 = tpu.matmul %219, %221, %cst_178 {dimension_numbers = #tpu.dot_dimension_numbers<[1], [0], [0], [1], [0, 0, 1, 1], [], []>} : vector<128x128xbf16>, vector<128x128xbf16>, vector<128x128xf32> -> vector<128x128xf32>
      %223 = arith.addf %217, %222 : vector<128x128xf32>
      %224 = arith.index_cast %182 : i32 to index
      %c9_179 = arith.constant 9 : index
      %c0_180 = arith.constant 0 : index
      %225 = vector.load %arg15[%224, %c9_179, %c0_180] : memref<34x48x128xbf16, #tpu.memory_space<vmem>>, vector<6x32x128xbf16>
      %226 = vector.extract_strided_slice %225 {offsets = [0, 0, 0], sizes = [4, 32, 128], strides = [1, 1, 1]} : vector<6x32x128xbf16> to vector<4x32x128xbf16>
      %227 = vector.shape_cast %226 : vector<4x32x128xbf16> to vector<128x128xbf16>
      %c2_181 = arith.constant 2 : index
      %c0_182 = arith.constant 0 : index
      %c0_183 = arith.constant 0 : index
      %228 = vector.load %arg2[%c2_181, %c0_182, %c0_183] : memref<9x128x128xbf16, #tpu.memory_space<vmem>>, vector<1x128x128xbf16>
      %229 = vector.shape_cast %228 : vector<1x128x128xbf16> to vector<128x128xbf16>
      %cst_184 = arith.constant dense<0.000000e+00> : vector<128x128xf32>
      %230 = tpu.matmul %227, %229, %cst_184 {dimension_numbers = #tpu.dot_dimension_numbers<[1], [0], [0], [1], [0, 0, 1, 1], [], []>} : vector<128x128xbf16>, vector<128x128xbf16>, vector<128x128xf32> -> vector<128x128xf32>
      %231 = arith.addf %223, %230 : vector<128x128xf32>
      %232 = vector.extract_strided_slice %225 {offsets = [1, 0, 0], sizes = [4, 32, 128], strides = [1, 1, 1]} : vector<6x32x128xbf16> to vector<4x32x128xbf16>
      %233 = vector.shape_cast %232 : vector<4x32x128xbf16> to vector<128x128xbf16>
      %c5_185 = arith.constant 5 : index
      %c0_186 = arith.constant 0 : index
      %c0_187 = arith.constant 0 : index
      %234 = vector.load %arg2[%c5_185, %c0_186, %c0_187] : memref<9x128x128xbf16, #tpu.memory_space<vmem>>, vector<1x128x128xbf16>
      %235 = vector.shape_cast %234 : vector<1x128x128xbf16> to vector<128x128xbf16>
      %cst_188 = arith.constant dense<0.000000e+00> : vector<128x128xf32>
      %236 = tpu.matmul %233, %235, %cst_188 {dimension_numbers = #tpu.dot_dimension_numbers<[1], [0], [0], [1], [0, 0, 1, 1], [], []>} : vector<128x128xbf16>, vector<128x128xbf16>, vector<128x128xf32> -> vector<128x128xf32>
      %237 = arith.addf %231, %236 : vector<128x128xf32>
      %238 = vector.extract_strided_slice %225 {offsets = [2, 0, 0], sizes = [4, 32, 128], strides = [1, 1, 1]} : vector<6x32x128xbf16> to vector<4x32x128xbf16>
      %239 = vector.shape_cast %238 : vector<4x32x128xbf16> to vector<128x128xbf16>
      %c8_189 = arith.constant 8 : index
      %c0_190 = arith.constant 0 : index
      %c0_191 = arith.constant 0 : index
      %240 = vector.load %arg2[%c8_189, %c0_190, %c0_191] : memref<9x128x128xbf16, #tpu.memory_space<vmem>>, vector<1x128x128xbf16>
      %241 = vector.shape_cast %240 : vector<1x128x128xbf16> to vector<128x128xbf16>
      %cst_192 = arith.constant dense<0.000000e+00> : vector<128x128xf32>
      %242 = tpu.matmul %239, %241, %cst_192 {dimension_numbers = #tpu.dot_dimension_numbers<[1], [0], [0], [1], [0, 0, 1, 1], [], []>} : vector<128x128xbf16>, vector<128x128xbf16>, vector<128x128xf32> -> vector<128x128xf32>
      %243 = arith.addf %237, %242 : vector<128x128xf32>
      %c0_193 = arith.constant 0 : index
      %c0_194 = arith.constant 0 : index
      %244 = vector.load %arg3[%c0_193, %c0_194] : memref<1x128xf32, #tpu.memory_space<vmem>>, vector<1x128xf32>
      %245 = vector.broadcast %244 : vector<1x128xf32> to vector<128x128xf32>
      %246 = arith.addf %243, %245 : vector<128x128xf32>
      %cst_195 = arith.constant 0.000000e+00 : f32
      %247 = vector.broadcast %cst_195 : f32 to vector<128x128xf32>
      %248 = arith.maximumf %246, %247 : vector<128x128xf32>
      %249 = vector.shape_cast %248 : vector<128x128xf32> to vector<4x32x128xf32>
      %250 = arith.truncf %249 : vector<4x32x128xf32> to vector<4x32x128xbf16>
      %c1_i32_196 = arith.constant 1 : i32
      %251 = arith.addi %c1_i32_196, %182 : i32
      %252 = arith.index_cast %251 : i32 to index
      %c8_197 = arith.constant 8 : index
      %c0_198 = arith.constant 0 : index
      %253 = vector.load %arg16[%252, %c8_197, %c0_198] : memref<34x48x128xbf16, #tpu.memory_space<vmem>>, vector<4x32x128xbf16>
      tpu.vector_store %arg16[%252, %c8_197, %c0_198], %250 {strides = array<i32>} : memref<34x48x128xbf16, #tpu.memory_space<vmem>>, vector<4x32x128xbf16>,
    }
    %c8_i32_23 = arith.constant 8 : i32
    %c0_i32_24 = arith.constant 0 : i32
    %c8_i32_25 = arith.constant 8 : i32
    %15 = arith.addi %c0_i32_24, %c8_i32_25 : i32
    %c1_i32_26 = arith.constant 1 : i32
    scf.for %arg20 = %c0_i32_24 to %15 step %c1_i32_26  : i32 {
      %c4_i32 = arith.constant 4 : i32
      %182 = arith.muli %arg20, %c4_i32 : i32
      %cst_150 = arith.constant 0.000000e+00 : f32
      %183 = vector.broadcast %cst_150 : f32 to vector<128x128xf32>
      %184 = arith.index_cast %182 : i32 to index
      %c7_151 = arith.constant 7 : index
      %c0_152 = arith.constant 0 : index
      %185 = vector.load %arg16[%184, %c7_151, %c0_152] : memref<34x48x128xbf16, #tpu.memory_space<vmem>>, vector<6x32x128xbf16>
      %186 = vector.extract_strided_slice %185 {offsets = [0, 0, 0], sizes = [4, 32, 128], strides = [1, 1, 1]} : vector<6x32x128xbf16> to vector<4x32x128xbf16>
      %187 = vector.shape_cast %186 : vector<4x32x128xbf16> to vector<128x128xbf16>
      %c0_153 = arith.constant 0 : index
      %c0_154 = arith.constant 0 : index
      %c0_155 = arith.constant 0 : index
      %188 = vector.load %arg4[%c0_153, %c0_154, %c0_155] : memref<9x128x128xbf16, #tpu.memory_space<vmem>>, vector<1x128x128xbf16>
      %189 = vector.shape_cast %188 : vector<1x128x128xbf16> to vector<128x128xbf16>
      %cst_156 = arith.constant dense<0.000000e+00> : vector<128x128xf32>
      %190 = tpu.matmul %187, %189, %cst_156 {dimension_numbers = #tpu.dot_dimension_numbers<[1], [0], [0], [1], [0, 0, 1, 1], [], []>} : vector<128x128xbf16>, vector<128x128xbf16>, vector<128x128xf32> -> vector<128x128xf32>
      %191 = arith.addf %183, %190 : vector<128x128xf32>
      %192 = vector.extract_strided_slice %185 {offsets = [1, 0, 0], sizes = [4, 32, 128], strides = [1, 1, 1]} : vector<6x32x128xbf16> to vector<4x32x128xbf16>
      %193 = vector.shape_cast %192 : vector<4x32x128xbf16> to vector<128x128xbf16>
      %c3_157 = arith.constant 3 : index
      %c0_158 = arith.constant 0 : index
      %c0_159 = arith.constant 0 : index
      %194 = vector.load %arg4[%c3_157, %c0_158, %c0_159] : memref<9x128x128xbf16, #tpu.memory_space<vmem>>, vector<1x128x128xbf16>
      %195 = vector.shape_cast %194 : vector<1x128x128xbf16> to vector<128x128xbf16>
      %cst_160 = arith.constant dense<0.000000e+00> : vector<128x128xf32>
      %196 = tpu.matmul %193, %195, %cst_160 {dimension_numbers = #tpu.dot_dimension_numbers<[1], [0], [0], [1], [0, 0, 1, 1], [], []>} : vector<128x128xbf16>, vector<128x128xbf16>, vector<128x128xf32> -> vector<128x128xf32>
      %197 = arith.addf %191, %196 : vector<128x128xf32>
      %198 = vector.extract_strided_slice %185 {offsets = [2, 0, 0], sizes = [4, 32, 128], strides = [1, 1, 1]} : vector<6x32x128xbf16> to vector<4x32x128xbf16>
      %199 = vector.shape_cast %198 : vector<4x32x128xbf16> to vector<128x128xbf16>
      %c6_161 = arith.constant 6 : index
      %c0_162 = arith.constant 0 : index
      %c0_163 = arith.constant 0 : index
      %200 = vector.load %arg4[%c6_161, %c0_162, %c0_163] : memref<9x128x128xbf16, #tpu.memory_space<vmem>>, vector<1x128x128xbf16>
      %201 = vector.shape_cast %200 : vector<1x128x128xbf16> to vector<128x128xbf16>
      %cst_164 = arith.constant dense<0.000000e+00> : vector<128x128xf32>
      %202 = tpu.matmul %199, %201, %cst_164 {dimension_numbers = #tpu.dot_dimension_numbers<[1], [0], [0], [1], [0, 0, 1, 1], [], []>} : vector<128x128xbf16>, vector<128x128xbf16>, vector<128x128xf32> -> vector<128x128xf32>
      %203 = arith.addf %197, %202 : vector<128x128xf32>
      %204 = arith.index_cast %182 : i32 to index
      %c8_165 = arith.constant 8 : index
      %c0_166 = arith.constant 0 : index
      %205 = vector.load %arg16[%204, %c8_165, %c0_166] : memref<34x48x128xbf16, #tpu.memory_space<vmem>>, vector<6x32x128xbf16>
      %206 = vector.extract_strided_slice %205 {offsets = [0, 0, 0], sizes = [4, 32, 128], strides = [1, 1, 1]} : vector<6x32x128xbf16> to vector<4x32x128xbf16>
      %207 = vector.shape_cast %206 : vector<4x32x128xbf16> to vector<128x128xbf16>
      %c1_167 = arith.constant 1 : index
      %c0_168 = arith.constant 0 : index
      %c0_169 = arith.constant 0 : index
      %208 = vector.load %arg4[%c1_167, %c0_168, %c0_169] : memref<9x128x128xbf16, #tpu.memory_space<vmem>>, vector<1x128x128xbf16>
      %209 = vector.shape_cast %208 : vector<1x128x128xbf16> to vector<128x128xbf16>
      %cst_170 = arith.constant dense<0.000000e+00> : vector<128x128xf32>
      %210 = tpu.matmul %207, %209, %cst_170 {dimension_numbers = #tpu.dot_dimension_numbers<[1], [0], [0], [1], [0, 0, 1, 1], [], []>} : vector<128x128xbf16>, vector<128x128xbf16>, vector<128x128xf32> -> vector<128x128xf32>
      %211 = arith.addf %203, %210 : vector<128x128xf32>
      %212 = vector.extract_strided_slice %205 {offsets = [1, 0, 0], sizes = [4, 32, 128], strides = [1, 1, 1]} : vector<6x32x128xbf16> to vector<4x32x128xbf16>
      %213 = vector.shape_cast %212 : vector<4x32x128xbf16> to vector<128x128xbf16>
      %c4_171 = arith.constant 4 : index
      %c0_172 = arith.constant 0 : index
      %c0_173 = arith.constant 0 : index
      %214 = vector.load %arg4[%c4_171, %c0_172, %c0_173] : memref<9x128x128xbf16, #tpu.memory_space<vmem>>, vector<1x128x128xbf16>
      %215 = vector.shape_cast %214 : vector<1x128x128xbf16> to vector<128x128xbf16>
      %cst_174 = arith.constant dense<0.000000e+00> : vector<128x128xf32>
      %216 = tpu.matmul %213, %215, %cst_174 {dimension_numbers = #tpu.dot_dimension_numbers<[1], [0], [0], [1], [0, 0, 1, 1], [], []>} : vector<128x128xbf16>, vector<128x128xbf16>, vector<128x128xf32> -> vector<128x128xf32>
      %217 = arith.addf %211, %216 : vector<128x128xf32>
      %218 = vector.extract_strided_slice %205 {offsets = [2, 0, 0], sizes = [4, 32, 128], strides = [1, 1, 1]} : vector<6x32x128xbf16> to vector<4x32x128xbf16>
      %219 = vector.shape_cast %218 : vector<4x32x128xbf16> to vector<128x128xbf16>
      %c7_175 = arith.constant 7 : index
      %c0_176 = arith.constant 0 : index
      %c0_177 = arith.constant 0 : index
      %220 = vector.load %arg4[%c7_175, %c0_176, %c0_177] : memref<9x128x128xbf16, #tpu.memory_space<vmem>>, vector<1x128x128xbf16>
      %221 = vector.shape_cast %220 : vector<1x128x128xbf16> to vector<128x128xbf16>
      %cst_178 = arith.constant dense<0.000000e+00> : vector<128x128xf32>
      %222 = tpu.matmul %219, %221, %cst_178 {dimension_numbers = #tpu.dot_dimension_numbers<[1], [0], [0], [1], [0, 0, 1, 1], [], []>} : vector<128x128xbf16>, vector<128x128xbf16>, vector<128x128xf32> -> vector<128x128xf32>
      %223 = arith.addf %217, %222 : vector<128x128xf32>
      %224 = arith.index_cast %182 : i32 to index
      %c9_179 = arith.constant 9 : index
      %c0_180 = arith.constant 0 : index
      %225 = vector.load %arg16[%224, %c9_179, %c0_180] : memref<34x48x128xbf16, #tpu.memory_space<vmem>>, vector<6x32x128xbf16>
      %226 = vector.extract_strided_slice %225 {offsets = [0, 0, 0], sizes = [4, 32, 128], strides = [1, 1, 1]} : vector<6x32x128xbf16> to vector<4x32x128xbf16>
      %227 = vector.shape_cast %226 : vector<4x32x128xbf16> to vector<128x128xbf16>
      %c2_181 = arith.constant 2 : index
      %c0_182 = arith.constant 0 : index
      %c0_183 = arith.constant 0 : index
      %228 = vector.load %arg4[%c2_181, %c0_182, %c0_183] : memref<9x128x128xbf16, #tpu.memory_space<vmem>>, vector<1x128x128xbf16>
      %229 = vector.shape_cast %228 : vector<1x128x128xbf16> to vector<128x128xbf16>
      %cst_184 = arith.constant dense<0.000000e+00> : vector<128x128xf32>
      %230 = tpu.matmul %227, %229, %cst_184 {dimension_numbers = #tpu.dot_dimension_numbers<[1], [0], [0], [1], [0, 0, 1, 1], [], []>} : vector<128x128xbf16>, vector<128x128xbf16>, vector<128x128xf32> -> vector<128x128xf32>
      %231 = arith.addf %223, %230 : vector<128x128xf32>
      %232 = vector.extract_strided_slice %225 {offsets = [1, 0, 0], sizes = [4, 32, 128], strides = [1, 1, 1]} : vector<6x32x128xbf16> to vector<4x32x128xbf16>
      %233 = vector.shape_cast %232 : vector<4x32x128xbf16> to vector<128x128xbf16>
      %c5_185 = arith.constant 5 : index
      %c0_186 = arith.constant 0 : index
      %c0_187 = arith.constant 0 : index
      %234 = vector.load %arg4[%c5_185, %c0_186, %c0_187] : memref<9x128x128xbf16, #tpu.memory_space<vmem>>, vector<1x128x128xbf16>
      %235 = vector.shape_cast %234 : vector<1x128x128xbf16> to vector<128x128xbf16>
      %cst_188 = arith.constant dense<0.000000e+00> : vector<128x128xf32>
      %236 = tpu.matmul %233, %235, %cst_188 {dimension_numbers = #tpu.dot_dimension_numbers<[1], [0], [0], [1], [0, 0, 1, 1], [], []>} : vector<128x128xbf16>, vector<128x128xbf16>, vector<128x128xf32> -> vector<128x128xf32>
      %237 = arith.addf %231, %236 : vector<128x128xf32>
      %238 = vector.extract_strided_slice %225 {offsets = [2, 0, 0], sizes = [4, 32, 128], strides = [1, 1, 1]} : vector<6x32x128xbf16> to vector<4x32x128xbf16>
      %239 = vector.shape_cast %238 : vector<4x32x128xbf16> to vector<128x128xbf16>
      %c8_189 = arith.constant 8 : index
      %c0_190 = arith.constant 0 : index
      %c0_191 = arith.constant 0 : index
      %240 = vector.load %arg4[%c8_189, %c0_190, %c0_191] : memref<9x128x128xbf16, #tpu.memory_space<vmem>>, vector<1x128x128xbf16>
      %241 = vector.shape_cast %240 : vector<1x128x128xbf16> to vector<128x128xbf16>
      %cst_192 = arith.constant dense<0.000000e+00> : vector<128x128xf32>
      %242 = tpu.matmul %239, %241, %cst_192 {dimension_numbers = #tpu.dot_dimension_numbers<[1], [0], [0], [1], [0, 0, 1, 1], [], []>} : vector<128x128xbf16>, vector<128x128xbf16>, vector<128x128xf32> -> vector<128x128xf32>
      %243 = arith.addf %237, %242 : vector<128x128xf32>
      %c0_193 = arith.constant 0 : index
      %c0_194 = arith.constant 0 : index
      %244 = vector.load %arg5[%c0_193, %c0_194] : memref<1x128xf32, #tpu.memory_space<vmem>>, vector<1x128xf32>
      %245 = vector.broadcast %244 : vector<1x128xf32> to vector<128x128xf32>
      %246 = arith.addf %243, %245 : vector<128x128xf32>
      %cst_195 = arith.constant 0.000000e+00 : f32
      %247 = vector.broadcast %cst_195 : f32 to vector<128x128xf32>
      %248 = arith.maximumf %246, %247 : vector<128x128xf32>
      %249 = vector.shape_cast %248 : vector<128x128xf32> to vector<4x32x128xf32>
      %250 = arith.truncf %249 : vector<4x32x128xf32> to vector<4x32x128xbf16>
      %c1_i32_196 = arith.constant 1 : i32
      %251 = arith.addi %c1_i32_196, %182 : i32
      %252 = arith.index_cast %251 : i32 to index
      %c8_197 = arith.constant 8 : index
      %c0_198 = arith.constant 0 : index
      %253 = vector.load %arg15[%252, %c8_197, %c0_198] : memref<34x48x128xbf16, #tpu.memory_space<vmem>>, vector<4x32x128xbf16>
      tpu.vector_store %arg15[%252, %c8_197, %c0_198], %250 {strides = array<i32>} : memref<34x48x128xbf16, #tpu.memory_space<vmem>>, vector<4x32x128xbf16>,
    }
    %c8_i32_27 = arith.constant 8 : i32
    %c1_28 = arith.constant 1 : index
    %c8_29 = arith.constant 8 : index
    %c0_30 = arith.constant 0 : index
    %16 = vector.load %arg15[%c1_28, %c8_29, %c0_30] : memref<34x48x128xbf16, #tpu.memory_space<vmem>>, vector<8x32x128xbf16>
    %17 = vector.shape_cast %16 : vector<8x32x128xbf16> to vector<4x2x32x128xbf16>
    %18 = vector.extract_strided_slice %17 {offsets = [0, 0, 0, 0], sizes = [4, 1, 32, 128], strides = [1, 1, 1, 1]} : vector<4x2x32x128xbf16> to vector<4x1x32x128xbf16>
    %19 = vector.shape_cast %18 : vector<4x1x32x128xbf16> to vector<4x32x128xbf16>
    %20 = vector.extract_strided_slice %17 {offsets = [0, 1, 0, 0], sizes = [4, 1, 32, 128], strides = [1, 1, 1, 1]} : vector<4x2x32x128xbf16> to vector<4x1x32x128xbf16>
    %21 = vector.shape_cast %20 : vector<4x1x32x128xbf16> to vector<4x32x128xbf16>
    %22 = arith.maximumf %19, %21 : vector<4x32x128xbf16>
    %23 = vector.shape_cast %22 : vector<4x32x128xbf16> to vector<128x128xbf16>
    %c0_31 = arith.constant 0 : index
    %c0_32 = arith.constant 0 : index
    %24 = vector.load %arg12[%c0_31, %c0_32] : memref<64x128xbf16, #tpu.memory_space<vmem>>, vector<64x128xbf16>
    %cst_33 = arith.constant dense<0.000000e+00> : vector<64x128xf32>
    %25 = tpu.matmul %24, %23, %cst_33 {dimension_numbers = #tpu.dot_dimension_numbers<[1], [0], [0], [1], [0, 0, 1, 1], [], []>} : vector<64x128xbf16>, vector<128x128xbf16>, vector<64x128xf32> -> vector<64x128xf32>
    %c0_34 = arith.constant 0 : index
    %c0_35 = arith.constant 0 : index
    %26 = vector.load %arg13[%c0_34, %c0_35] : memref<64x128xbf16, #tpu.memory_space<vmem>>, vector<64x128xbf16>
    %cst_36 = arith.constant dense<0.000000e+00> : vector<64x128xf32>
    %27 = tpu.matmul %26, %23, %cst_36 {dimension_numbers = #tpu.dot_dimension_numbers<[1], [0], [0], [1], [0, 0, 1, 1], [], []>} : vector<64x128xbf16>, vector<128x128xbf16>, vector<64x128xf32> -> vector<64x128xf32>
    %28 = arith.maximumf %25, %27 : vector<64x128xf32>
    %29 = vector.shape_cast %28 : vector<64x128xf32> to vector<4x16x128xf32>
    %30 = arith.truncf %29 : vector<4x16x128xf32> to vector<4x16x128xbf16>
    %c1_37 = arith.constant 1 : index
    %c8_38 = arith.constant 8 : index
    %c0_39 = arith.constant 0 : index
    %31 = vector.load %arg17[%c1_37, %c8_38, %c0_39] : memref<18x32x128xbf16, #tpu.memory_space<vmem>>, vector<4x16x128xbf16>
    tpu.vector_store %arg17[%c1_37, %c8_38, %c0_39], %30 {strides = array<i32>} : memref<18x32x128xbf16, #tpu.memory_space<vmem>>, vector<4x16x128xbf16>,
    %c9 = arith.constant 9 : index
    %c8_40 = arith.constant 8 : index
    %c0_41 = arith.constant 0 : index
    %32 = vector.load %arg15[%c9, %c8_40, %c0_41] : memref<34x48x128xbf16, #tpu.memory_space<vmem>>, vector<8x32x128xbf16>
    %33 = vector.shape_cast %32 : vector<8x32x128xbf16> to vector<4x2x32x128xbf16>
    %34 = vector.extract_strided_slice %33 {offsets = [0, 0, 0, 0], sizes = [4, 1, 32, 128], strides = [1, 1, 1, 1]} : vector<4x2x32x128xbf16> to vector<4x1x32x128xbf16>
    %35 = vector.shape_cast %34 : vector<4x1x32x128xbf16> to vector<4x32x128xbf16>
    %36 = vector.extract_strided_slice %33 {offsets = [0, 1, 0, 0], sizes = [4, 1, 32, 128], strides = [1, 1, 1, 1]} : vector<4x2x32x128xbf16> to vector<4x1x32x128xbf16>
    %37 = vector.shape_cast %36 : vector<4x1x32x128xbf16> to vector<4x32x128xbf16>
    %38 = arith.maximumf %35, %37 : vector<4x32x128xbf16>
    %39 = vector.shape_cast %38 : vector<4x32x128xbf16> to vector<128x128xbf16>
    %c0_42 = arith.constant 0 : index
    %c0_43 = arith.constant 0 : index
    %40 = vector.load %arg12[%c0_42, %c0_43] : memref<64x128xbf16, #tpu.memory_space<vmem>>, vector<64x128xbf16>
    %cst_44 = arith.constant dense<0.000000e+00> : vector<64x128xf32>
    %41 = tpu.matmul %40, %39, %cst_44 {dimension_numbers = #tpu.dot_dimension_numbers<[1], [0], [0], [1], [0, 0, 1, 1], [], []>} : vector<64x128xbf16>, vector<128x128xbf16>, vector<64x128xf32> -> vector<64x128xf32>
    %c0_45 = arith.constant 0 : index
    %c0_46 = arith.constant 0 : index
    %42 = vector.load %arg13[%c0_45, %c0_46] : memref<64x128xbf16, #tpu.memory_space<vmem>>, vector<64x128xbf16>
    %cst_47 = arith.constant dense<0.000000e+00> : vector<64x128xf32>
    %43 = tpu.matmul %42, %39, %cst_47 {dimension_numbers = #tpu.dot_dimension_numbers<[1], [0], [0], [1], [0, 0, 1, 1], [], []>} : vector<64x128xbf16>, vector<128x128xbf16>, vector<64x128xf32> -> vector<64x128xf32>
    %44 = arith.maximumf %41, %43 : vector<64x128xf32>
    %45 = vector.shape_cast %44 : vector<64x128xf32> to vector<4x16x128xf32>
    %46 = arith.truncf %45 : vector<4x16x128xf32> to vector<4x16x128xbf16>
    %c5 = arith.constant 5 : index
    %c8_48 = arith.constant 8 : index
    %c0_49 = arith.constant 0 : index
    %47 = vector.load %arg17[%c5, %c8_48, %c0_49] : memref<18x32x128xbf16, #tpu.memory_space<vmem>>, vector<4x16x128xbf16>
    tpu.vector_store %arg17[%c5, %c8_48, %c0_49], %46 {strides = array<i32>} : memref<18x32x128xbf16, #tpu.memory_space<vmem>>, vector<4x16x128xbf16>,
    %c17 = arith.constant 17 : index
    %c8_50 = arith.constant 8 : index
    %c0_51 = arith.constant 0 : index
    %48 = vector.load %arg15[%c17, %c8_50, %c0_51] : memref<34x48x128xbf16, #tpu.memory_space<vmem>>, vector<8x32x128xbf16>
    %49 = vector.shape_cast %48 : vector<8x32x128xbf16> to vector<4x2x32x128xbf16>
    %50 = vector.extract_strided_slice %49 {offsets = [0, 0, 0, 0], sizes = [4, 1, 32, 128], strides = [1, 1, 1, 1]} : vector<4x2x32x128xbf16> to vector<4x1x32x128xbf16>
    %51 = vector.shape_cast %50 : vector<4x1x32x128xbf16> to vector<4x32x128xbf16>
    %52 = vector.extract_strided_slice %49 {offsets = [0, 1, 0, 0], sizes = [4, 1, 32, 128], strides = [1, 1, 1, 1]} : vector<4x2x32x128xbf16> to vector<4x1x32x128xbf16>
    %53 = vector.shape_cast %52 : vector<4x1x32x128xbf16> to vector<4x32x128xbf16>
    %54 = arith.maximumf %51, %53 : vector<4x32x128xbf16>
    %55 = vector.shape_cast %54 : vector<4x32x128xbf16> to vector<128x128xbf16>
    %c0_52 = arith.constant 0 : index
    %c0_53 = arith.constant 0 : index
    %56 = vector.load %arg12[%c0_52, %c0_53] : memref<64x128xbf16, #tpu.memory_space<vmem>>, vector<64x128xbf16>
    %cst_54 = arith.constant dense<0.000000e+00> : vector<64x128xf32>
    %57 = tpu.matmul %56, %55, %cst_54 {dimension_numbers = #tpu.dot_dimension_numbers<[1], [0], [0], [1], [0, 0, 1, 1], [], []>} : vector<64x128xbf16>, vector<128x128xbf16>, vector<64x128xf32> -> vector<64x128xf32>
    %c0_55 = arith.constant 0 : index
    %c0_56 = arith.constant 0 : index
    %58 = vector.load %arg13[%c0_55, %c0_56] : memref<64x128xbf16, #tpu.memory_space<vmem>>, vector<64x128xbf16>
    %cst_57 = arith.constant dense<0.000000e+00> : vector<64x128xf32>
    %59 = tpu.matmul %58, %55, %cst_57 {dimension_numbers = #tpu.dot_dimension_numbers<[1], [0], [0], [1], [0, 0, 1, 1], [], []>} : vector<64x128xbf16>, vector<128x128xbf16>, vector<64x128xf32> -> vector<64x128xf32>
    %60 = arith.maximumf %57, %59 : vector<64x128xf32>
    %61 = vector.shape_cast %60 : vector<64x128xf32> to vector<4x16x128xf32>
    %62 = arith.truncf %61 : vector<4x16x128xf32> to vector<4x16x128xbf16>
    %c9_58 = arith.constant 9 : index
    %c8_59 = arith.constant 8 : index
    %c0_60 = arith.constant 0 : index
    %63 = vector.load %arg17[%c9_58, %c8_59, %c0_60] : memref<18x32x128xbf16, #tpu.memory_space<vmem>>, vector<4x16x128xbf16>
    tpu.vector_store %arg17[%c9_58, %c8_59, %c0_60], %62 {strides = array<i32>} : memref<18x32x128xbf16, #tpu.memory_space<vmem>>, vector<4x16x128xbf16>,
    %c25 = arith.constant 25 : index
    %c8_61 = arith.constant 8 : index
    %c0_62 = arith.constant 0 : index
    %64 = vector.load %arg15[%c25, %c8_61, %c0_62] : memref<34x48x128xbf16, #tpu.memory_space<vmem>>, vector<8x32x128xbf16>
    %65 = vector.shape_cast %64 : vector<8x32x128xbf16> to vector<4x2x32x128xbf16>
    %66 = vector.extract_strided_slice %65 {offsets = [0, 0, 0, 0], sizes = [4, 1, 32, 128], strides = [1, 1, 1, 1]} : vector<4x2x32x128xbf16> to vector<4x1x32x128xbf16>
    %67 = vector.shape_cast %66 : vector<4x1x32x128xbf16> to vector<4x32x128xbf16>
    %68 = vector.extract_strided_slice %65 {offsets = [0, 1, 0, 0], sizes = [4, 1, 32, 128], strides = [1, 1, 1, 1]} : vector<4x2x32x128xbf16> to vector<4x1x32x128xbf16>
    %69 = vector.shape_cast %68 : vector<4x1x32x128xbf16> to vector<4x32x128xbf16>
    %70 = arith.maximumf %67, %69 : vector<4x32x128xbf16>
    %71 = vector.shape_cast %70 : vector<4x32x128xbf16> to vector<128x128xbf16>
    %c0_63 = arith.constant 0 : index
    %c0_64 = arith.constant 0 : index
    %72 = vector.load %arg12[%c0_63, %c0_64] : memref<64x128xbf16, #tpu.memory_space<vmem>>, vector<64x128xbf16>
    %cst_65 = arith.constant dense<0.000000e+00> : vector<64x128xf32>
    %73 = tpu.matmul %72, %71, %cst_65 {dimension_numbers = #tpu.dot_dimension_numbers<[1], [0], [0], [1], [0, 0, 1, 1], [], []>} : vector<64x128xbf16>, vector<128x128xbf16>, vector<64x128xf32> -> vector<64x128xf32>
    %c0_66 = arith.constant 0 : index
    %c0_67 = arith.constant 0 : index
    %74 = vector.load %arg13[%c0_66, %c0_67] : memref<64x128xbf16, #tpu.memory_space<vmem>>, vector<64x128xbf16>
    %cst_68 = arith.constant dense<0.000000e+00> : vector<64x128xf32>
    %75 = tpu.matmul %74, %71, %cst_68 {dimension_numbers = #tpu.dot_dimension_numbers<[1], [0], [0], [1], [0, 0, 1, 1], [], []>} : vector<64x128xbf16>, vector<128x128xbf16>, vector<64x128xf32> -> vector<64x128xf32>
    %76 = arith.maximumf %73, %75 : vector<64x128xf32>
    %77 = vector.shape_cast %76 : vector<64x128xf32> to vector<4x16x128xf32>
    %78 = arith.truncf %77 : vector<4x16x128xf32> to vector<4x16x128xbf16>
    %c13 = arith.constant 13 : index
    %c8_69 = arith.constant 8 : index
    %c0_70 = arith.constant 0 : index
    %79 = vector.load %arg17[%c13, %c8_69, %c0_70] : memref<18x32x128xbf16, #tpu.memory_space<vmem>>, vector<4x16x128xbf16>
    tpu.vector_store %arg17[%c13, %c8_69, %c0_70], %78 {strides = array<i32>} : memref<18x32x128xbf16, #tpu.memory_space<vmem>>, vector<4x16x128xbf16>,
    %c0_i32_71 = arith.constant 0 : i32
    %c2_i32 = arith.constant 2 : i32
    %80 = arith.addi %c0_i32_71, %c2_i32 : i32
    %c1_i32_72 = arith.constant 1 : i32
    scf.for %arg20 = %c0_i32_71 to %80 step %c1_i32_72  : i32 {
      %c8_i32_150 = arith.constant 8 : i32
      %182 = arith.muli %arg20, %c8_i32_150 : i32
      %cst_151 = arith.constant 0.000000e+00 : f32
      %183 = vector.broadcast %cst_151 : f32 to vector<128x128xf32>
      %184 = arith.index_cast %182 : i32 to index
      %c7_152 = arith.constant 7 : index
      %c0_153 = arith.constant 0 : index
      %185 = vector.load %arg17[%184, %c7_152, %c0_153] : memref<18x32x128xbf16, #tpu.memory_space<vmem>>, vector<10x16x128xbf16>
      %186 = vector.extract_strided_slice %185 {offsets = [0, 0, 0], sizes = [8, 16, 128], strides = [1, 1, 1]} : vector<10x16x128xbf16> to vector<8x16x128xbf16>
      %187 = vector.shape_cast %186 : vector<8x16x128xbf16> to vector<128x128xbf16>
      %c0_154 = arith.constant 0 : index
      %c0_155 = arith.constant 0 : index
      %c0_156 = arith.constant 0 : index
      %188 = vector.load %arg6[%c0_154, %c0_155, %c0_156] : memref<9x128x128xbf16, #tpu.memory_space<vmem>>, vector<1x128x128xbf16>
      %189 = vector.shape_cast %188 : vector<1x128x128xbf16> to vector<128x128xbf16>
      %cst_157 = arith.constant dense<0.000000e+00> : vector<128x128xf32>
      %190 = tpu.matmul %187, %189, %cst_157 {dimension_numbers = #tpu.dot_dimension_numbers<[1], [0], [0], [1], [0, 0, 1, 1], [], []>} : vector<128x128xbf16>, vector<128x128xbf16>, vector<128x128xf32> -> vector<128x128xf32>
      %191 = arith.addf %183, %190 : vector<128x128xf32>
      %192 = vector.extract_strided_slice %185 {offsets = [1, 0, 0], sizes = [8, 16, 128], strides = [1, 1, 1]} : vector<10x16x128xbf16> to vector<8x16x128xbf16>
      %193 = vector.shape_cast %192 : vector<8x16x128xbf16> to vector<128x128xbf16>
      %c3_158 = arith.constant 3 : index
      %c0_159 = arith.constant 0 : index
      %c0_160 = arith.constant 0 : index
      %194 = vector.load %arg6[%c3_158, %c0_159, %c0_160] : memref<9x128x128xbf16, #tpu.memory_space<vmem>>, vector<1x128x128xbf16>
      %195 = vector.shape_cast %194 : vector<1x128x128xbf16> to vector<128x128xbf16>
      %cst_161 = arith.constant dense<0.000000e+00> : vector<128x128xf32>
      %196 = tpu.matmul %193, %195, %cst_161 {dimension_numbers = #tpu.dot_dimension_numbers<[1], [0], [0], [1], [0, 0, 1, 1], [], []>} : vector<128x128xbf16>, vector<128x128xbf16>, vector<128x128xf32> -> vector<128x128xf32>
      %197 = arith.addf %191, %196 : vector<128x128xf32>
      %198 = vector.extract_strided_slice %185 {offsets = [2, 0, 0], sizes = [8, 16, 128], strides = [1, 1, 1]} : vector<10x16x128xbf16> to vector<8x16x128xbf16>
      %199 = vector.shape_cast %198 : vector<8x16x128xbf16> to vector<128x128xbf16>
      %c6_162 = arith.constant 6 : index
      %c0_163 = arith.constant 0 : index
      %c0_164 = arith.constant 0 : index
      %200 = vector.load %arg6[%c6_162, %c0_163, %c0_164] : memref<9x128x128xbf16, #tpu.memory_space<vmem>>, vector<1x128x128xbf16>
      %201 = vector.shape_cast %200 : vector<1x128x128xbf16> to vector<128x128xbf16>
      %cst_165 = arith.constant dense<0.000000e+00> : vector<128x128xf32>
      %202 = tpu.matmul %199, %201, %cst_165 {dimension_numbers = #tpu.dot_dimension_numbers<[1], [0], [0], [1], [0, 0, 1, 1], [], []>} : vector<128x128xbf16>, vector<128x128xbf16>, vector<128x128xf32> -> vector<128x128xf32>
      %203 = arith.addf %197, %202 : vector<128x128xf32>
      %204 = arith.index_cast %182 : i32 to index
      %c8_166 = arith.constant 8 : index
      %c0_167 = arith.constant 0 : index
      %205 = vector.load %arg17[%204, %c8_166, %c0_167] : memref<18x32x128xbf16, #tpu.memory_space<vmem>>, vector<10x16x128xbf16>
      %206 = vector.extract_strided_slice %205 {offsets = [0, 0, 0], sizes = [8, 16, 128], strides = [1, 1, 1]} : vector<10x16x128xbf16> to vector<8x16x128xbf16>
      %207 = vector.shape_cast %206 : vector<8x16x128xbf16> to vector<128x128xbf16>
      %c1_168 = arith.constant 1 : index
      %c0_169 = arith.constant 0 : index
      %c0_170 = arith.constant 0 : index
      %208 = vector.load %arg6[%c1_168, %c0_169, %c0_170] : memref<9x128x128xbf16, #tpu.memory_space<vmem>>, vector<1x128x128xbf16>
      %209 = vector.shape_cast %208 : vector<1x128x128xbf16> to vector<128x128xbf16>
      %cst_171 = arith.constant dense<0.000000e+00> : vector<128x128xf32>
      %210 = tpu.matmul %207, %209, %cst_171 {dimension_numbers = #tpu.dot_dimension_numbers<[1], [0], [0], [1], [0, 0, 1, 1], [], []>} : vector<128x128xbf16>, vector<128x128xbf16>, vector<128x128xf32> -> vector<128x128xf32>
      %211 = arith.addf %203, %210 : vector<128x128xf32>
      %212 = vector.extract_strided_slice %205 {offsets = [1, 0, 0], sizes = [8, 16, 128], strides = [1, 1, 1]} : vector<10x16x128xbf16> to vector<8x16x128xbf16>
      %213 = vector.shape_cast %212 : vector<8x16x128xbf16> to vector<128x128xbf16>
      %c4_172 = arith.constant 4 : index
      %c0_173 = arith.constant 0 : index
      %c0_174 = arith.constant 0 : index
      %214 = vector.load %arg6[%c4_172, %c0_173, %c0_174] : memref<9x128x128xbf16, #tpu.memory_space<vmem>>, vector<1x128x128xbf16>
      %215 = vector.shape_cast %214 : vector<1x128x128xbf16> to vector<128x128xbf16>
      %cst_175 = arith.constant dense<0.000000e+00> : vector<128x128xf32>
      %216 = tpu.matmul %213, %215, %cst_175 {dimension_numbers = #tpu.dot_dimension_numbers<[1], [0], [0], [1], [0, 0, 1, 1], [], []>} : vector<128x128xbf16>, vector<128x128xbf16>, vector<128x128xf32> -> vector<128x128xf32>
      %217 = arith.addf %211, %216 : vector<128x128xf32>
      %218 = vector.extract_strided_slice %205 {offsets = [2, 0, 0], sizes = [8, 16, 128], strides = [1, 1, 1]} : vector<10x16x128xbf16> to vector<8x16x128xbf16>
      %219 = vector.shape_cast %218 : vector<8x16x128xbf16> to vector<128x128xbf16>
      %c7_176 = arith.constant 7 : index
      %c0_177 = arith.constant 0 : index
      %c0_178 = arith.constant 0 : index
      %220 = vector.load %arg6[%c7_176, %c0_177, %c0_178] : memref<9x128x128xbf16, #tpu.memory_space<vmem>>, vector<1x128x128xbf16>
      %221 = vector.shape_cast %220 : vector<1x128x128xbf16> to vector<128x128xbf16>
      %cst_179 = arith.constant dense<0.000000e+00> : vector<128x128xf32>
      %222 = tpu.matmul %219, %221, %cst_179 {dimension_numbers = #tpu.dot_dimension_numbers<[1], [0], [0], [1], [0, 0, 1, 1], [], []>} : vector<128x128xbf16>, vector<128x128xbf16>, vector<128x128xf32> -> vector<128x128xf32>
      %223 = arith.addf %217, %222 : vector<128x128xf32>
      %224 = arith.index_cast %182 : i32 to index
      %c9_180 = arith.constant 9 : index
      %c0_181 = arith.constant 0 : index
      %225 = vector.load %arg17[%224, %c9_180, %c0_181] : memref<18x32x128xbf16, #tpu.memory_space<vmem>>, vector<10x16x128xbf16>
      %226 = vector.extract_strided_slice %225 {offsets = [0, 0, 0], sizes = [8, 16, 128], strides = [1, 1, 1]} : vector<10x16x128xbf16> to vector<8x16x128xbf16>
      %227 = vector.shape_cast %226 : vector<8x16x128xbf16> to vector<128x128xbf16>
      %c2_182 = arith.constant 2 : index
      %c0_183 = arith.constant 0 : index
      %c0_184 = arith.constant 0 : index
      %228 = vector.load %arg6[%c2_182, %c0_183, %c0_184] : memref<9x128x128xbf16, #tpu.memory_space<vmem>>, vector<1x128x128xbf16>
      %229 = vector.shape_cast %228 : vector<1x128x128xbf16> to vector<128x128xbf16>
      %cst_185 = arith.constant dense<0.000000e+00> : vector<128x128xf32>
      %230 = tpu.matmul %227, %229, %cst_185 {dimension_numbers = #tpu.dot_dimension_numbers<[1], [0], [0], [1], [0, 0, 1, 1], [], []>} : vector<128x128xbf16>, vector<128x128xbf16>, vector<128x128xf32> -> vector<128x128xf32>
      %231 = arith.addf %223, %230 : vector<128x128xf32>
      %232 = vector.extract_strided_slice %225 {offsets = [1, 0, 0], sizes = [8, 16, 128], strides = [1, 1, 1]} : vector<10x16x128xbf16> to vector<8x16x128xbf16>
      %233 = vector.shape_cast %232 : vector<8x16x128xbf16> to vector<128x128xbf16>
      %c5_186 = arith.constant 5 : index
      %c0_187 = arith.constant 0 : index
      %c0_188 = arith.constant 0 : index
      %234 = vector.load %arg6[%c5_186, %c0_187, %c0_188] : memref<9x128x128xbf16, #tpu.memory_space<vmem>>, vector<1x128x128xbf16>
      %235 = vector.shape_cast %234 : vector<1x128x128xbf16> to vector<128x128xbf16>
      %cst_189 = arith.constant dense<0.000000e+00> : vector<128x128xf32>
      %236 = tpu.matmul %233, %235, %cst_189 {dimension_numbers = #tpu.dot_dimension_numbers<[1], [0], [0], [1], [0, 0, 1, 1], [], []>} : vector<128x128xbf16>, vector<128x128xbf16>, vector<128x128xf32> -> vector<128x128xf32>
      %237 = arith.addf %231, %236 : vector<128x128xf32>
      %238 = vector.extract_strided_slice %225 {offsets = [2, 0, 0], sizes = [8, 16, 128], strides = [1, 1, 1]} : vector<10x16x128xbf16> to vector<8x16x128xbf16>
      %239 = vector.shape_cast %238 : vector<8x16x128xbf16> to vector<128x128xbf16>
      %c8_190 = arith.constant 8 : index
      %c0_191 = arith.constant 0 : index
      %c0_192 = arith.constant 0 : index
      %240 = vector.load %arg6[%c8_190, %c0_191, %c0_192] : memref<9x128x128xbf16, #tpu.memory_space<vmem>>, vector<1x128x128xbf16>
      %241 = vector.shape_cast %240 : vector<1x128x128xbf16> to vector<128x128xbf16>
      %cst_193 = arith.constant dense<0.000000e+00> : vector<128x128xf32>
      %242 = tpu.matmul %239, %241, %cst_193 {dimension_numbers = #tpu.dot_dimension_numbers<[1], [0], [0], [1], [0, 0, 1, 1], [], []>} : vector<128x128xbf16>, vector<128x128xbf16>, vector<128x128xf32> -> vector<128x128xf32>
      %243 = arith.addf %237, %242 : vector<128x128xf32>
      %c0_194 = arith.constant 0 : index
      %c0_195 = arith.constant 0 : index
      %244 = vector.load %arg7[%c0_194, %c0_195] : memref<1x128xf32, #tpu.memory_space<vmem>>, vector<1x128xf32>
      %245 = vector.broadcast %244 : vector<1x128xf32> to vector<128x128xf32>
      %246 = arith.addf %243, %245 : vector<128x128xf32>
      %cst_196 = arith.constant 0.000000e+00 : f32
      %247 = vector.broadcast %cst_196 : f32 to vector<128x128xf32>
      %248 = arith.maximumf %246, %247 : vector<128x128xf32>
      %249 = vector.shape_cast %248 : vector<128x128xf32> to vector<8x16x128xf32>
      %250 = arith.truncf %249 : vector<8x16x128xf32> to vector<8x16x128xbf16>
      %c1_i32_197 = arith.constant 1 : i32
      %251 = arith.addi %c1_i32_197, %182 : i32
      %252 = arith.index_cast %251 : i32 to index
      %c8_198 = arith.constant 8 : index
      %c0_199 = arith.constant 0 : index
      %253 = vector.load %arg18[%252, %c8_198, %c0_199] : memref<18x32x128xbf16, #tpu.memory_space<vmem>>, vector<8x16x128xbf16>
      tpu.vector_store %arg18[%252, %c8_198, %c0_199], %250 {strides = array<i32>} : memref<18x32x128xbf16, #tpu.memory_space<vmem>>, vector<8x16x128xbf16>,
    }
    %c2_i32_73 = arith.constant 2 : i32
    %c0_i32_74 = arith.constant 0 : i32
    %c2_i32_75 = arith.constant 2 : i32
    %81 = arith.addi %c0_i32_74, %c2_i32_75 : i32
    %c1_i32_76 = arith.constant 1 : i32
    scf.for %arg20 = %c0_i32_74 to %81 step %c1_i32_76  : i32 {
      %c8_i32_150 = arith.constant 8 : i32
      %182 = arith.muli %arg20, %c8_i32_150 : i32
      %cst_151 = arith.constant 0.000000e+00 : f32
      %183 = vector.broadcast %cst_151 : f32 to vector<128x128xf32>
      %184 = arith.index_cast %182 : i32 to index
      %c7_152 = arith.constant 7 : index
      %c0_153 = arith.constant 0 : index
      %185 = vector.load %arg18[%184, %c7_152, %c0_153] : memref<18x32x128xbf16, #tpu.memory_space<vmem>>, vector<10x16x128xbf16>
      %186 = vector.extract_strided_slice %185 {offsets = [0, 0, 0], sizes = [8, 16, 128], strides = [1, 1, 1]} : vector<10x16x128xbf16> to vector<8x16x128xbf16>
      %187 = vector.shape_cast %186 : vector<8x16x128xbf16> to vector<128x128xbf16>
      %c0_154 = arith.constant 0 : index
      %c0_155 = arith.constant 0 : index
      %c0_156 = arith.constant 0 : index
      %188 = vector.load %arg8[%c0_154, %c0_155, %c0_156] : memref<9x128x128xbf16, #tpu.memory_space<vmem>>, vector<1x128x128xbf16>
      %189 = vector.shape_cast %188 : vector<1x128x128xbf16> to vector<128x128xbf16>
      %cst_157 = arith.constant dense<0.000000e+00> : vector<128x128xf32>
      %190 = tpu.matmul %187, %189, %cst_157 {dimension_numbers = #tpu.dot_dimension_numbers<[1], [0], [0], [1], [0, 0, 1, 1], [], []>} : vector<128x128xbf16>, vector<128x128xbf16>, vector<128x128xf32> -> vector<128x128xf32>
      %191 = arith.addf %183, %190 : vector<128x128xf32>
      %192 = vector.extract_strided_slice %185 {offsets = [1, 0, 0], sizes = [8, 16, 128], strides = [1, 1, 1]} : vector<10x16x128xbf16> to vector<8x16x128xbf16>
      %193 = vector.shape_cast %192 : vector<8x16x128xbf16> to vector<128x128xbf16>
      %c3_158 = arith.constant 3 : index
      %c0_159 = arith.constant 0 : index
      %c0_160 = arith.constant 0 : index
      %194 = vector.load %arg8[%c3_158, %c0_159, %c0_160] : memref<9x128x128xbf16, #tpu.memory_space<vmem>>, vector<1x128x128xbf16>
      %195 = vector.shape_cast %194 : vector<1x128x128xbf16> to vector<128x128xbf16>
      %cst_161 = arith.constant dense<0.000000e+00> : vector<128x128xf32>
      %196 = tpu.matmul %193, %195, %cst_161 {dimension_numbers = #tpu.dot_dimension_numbers<[1], [0], [0], [1], [0, 0, 1, 1], [], []>} : vector<128x128xbf16>, vector<128x128xbf16>, vector<128x128xf32> -> vector<128x128xf32>
      %197 = arith.addf %191, %196 : vector<128x128xf32>
      %198 = vector.extract_strided_slice %185 {offsets = [2, 0, 0], sizes = [8, 16, 128], strides = [1, 1, 1]} : vector<10x16x128xbf16> to vector<8x16x128xbf16>
      %199 = vector.shape_cast %198 : vector<8x16x128xbf16> to vector<128x128xbf16>
      %c6_162 = arith.constant 6 : index
      %c0_163 = arith.constant 0 : index
      %c0_164 = arith.constant 0 : index
      %200 = vector.load %arg8[%c6_162, %c0_163, %c0_164] : memref<9x128x128xbf16, #tpu.memory_space<vmem>>, vector<1x128x128xbf16>
      %201 = vector.shape_cast %200 : vector<1x128x128xbf16> to vector<128x128xbf16>
      %cst_165 = arith.constant dense<0.000000e+00> : vector<128x128xf32>
      %202 = tpu.matmul %199, %201, %cst_165 {dimension_numbers = #tpu.dot_dimension_numbers<[1], [0], [0], [1], [0, 0, 1, 1], [], []>} : vector<128x128xbf16>, vector<128x128xbf16>, vector<128x128xf32> -> vector<128x128xf32>
      %203 = arith.addf %197, %202 : vector<128x128xf32>
      %204 = arith.index_cast %182 : i32 to index
      %c8_166 = arith.constant 8 : index
      %c0_167 = arith.constant 0 : index
      %205 = vector.load %arg18[%204, %c8_166, %c0_167] : memref<18x32x128xbf16, #tpu.memory_space<vmem>>, vector<10x16x128xbf16>
      %206 = vector.extract_strided_slice %205 {offsets = [0, 0, 0], sizes = [8, 16, 128], strides = [1, 1, 1]} : vector<10x16x128xbf16> to vector<8x16x128xbf16>
      %207 = vector.shape_cast %206 : vector<8x16x128xbf16> to vector<128x128xbf16>
      %c1_168 = arith.constant 1 : index
      %c0_169 = arith.constant 0 : index
      %c0_170 = arith.constant 0 : index
      %208 = vector.load %arg8[%c1_168, %c0_169, %c0_170] : memref<9x128x128xbf16, #tpu.memory_space<vmem>>, vector<1x128x128xbf16>
      %209 = vector.shape_cast %208 : vector<1x128x128xbf16> to vector<128x128xbf16>
      %cst_171 = arith.constant dense<0.000000e+00> : vector<128x128xf32>
      %210 = tpu.matmul %207, %209, %cst_171 {dimension_numbers = #tpu.dot_dimension_numbers<[1], [0], [0], [1], [0, 0, 1, 1], [], []>} : vector<128x128xbf16>, vector<128x128xbf16>, vector<128x128xf32> -> vector<128x128xf32>
      %211 = arith.addf %203, %210 : vector<128x128xf32>
      %212 = vector.extract_strided_slice %205 {offsets = [1, 0, 0], sizes = [8, 16, 128], strides = [1, 1, 1]} : vector<10x16x128xbf16> to vector<8x16x128xbf16>
      %213 = vector.shape_cast %212 : vector<8x16x128xbf16> to vector<128x128xbf16>
      %c4_172 = arith.constant 4 : index
      %c0_173 = arith.constant 0 : index
      %c0_174 = arith.constant 0 : index
      %214 = vector.load %arg8[%c4_172, %c0_173, %c0_174] : memref<9x128x128xbf16, #tpu.memory_space<vmem>>, vector<1x128x128xbf16>
      %215 = vector.shape_cast %214 : vector<1x128x128xbf16> to vector<128x128xbf16>
      %cst_175 = arith.constant dense<0.000000e+00> : vector<128x128xf32>
      %216 = tpu.matmul %213, %215, %cst_175 {dimension_numbers = #tpu.dot_dimension_numbers<[1], [0], [0], [1], [0, 0, 1, 1], [], []>} : vector<128x128xbf16>, vector<128x128xbf16>, vector<128x128xf32> -> vector<128x128xf32>
      %217 = arith.addf %211, %216 : vector<128x128xf32>
      %218 = vector.extract_strided_slice %205 {offsets = [2, 0, 0], sizes = [8, 16, 128], strides = [1, 1, 1]} : vector<10x16x128xbf16> to vector<8x16x128xbf16>
      %219 = vector.shape_cast %218 : vector<8x16x128xbf16> to vector<128x128xbf16>
      %c7_176 = arith.constant 7 : index
      %c0_177 = arith.constant 0 : index
      %c0_178 = arith.constant 0 : index
      %220 = vector.load %arg8[%c7_176, %c0_177, %c0_178] : memref<9x128x128xbf16, #tpu.memory_space<vmem>>, vector<1x128x128xbf16>
      %221 = vector.shape_cast %220 : vector<1x128x128xbf16> to vector<128x128xbf16>
      %cst_179 = arith.constant dense<0.000000e+00> : vector<128x128xf32>
      %222 = tpu.matmul %219, %221, %cst_179 {dimension_numbers = #tpu.dot_dimension_numbers<[1], [0], [0], [1], [0, 0, 1, 1], [], []>} : vector<128x128xbf16>, vector<128x128xbf16>, vector<128x128xf32> -> vector<128x128xf32>
      %223 = arith.addf %217, %222 : vector<128x128xf32>
      %224 = arith.index_cast %182 : i32 to index
      %c9_180 = arith.constant 9 : index
      %c0_181 = arith.constant 0 : index
      %225 = vector.load %arg18[%224, %c9_180, %c0_181] : memref<18x32x128xbf16, #tpu.memory_space<vmem>>, vector<10x16x128xbf16>
      %226 = vector.extract_strided_slice %225 {offsets = [0, 0, 0], sizes = [8, 16, 128], strides = [1, 1, 1]} : vector<10x16x128xbf16> to vector<8x16x128xbf16>
      %227 = vector.shape_cast %226 : vector<8x16x128xbf16> to vector<128x128xbf16>
      %c2_182 = arith.constant 2 : index
      %c0_183 = arith.constant 0 : index
      %c0_184 = arith.constant 0 : index
      %228 = vector.load %arg8[%c2_182, %c0_183, %c0_184] : memref<9x128x128xbf16, #tpu.memory_space<vmem>>, vector<1x128x128xbf16>
      %229 = vector.shape_cast %228 : vector<1x128x128xbf16> to vector<128x128xbf16>
      %cst_185 = arith.constant dense<0.000000e+00> : vector<128x128xf32>
      %230 = tpu.matmul %227, %229, %cst_185 {dimension_numbers = #tpu.dot_dimension_numbers<[1], [0], [0], [1], [0, 0, 1, 1], [], []>} : vector<128x128xbf16>, vector<128x128xbf16>, vector<128x128xf32> -> vector<128x128xf32>
      %231 = arith.addf %223, %230 : vector<128x128xf32>
      %232 = vector.extract_strided_slice %225 {offsets = [1, 0, 0], sizes = [8, 16, 128], strides = [1, 1, 1]} : vector<10x16x128xbf16> to vector<8x16x128xbf16>
      %233 = vector.shape_cast %232 : vector<8x16x128xbf16> to vector<128x128xbf16>
      %c5_186 = arith.constant 5 : index
      %c0_187 = arith.constant 0 : index
      %c0_188 = arith.constant 0 : index
      %234 = vector.load %arg8[%c5_186, %c0_187, %c0_188] : memref<9x128x128xbf16, #tpu.memory_space<vmem>>, vector<1x128x128xbf16>
      %235 = vector.shape_cast %234 : vector<1x128x128xbf16> to vector<128x128xbf16>
      %cst_189 = arith.constant dense<0.000000e+00> : vector<128x128xf32>
      %236 = tpu.matmul %233, %235, %cst_189 {dimension_numbers = #tpu.dot_dimension_numbers<[1], [0], [0], [1], [0, 0, 1, 1], [], []>} : vector<128x128xbf16>, vector<128x128xbf16>, vector<128x128xf32> -> vector<128x128xf32>
      %237 = arith.addf %231, %236 : vector<128x128xf32>
      %238 = vector.extract_strided_slice %225 {offsets = [2, 0, 0], sizes = [8, 16, 128], strides = [1, 1, 1]} : vector<10x16x128xbf16> to vector<8x16x128xbf16>
      %239 = vector.shape_cast %238 : vector<8x16x128xbf16> to vector<128x128xbf16>
      %c8_190 = arith.constant 8 : index
      %c0_191 = arith.constant 0 : index
      %c0_192 = arith.constant 0 : index
      %240 = vector.load %arg8[%c8_190, %c0_191, %c0_192] : memref<9x128x128xbf16, #tpu.memory_space<vmem>>, vector<1x128x128xbf16>
      %241 = vector.shape_cast %240 : vector<1x128x128xbf16> to vector<128x128xbf16>
      %cst_193 = arith.constant dense<0.000000e+00> : vector<128x128xf32>
      %242 = tpu.matmul %239, %241, %cst_193 {dimension_numbers = #tpu.dot_dimension_numbers<[1], [0], [0], [1], [0, 0, 1, 1], [], []>} : vector<128x128xbf16>, vector<128x128xbf16>, vector<128x128xf32> -> vector<128x128xf32>
      %243 = arith.addf %237, %242 : vector<128x128xf32>
      %c0_194 = arith.constant 0 : index
      %c0_195 = arith.constant 0 : index
      %244 = vector.load %arg9[%c0_194, %c0_195] : memref<1x128xf32, #tpu.memory_space<vmem>>, vector<1x128xf32>
      %245 = vector.broadcast %244 : vector<1x128xf32> to vector<128x128xf32>
      %246 = arith.addf %243, %245 : vector<128x128xf32>
      %cst_196 = arith.constant 0.000000e+00 : f32
      %247 = vector.broadcast %cst_196 : f32 to vector<128x128xf32>
      %248 = arith.maximumf %246, %247 : vector<128x128xf32>
      %249 = vector.shape_cast %248 : vector<128x128xf32> to vector<8x16x128xf32>
      %250 = arith.truncf %249 : vector<8x16x128xf32> to vector<8x16x128xbf16>
      %c1_i32_197 = arith.constant 1 : i32
      %251 = arith.addi %c1_i32_197, %182 : i32
      %252 = arith.index_cast %251 : i32 to index
      %c8_198 = arith.constant 8 : index
      %c0_199 = arith.constant 0 : index
      %253 = vector.load %arg17[%252, %c8_198, %c0_199] : memref<18x32x128xbf16, #tpu.memory_space<vmem>>, vector<8x16x128xbf16>
      tpu.vector_store %arg17[%252, %c8_198, %c0_199], %250 {strides = array<i32>} : memref<18x32x128xbf16, #tpu.memory_space<vmem>>, vector<8x16x128xbf16>,
    }
    %c2_i32_77 = arith.constant 2 : i32
    %c1_78 = arith.constant 1 : index
    %c8_79 = arith.constant 8 : index
    %c0_80 = arith.constant 0 : index
    %82 = vector.load %arg17[%c1_78, %c8_79, %c0_80] : memref<18x32x128xbf16, #tpu.memory_space<vmem>>, vector<8x16x128xbf16>
    %83 = vector.shape_cast %82 : vector<8x16x128xbf16> to vector<4x2x16x128xbf16>
    %84 = vector.extract_strided_slice %83 {offsets = [0, 0, 0, 0], sizes = [4, 1, 16, 128], strides = [1, 1, 1, 1]} : vector<4x2x16x128xbf16> to vector<4x1x16x128xbf16>
    %85 = vector.shape_cast %84 : vector<4x1x16x128xbf16> to vector<4x16x128xbf16>
    %86 = vector.extract_strided_slice %83 {offsets = [0, 1, 0, 0], sizes = [4, 1, 16, 128], strides = [1, 1, 1, 1]} : vector<4x2x16x128xbf16> to vector<4x1x16x128xbf16>
    %87 = vector.shape_cast %86 : vector<4x1x16x128xbf16> to vector<4x16x128xbf16>
    %88 = arith.maximumf %85, %87 : vector<4x16x128xbf16>
    %89 = vector.shape_cast %88 : vector<4x16x128xbf16> to vector<64x128xbf16>
    %c0_81 = arith.constant 0 : index
    %c0_82 = arith.constant 0 : index
    %90 = vector.load %arg12[%c0_81, %c0_82] : memref<64x128xbf16, #tpu.memory_space<vmem>>, vector<32x64xbf16>
    %cst_83 = arith.constant dense<0.000000e+00> : vector<32x128xf32>
    %91 = tpu.matmul %90, %89, %cst_83 {dimension_numbers = #tpu.dot_dimension_numbers<[1], [0], [0], [1], [0, 0, 1, 1], [], []>} : vector<32x64xbf16>, vector<64x128xbf16>, vector<32x128xf32> -> vector<32x128xf32>
    %c0_84 = arith.constant 0 : index
    %c0_85 = arith.constant 0 : index
    %92 = vector.load %arg13[%c0_84, %c0_85] : memref<64x128xbf16, #tpu.memory_space<vmem>>, vector<32x64xbf16>
    %cst_86 = arith.constant dense<0.000000e+00> : vector<32x128xf32>
    %93 = tpu.matmul %92, %89, %cst_86 {dimension_numbers = #tpu.dot_dimension_numbers<[1], [0], [0], [1], [0, 0, 1, 1], [], []>} : vector<32x64xbf16>, vector<64x128xbf16>, vector<32x128xf32> -> vector<32x128xf32>
    %94 = arith.maximumf %91, %93 : vector<32x128xf32>
    %95 = vector.shape_cast %94 : vector<32x128xf32> to vector<4x8x128xf32>
    %96 = arith.truncf %95 : vector<4x8x128xf32> to vector<4x8x128xbf16>
    %c1_87 = arith.constant 1 : index
    %c8_88 = arith.constant 8 : index
    %c0_89 = arith.constant 0 : index
    %97 = vector.load %arg19[%c1_87, %c8_88, %c0_89] : memref<10x24x128xbf16, #tpu.memory_space<vmem>>, vector<4x8x128xbf16>
    tpu.vector_store %arg19[%c1_87, %c8_88, %c0_89], %96 {strides = array<i32>} : memref<10x24x128xbf16, #tpu.memory_space<vmem>>, vector<4x8x128xbf16>,
    %c9_90 = arith.constant 9 : index
    %c8_91 = arith.constant 8 : index
    %c0_92 = arith.constant 0 : index
    %98 = vector.load %arg17[%c9_90, %c8_91, %c0_92] : memref<18x32x128xbf16, #tpu.memory_space<vmem>>, vector<8x16x128xbf16>
    %99 = vector.shape_cast %98 : vector<8x16x128xbf16> to vector<4x2x16x128xbf16>
    %100 = vector.extract_strided_slice %99 {offsets = [0, 0, 0, 0], sizes = [4, 1, 16, 128], strides = [1, 1, 1, 1]} : vector<4x2x16x128xbf16> to vector<4x1x16x128xbf16>
    %101 = vector.shape_cast %100 : vector<4x1x16x128xbf16> to vector<4x16x128xbf16>
    %102 = vector.extract_strided_slice %99 {offsets = [0, 1, 0, 0], sizes = [4, 1, 16, 128], strides = [1, 1, 1, 1]} : vector<4x2x16x128xbf16> to vector<4x1x16x128xbf16>
    %103 = vector.shape_cast %102 : vector<4x1x16x128xbf16> to vector<4x16x128xbf16>
    %104 = arith.maximumf %101, %103 : vector<4x16x128xbf16>
    %105 = vector.shape_cast %104 : vector<4x16x128xbf16> to vector<64x128xbf16>
    %c0_93 = arith.constant 0 : index
    %c0_94 = arith.constant 0 : index
    %106 = vector.load %arg12[%c0_93, %c0_94] : memref<64x128xbf16, #tpu.memory_space<vmem>>, vector<32x64xbf16>
    %cst_95 = arith.constant dense<0.000000e+00> : vector<32x128xf32>
    %107 = tpu.matmul %106, %105, %cst_95 {dimension_numbers = #tpu.dot_dimension_numbers<[1], [0], [0], [1], [0, 0, 1, 1], [], []>} : vector<32x64xbf16>, vector<64x128xbf16>, vector<32x128xf32> -> vector<32x128xf32>
    %c0_96 = arith.constant 0 : index
    %c0_97 = arith.constant 0 : index
    %108 = vector.load %arg13[%c0_96, %c0_97] : memref<64x128xbf16, #tpu.memory_space<vmem>>, vector<32x64xbf16>
    %cst_98 = arith.constant dense<0.000000e+00> : vector<32x128xf32>
    %109 = tpu.matmul %108, %105, %cst_98 {dimension_numbers = #tpu.dot_dimension_numbers<[1], [0], [0], [1], [0, 0, 1, 1], [], []>} : vector<32x64xbf16>, vector<64x128xbf16>, vector<32x128xf32> -> vector<32x128xf32>
    %110 = arith.maximumf %107, %109 : vector<32x128xf32>
    %111 = vector.shape_cast %110 : vector<32x128xf32> to vector<4x8x128xf32>
    %112 = arith.truncf %111 : vector<4x8x128xf32> to vector<4x8x128xbf16>
    %c5_99 = arith.constant 5 : index
    %c8_100 = arith.constant 8 : index
    %c0_101 = arith.constant 0 : index
    %113 = vector.load %arg19[%c5_99, %c8_100, %c0_101] : memref<10x24x128xbf16, #tpu.memory_space<vmem>>, vector<4x8x128xbf16>
    tpu.vector_store %arg19[%c5_99, %c8_100, %c0_101], %112 {strides = array<i32>} : memref<10x24x128xbf16, #tpu.memory_space<vmem>>, vector<4x8x128xbf16>,
    %cst_102 = arith.constant 0.000000e+00 : f32
    %114 = vector.broadcast %cst_102 : f32 to vector<64x128xf32>
    %c0_103 = arith.constant 0 : index
    %c7 = arith.constant 7 : index
    %c0_104 = arith.constant 0 : index
    %115 = vector.load %arg19[%c0_103, %c7, %c0_104] : memref<10x24x128xbf16, #tpu.memory_space<vmem>>, vector<10x8x128xbf16>
    %116 = vector.extract_strided_slice %115 {offsets = [0, 0, 0], sizes = [8, 8, 128], strides = [1, 1, 1]} : vector<10x8x128xbf16> to vector<8x8x128xbf16>
    %117 = vector.shape_cast %116 : vector<8x8x128xbf16> to vector<64x128xbf16>
    %c0_105 = arith.constant 0 : index
    %c0_106 = arith.constant 0 : index
    %c0_107 = arith.constant 0 : index
    %118 = vector.load %arg10[%c0_105, %c0_106, %c0_107] : memref<9x128x128xbf16, #tpu.memory_space<vmem>>, vector<1x128x128xbf16>
    %119 = vector.shape_cast %118 : vector<1x128x128xbf16> to vector<128x128xbf16>
    %cst_108 = arith.constant dense<0.000000e+00> : vector<64x128xf32>
    %120 = tpu.matmul %117, %119, %cst_108 {dimension_numbers = #tpu.dot_dimension_numbers<[1], [0], [0], [1], [0, 0, 1, 1], [], []>} : vector<64x128xbf16>, vector<128x128xbf16>, vector<64x128xf32> -> vector<64x128xf32>
    %121 = arith.addf %114, %120 : vector<64x128xf32>
    %122 = vector.extract_strided_slice %115 {offsets = [1, 0, 0], sizes = [8, 8, 128], strides = [1, 1, 1]} : vector<10x8x128xbf16> to vector<8x8x128xbf16>
    %123 = vector.shape_cast %122 : vector<8x8x128xbf16> to vector<64x128xbf16>
    %c3 = arith.constant 3 : index
    %c0_109 = arith.constant 0 : index
    %c0_110 = arith.constant 0 : index
    %124 = vector.load %arg10[%c3, %c0_109, %c0_110] : memref<9x128x128xbf16, #tpu.memory_space<vmem>>, vector<1x128x128xbf16>
    %125 = vector.shape_cast %124 : vector<1x128x128xbf16> to vector<128x128xbf16>
    %cst_111 = arith.constant dense<0.000000e+00> : vector<64x128xf32>
    %126 = tpu.matmul %123, %125, %cst_111 {dimension_numbers = #tpu.dot_dimension_numbers<[1], [0], [0], [1], [0, 0, 1, 1], [], []>} : vector<64x128xbf16>, vector<128x128xbf16>, vector<64x128xf32> -> vector<64x128xf32>
    %127 = arith.addf %121, %126 : vector<64x128xf32>
    %128 = vector.extract_strided_slice %115 {offsets = [2, 0, 0], sizes = [8, 8, 128], strides = [1, 1, 1]} : vector<10x8x128xbf16> to vector<8x8x128xbf16>
    %129 = vector.shape_cast %128 : vector<8x8x128xbf16> to vector<64x128xbf16>
    %c6 = arith.constant 6 : index
    %c0_112 = arith.constant 0 : index
    %c0_113 = arith.constant 0 : index
    %130 = vector.load %arg10[%c6, %c0_112, %c0_113] : memref<9x128x128xbf16, #tpu.memory_space<vmem>>, vector<1x128x128xbf16>
    %131 = vector.shape_cast %130 : vector<1x128x128xbf16> to vector<128x128xbf16>
    %cst_114 = arith.constant dense<0.000000e+00> : vector<64x128xf32>
    %132 = tpu.matmul %129, %131, %cst_114 {dimension_numbers = #tpu.dot_dimension_numbers<[1], [0], [0], [1], [0, 0, 1, 1], [], []>} : vector<64x128xbf16>, vector<128x128xbf16>, vector<64x128xf32> -> vector<64x128xf32>
    %133 = arith.addf %127, %132 : vector<64x128xf32>
    %c0_115 = arith.constant 0 : index
    %c8_116 = arith.constant 8 : index
    %c0_117 = arith.constant 0 : index
    %134 = vector.load %arg19[%c0_115, %c8_116, %c0_117] : memref<10x24x128xbf16, #tpu.memory_space<vmem>>, vector<10x8x128xbf16>
    %135 = vector.extract_strided_slice %134 {offsets = [0, 0, 0], sizes = [8, 8, 128], strides = [1, 1, 1]} : vector<10x8x128xbf16> to vector<8x8x128xbf16>
    %136 = vector.shape_cast %135 : vector<8x8x128xbf16> to vector<64x128xbf16>
    %c1_118 = arith.constant 1 : index
    %c0_119 = arith.constant 0 : index
    %c0_120 = arith.constant 0 : index
    %137 = vector.load %arg10[%c1_118, %c0_119, %c0_120] : memref<9x128x128xbf16, #tpu.memory_space<vmem>>, vector<1x128x128xbf16>
    %138 = vector.shape_cast %137 : vector<1x128x128xbf16> to vector<128x128xbf16>
    %cst_121 = arith.constant dense<0.000000e+00> : vector<64x128xf32>
    %139 = tpu.matmul %136, %138, %cst_121 {dimension_numbers = #tpu.dot_dimension_numbers<[1], [0], [0], [1], [0, 0, 1, 1], [], []>} : vector<64x128xbf16>, vector<128x128xbf16>, vector<64x128xf32> -> vector<64x128xf32>
    %140 = arith.addf %133, %139 : vector<64x128xf32>
    %141 = vector.extract_strided_slice %134 {offsets = [1, 0, 0], sizes = [8, 8, 128], strides = [1, 1, 1]} : vector<10x8x128xbf16> to vector<8x8x128xbf16>
    %142 = vector.shape_cast %141 : vector<8x8x128xbf16> to vector<64x128xbf16>
    %c4 = arith.constant 4 : index
    %c0_122 = arith.constant 0 : index
    %c0_123 = arith.constant 0 : index
    %143 = vector.load %arg10[%c4, %c0_122, %c0_123] : memref<9x128x128xbf16, #tpu.memory_space<vmem>>, vector<1x128x128xbf16>
    %144 = vector.shape_cast %143 : vector<1x128x128xbf16> to vector<128x128xbf16>
    %cst_124 = arith.constant dense<0.000000e+00> : vector<64x128xf32>
    %145 = tpu.matmul %142, %144, %cst_124 {dimension_numbers = #tpu.dot_dimension_numbers<[1], [0], [0], [1], [0, 0, 1, 1], [], []>} : vector<64x128xbf16>, vector<128x128xbf16>, vector<64x128xf32> -> vector<64x128xf32>
    %146 = arith.addf %140, %145 : vector<64x128xf32>
    %147 = vector.extract_strided_slice %134 {offsets = [2, 0, 0], sizes = [8, 8, 128], strides = [1, 1, 1]} : vector<10x8x128xbf16> to vector<8x8x128xbf16>
    %148 = vector.shape_cast %147 : vector<8x8x128xbf16> to vector<64x128xbf16>
    %c7_125 = arith.constant 7 : index
    %c0_126 = arith.constant 0 : index
    %c0_127 = arith.constant 0 : index
    %149 = vector.load %arg10[%c7_125, %c0_126, %c0_127] : memref<9x128x128xbf16, #tpu.memory_space<vmem>>, vector<1x128x128xbf16>
    %150 = vector.shape_cast %149 : vector<1x128x128xbf16> to vector<128x128xbf16>
    %cst_128 = arith.constant dense<0.000000e+00> : vector<64x128xf32>
    %151 = tpu.matmul %148, %150, %cst_128 {dimension_numbers = #tpu.dot_dimension_numbers<[1], [0], [0], [1], [0, 0, 1, 1], [], []>} : vector<64x128xbf16>, vector<128x128xbf16>, vector<64x128xf32> -> vector<64x128xf32>
    %152 = arith.addf %146, %151 : vector<64x128xf32>
    %c0_129 = arith.constant 0 : index
    %c9_130 = arith.constant 9 : index
    %c0_131 = arith.constant 0 : index
    %153 = vector.load %arg19[%c0_129, %c9_130, %c0_131] : memref<10x24x128xbf16, #tpu.memory_space<vmem>>, vector<10x8x128xbf16>
    %154 = vector.extract_strided_slice %153 {offsets = [0, 0, 0], sizes = [8, 8, 128], strides = [1, 1, 1]} : vector<10x8x128xbf16> to vector<8x8x128xbf16>
    %155 = vector.shape_cast %154 : vector<8x8x128xbf16> to vector<64x128xbf16>
    %c2 = arith.constant 2 : index
    %c0_132 = arith.constant 0 : index
    %c0_133 = arith.constant 0 : index
    %156 = vector.load %arg10[%c2, %c0_132, %c0_133] : memref<9x128x128xbf16, #tpu.memory_space<vmem>>, vector<1x128x128xbf16>
    %157 = vector.shape_cast %156 : vector<1x128x128xbf16> to vector<128x128xbf16>
    %cst_134 = arith.constant dense<0.000000e+00> : vector<64x128xf32>
    %158 = tpu.matmul %155, %157, %cst_134 {dimension_numbers = #tpu.dot_dimension_numbers<[1], [0], [0], [1], [0, 0, 1, 1], [], []>} : vector<64x128xbf16>, vector<128x128xbf16>, vector<64x128xf32> -> vector<64x128xf32>
    %159 = arith.addf %152, %158 : vector<64x128xf32>
    %160 = vector.extract_strided_slice %153 {offsets = [1, 0, 0], sizes = [8, 8, 128], strides = [1, 1, 1]} : vector<10x8x128xbf16> to vector<8x8x128xbf16>
    %161 = vector.shape_cast %160 : vector<8x8x128xbf16> to vector<64x128xbf16>
    %c5_135 = arith.constant 5 : index
    %c0_136 = arith.constant 0 : index
    %c0_137 = arith.constant 0 : index
    %162 = vector.load %arg10[%c5_135, %c0_136, %c0_137] : memref<9x128x128xbf16, #tpu.memory_space<vmem>>, vector<1x128x128xbf16>
    %163 = vector.shape_cast %162 : vector<1x128x128xbf16> to vector<128x128xbf16>
    %cst_138 = arith.constant dense<0.000000e+00> : vector<64x128xf32>
    %164 = tpu.matmul %161, %163, %cst_138 {dimension_numbers = #tpu.dot_dimension_numbers<[1], [0], [0], [1], [0, 0, 1, 1], [], []>} : vector<64x128xbf16>, vector<128x128xbf16>, vector<64x128xf32> -> vector<64x128xf32>
    %165 = arith.addf %159, %164 : vector<64x128xf32>
    %166 = vector.extract_strided_slice %153 {offsets = [2, 0, 0], sizes = [8, 8, 128], strides = [1, 1, 1]} : vector<10x8x128xbf16> to vector<8x8x128xbf16>
    %167 = vector.shape_cast %166 : vector<8x8x128xbf16> to vector<64x128xbf16>
    %c8_139 = arith.constant 8 : index
    %c0_140 = arith.constant 0 : index
    %c0_141 = arith.constant 0 : index
    %168 = vector.load %arg10[%c8_139, %c0_140, %c0_141] : memref<9x128x128xbf16, #tpu.memory_space<vmem>>, vector<1x128x128xbf16>
    %169 = vector.shape_cast %168 : vector<1x128x128xbf16> to vector<128x128xbf16>
    %cst_142 = arith.constant dense<0.000000e+00> : vector<64x128xf32>
    %170 = tpu.matmul %167, %169, %cst_142 {dimension_numbers = #tpu.dot_dimension_numbers<[1], [0], [0], [1], [0, 0, 1, 1], [], []>} : vector<64x128xbf16>, vector<128x128xbf16>, vector<64x128xf32> -> vector<64x128xf32>
    %171 = arith.addf %165, %170 : vector<64x128xf32>
    %c0_143 = arith.constant 0 : index
    %c0_144 = arith.constant 0 : index
    %172 = vector.load %arg11[%c0_143, %c0_144] : memref<1x128xf32, #tpu.memory_space<vmem>>, vector<1x128xf32>
    %173 = vector.broadcast %172 : vector<1x128xf32> to vector<64x128xf32>
    %174 = arith.addf %171, %173 : vector<64x128xf32>
    %cst_145 = arith.constant 0.000000e+00 : f32
    %175 = vector.broadcast %cst_145 : f32 to vector<64x128xf32>
    %176 = arith.maximumf %174, %175 : vector<64x128xf32>
    %177 = vector.extract_strided_slice %176 {offsets = [0, 0], sizes = [64, 64], strides = [1, 1]} : vector<64x128xf32> to vector<64x64xf32>
    %178 = vector.shape_cast %177 : vector<64x64xf32> to vector<8x8x64xf32>
    %c0_146 = arith.constant 0 : index
    %c0_147 = arith.constant 0 : index
    %c0_148 = arith.constant 0 : index
    %c0_149 = arith.constant 0 : index
    %179 = vector.load %arg14[%c0_146, %c0_147, %c0_148, %c0_149] : memref<1x8x8x64xf32, #tpu.memory_space<vmem>>, vector<1x8x8x64xf32>
    %180 = vector.shape_cast %179 : vector<1x8x8x64xf32> to vector<8x8x64xf32>
    %181 = vector.shape_cast %178 : vector<8x8x64xf32> to vector<1x8x8x64xf32>
    tpu.vector_store %arg14[%c0_146, %c0_147, %c0_148, %c0_149], %181 {strides = array<i32>} : memref<1x8x8x64xf32, #tpu.memory_space<vmem>>, vector<1x8x8x64xf32>,
    return
  }
  func.func @transform_0(%arg0: i32) -> (i32, i32, i32, i32) {
    %c0_i32 = arith.constant 0 : i32
    %c0_i32_0 = arith.constant 0 : i32
    %c0_i32_1 = arith.constant 0 : i32
    %c0_i32_2 = arith.constant 0 : i32
    return %arg0, %c0_i32, %c0_i32_0, %c0_i32_1 : i32, i32, i32, i32
  }
  func.func @transform_1(%arg0: i32) -> (i32, i32, i32) {
    %c0_i32 = arith.constant 0 : i32
    %c0_i32_0 = arith.constant 0 : i32
    %c0_i32_1 = arith.constant 0 : i32
    %c0_i32_2 = arith.constant 0 : i32
    return %c0_i32, %c0_i32_0, %c0_i32_1 : i32, i32, i32
  }
  func.func @transform_2(%arg0: i32) -> (i32, i32) {
    %c0_i32 = arith.constant 0 : i32
    %c0_i32_0 = arith.constant 0 : i32
    %c0_i32_1 = arith.constant 0 : i32
    return %c0_i32, %c0_i32_0 : i32, i32
  }
  func.func @transform_3(%arg0: i32) -> (i32, i32, i32) {
    %c0_i32 = arith.constant 0 : i32
    %c0_i32_0 = arith.constant 0 : i32
    %c0_i32_1 = arith.constant 0 : i32
    %c0_i32_2 = arith.constant 0 : i32
    return %c0_i32, %c0_i32_0, %c0_i32_1 : i32, i32, i32
  }
  func.func @transform_4(%arg0: i32) -> (i32, i32) {
    %c0_i32 = arith.constant 0 : i32
    %c0_i32_0 = arith.constant 0 : i32
    %c0_i32_1 = arith.constant 0 : i32
    return %c0_i32, %c0_i32_0 : i32, i32
  }
  func.func @transform_5(%arg0: i32) -> (i32, i32, i32) {
    %c0_i32 = arith.constant 0 : i32
    %c0_i32_0 = arith.constant 0 : i32
    %c0_i32_1 = arith.constant 0 : i32
    %c0_i32_2 = arith.constant 0 : i32
    return %c0_i32, %c0_i32_0, %c0_i32_1 : i32, i32, i32
  }
  func.func @transform_6(%arg0: i32) -> (i32, i32) {
    %c0_i32 = arith.constant 0 : i32
    %c0_i32_0 = arith.constant 0 : i32
    %c0_i32_1 = arith.constant 0 : i32
    return %c0_i32, %c0_i32_0 : i32, i32
  }
  func.func @transform_7(%arg0: i32) -> (i32, i32, i32) {
    %c0_i32 = arith.constant 0 : i32
    %c0_i32_0 = arith.constant 0 : i32
    %c0_i32_1 = arith.constant 0 : i32
    %c0_i32_2 = arith.constant 0 : i32
    return %c0_i32, %c0_i32_0, %c0_i32_1 : i32, i32, i32
  }
  func.func @transform_8(%arg0: i32) -> (i32, i32) {
    %c0_i32 = arith.constant 0 : i32
    %c0_i32_0 = arith.constant 0 : i32
    %c0_i32_1 = arith.constant 0 : i32
    return %c0_i32, %c0_i32_0 : i32, i32
  }
  func.func @transform_9(%arg0: i32) -> (i32, i32, i32) {
    %c0_i32 = arith.constant 0 : i32
    %c0_i32_0 = arith.constant 0 : i32
    %c0_i32_1 = arith.constant 0 : i32
    %c0_i32_2 = arith.constant 0 : i32
    return %c0_i32, %c0_i32_0, %c0_i32_1 : i32, i32, i32
  }
  func.func @transform_10(%arg0: i32) -> (i32, i32) {
    %c0_i32 = arith.constant 0 : i32
    %c0_i32_0 = arith.constant 0 : i32
    %c0_i32_1 = arith.constant 0 : i32
    return %c0_i32, %c0_i32_0 : i32, i32
  }
  func.func @transform_11(%arg0: i32) -> (i32, i32) {
    %c0_i32 = arith.constant 0 : i32
    %c0_i32_0 = arith.constant 0 : i32
    %c0_i32_1 = arith.constant 0 : i32
    return %c0_i32, %c0_i32_0 : i32, i32
  }
  func.func @transform_12(%arg0: i32) -> (i32, i32) {
    %c0_i32 = arith.constant 0 : i32
    %c0_i32_0 = arith.constant 0 : i32
    %c0_i32_1 = arith.constant 0 : i32
    return %c0_i32, %c0_i32_0 : i32, i32
  }
  func.func @transform_13(%arg0: i32) -> (i32, i32, i32, i32) {
    %c0_i32 = arith.constant 0 : i32
    %c0_i32_0 = arith.constant 0 : i32
    %c0_i32_1 = arith.constant 0 : i32
    %c0_i32_2 = arith.constant 0 : i32
    return %arg0, %c0_i32, %c0_i32_0, %c0_i32_1 : i32, i32, i32, i32
  }
}

</mosaic_0001>

<bundles_post_ra>
// kernel: feature_extractor.1
= control target key start
LH: loop header
LB: loop body
LE: loop exit
PB: predicated region body
PF: predicated region fallthrough
CT: control target
= control target key end

     0   :  { %s21650_s0 = inlined_call_operand.vmem [shape: f32[2,32,32,8], index: 0, kind: input, shape index: {}]   ;;  %s21651_s1 = inlined_call_operand.vmem [shape: bf16[9,128,128], index: 1, kind: input, shape index: {}]   ;;  %s21652_s2 = inlined_call_operand.vmem [shape: f32[1,128], index: 2, kind: input, shape index: {}]   ;;  %s21653_s3 = inlined_call_operand.vmem [shape: bf16[9,128,128], index: 3, kind: input, shape index: {}]   ;;  %s21654_s4 = inlined_call_operand.vmem [shape: f32[1,128], index: 4, kind: input, shape index: {}]   ;;  %s21655_s5 = inlined_call_operand.vmem [shape: bf16[9,128,128], index: 5, kind: input, shape index: {}]   ;;  %s21656_s6 = inlined_call_operand.vmem [shape: f32[1,128], index: 6, kind: input, shape index: {}]   ;;  %s21657_s7 = inlined_call_operand.vmem [shape: bf16[9,128,128], index: 7, kind: input, shape index: {}]   ;;  %s21658_s8 = inlined_call_operand.vmem [shape: f32[1,128], index: 8, kind: input, shape index: {}]   ;;  %s21659_s9 = inlined_call_operand.vmem [shape: bf16[9,128,128], index: 9, kind: input, shape index: {}]   ;;  %s21660_s10 = inlined_call_operand.vmem [shape: f32[1,128], index: 10, kind: input, shape index: {}]   ;;  %s21661_s11 = inlined_call_operand.vmem [shape: bf16[64,128], index: 11, kind: input, shape index: {}]   ;;  %s21662_s12 = inlined_call_operand.vmem [shape: bf16[64,128], index: 12, kind: input, shape index: {}]   ;;  %s21663_s13 = inlined_call_operand.hbm [shape: f32[2,8,8,64], index: 13, kind: output, shape index: {}]  }
   0x1   :  { %21668 = sst [smem:[#allocation13_spill]] %s21650_s0 }
   0x2   :  { %18 = vsyncpa [#allocation8], 0 }
   0x3   :  { %20 = vsyncpa [#allocation8 + $0x1], 0  ;;  %s17996_s25 = smov 0   ;;  %s17998_s26 = smov 0  }
   0x4   :  { %s18000_s27 = smov 0   ;;  %s18002_s28 = smov 0  }
   0x5 LB: > { %21669 = sst [smem:[#allocation10_spill]] %s17900_s27  ;;  %s18017_s29 = sadd.s32 4294967295, %s17904_s28   ;;  %s17904_s28 = sphi %s18002_s28, %s21680_s28   ;;  %s17900_s27 = sphi %s18000_s27, %s21682_s27   ;;  %s17896_s26 = sphi %s17998_s26, %s21684_s26   ;;  %s17892_s25 = sphi %s17996_s25, %s21683_s25  }
   0x6   : > { %s13103_s30 = sadd.s32 4294967294, %s17904_s28   ;;  %s18021_s14 = sadd.s32 1, %s17904_s28  }
   0x7   : > { %21670 = sst [smem:[#allocation11_spill]] %s18021_s14  ;;  %s311_s15 = sadd.s32 1, %s17900_s27 }
   0x8   : > { %s308_s16 = ssub.s32 %s17904_s28, %s18021_s14  ;;  %p321_p0 = scmp.ne.s32.totalorder %s17900_s27, %s17896_s26 }
   0x9   : > { %p309_p1 = scmp.eq.s32.totalorder %s308_s16, 0  ;;  %p322_p2 = scmp.eq.s32.totalorder %s18017_s29, 1 }
   0xa   : > { %p327_p3 = scmp.ne.s32.totalorder %s17896_s26, %s17892_s25  ;;  %p328_p4 = scmp.eq.s32.totalorder %s13103_s30, 1 }
   0xb   : > { %s18032_s17 = scalar_select %p309_p1, %s17900_s27, %s311_s15  }
   0xc   : > { %p18034_p5 = por %p322_p2, %p321_p0  ;;  %p18038_p6 = por %p328_p4, %p327_p3 }
   0xd   : > { %21671 = sst [smem:[#allocation12_spill]] %s18032_s17  ;;  %p13106_p7 = scmp.ge.s32.totalorder %s17904_s28, 1 }
   0xe   : > { %p390_p8 = scmp.lt.s32.totalorder %s17904_s28, 3 }
  0x10   : > { %p391_p9 = pnand %p13106_p7, %p390_p8 }
  0x11   : > { %s21664_s20 = sand.u32 (!%p391_p9), 1, %s17896_s26   ;;  %p434_p10 = scmp.lt.s32.totalorder (!%p391_p9), %s18017_s29, 1  ;;  %v17922_v0 = vmov (!%p391_p9), 0   ;;  %vm1196_vm0 = vcmask (!%p391_p9), 64516   ;;  %vm1002_vm1 = vcmask (!%p391_p9), 1043456   ;;  %vm1198_vm2 = vcmask (!%p391_p9), 64512  }
  0x12   : > { %394 = sbr.rel (%p391_p9) target bundleno = 2834 (0xb12), region = 72  ;;  %443 = vst [vmem:[#allocation2 + $0x18] sm:$0xff] (!%p391_p9), %v17922_v0  ;;  %440 = vst [vmem:[#allocation2] sm:$0xff] (!%p391_p9), %v17922_v0  ;;  %s18354_s21 = sshll.u32 (!%p391_p9), %s21664_s20, 6  ;;  %vm1200_vm3 = vcmask (!%p391_p9), 60416  }
  0x13   : > { %441 = vst [vmem:[#allocation2 + $0x8] sm:$0xff] (!%p391_p9), %v17922_v0  ;;  %442 = vst [vmem:[#allocation2 + $0x10] sm:$0xff] (!%p391_p9), %v17922_v0  ;;  %s21674_s0 = sld [smem:[#allocation13_spill]] (!%p391_p9)  ;;  %s18621_s16 = scalar_lea.vmem (!%p391_p9), [#allocation7], %s18354_s21 }
  0x14   : > { %444 = vst [vmem:[#allocation2 + $0x20] sm:$0xff] (!%p391_p9), %v17922_v0  ;;  %445 = vst [vmem:[#allocation2 + $0x28] sm:$0xff] (!%p391_p9), %v17922_v0 }
  0x15   : > { %446 = vst [vmem:[#allocation2 + $0x30] sm:$0xff] (!%p391_p9), %v17922_v0  ;;  %447 = vst [vmem:[#allocation2 + $0x38] sm:$0xff] (!%p391_p9), %v17922_v0 }
  0x16   : > { %448 = vst [vmem:[#allocation2 + $0x40] sm:$0xff] (!%p391_p9), %v17922_v0  ;;  %449 = vst [vmem:[#allocation2 + $0x48] sm:$0xff] (!%p391_p9), %v17922_v0 }
  0x17   : > { %450 = vst [vmem:[#allocation2 + $0x50] sm:$0xff] (!%p391_p9), %v17922_v0  ;;  %451 = vst [vmem:[#allocation2 + $0x58] sm:$0xff] (!%p391_p9), %v17922_v0 }
  0x18   : > { %452 = vst [vmem:[#allocation2 + $0x60] sm:$0xff] (!%p391_p9), %v17922_v0  ;;  %453 = vst [vmem:[#allocation2 + $0x68] sm:$0xff] (!%p391_p9), %v17922_v0 }
  0x19   : > { %454 = vst [vmem:[#allocation2 + $0x70] sm:$0xff] %v17922_v0  ;;  %455 = vst [vmem:[#allocation2 + $0x78] sm:$0xff] %v17922_v0  ;;  %s435_s22 = scalar_select %p434_p10, %s18017_s29, 1 }
  0x1a   : > { %456 = vst [vmem:[#allocation2 + $0x80] sm:$0xff] %v17922_v0  ;;  %457 = vst [vmem:[#allocation2 + $0x88] sm:$0xff] %v17922_v0 }
  0x1b   : > { %458 = vst [vmem:[#allocation2 + $0x90] sm:$0xff] %v17922_v0  ;;  %459 = vst [vmem:[#allocation2 + $0x98] sm:$0xff] %v17922_v0  ;;  %s14281_s23 = sshll.u32 %s435_s22, 10  ;;  %s18623_s22 = smov 0  }
  0x1c   : > { %460 = vst [vmem:[#allocation2 + $0xa0] sm:$0xff] %v17922_v0  ;;  %461 = vst [vmem:[#allocation2 + $0xa8] sm:$0xff] %v17922_v0  ;;  %s18362_s15 = scalar_lea.vmem %s21674_s0, %s14281_s23 }
  0x1d   : > { %462 = vst [vmem:[#allocation2 + $0xb0] sm:$0xff] %v17922_v0  ;;  %463 = vst [vmem:[#allocation2 + $0xb8] sm:$0xff] %v17922_v0  ;;  %v746_v1 = vld [vmem:[%s18362_s15] sm:$0xff]  ;;  %v747_v2 = vld [vmem:[%s18362_s15 + $0x8] sm:$0xff] }
  0x1e   : > { %464 = vst [vmem:[#allocation2 + $0xc0] sm:$0xff] %v17922_v0  ;;  %465 = vst [vmem:[#allocation2 + $0xc8] sm:$0xff] %v17922_v0  ;;  %v748_v3 = vld [vmem:[%s18362_s15 + $0x10] sm:$0xff]  ;;  %v874_v4 = vpack.c.bf16 %v747_v2, %v746_v1  ;;  %v749_v5 = vld [vmem:[%s18362_s15 + $0x18] sm:$0xff] }
  0x1f   : > { %466 = vst [vmem:[#allocation2 + $0xd0] sm:$0xff] %v17922_v0  ;;  %467 = vst [vmem:[#allocation2 + $0xd8] sm:$0xff] %v17922_v0  ;;  %v750_v6 = vld [vmem:[%s18362_s15 + $0x20] sm:$0xff]  ;;  %v751_v7 = vld [vmem:[%s18362_s15 + $0x28] sm:$0xff]  ;;  %v875_v8 = vpack.c.bf16 %v749_v5, %v748_v3 }
  0x20   : > { %468 = vst [vmem:[#allocation2 + $0xe0] sm:$0xff] %v17922_v0  ;;  %469 = vst [vmem:[#allocation2 + $0xe8] sm:$0xff] %v17922_v0  ;;  %v876_v9 = vpack.c.bf16 %v751_v7, %v750_v6  ;;  %v752_v10 = vld [vmem:[%s18362_s15 + $0x30] sm:$0xff]  ;;  %v753_v11 = vld [vmem:[%s18362_s15 + $0x38] sm:$0xff]  ;;  %v1003_v13 = vrot.slane %v874_v4, 4 }
  0x21   : > { %470 = vst [vmem:[#allocation2 + $0xf0] sm:$0xff] %v17922_v0  ;;  %471 = vst [vmem:[#allocation2 + $0xf8] sm:$0xff] %v17922_v0  ;;  %v754_v12 = vld [vmem:[%s18362_s15 + $0x40] sm:$0xff]  ;;  %v877_v14 = vpack.c.bf16 %v753_v11, %v752_v10  ;;  %v755_v15 = vld [vmem:[%s18362_s15 + $0x48] sm:$0xff]  ;;  %v1004_v18 = vrot.slane %v875_v8, 4 }
  0x22   : > { %472 = vst [vmem:[#allocation2 + $0x100] sm:$0xff] %v17922_v0  ;;  %473 = vst [vmem:[#allocation2 + $0x108] sm:$0xff] %v17922_v0  ;;  %v756_v16 = vld [vmem:[%s18362_s15 + $0x50] sm:$0xff]  ;;  %v757_v17 = vld [vmem:[%s18362_s15 + $0x58] sm:$0xff]  ;;  %v1006_v19 = vrot.slane %v876_v9, 4  ;;  %v878_v20 = vpack.c.bf16 %v755_v15, %v754_v12 }
  0x23   : > { %474 = vst [vmem:[#allocation2 + $0x110] sm:$0xff] %v17922_v0  ;;  %475 = vst [vmem:[#allocation2 + $0x118] sm:$0xff] %v17922_v0  ;;  %v879_v21 = vpack.c.bf16 %v757_v17, %v756_v16  ;;  %v758_v22 = vld [vmem:[%s18362_s15 + $0x60] sm:$0xff]  ;;  %v759_v23 = vld [vmem:[%s18362_s15 + $0x68] sm:$0xff]  ;;  %v1007_v25 = vrot.slane %v877_v14, 4  ;;  %v1005_v30 = vsel %vm1002_vm1, %v1003_v13, %v1004_v18 }
  0x24   : > { %476 = vst [vmem:[#allocation2 + $0x120] sm:$0xff] %v17922_v0  ;;  %477 = vst [vmem:[#allocation2 + $0x128] sm:$0xff] %v17922_v0  ;;  %v760_v24 = vld [vmem:[%s18362_s15 + $0x70] sm:$0xff]  ;;  %v880_v26 = vpack.c.bf16 %v759_v23, %v758_v22  ;;  %v761_v27 = vld [vmem:[%s18362_s15 + $0x78] sm:$0xff]  ;;  %v1009_v31 = vrot.slane %v878_v20, 4 }
  0x25   : > { %478 = vst [vmem:[#allocation2 + $0x130] sm:$0xff] %v17922_v0  ;;  %479 = vst [vmem:[#allocation2 + $0x138] sm:$0xff] %v17922_v0  ;;  %v762_v28 = vld [vmem:[%s18362_s15 + $0x80] sm:$0xff]  ;;  %v763_v29 = vld [vmem:[%s18362_s15 + $0x88] sm:$0xff]  ;;  %v1010_v32 = vrot.slane %v879_v21, 4  ;;  %v881_v33 = vpack.c.bf16 %v761_v27, %v760_v24  ;;  %v1008_v37 = vsel %vm1002_vm1, %v1006_v19, %v1007_v25 }
  0x26   : > { %480 = vst [vmem:[#allocation2 + $0x140] sm:$0xff] %v17922_v0  ;;  %481 = vst [vmem:[#allocation2 + $0x148] sm:$0xff] %v17922_v0  ;;  %v764_v34 = vld [vmem:[%s18362_s15 + $0x90] sm:$0xff]  ;;  %v765_v35 = vld [vmem:[%s18362_s15 + $0x98] sm:$0xff]  ;;  %v1012_v38 = vrot.slane %v880_v26, 4  ;;  %v882_v39 = vpack.c.bf16 %v763_v29, %v762_v28 }
  0x27   : > { %482 = vst [vmem:[#allocation2 + $0x150] sm:$0xff] %v17922_v0  ;;  %483 = vst [vmem:[#allocation2 + $0x158] sm:$0xff] %v17922_v0  ;;  %v766_v36 = vld [vmem:[%s18362_s15 + $0xa0] sm:$0xff]  ;;  %v883_v40 = vpack.c.bf16 %v765_v35, %v764_v34  ;;  %v767_v41 = vld [vmem:[%s18362_s15 + $0xa8] sm:$0xff]  ;;  %v1011_v44 = vsel %vm1002_vm1, %v1009_v31, %v1010_v32  ;;  %v1013_v45 = vrot.slane %v881_v33, 4 }
  0x28   : > { %484 = vst [vmem:[#allocation2 + $0x160] sm:$0xff] %v17922_v0  ;;  %485 = vst [vmem:[#allocation2 + $0x168] sm:$0xff] %v17922_v0  ;;  %v768_v42 = vld [vmem:[%s18362_s15 + $0xb0] sm:$0xff]  ;;  %v769_v43 = vld [vmem:[%s18362_s15 + $0xb8] sm:$0xff]  ;;  %v884_v46 = vpack.c.bf16 %v767_v41, %v766_v36  ;;  %v1015_v51 = vrot.slane %v882_v39, 4 }
  0x29   : > { %486 = vst [vmem:[#allocation2 + $0x170] sm:$0xff] %v17922_v0  ;;  %487 = vst [vmem:[#allocation2 + $0x178] sm:$0xff] %v17922_v0  ;;  %v885_v47 = vpack.c.bf16 %v769_v43, %v768_v42  ;;  %v770_v48 = vld [vmem:[%s18362_s15 + $0xc0] sm:$0xff]  ;;  %v771_v49 = vld [vmem:[%s18362_s15 + $0xc8] sm:$0xff]  ;;  %v1016_v52 = vrot.slane %v883_v40, 4  ;;  %v1014_v57 = vsel %vm1002_vm1, %v1012_v38, %v1013_v45 }
  0x2a   : > { %488 = vst [vmem:[#allocation2 + $0x180] sm:$0xff] %v17922_v0  ;;  %489 = vst [vmem:[#allocation2 + $0x188] sm:$0xff] %v17922_v0  ;;  %v772_v50 = vld [vmem:[%s18362_s15 + $0xd0] sm:$0xff]  ;;  %v886_v53 = vpack.c.bf16 %v771_v49, %v770_v48  ;;  %v773_v54 = vld [vmem:[%s18362_s15 + $0xd8] sm:$0xff]  ;;  %v1018_v58 = vrot.slane %v884_v46, 4 }
  0x2b   : > { %490 = vst [vmem:[#allocation2 + $0x190] sm:$0xff] %v17922_v0  ;;  %491 = vst [vmem:[#allocation2 + $0x198] sm:$0xff] %v17922_v0  ;;  %v774_v55 = vld [vmem:[%s18362_s15 + $0xe0] sm:$0xff]  ;;  %v775_v56 = vld [vmem:[%s18362_s15 + $0xe8] sm:$0xff]  ;;  %v1019_v59 = vrot.slane %v885_v47, 4  ;;  %v887_v60 = vpack.c.bf16 %v773_v54, %v772_v50 }
  0x2c   : > { %492 = vst [vmem:[#allocation2 + $0x1a0] sm:$0xff] %v17922_v0  ;;  %493 = vst [vmem:[#allocation2 + $0x1a8] sm:$0xff] %v17922_v0  ;;  %v776_v61 = vld [vmem:[%s18362_s15 + $0xf0] sm:$0xff]  ;;  %v777_v62 = vld [vmem:[%s18362_s15 + $0xf8] sm:$0xff]  ;;  %v1021_v1 = vrot.slane %v886_v53, 4  ;;  %v888_v2 = vpack.c.bf16 %v775_v56, %v774_v55 }
  0x2d   : > { %494 = vst [vmem:[#allocation2 + $0x1b0] sm:$0xff] %v17922_v0  ;;  %495 = vst [vmem:[#allocation2 + $0x1b8] sm:$0xff] %v17922_v0  ;;  %v778_v63 = vld [vmem:[%s18362_s15 + $0x100] sm:$0xff]  ;;  %v889_v3 = vpack.c.bf16 %v777_v62, %v776_v61  ;;  %v779_v4 = vld [vmem:[%s18362_s15 + $0x108] sm:$0xff]  ;;  %v1020_v7 = vsel %vm1002_vm1, %v1018_v58, %v1019_v59  ;;  %v1022_v8 = vrot.slane %v887_v60, 4 }
  0x2e   : > { %496 = vst [vmem:[#allocation2 + $0x1c0] sm:$0xff] %v17922_v0  ;;  %497 = vst [vmem:[#allocation2 + $0x1c8] sm:$0xff] %v17922_v0  ;;  %v780_v5 = vld [vmem:[%s18362_s15 + $0x110] sm:$0xff]  ;;  %v781_v6 = vld [vmem:[%s18362_s15 + $0x118] sm:$0xff]  ;;  %v890_v9 = vpack.c.bf16 %v779_v4, %v778_v63  ;;  %v1024_v14 = vrot.slane %v888_v2, 4 }
  0x2f   : > { %498 = vst [vmem:[#allocation2 + $0x1d0] sm:$0xff] %v17922_v0  ;;  %499 = vst [vmem:[#allocation2 + $0x1d8] sm:$0xff] %v17922_v0  ;;  %v891_v10 = vpack.c.bf16 %v781_v6, %v780_v5  ;;  %v782_v11 = vld [vmem:[%s18362_s15 + $0x120] sm:$0xff]  ;;  %v783_v12 = vld [vmem:[%s18362_s15 + $0x128] sm:$0xff]  ;;  %v1025_v15 = vrot.slane %v889_v3, 4  ;;  %v1023_v20 = vsel %vm1002_vm1, %v1021_v1, %v1022_v8 }
  0x30   : > { %500 = vst [vmem:[#allocation2 + $0x1e0] sm:$0xff] %v17922_v0  ;;  %501 = vst [vmem:[#allocation2 + $0x1e8] sm:$0xff] %v17922_v0  ;;  %v892_v16 = vpack.c.bf16 %v783_v12, %v782_v11  ;;  %v785_v17 = vld [vmem:[%s18362_s15 + $0x138] sm:$0xff]  ;;  %v1027_v21 = vrot.slane %v890_v9, 4  ;;  %v788_v24 = vld [vmem:[%s18362_s15 + $0x150] sm:$0xff] }
  0x31   : > { %502 = vst [vmem:[#allocation2 + $0x1f0] sm:$0xff] %v17922_v0  ;;  %503 = vst [vmem:[#allocation2 + $0x1f8] sm:$0xff] %v17922_v0  ;;  %v1028_v22 = vrot.slane %v891_v10, 4  ;;  %v790_v26 = vld [vmem:[%s18362_s15 + $0x160] sm:$0xff]  ;;  %v1026_v27 = vsel %vm1002_vm1, %v1024_v14, %v1025_v15  ;;  %v793_v33 = vld [vmem:[%s18362_s15 + $0x178] sm:$0xff] }
  0x32   : > { %504 = vst [vmem:[#allocation2 + $0x200] sm:$0xff] %v17922_v0  ;;  %505 = vst [vmem:[#allocation2 + $0x208] sm:$0xff] %v17922_v0  ;;  %v1030_v28 = vrot.slane %v892_v16, 4  ;;  %v795_v39 = vld [vmem:[%s18362_s15 + $0x188] sm:$0xff]  ;;  %v796_v40 = vld [vmem:[%s18362_s15 + $0x190] sm:$0xff] }
  0x33   : > { %506 = vst [vmem:[#allocation2 + $0x210] sm:$0xff] %v17922_v0  ;;  %507 = vst [vmem:[#allocation2 + $0x218] sm:$0xff] %v17922_v0  ;;  %v1029_v34 = vsel %vm1002_vm1, %v1027_v21, %v1028_v22  ;;  %v799_v46 = vld [vmem:[%s18362_s15 + $0x1a8] sm:$0xff]  ;;  %v802_v53 = vld [vmem:[%s18362_s15 + $0x1c0] sm:$0xff] }
  0x34   : > { %508 = vst [vmem:[#allocation2 + $0x220] sm:$0xff] %v17922_v0  ;;  %509 = vst [vmem:[#allocation2 + $0x228] sm:$0xff] %v17922_v0  ;;  %v805_v60 = vld [vmem:[%s18362_s15 + $0x1d8] sm:$0xff]  ;;  %v807_v2 = vld [vmem:[%s18362_s15 + $0x1e8] sm:$0xff] }
  0x35   : > { %510 = vst [vmem:[#allocation2 + $0x230] sm:$0xff] %v17922_v0  ;;  %511 = vst [vmem:[#allocation2 + $0x238] sm:$0xff] %v17922_v0  ;;  %v808_v3 = vld [vmem:[%s18362_s15 + $0x1f0] sm:$0xff]  ;;  %v811_v9 = vld [vmem:[%s18362_s15 + $0x208] sm:$0xff] }
  0x36   : > { %512 = vst [vmem:[#allocation2 + $0x240] sm:$0xff] %v17922_v0  ;;  %513 = vst [vmem:[#allocation2 + $0x248] sm:$0xff] %v17922_v0  ;;  %v814_v16 = vld [vmem:[%s18362_s15 + $0x220] sm:$0xff] }
  0x37   : > { %514 = vst [vmem:[#allocation2 + $0x250] sm:$0xff] %v17922_v0  ;;  %515 = vst [vmem:[#allocation2 + $0x258] sm:$0xff] %v17922_v0 }
  0x38   : > { %516 = vst [vmem:[#allocation2 + $0x260] sm:$0xff] %v17922_v0  ;;  %517 = vst [vmem:[#allocation2 + $0x268] sm:$0xff] %v17922_v0 }
  0x39   : > { %518 = vst [vmem:[#allocation2 + $0x270] sm:$0xff] %v17922_v0  ;;  %519 = vst [vmem:[#allocation2 + $0x278] sm:$0xff] %v17922_v0 }
  0x3a   : > { %520 = vst [vmem:[#allocation2 + $0x280] sm:$0xff] %v17922_v0  ;;  %521 = vst [vmem:[#allocation2 + $0x288] sm:$0xff] %v17922_v0 }
  0x3b   : > { %522 = vst [vmem:[#allocation2 + $0x290] sm:$0xff] %v17922_v0  ;;  %523 = vst [vmem:[#allocation2 + $0x298] sm:$0xff] %v17922_v0 }
  0x3c   : > { %524 = vst [vmem:[#allocation2 + $0x2a0] sm:$0xff] %v17922_v0  ;;  %525 = vst [vmem:[#allocation2 + $0x2a8] sm:$0xff] %v17922_v0 }
  0x3d   : > { %526 = vst [vmem:[#allocation2 + $0x2b0] sm:$0xff] %v17922_v0  ;;  %527 = vst [vmem:[#allocation2 + $0x2b8] sm:$0xff] %v17922_v0 }
  0x3e   : > { %528 = vst [vmem:[#allocation2 + $0x2c0] sm:$0xff] %v17922_v0  ;;  %529 = vst [vmem:[#allocation2 + $0x2c8] sm:$0xff] %v17922_v0 }
  0x3f   : > { %530 = vst [vmem:[#allocation2 + $0x2d0] sm:$0xff] %v17922_v0  ;;  %531 = vst [vmem:[#allocation2 + $0x2d8] sm:$0xff] %v17922_v0 }
  0x40   : > { %532 = vst [vmem:[#allocation2 + $0x2e0] sm:$0xff] %v17922_v0  ;;  %533 = vst [vmem:[#allocation2 + $0x2e8] sm:$0xff] %v17922_v0 }
  0x41   : > { %534 = vst [vmem:[#allocation2 + $0x2f0] sm:$0xff] %v17922_v0  ;;  %535 = vst [vmem:[#allocation2 + $0x2f8] sm:$0xff] %v17922_v0 }
  0x42   : > { %536 = vst [vmem:[#allocation2 + $0x300] sm:$0xff] %v17922_v0  ;;  %537 = vst [vmem:[#allocation2 + $0x308] sm:$0xff] %v17922_v0 }
  0x43   : > { %538 = vst [vmem:[#allocation2 + $0x310] sm:$0xff] %v17922_v0  ;;  %539 = vst [vmem:[#allocation2 + $0x318] sm:$0xff] %v17922_v0 }
  0x44   : > { %540 = vst [vmem:[#allocation2 + $0x320] sm:$0xff] %v17922_v0  ;;  %541 = vst [vmem:[#allocation2 + $0x328] sm:$0xff] %v17922_v0 }
  0x45   : > { %542 = vst [vmem:[#allocation3] sm:$0xff] %v17922_v0  ;;  %543 = vst [vmem:[#allocation3 + $0x8] sm:$0xff] %v17922_v0 }
  0x46   : > { %544 = vst [vmem:[#allocation3 + $0x10] sm:$0xff] %v17922_v0  ;;  %545 = vst [vmem:[#allocation3 + $0x18] sm:$0xff] %v17922_v0 }
  0x47   : > { %546 = vst [vmem:[#allocation3 + $0x20] sm:$0xff] %v17922_v0  ;;  %547 = vst [vmem:[#allocation3 + $0x28] sm:$0xff] %v17922_v0 }
  0x48   : > { %548 = vst [vmem:[#allocation3 + $0x30] sm:$0xff] %v17922_v0  ;;  %549 = vst [vmem:[#allocation3 + $0x38] sm:$0xff] %v17922_v0 }
  0x49   : > { %550 = vst [vmem:[#allocation3 + $0x40] sm:$0xff] %v17922_v0  ;;  %551 = vst [vmem:[#allocation3 + $0x48] sm:$0xff] %v17922_v0 }
  0x4a   : > { %552 = vst [vmem:[#allocation3 + $0x50] sm:$0xff] %v17922_v0  ;;  %553 = vst [vmem:[#allocation3 + $0x58] sm:$0xff] %v17922_v0 }
  0x4b   : > { %554 = vst [vmem:[#allocation3 + $0x60] sm:$0xff] %v17922_v0  ;;  %555 = vst [vmem:[#allocation3 + $0x68] sm:$0xff] %v17922_v0 }
  0x4c   : > { %556 = vst [vmem:[#allocation3 + $0x70] sm:$0xff] %v17922_v0  ;;  %557 = vst [vmem:[#allocation3 + $0x78] sm:$0xff] %v17922_v0 }
  0x4d   : > { %558 = vst [vmem:[#allocation3 + $0x80] sm:$0xff] %v17922_v0  ;;  %559 = vst [vmem:[#allocation3 + $0x88] sm:$0xff] %v17922_v0 }
  0x4e   : > { %560 = vst [vmem:[#allocation3 + $0x90] sm:$0xff] %v17922_v0  ;;  %561 = vst [vmem:[#allocation3 + $0x98] sm:$0xff] %v17922_v0 }
  0x4f   : > { %562 = vst [vmem:[#allocation3 + $0xa0] sm:$0xff] %v17922_v0  ;;  %563 = vst [vmem:[#allocation3 + $0xa8] sm:$0xff] %v17922_v0 }
  0x50   : > { %564 = vst [vmem:[#allocation3 + $0xb0] sm:$0xff] %v17922_v0  ;;  %565 = vst [vmem:[#allocation3 + $0xb8] sm:$0xff] %v17922_v0 }
  0x51   : > { %566 = vst [vmem:[#allocation3 + $0xc0] sm:$0xff] %v17922_v0  ;;  %567 = vst [vmem:[#allocation3 + $0xc8] sm:$0xff] %v17922_v0 }
  0x52   : > { %568 = vst [vmem:[#allocation3 + $0xd0] sm:$0xff] %v17922_v0  ;;  %569 = vst [vmem:[#allocation3 + $0xd8] sm:$0xff] %v17922_v0 }
  0x53   : > { %570 = vst [vmem:[#allocation3 + $0xe0] sm:$0xff] %v17922_v0  ;;  %571 = vst [vmem:[#allocation3 + $0xe8] sm:$0xff] %v17922_v0 }
  0x54   : > { %572 = vst [vmem:[#allocation3 + $0xf0] sm:$0xff] %v17922_v0  ;;  %573 = vst [vmem:[#allocation3 + $0xf8] sm:$0xff] %v17922_v0 }
  0x55   : > { %574 = vst [vmem:[#allocation3 + $0x100] sm:$0xff] %v17922_v0  ;;  %575 = vst [vmem:[#allocation3 + $0x108] sm:$0xff] %v17922_v0 }
  0x56   : > { %576 = vst [vmem:[#allocation3 + $0x110] sm:$0xff] %v17922_v0  ;;  %577 = vst [vmem:[#allocation3 + $0x118] sm:$0xff] %v17922_v0 }
  0x57   : > { %578 = vst [vmem:[#allocation3 + $0x120] sm:$0xff] %v17922_v0  ;;  %579 = vst [vmem:[#allocation3 + $0x128] sm:$0xff] %v17922_v0 }
  0x58   : > { %580 = vst [vmem:[#allocation3 + $0x130] sm:$0xff] %v17922_v0  ;;  %581 = vst [vmem:[#allocation3 + $0x138] sm:$0xff] %v17922_v0 }
  0x59   : > { %582 = vst [vmem:[#allocation3 + $0x140] sm:$0xff] %v17922_v0  ;;  %583 = vst [vmem:[#allocation3 + $0x148] sm:$0xff] %v17922_v0 }
  0x5a   : > { %584 = vst [vmem:[#allocation3 + $0x150] sm:$0xff] %v17922_v0  ;;  %585 = vst [vmem:[#allocation3 + $0x158] sm:$0xff] %v17922_v0 }
  0x5b   : > { %586 = vst [vmem:[#allocation3 + $0x160] sm:$0xff] %v17922_v0  ;;  %587 = vst [vmem:[#allocation3 + $0x168] sm:$0xff] %v17922_v0 }
  0x5c   : > { %588 = vst [vmem:[#allocation3 + $0x170] sm:$0xff] %v17922_v0  ;;  %589 = vst [vmem:[#allocation3 + $0x178] sm:$0xff] %v17922_v0 }
  0x5d   : > { %590 = vst [vmem:[#allocation3 + $0x180] sm:$0xff] %v17922_v0  ;;  %591 = vst [vmem:[#allocation3 + $0x188] sm:$0xff] %v17922_v0 }
  0x5e   : > { %592 = vst [vmem:[#allocation3 + $0x190] sm:$0xff] %v17922_v0  ;;  %593 = vst [vmem:[#allocation3 + $0x198] sm:$0xff] %v17922_v0 }
  0x5f   : > { %594 = vst [vmem:[#allocation3 + $0x1a0] sm:$0xff] %v17922_v0  ;;  %595 = vst [vmem:[#allocation3 + $0x1a8] sm:$0xff] %v17922_v0 }
  0x60   : > { %596 = vst [vmem:[#allocation3 + $0x1b0] sm:$0xff] %v17922_v0  ;;  %597 = vst [vmem:[#allocation3 + $0x1b8] sm:$0xff] %v17922_v0 }
  0x61   : > { %598 = vst [vmem:[#allocation3 + $0x1c0] sm:$0xff] %v17922_v0  ;;  %599 = vst [vmem:[#allocation3 + $0x1c8] sm:$0xff] %v17922_v0 }
  0x62   : > { %600 = vst [vmem:[#allocation3 + $0x1d0] sm:$0xff] %v17922_v0  ;;  %601 = vst [vmem:[#allocation3 + $0x1d8] sm:$0xff] %v17922_v0 }
  0x63   : > { %602 = vst [vmem:[#allocation3 + $0x1e0] sm:$0xff] %v17922_v0  ;;  %603 = vst [vmem:[#allocation3 + $0x1e8] sm:$0xff] %v17922_v0 }
  0x64   : > { %604 = vst [vmem:[#allocation3 + $0x1f0] sm:$0xff] %v17922_v0  ;;  %605 = vst [vmem:[#allocation3 + $0x1f8] sm:$0xff] %v17922_v0 }
  0x65   : > { %606 = vst [vmem:[#allocation3 + $0x200] sm:$0xff] %v17922_v0  ;;  %607 = vst [vmem:[#allocation3 + $0x208] sm:$0xff] %v17922_v0 }
  0x66   : > { %608 = vst [vmem:[#allocation3 + $0x210] sm:$0xff] %v17922_v0  ;;  %609 = vst [vmem:[#allocation3 + $0x218] sm:$0xff] %v17922_v0 }
  0x67   : > { %610 = vst [vmem:[#allocation3 + $0x220] sm:$0xff] %v17922_v0  ;;  %611 = vst [vmem:[#allocation3 + $0x228] sm:$0xff] %v17922_v0 }
  0x68   : > { %612 = vst [vmem:[#allocation3 + $0x230] sm:$0xff] %v17922_v0  ;;  %613 = vst [vmem:[#allocation3 + $0x238] sm:$0xff] %v17922_v0 }
  0x69   : > { %614 = vst [vmem:[#allocation3 + $0x240] sm:$0xff] %v17922_v0  ;;  %615 = vst [vmem:[#allocation3 + $0x248] sm:$0xff] %v17922_v0 }
  0x6a   : > { %616 = vst [vmem:[#allocation3 + $0x250] sm:$0xff] %v17922_v0  ;;  %617 = vst [vmem:[#allocation3 + $0x258] sm:$0xff] %v17922_v0 }
  0x6b   : > { %618 = vst [vmem:[#allocation3 + $0x260] sm:$0xff] %v17922_v0  ;;  %619 = vst [vmem:[#allocation3 + $0x268] sm:$0xff] %v17922_v0 }
  0x6c   : > { %620 = vst [vmem:[#allocation3 + $0x270] sm:$0xff] %v17922_v0  ;;  %621 = vst [vmem:[#allocation3 + $0x278] sm:$0xff] %v17922_v0 }
  0x6d   : > { %622 = vst [vmem:[#allocation3 + $0x280] sm:$0xff] %v17922_v0  ;;  %623 = vst [vmem:[#allocation3 + $0x288] sm:$0xff] %v17922_v0 }
  0x6e   : > { %624 = vst [vmem:[#allocation3 + $0x290] sm:$0xff] %v17922_v0  ;;  %625 = vst [vmem:[#allocation3 + $0x298] sm:$0xff] %v17922_v0 }
  0x6f   : > { %626 = vst [vmem:[#allocation3 + $0x2a0] sm:$0xff] %v17922_v0  ;;  %627 = vst [vmem:[#allocation3 + $0x2a8] sm:$0xff] %v17922_v0 }
  0x70   : > { %628 = vst [vmem:[#allocation3 + $0x2b0] sm:$0xff] %v17922_v0  ;;  %629 = vst [vmem:[#allocation3 + $0x2b8] sm:$0xff] %v17922_v0 }
  0x71   : > { %630 = vst [vmem:[#allocation3 + $0x2c0] sm:$0xff] %v17922_v0  ;;  %631 = vst [vmem:[#allocation3 + $0x2c8] sm:$0xff] %v17922_v0 }
  0x72   : > { %632 = vst [vmem:[#allocation3 + $0x2d0] sm:$0xff] %v17922_v0  ;;  %633 = vst [vmem:[#allocation3 + $0x2d8] sm:$0xff] %v17922_v0 }
  0x73   : > { %634 = vst [vmem:[#allocation3 + $0x2e0] sm:$0xff] %v17922_v0  ;;  %635 = vst [vmem:[#allocation3 + $0x2e8] sm:$0xff] %v17922_v0 }
  0x74   : > { %636 = vst [vmem:[#allocation3 + $0x2f0] sm:$0xff] %v17922_v0  ;;  %637 = vst [vmem:[#allocation3 + $0x2f8] sm:$0xff] %v17922_v0 }
  0x75   : > { %638 = vst [vmem:[#allocation3 + $0x300] sm:$0xff] %v17922_v0  ;;  %639 = vst [vmem:[#allocation3 + $0x308] sm:$0xff] %v17922_v0 }
  0x76   : > { %640 = vst [vmem:[#allocation3 + $0x310] sm:$0xff] %v17922_v0  ;;  %641 = vst [vmem:[#allocation3 + $0x318] sm:$0xff] %v17922_v0 }
  0x77   : > { %642 = vst [vmem:[#allocation3 + $0x320] sm:$0xff] %v17922_v0  ;;  %643 = vst [vmem:[#allocation3 + $0x328] sm:$0xff] %v17922_v0 }
  0x78   : > { %644 = vst [vmem:[#allocation4] sm:$0xff] %v17922_v0  ;;  %645 = vst [vmem:[#allocation4 + $0x8] sm:$0xff] %v17922_v0 }
  0x79   : > { %646 = vst [vmem:[#allocation4 + $0x10] sm:$0xff] %v17922_v0  ;;  %647 = vst [vmem:[#allocation4 + $0x18] sm:$0xff] %v17922_v0 }
  0x7a   : > { %648 = vst [vmem:[#allocation4 + $0x20] sm:$0xff] %v17922_v0  ;;  %649 = vst [vmem:[#allocation4 + $0x28] sm:$0xff] %v17922_v0 }
  0x7b   : > { %650 = vst [vmem:[#allocation4 + $0x30] sm:$0xff] %v17922_v0  ;;  %651 = vst [vmem:[#allocation4 + $0x38] sm:$0xff] %v17922_v0 }
  0x7c   : > { %652 = vst [vmem:[#allocation4 + $0x40] sm:$0xff] %v17922_v0  ;;  %653 = vst [vmem:[#allocation4 + $0x48] sm:$0xff] %v17922_v0 }
  0x7d   : > { %654 = vst [vmem:[#allocation4 + $0x50] sm:$0xff] %v17922_v0  ;;  %655 = vst [vmem:[#allocation4 + $0x58] sm:$0xff] %v17922_v0 }
  0x7e   : > { %656 = vst [vmem:[#allocation4 + $0x60] sm:$0xff] %v17922_v0  ;;  %657 = vst [vmem:[#allocation4 + $0x68] sm:$0xff] %v17922_v0 }
  0x7f   : > { %658 = vst [vmem:[#allocation4 + $0x70] sm:$0xff] %v17922_v0  ;;  %659 = vst [vmem:[#allocation4 + $0x78] sm:$0xff] %v17922_v0 }
  0x80   : > { %660 = vst [vmem:[#allocation4 + $0x80] sm:$0xff] %v17922_v0  ;;  %661 = vst [vmem:[#allocation4 + $0x88] sm:$0xff] %v17922_v0 }
  0x81   : > { %662 = vst [vmem:[#allocation4 + $0x90] sm:$0xff] %v17922_v0  ;;  %663 = vst [vmem:[#allocation4 + $0x98] sm:$0xff] %v17922_v0 }
  0x82   : > { %664 = vst [vmem:[#allocation4 + $0xa0] sm:$0xff] %v17922_v0  ;;  %665 = vst [vmem:[#allocation4 + $0xa8] sm:$0xff] %v17922_v0 }
  0x83   : > { %666 = vst [vmem:[#allocation4 + $0xb0] sm:$0xff] %v17922_v0  ;;  %667 = vst [vmem:[#allocation4 + $0xb8] sm:$0xff] %v17922_v0 }
  0x84   : > { %668 = vst [vmem:[#allocation4 + $0xc0] sm:$0xff] %v17922_v0  ;;  %669 = vst [vmem:[#allocation4 + $0xc8] sm:$0xff] %v17922_v0 }
  0x85   : > { %670 = vst [vmem:[#allocation4 + $0xd0] sm:$0xff] %v17922_v0  ;;  %671 = vst [vmem:[#allocation4 + $0xd8] sm:$0xff] %v17922_v0 }
  0x86   : > { %672 = vst [vmem:[#allocation4 + $0xe0] sm:$0xff] %v17922_v0  ;;  %673 = vst [vmem:[#allocation4 + $0xe8] sm:$0xff] %v17922_v0 }
  0x87   : > { %674 = vst [vmem:[#allocation4 + $0xf0] sm:$0xff] %v17922_v0  ;;  %675 = vst [vmem:[#allocation4 + $0xf8] sm:$0xff] %v17922_v0 }
  0x88   : > { %676 = vst [vmem:[#allocation4 + $0x100] sm:$0xff] %v17922_v0  ;;  %677 = vst [vmem:[#allocation4 + $0x108] sm:$0xff] %v17922_v0 }
  0x89   : > { %678 = vst [vmem:[#allocation4 + $0x110] sm:$0xff] %v17922_v0  ;;  %679 = vst [vmem:[#allocation4 + $0x118] sm:$0xff] %v17922_v0 }
  0x8a   : > { %680 = vst [vmem:[#allocation5] sm:$0xff] %v17922_v0  ;;  %681 = vst [vmem:[#allocation5 + $0x8] sm:$0xff] %v17922_v0 }
  0x8b   : > { %682 = vst [vmem:[#allocation5 + $0x10] sm:$0xff] %v17922_v0  ;;  %683 = vst [vmem:[#allocation5 + $0x18] sm:$0xff] %v17922_v0 }
  0x8c   : > { %684 = vst [vmem:[#allocation5 + $0x20] sm:$0xff] %v17922_v0  ;;  %685 = vst [vmem:[#allocation5 + $0x28] sm:$0xff] %v17922_v0 }
  0x8d   : > { %686 = vst [vmem:[#allocation5 + $0x30] sm:$0xff] %v17922_v0  ;;  %687 = vst [vmem:[#allocation5 + $0x38] sm:$0xff] %v17922_v0 }
  0x8e   : > { %688 = vst [vmem:[#allocation5 + $0x40] sm:$0xff] %v17922_v0  ;;  %689 = vst [vmem:[#allocation5 + $0x48] sm:$0xff] %v17922_v0 }
  0x8f   : > { %690 = vst [vmem:[#allocation5 + $0x50] sm:$0xff] %v17922_v0  ;;  %691 = vst [vmem:[#allocation5 + $0x58] sm:$0xff] %v17922_v0 }
  0x90   : > { %692 = vst [vmem:[#allocation5 + $0x60] sm:$0xff] %v17922_v0  ;;  %693 = vst [vmem:[#allocation5 + $0x68] sm:$0xff] %v17922_v0 }
  0x91   : > { %694 = vst [vmem:[#allocation5 + $0x70] sm:$0xff] %v17922_v0  ;;  %695 = vst [vmem:[#allocation5 + $0x78] sm:$0xff] %v17922_v0 }
  0x92   : > { %696 = vst [vmem:[#allocation5 + $0x80] sm:$0xff] %v17922_v0  ;;  %697 = vst [vmem:[#allocation5 + $0x88] sm:$0xff] %v17922_v0 }
  0x93   : > { %698 = vst [vmem:[#allocation5 + $0x90] sm:$0xff] %v17922_v0  ;;  %699 = vst [vmem:[#allocation5 + $0x98] sm:$0xff] %v17922_v0 }
  0x94   : > { %700 = vst [vmem:[#allocation5 + $0xa0] sm:$0xff] %v17922_v0  ;;  %701 = vst [vmem:[#allocation5 + $0xa8] sm:$0xff] %v17922_v0 }
  0x95   : > { %702 = vst [vmem:[#allocation5 + $0xb0] sm:$0xff] %v17922_v0  ;;  %703 = vst [vmem:[#allocation5 + $0xb8] sm:$0xff] %v17922_v0 }
  0x96   : > { %704 = vst [vmem:[#allocation5 + $0xc0] sm:$0xff] %v17922_v0  ;;  %705 = vst [vmem:[#allocation5 + $0xc8] sm:$0xff] %v17922_v0 }
  0x97   : > { %706 = vst [vmem:[#allocation5 + $0xd0] sm:$0xff] %v17922_v0  ;;  %707 = vst [vmem:[#allocation5 + $0xd8] sm:$0xff] %v17922_v0 }
  0x98   : > { %708 = vst [vmem:[#allocation5 + $0xe0] sm:$0xff] %v17922_v0  ;;  %709 = vst [vmem:[#allocation5 + $0xe8] sm:$0xff] %v17922_v0 }
  0x99   : > { %710 = vst [vmem:[#allocation5 + $0xf0] sm:$0xff] %v17922_v0  ;;  %711 = vst [vmem:[#allocation5 + $0xf8] sm:$0xff] %v17922_v0 }
  0x9a   : > { %712 = vst [vmem:[#allocation5 + $0x100] sm:$0xff] %v17922_v0  ;;  %713 = vst [vmem:[#allocation5 + $0x108] sm:$0xff] %v17922_v0 }
  0x9b   : > { %714 = vst [vmem:[#allocation5 + $0x110] sm:$0xff] %v17922_v0  ;;  %715 = vst [vmem:[#allocation5 + $0x118] sm:$0xff] %v17922_v0 }
  0x9c   : > { %716 = vst [vmem:[#allocation6] sm:$0xf] %v17922_v0  ;;  %717 = vst [vmem:[#allocation6 + $0x4] sm:$0xf] %v17922_v0 }
  0x9d   : > { %718 = vst [vmem:[#allocation6 + $0x8] sm:$0xf] %v17922_v0  ;;  %719 = vst [vmem:[#allocation6 + $0xc] sm:$0xf] %v17922_v0 }
  0x9e   : > { %720 = vst [vmem:[#allocation6 + $0x10] sm:$0xf] %v17922_v0  ;;  %721 = vst [vmem:[#allocation6 + $0x14] sm:$0xf] %v17922_v0 }
  0x9f   : > { %722 = vst [vmem:[#allocation6 + $0x18] sm:$0xf] %v17922_v0  ;;  %723 = vst [vmem:[#allocation6 + $0x1c] sm:$0xf] %v17922_v0 }
  0xa0   : > { %724 = vst [vmem:[#allocation6 + $0x20] sm:$0xf] %v17922_v0  ;;  %725 = vst [vmem:[#allocation6 + $0x24] sm:$0xf] %v17922_v0 }
  0xa1   : > { %726 = vst [vmem:[#allocation6 + $0x28] sm:$0xf] %v17922_v0  ;;  %727 = vst [vmem:[#allocation6 + $0x2c] sm:$0xf] %v17922_v0 }
  0xa2   : > { %728 = vst [vmem:[#allocation6 + $0x30] sm:$0xf] %v17922_v0  ;;  %729 = vst [vmem:[#allocation6 + $0x34] sm:$0xf] %v17922_v0 }
  0xa3   : > { %730 = vst [vmem:[#allocation6 + $0x38] sm:$0xf] %v17922_v0  ;;  %731 = vst [vmem:[#allocation6 + $0x3c] sm:$0xf] %v17922_v0 }
  0xa4   : > { %732 = vst [vmem:[#allocation6 + $0x40] sm:$0xf] %v17922_v0  ;;  %733 = vst [vmem:[#allocation6 + $0x44] sm:$0xf] %v17922_v0 }
  0xa5   : > { %734 = vst [vmem:[#allocation6 + $0x48] sm:$0xf] %v17922_v0  ;;  %735 = vst [vmem:[#allocation6 + $0x4c] sm:$0xf] %v17922_v0 }
  0xa6   : > { %736 = vst [vmem:[#allocation6 + $0x50] sm:$0xf] %v17922_v0  ;;  %737 = vst [vmem:[#allocation6 + $0x54] sm:$0xf] %v17922_v0 }
  0xa7   : > { %738 = vst [vmem:[#allocation6 + $0x58] sm:$0xf] %v17922_v0  ;;  %739 = vst [vmem:[#allocation6 + $0x5c] sm:$0xf] %v17922_v0 }
  0xa8   : > { %740 = vst [vmem:[#allocation6 + $0x60] sm:$0xf] %v17922_v0  ;;  %741 = vst [vmem:[#allocation6 + $0x64] sm:$0xf] %v17922_v0 }
  0xa9   : > { %742 = vst [vmem:[#allocation6 + $0x68] sm:$0xf] %v17922_v0  ;;  %743 = vst [vmem:[#allocation6 + $0x6c] sm:$0xf] %v17922_v0 }
  0xaa   : > { %744 = vst [vmem:[#allocation6 + $0x70] sm:$0xf] %v17922_v0  ;;  %745 = vst [vmem:[#allocation6 + $0x74] sm:$0xf] %v17922_v0  ;;  %v1017_v0 = vsel %vm1002_vm1, %v1015_v51, %v1016_v52 }
  0xab   : > { %1197 = vst.msk [vmem:[#allocation2 + $0x18] sm:$0xf0] %vm1196_vm0, %v1003_v13  ;;  %1202 = vst.msk [vmem:[#allocation2 + $0x30] sm:$0xf0] %vm1196_vm0, %v1006_v19  ;;  %v784_v13 = vld [vmem:[%s18362_s15 + $0x130] sm:$0xff]  ;;  %v787_v19 = vld [vmem:[%s18362_s15 + $0x148] sm:$0xff] }
  0xac   : > { %1201 = vst.msk [vmem:[#allocation2 + $0x28] sm:$0xf] %vm1200_vm3, %v1004_v18  ;;  %1204 = vst.msk [vmem:[#allocation2 + $0x40] sm:$0xf] %vm1200_vm3, %v1007_v25  ;;  %v786_v18 = vld [vmem:[%s18362_s15 + $0x140] sm:$0xff]  ;;  %v893_v23 = vpack.c.bf16 %v785_v17, %v784_v13  ;;  %v789_v25 = vld [vmem:[%s18362_s15 + $0x158] sm:$0xff] }
  0xad   : > { %1199 = vst.msk [vmem:[#allocation2 + $0x20] sm:$0xff] %vm1198_vm2, %v1005_v30  ;;  %1203 = vst.msk [vmem:[#allocation2 + $0x38] sm:$0xff] %vm1198_vm2, %v1008_v37  ;;  %v894_v29 = vpack.c.bf16 %v787_v19, %v786_v18  ;;  %v895_v30 = vpack.c.bf16 %v789_v25, %v788_v24 }
  0xae   : > { %1205 = vst.msk [vmem:[#allocation2 + $0x48] sm:$0xf0] %vm1196_vm0, %v1009_v31  ;;  %1208 = vst.msk [vmem:[#allocation2 + $0x60] sm:$0xf0] %vm1196_vm0, %v1012_v38  ;;  %v791_v31 = vld [vmem:[%s18362_s15 + $0x168] sm:$0xff]  ;;  %v1031_v35 = vrot.slane %v893_v23, 4 }
  0xaf   : > { %1207 = vst.msk [vmem:[#allocation2 + $0x58] sm:$0xf] %vm1200_vm3, %v1010_v32  ;;  %1210 = vst.msk [vmem:[#allocation2 + $0x70] sm:$0xf] %vm1200_vm3, %v1013_v45  ;;  %v792_v32 = vld [vmem:[%s18362_s15 + $0x170] sm:$0xff]  ;;  %v896_v36 = vpack.c.bf16 %v791_v31, %v790_v26  ;;  %v794_v38 = vld [vmem:[%s18362_s15 + $0x180] sm:$0xff] }
  0xb0   : > { %1206 = vst.msk [vmem:[#allocation2 + $0x50] sm:$0xff] %vm1198_vm2, %v1011_v44  ;;  %1209 = vst.msk [vmem:[#allocation2 + $0x68] sm:$0xff] %vm1198_vm2, %v1014_v57  ;;  %v897_v37 = vpack.c.bf16 %v793_v33, %v792_v32  ;;  %v1033_v41 = vrot.slane %v894_v29, 4  ;;  %v1034_v42 = vrot.slane %v895_v30, 4  ;;  %v898_v43 = vpack.c.bf16 %v795_v39, %v794_v38  ;;  %v797_v44 = vld [vmem:[%s18362_s15 + $0x198] sm:$0xff]  ;;  %v798_v45 = vld [vmem:[%s18362_s15 + $0x1a0] sm:$0xff] }
  0xb1   : > { %1211 = vst.msk [vmem:[#allocation2 + $0x78] sm:$0xf0] %vm1196_vm0, %v1015_v51  ;;  %1214 = vst.msk [vmem:[#allocation2 + $0x90] sm:$0xf0] %vm1196_vm0, %v1018_v58  ;;  %v1032_v47 = vsel %vm1002_vm1, %v1030_v28, %v1031_v35  ;;  %v1036_v48 = vrot.slane %v896_v36, 4  ;;  %v899_v50 = vpack.c.bf16 %v797_v44, %v796_v40  ;;  %v800_v51 = vld [vmem:[%s18362_s15 + $0x1b0] sm:$0xff]  ;;  %v900_v56 = vpack.c.bf16 %v799_v46, %v798_v45 }
  0xb2   : > { %1213 = vst.msk [vmem:[#allocation2 + $0x88] sm:$0xf] %vm1200_vm3, %v1016_v52  ;;  %1216 = vst.msk [vmem:[#allocation2 + $0xa0] sm:$0xf] %vm1200_vm3, %v1019_v59  ;;  %v1037_v49 = vrot.slane %v897_v37, 4  ;;  %v801_v52 = vld [vmem:[%s18362_s15 + $0x1b8] sm:$0xff]  ;;  %v1035_v54 = vsel %vm1002_vm1, %v1033_v41, %v1034_v42 }
  0xb3   : > { %1212 = vst.msk [vmem:[#allocation2 + $0x80] sm:$0xff] %vm1198_vm2, %v1017_v0  ;;  %1215 = vst.msk [vmem:[#allocation2 + $0x98] sm:$0xff] %vm1198_vm2, %v1020_v7  ;;  %v1039_v55 = vrot.slane %v898_v43, 4  ;;  %v901_v57 = vpack.c.bf16 %v801_v52, %v800_v51  ;;  %v803_v58 = vld [vmem:[%s18362_s15 + $0x1c8] sm:$0xff]  ;;  %v804_v59 = vld [vmem:[%s18362_s15 + $0x1d0] sm:$0xff]  ;;  %v1040_v62 = vrot.slane %v899_v50, 4 }
  0xb4   : > { %1217 = vst.msk [vmem:[#allocation2 + $0xa8] sm:$0xf0] %vm1196_vm0, %v1021_v1  ;;  %1220 = vst.msk [vmem:[#allocation2 + $0xc0] sm:$0xf0] %vm1196_vm0, %v1024_v14  ;;  %v1038_v61 = vsel %vm1002_vm1, %v1036_v48, %v1037_v49  ;;  %v902_v63 = vpack.c.bf16 %v803_v58, %v802_v53  ;;  %v903_v0 = vpack.c.bf16 %v805_v60, %v804_v59  ;;  %v806_v1 = vld [vmem:[%s18362_s15 + $0x1e0] sm:$0xff]  ;;  %v1042_v4 = vrot.slane %v900_v56, 4 }
  0xb5   : > { %1219 = vst.msk [vmem:[#allocation2 + $0xb8] sm:$0xf] %vm1200_vm3, %v1022_v8  ;;  %1222 = vst.msk [vmem:[#allocation2 + $0xd0] sm:$0xf] %vm1200_vm3, %v1025_v15  ;;  %v1043_v5 = vrot.slane %v901_v57, 4  ;;  %v904_v6 = vpack.c.bf16 %v807_v2, %v806_v1  ;;  %v809_v7 = vld [vmem:[%s18362_s15 + $0x1f8] sm:$0xff]  ;;  %v1041_v10 = vsel %vm1002_vm1, %v1039_v55, %v1040_v62 }
  0xb6   : > { %1218 = vst.msk [vmem:[#allocation2 + $0xb0] sm:$0xff] %vm1198_vm2, %v1023_v20  ;;  %1221 = vst.msk [vmem:[#allocation2 + $0xc8] sm:$0xff] %vm1198_vm2, %v1026_v27  ;;  %v810_v8 = vld [vmem:[%s18362_s15 + $0x200] sm:$0xff]  ;;  %v1045_v11 = vrot.slane %v902_v63, 4  ;;  %v1046_v12 = vrot.slane %v903_v0, 4  ;;  %v905_v13 = vpack.c.bf16 %v809_v7, %v808_v3  ;;  %v812_v14 = vld [vmem:[%s18362_s15 + $0x210] sm:$0xff] }
  0xb7   : > { %1223 = vst.msk [vmem:[#allocation2 + $0xd8] sm:$0xf0] %vm1196_vm0, %v1027_v21  ;;  %1226 = vst.msk [vmem:[#allocation2 + $0xf0] sm:$0xf0] %vm1196_vm0, %v1030_v28  ;;  %v813_v15 = vld [vmem:[%s18362_s15 + $0x218] sm:$0xff]  ;;  %v1044_v17 = vsel %vm1002_vm1, %v1042_v4, %v1043_v5  ;;  %v1048_v18 = vrot.slane %v904_v6, 4  ;;  %v906_v19 = vpack.c.bf16 %v811_v9, %v810_v8 }
  0xb8   : > { %1225 = vst.msk [vmem:[#allocation2 + $0xe8] sm:$0xf] %vm1200_vm3, %v1028_v22  ;;  %1228 = vst.msk [vmem:[#allocation2 + $0x100] sm:$0xf] %vm1200_vm3, %v1031_v35  ;;  %v907_v20 = vpack.c.bf16 %v813_v15, %v812_v14  ;;  %v815_v21 = vld [vmem:[%s18362_s15 + $0x228] sm:$0xff]  ;;  %v816_v22 = vld [vmem:[%s18362_s15 + $0x230] sm:$0xff]  ;;  %v1047_v24 = vsel %vm1002_vm1, %v1045_v11, %v1046_v12 }
  0xb9   : > { %1224 = vst.msk [vmem:[#allocation2 + $0xe0] sm:$0xff] %vm1198_vm2, %v1029_v34  ;;  %1227 = vst.msk [vmem:[#allocation2 + $0xf8] sm:$0xff] %vm1198_vm2, %v1032_v47  ;;  %v817_v23 = vld [vmem:[%s18362_s15 + $0x238] sm:$0xff]  ;;  %v1049_v25 = vrot.slane %v905_v13, 4  ;;  %v908_v26 = vpack.c.bf16 %v815_v21, %v814_v16  ;;  %v818_v28 = vld [vmem:[%s18362_s15 + $0x240] sm:$0xff]  ;;  %v1051_v31 = vrot.slane %v906_v19, 4 }
  0xba   : > { %1229 = vst.msk [vmem:[#allocation2 + $0x108] sm:$0xf0] %vm1196_vm0, %v1033_v41  ;;  %1232 = vst.msk [vmem:[#allocation2 + $0x120] sm:$0xf0] %vm1196_vm0, %v1036_v48  ;;  %v909_v27 = vpack.c.bf16 %v817_v23, %v816_v22  ;;  %v819_v29 = vld [vmem:[%s18362_s15 + $0x248] sm:$0xff]  ;;  %v820_v30 = vld [vmem:[%s18362_s15 + $0x250] sm:$0xff] }
  0xbb   : > { %1231 = vst.msk [vmem:[#allocation2 + $0x118] sm:$0xf] %vm1200_vm3, %v1034_v42  ;;  %1234 = vst.msk [vmem:[#allocation2 + $0x130] sm:$0xf] %vm1200_vm3, %v1037_v49  ;;  %v1052_v32 = vrot.slane %v907_v20, 4  ;;  %v910_v33 = vpack.c.bf16 %v819_v29, %v818_v28  ;;  %v821_v34 = vld [vmem:[%s18362_s15 + $0x258] sm:$0xff]  ;;  %v1050_v37 = vsel %vm1002_vm1, %v1048_v18, %v1049_v25 }
  0xbc   : > { %1230 = vst.msk [vmem:[#allocation2 + $0x110] sm:$0xff] %vm1198_vm2, %v1035_v54  ;;  %1233 = vst.msk [vmem:[#allocation2 + $0x128] sm:$0xff] %vm1198_vm2, %v1038_v61  ;;  %v822_v35 = vld [vmem:[%s18362_s15 + $0x260] sm:$0xff]  ;;  %v823_v36 = vld [vmem:[%s18362_s15 + $0x268] sm:$0xff]  ;;  %v1054_v38 = vrot.slane %v908_v26, 4  ;;  %v1055_v39 = vrot.slane %v909_v27, 4  ;;  %v911_v40 = vpack.c.bf16 %v821_v34, %v820_v30 }
  0xbd   : > { %1235 = vst.msk [vmem:[#allocation2 + $0x138] sm:$0xf0] %vm1196_vm0, %v1039_v55  ;;  %1238 = vst.msk [vmem:[#allocation2 + $0x150] sm:$0xf0] %vm1196_vm0, %v1042_v4  ;;  %v824_v41 = vld [vmem:[%s18362_s15 + $0x270] sm:$0xff]  ;;  %v825_v42 = vld [vmem:[%s18362_s15 + $0x278] sm:$0xff]  ;;  %v1053_v44 = vsel %vm1002_vm1, %v1051_v31, %v1052_v32  ;;  %v912_v46 = vpack.c.bf16 %v823_v36, %v822_v35 }
  0xbe   : > { %1237 = vst.msk [vmem:[#allocation2 + $0x148] sm:$0xf] %vm1200_vm3, %v1040_v62  ;;  %1240 = vst.msk [vmem:[#allocation2 + $0x160] sm:$0xf] %vm1200_vm3, %v1043_v5  ;;  %v826_v43 = vld [vmem:[%s18362_s15 + $0x280] sm:$0xff]  ;;  %v1057_v45 = vrot.slane %v910_v33, 4  ;;  %v913_v47 = vpack.c.bf16 %v825_v42, %v824_v41  ;;  %v1056_v51 = vsel %vm1002_vm1, %v1054_v38, %v1055_v39 }
  0xbf   : > { %1236 = vst.msk [vmem:[#allocation2 + $0x140] sm:$0xff] %vm1198_vm2, %v1041_v10  ;;  %1239 = vst.msk [vmem:[#allocation2 + $0x158] sm:$0xff] %vm1198_vm2, %v1044_v17  ;;  %v827_v48 = vld [vmem:[%s18362_s15 + $0x288] sm:$0xff]  ;;  %v828_v49 = vld [vmem:[%s18362_s15 + $0x290] sm:$0xff]  ;;  %v1058_v52 = vrot.slane %v911_v40, 4  ;;  %v1060_v58 = vrot.slane %v912_v46, 4 }
  0xc0   : > { %1241 = vst.msk [vmem:[#allocation2 + $0x168] sm:$0xf0] %vm1196_vm0, %v1045_v11  ;;  %1244 = vst.msk [vmem:[#allocation2 + $0x180] sm:$0xf0] %vm1196_vm0, %v1048_v18  ;;  %v829_v50 = vld [vmem:[%s18362_s15 + $0x298] sm:$0xff]  ;;  %v914_v53 = vpack.c.bf16 %v827_v48, %v826_v43  ;;  %v830_v55 = vld [vmem:[%s18362_s15 + $0x2a0] sm:$0xff] }
  0xc1   : > { %1243 = vst.msk [vmem:[#allocation2 + $0x178] sm:$0xf] %vm1200_vm3, %v1046_v12  ;;  %1246 = vst.msk [vmem:[#allocation2 + $0x190] sm:$0xf] %vm1200_vm3, %v1049_v25  ;;  %v915_v54 = vpack.c.bf16 %v829_v50, %v828_v49  ;;  %v831_v56 = vld [vmem:[%s18362_s15 + $0x2a8] sm:$0xff]  ;;  %v832_v57 = vld [vmem:[%s18362_s15 + $0x2b0] sm:$0xff]  ;;  %v1059_v0 = vsel %vm1002_vm1, %v1057_v45, %v1058_v52 }
  0xc2   : > { %1242 = vst.msk [vmem:[#allocation2 + $0x170] sm:$0xff] %vm1198_vm2, %v1047_v24  ;;  %1245 = vst.msk [vmem:[#allocation2 + $0x188] sm:$0xff] %vm1198_vm2, %v1050_v37  ;;  %v1061_v59 = vrot.slane %v913_v47, 4  ;;  %v916_v60 = vpack.c.bf16 %v831_v56, %v830_v55  ;;  %v833_v61 = vld [vmem:[%s18362_s15 + $0x2b8] sm:$0xff]  ;;  %v834_v62 = vld [vmem:[%s18362_s15 + $0x2c0] sm:$0xff]  ;;  %v1063_v1 = vrot.slane %v914_v53, 4 }
  0xc3   : > { %1247 = vst.msk [vmem:[#allocation2 + $0x198] sm:$0xf0] %vm1196_vm0, %v1051_v31  ;;  %1250 = vst.msk [vmem:[#allocation2 + $0x1b0] sm:$0xf0] %vm1196_vm0, %v1054_v38  ;;  %v835_v63 = vld [vmem:[%s18362_s15 + $0x2c8] sm:$0xff]  ;;  %v1064_v2 = vrot.slane %v915_v54, 4  ;;  %v917_v3 = vpack.c.bf16 %v833_v61, %v832_v57 }
  0xc4   : > { %1249 = vst.msk [vmem:[#allocation2 + $0x1a8] sm:$0xf] %vm1200_vm3, %v1052_v32  ;;  %1252 = vst.msk [vmem:[#allocation2 + $0x1c0] sm:$0xf] %vm1200_vm3, %v1055_v39  ;;  %v836_v4 = vld [vmem:[%s18362_s15 + $0x2d0] sm:$0xff]  ;;  %v837_v5 = vld [vmem:[%s18362_s15 + $0x2d8] sm:$0xff]  ;;  %v1062_v7 = vsel %vm1002_vm1, %v1060_v58, %v1061_v59  ;;  %v918_v9 = vpack.c.bf16 %v835_v63, %v834_v62 }
  0xc5   : > { %1248 = vst.msk [vmem:[#allocation2 + $0x1a0] sm:$0xff] %vm1198_vm2, %v1053_v44  ;;  %1251 = vst.msk [vmem:[#allocation2 + $0x1b8] sm:$0xff] %vm1198_vm2, %v1056_v51  ;;  %v838_v6 = vld [vmem:[%s18362_s15 + $0x2e0] sm:$0xff]  ;;  %v1066_v8 = vrot.slane %v916_v60, 4  ;;  %v919_v10 = vpack.c.bf16 %v837_v5, %v836_v4  ;;  %v839_v11 = vld [vmem:[%s18362_s15 + $0x2e8] sm:$0xff]  ;;  %v1065_v14 = vsel %vm1002_vm1, %v1063_v1, %v1064_v2  ;;  %v1067_v15 = vrot.slane %v917_v3, 4 }
  0xc6   : > { %1253 = vst.msk [vmem:[#allocation2 + $0x1c8] sm:$0xf0] %vm1196_vm0, %v1057_v45  ;;  %1256 = vst.msk [vmem:[#allocation2 + $0x1e0] sm:$0xf0] %vm1196_vm0, %v1060_v58  ;;  %v840_v12 = vld [vmem:[%s18362_s15 + $0x2f0] sm:$0xff]  ;;  %v841_v13 = vld [vmem:[%s18362_s15 + $0x2f8] sm:$0xff]  ;;  %v920_v16 = vpack.c.bf16 %v839_v11, %v838_v6 }
  0xc7   : > { %1255 = vst.msk [vmem:[#allocation2 + $0x1d8] sm:$0xf] %vm1200_vm3, %v1058_v52  ;;  %1258 = vst.msk [vmem:[#allocation2 + $0x1f0] sm:$0xf] %vm1200_vm3, %v1061_v59  ;;  %v921_v17 = vpack.c.bf16 %v841_v13, %v840_v12  ;;  %v842_v18 = vld [vmem:[%s18362_s15 + $0x300] sm:$0xff]  ;;  %v843_v19 = vld [vmem:[%s18362_s15 + $0x308] sm:$0xff]  ;;  %v1068_v27 = vsel %vm1002_vm1, %v1066_v8, %v1067_v15 }
  0xc8   : > { %1254 = vst.msk [vmem:[#allocation2 + $0x1d0] sm:$0xff] %vm1198_vm2, %v1059_v0  ;;  %1257 = vst.msk [vmem:[#allocation2 + $0x1e8] sm:$0xff] %vm1198_vm2, %v1062_v7  ;;  %v844_v20 = vld [vmem:[%s18362_s15 + $0x310] sm:$0xff]  ;;  %v1069_v21 = vrot.slane %v918_v9, 4  ;;  %v1070_v22 = vrot.slane %v919_v10, 4  ;;  %v922_v23 = vpack.c.bf16 %v843_v19, %v842_v18  ;;  %v845_v24 = vld [vmem:[%s18362_s15 + $0x318] sm:$0xff] }
  0xc9   : > { %1259 = vst.msk [vmem:[#allocation2 + $0x1f8] sm:$0xf0] %vm1196_vm0, %v1063_v1  ;;  %1262 = vst.msk [vmem:[#allocation2 + $0x210] sm:$0xf0] %vm1196_vm0, %v1066_v8  ;;  %v846_v25 = vld [vmem:[%s18362_s15 + $0x320] sm:$0xff]  ;;  %v847_v26 = vld [vmem:[%s18362_s15 + $0x328] sm:$0xff]  ;;  %v923_v30 = vpack.c.bf16 %v845_v24, %v844_v20 }
  0xca   : > { %1261 = vst.msk [vmem:[#allocation2 + $0x208] sm:$0xf] %vm1200_vm3, %v1064_v2  ;;  %1264 = vst.msk [vmem:[#allocation2 + $0x220] sm:$0xf] %vm1200_vm3, %v1067_v15  ;;  %v1072_v28 = vrot.slane %v920_v16, 4  ;;  %v1073_v29 = vrot.slane %v921_v17, 4  ;;  %v1071_v34 = vsel %vm1002_vm1, %v1069_v21, %v1070_v22  ;;  %v924_v36 = vpack.c.bf16 %v847_v26, %v846_v25 }
  0xcb   : > { %1260 = vst.msk [vmem:[#allocation2 + $0x200] sm:$0xff] %vm1198_vm2, %v1065_v14  ;;  %v848_v31 = vld [vmem:[%s18362_s15 + $0x330] sm:$0xff]  ;;  %v849_v32 = vld [vmem:[%s18362_s15 + $0x338] sm:$0xff]  ;;  %v850_v33 = vld [vmem:[%s18362_s15 + $0x340] sm:$0xff]  ;;  %v1075_v35 = vrot.slane %v922_v23, 4  ;;  %v1076_v42 = vrot.slane %v923_v30, 4 }
  0xcc   : > { %1263 = vst.msk [vmem:[#allocation2 + $0x218] sm:$0xff] %vm1198_vm2, %v1068_v27  ;;  %v925_v37 = vpack.c.bf16 %v849_v32, %v848_v31  ;;  %v851_v38 = vld [vmem:[%s18362_s15 + $0x348] sm:$0xff]  ;;  %v852_v39 = vld [vmem:[%s18362_s15 + $0x350] sm:$0xff]  ;;  %v853_v40 = vld [vmem:[%s18362_s15 + $0x358] sm:$0xff]  ;;  %v1074_v41 = vsel %vm1002_vm1, %v1072_v28, %v1073_v29  ;;  %v1078_v48 = vrot.slane %v924_v36, 4 }
  0xcd   : > { %1265 = vst.msk [vmem:[#allocation2 + $0x228] sm:$0xf0] %vm1196_vm0, %v1069_v21  ;;  %1268 = vst.msk [vmem:[#allocation2 + $0x240] sm:$0xf0] %vm1196_vm0, %v1072_v28  ;;  %v926_v43 = vpack.c.bf16 %v851_v38, %v850_v33  ;;  %v927_v44 = vpack.c.bf16 %v853_v40, %v852_v39  ;;  %v854_v45 = vld [vmem:[%s18362_s15 + $0x360] sm:$0xff]  ;;  %v855_v46 = vld [vmem:[%s18362_s15 + $0x368] sm:$0xff]  ;;  %v1077_v54 = vsel %vm1002_vm1, %v1075_v35, %v1076_v42 }
  0xce   : > { %1267 = vst.msk [vmem:[#allocation2 + $0x238] sm:$0xf] %vm1200_vm3, %v1070_v22  ;;  %1270 = vst.msk [vmem:[#allocation2 + $0x250] sm:$0xf] %vm1200_vm3, %v1073_v29  ;;  %v856_v47 = vld [vmem:[%s18362_s15 + $0x370] sm:$0xff]  ;;  %v1079_v49 = vrot.slane %v925_v37, 4  ;;  %v928_v50 = vpack.c.bf16 %v855_v46, %v854_v45 }
  0xcf   : > { %1266 = vst.msk [vmem:[#allocation2 + $0x230] sm:$0xff] %vm1198_vm2, %v1071_v34  ;;  %1269 = vst.msk [vmem:[#allocation2 + $0x248] sm:$0xff] %vm1198_vm2, %v1074_v41  ;;  %v857_v51 = vld [vmem:[%s18362_s15 + $0x378] sm:$0xff]  ;;  %v858_v52 = vld [vmem:[%s18362_s15 + $0x380] sm:$0xff]  ;;  %v1081_v55 = vrot.slane %v926_v43, 4  ;;  %v1082_v56 = vrot.slane %v927_v44, 4 }
  0xd0   : > { %1271 = vst.msk [vmem:[#allocation2 + $0x258] sm:$0xf0] %vm1196_vm0, %v1075_v35  ;;  %v859_v53 = vld [vmem:[%s18362_s15 + $0x388] sm:$0xff]  ;;  %v929_v57 = vpack.c.bf16 %v857_v51, %v856_v47  ;;  %v860_v58 = vld [vmem:[%s18362_s15 + $0x390] sm:$0xff]  ;;  %v861_v59 = vld [vmem:[%s18362_s15 + $0x398] sm:$0xff]  ;;  %v1080_v61 = vsel %vm1002_vm1, %v1078_v48, %v1079_v49  ;;  %v1084_v62 = vrot.slane %v928_v50, 4 }
  0xd1   : > { %1273 = vst.msk [vmem:[#allocation2 + $0x268] sm:$0xf] %vm1200_vm3, %v1076_v42  ;;  %v862_v60 = vld [vmem:[%s18362_s15 + $0x3a0] sm:$0xff]  ;;  %1276 = vst.msk [vmem:[#allocation2 + $0x280] sm:$0xf] %vm1200_vm3, %v1079_v49  ;;  %v930_v63 = vpack.c.bf16 %v859_v53, %v858_v52  ;;  %v931_v0 = vpack.c.bf16 %v861_v59, %v860_v58  ;;  %v863_v1 = vld [vmem:[%s18362_s15 + $0x3a8] sm:$0xff]  ;;  %v1083_v4 = vsel %vm1002_vm1, %v1081_v55, %v1082_v56 }
  0xd2   : > { %1272 = vst.msk [vmem:[#allocation2 + $0x260] sm:$0xff] %vm1198_vm2, %v1077_v54  ;;  %v864_v2 = vld [vmem:[%s18362_s15 + $0x3b0] sm:$0xff]  ;;  %v865_v3 = vld [vmem:[%s18362_s15 + $0x3b8] sm:$0xff]  ;;  %1275 = vst.msk [vmem:[#allocation2 + $0x278] sm:$0xff] %vm1198_vm2, %v1080_v61  ;;  %v1085_v5 = vrot.slane %v929_v57, 4  ;;  %v932_v6 = vpack.c.bf16 %v863_v1, %v862_v60 }
  0xd3   : > { %1274 = vst.msk [vmem:[#allocation2 + $0x270] sm:$0xf0] %vm1196_vm0, %v1078_v48  ;;  %1277 = vst.msk [vmem:[#allocation2 + $0x288] sm:$0xf0] %vm1196_vm0, %v1081_v55  ;;  %v933_v7 = vpack.c.bf16 %v865_v3, %v864_v2  ;;  %v866_v8 = vld [vmem:[%s18362_s15 + $0x3c0] sm:$0xff]  ;;  %v867_v9 = vld [vmem:[%s18362_s15 + $0x3c8] sm:$0xff] }
  0xd4   : > { %1279 = vst.msk [vmem:[#allocation2 + $0x298] sm:$0xf] %vm1200_vm3, %v1082_v56  ;;  %v868_v10 = vld [vmem:[%s18362_s15 + $0x3d0] sm:$0xff]  ;;  %v1087_v11 = vrot.slane %v930_v63, 4  ;;  %v1088_v12 = vrot.slane %v931_v0, 4  ;;  %v934_v13 = vpack.c.bf16 %v867_v9, %v866_v8  ;;  %v869_v14 = vld [vmem:[%s18362_s15 + $0x3d8] sm:$0xff]  ;;  %v1086_v17 = vsel %vm1002_vm1, %v1084_v62, %v1085_v5 }
  0xd5   : > { %1278 = vst.msk [vmem:[#allocation2 + $0x290] sm:$0xff] %vm1198_vm2, %v1083_v4  ;;  %v870_v15 = vld [vmem:[%s18362_s15 + $0x3e0] sm:$0xff]  ;;  %v871_v16 = vld [vmem:[%s18362_s15 + $0x3e8] sm:$0xff]  ;;  %v1090_v18 = vrot.slane %v932_v6, 4  ;;  %v1091_v19 = vrot.slane %v933_v7, 4  ;;  %v935_v20 = vpack.c.bf16 %v869_v14, %v868_v10  ;;  %v872_v21 = vld [vmem:[%s18362_s15 + $0x3f0] sm:$0xff] }
  0xd6   : > { %1280 = vst.msk [vmem:[#allocation2 + $0x2a0] sm:$0xf0] %vm1196_vm0, %v1084_v62  ;;  %v873_v22 = vld [vmem:[%s18362_s15 + $0x3f8] sm:$0xff]  ;;  %1283 = vst.msk [vmem:[#allocation2 + $0x2b8] sm:$0xf0] %vm1196_vm0, %v1087_v11  ;;  %v1089_v23 = vsel %vm1002_vm1, %v1087_v11, %v1088_v12  ;;  %v1093_v24 = vrot.slane %v934_v13, 4  ;;  %v936_v25 = vpack.c.bf16 %v871_v16, %v870_v15 }
  0xd7   : > { %1282 = vst.msk [vmem:[#allocation2 + $0x2b0] sm:$0xf] %vm1200_vm3, %v1085_v5  ;;  %1285 = vst.msk [vmem:[#allocation2 + $0x2c8] sm:$0xf] %vm1200_vm3, %v1088_v12  ;;  %v937_v26 = vpack.c.bf16 %v873_v22, %v872_v21  ;;  %v1092_v27 = vsel %vm1002_vm1, %v1090_v18, %v1091_v19  ;;  %v1094_v28 = vrot.slane %v935_v20, 4 }
  0xd8   : > { %1281 = vst.msk [vmem:[#allocation2 + $0x2a8] sm:$0xff] %vm1198_vm2, %v1086_v17  ;;  %1284 = vst.msk [vmem:[#allocation2 + $0x2c0] sm:$0xff] %vm1198_vm2, %v1089_v23  ;;  %v1096_v29 = vrot.slane %v936_v25, 4 }
  0xd9   : > { %1286 = vst.msk [vmem:[#allocation2 + $0x2d0] sm:$0xf0] %vm1196_vm0, %v1090_v18  ;;  %1289 = vst.msk [vmem:[#allocation2 + $0x2e8] sm:$0xf0] %vm1196_vm0, %v1093_v24  ;;  %v1097_v30 = vrot.slane %v937_v26, 4  ;;  %v1095_v31 = vsel %vm1002_vm1, %v1093_v24, %v1094_v28 }
  0xda   : > { %1288 = vst.msk [vmem:[#allocation2 + $0x2e0] sm:$0xf] %vm1200_vm3, %v1091_v19  ;;  %1291 = vst.msk [vmem:[#allocation2 + $0x2f8] sm:$0xf] %vm1200_vm3, %v1094_v28 }
  0xdb   : > { %1287 = vst.msk [vmem:[#allocation2 + $0x2d8] sm:$0xff] %vm1198_vm2, %v1092_v27  ;;  %1290 = vst.msk [vmem:[#allocation2 + $0x2f0] sm:$0xff] %vm1198_vm2, %v1095_v31  ;;  %v1098_v32 = vsel %vm1002_vm1, %v1096_v29, %v1097_v30 }
  0xdc   : > { %1292 = vst.msk [vmem:[#allocation2 + $0x300] sm:$0xf0] %vm1196_vm0, %v1096_v29 }
  0xdd   : > { %1294 = vst.msk [vmem:[#allocation2 + $0x310] sm:$0xf] %vm1200_vm3, %v1097_v30 }
  0xde   : > { %1293 = vst.msk [vmem:[#allocation2 + $0x308] sm:$0xff] %vm1198_vm2, %v1098_v32 }
  0xdf LB: >> { %v17417_v33 = vld [vmem:[%s21651_s1 + $0xc0] sm:$0xff]   ;;  %v17419_v35 = vld [vmem:[%s21651_s1 + $0xc8] sm:$0xff]   ;;  %v17421_v37 = vld [vmem:[%s21651_s1 + $0xd0] sm:$0xff]   ;;  %s14282_s23 = smul.u32 96, %s17908_s22  ;;  %vm1323_vm4 = vsmask.f32 4352  ;;  %s17908_s22 = sphi %s18623_s22, %s1300_s22  }
  0xe0   : >> { %v17418_v34 = vld [vmem:[%s21651_s1 + $0x100] sm:$0xff]   ;;  %15095 = vmatprep.subr.bf16.mxu1 %v17417_v33  ;;  %v17420_v36 = vld [vmem:[%s21651_s1 + $0x108] sm:$0xff]   ;;  %v17422_v38 = vld [vmem:[%s21651_s1 + $0x110] sm:$0xff]   ;;  %vm2599_vm5 = vsmask.f32 3328  ;;  %s1300_s22 = sadd.s32 1, %s17908_s22  }
  0xe1   : >> { %15223 = vmatprep.subr.bf16.mxu0 %v17418_v34  ;;  %15096 = vmatpush3.bf16.msra.mxu1 %v17417_v33  ;;  %v17423_v39 = vld [vmem:[%s21651_s1 + $0xd8] sm:$0xff]   ;;  %v17425_v41 = vld [vmem:[%s21651_s1 + $0xe0] sm:$0xff]   ;;  %v17427_v43 = vld [vmem:[%s21651_s1 + $0xe8] sm:$0xff]   ;;  %s18667_s14 = scalar_lea.vmem [#allocation2], %s14282_s23  ;;  %s19222_s24 = scalar_lea.vmem [#allocation3], %s14282_s23 }
  0xe2   : >> { %15224 = vmatpush3.bf16.msra.mxu0 %v17418_v34  ;;  %15097 = vmatprep.subr.bf16.mxu1 %v17419_v35  ;;  %v17424_v40 = vld [vmem:[%s21651_s1 + $0x118] sm:$0xff]   ;;  %v17426_v42 = vld [vmem:[%s21651_s1 + $0x120] sm:$0xff]   ;;  %v17428_v44 = vld [vmem:[%s21651_s1 + $0x128] sm:$0xff]   ;;  %p1297_p11 = scmp.ge.s32.totalorder %s1300_s22, 8  }
  0xe3   : >> { %15225 = vmatprep.subr.bf16.mxu0 %v17420_v36  ;;  %v17429_v59 = vld [vmem:[%s21651_s1 + $0xf0] sm:$0xff]   ;;  %v17431_v2 = vld [vmem:[%s21651_s1 + $0xf8] sm:$0xff]   ;;  %v17433_v18 = vld [vmem:[%s21651_s1] sm:$0xff]   ;;  %s19255_s23 = smov (%p1297_p11), 0  }
  0xe4   : >> { %v17430_v62 = vld [vmem:[%s21651_s1 + $0x130] sm:$0xff]   ;;  %v17432_v6 = vld [vmem:[%s21651_s1 + $0x138] sm:$0xff]   ;;  %v17434_v23 = vld [vmem:[%s21651_s1 + $0x1c0] sm:$0xff]  }
  0xe5   : >> { %15098 = vmatpush3.bf16.msra.mxu1 %v17419_v35  ;;  %v1308_v45 = vld [vmem:[%s18667_s14 + $0x18] sm:$0xf8]  ;;  %v18671_v46 = vld [vmem:[%s18667_s14 + $0x20] sm:$0xff]  ;;  %v18681_v54 = vld [vmem:[%s18667_s14 + $0x28] sm:$0xf] }
  0xe6   : >> { %15226 = vmatpush3.bf16.msra.mxu0 %v17420_v36  ;;  %15099 = vmatprep.subr.bf16.mxu1 %v17421_v37  ;;  %v1351_v47 = vshrl.u32 %v1308_v45, 16  ;;  %v1354_v48 = vshll.u32 %v1308_v45, 16  ;;  %v1359_v49 = vshrl.u32 %v18671_v46, 16  ;;  %v1362_v50 = vshll.u32 %v18671_v46, 16  ;;  %v18676_v51 = vld [vmem:[%s18667_s14 + $0x18] sm:$0xf0] }
  0xe7   : >> { %15227 = vmatprep.subr.bf16.mxu0 %v17422_v38  ;;  %v2016_v52 = vrot.slane %v18676_v51, 4  ;;  %v2017_v53 = vrot.slane %v18671_v46, 4  ;;  %v1368_v61 = vshrl.u32 %v18681_v54, 16  ;;  %v1371_v1 = vshll.u32 %v18681_v54, 16  ;;  %v1311_v7 = vld [vmem:[%s18667_s14 + $0x30] sm:$0xf8] }
  0xe8   : >> { %v1353_v55 = vrot.slane %v1351_v47, 3  ;;  %v1356_v56 = vrot.slane %v1354_v48, 4  ;;  %v1361_v57 = vrot.slane %v1359_v49, 3  ;;  %v1364_v58 = vrot.slane %v1362_v50, 4  ;;  %v18712_v8 = vld [vmem:[%s18667_s14 + $0x38] sm:$0xff]  ;;  %v18745_v35 = vld [vmem:[%s18667_s14 + $0x50] sm:$0xff] }
  0xe9   : >> { %15100 = vmatpush3.bf16.msra.mxu1 %v17421_v37  ;;  %v18693_v60 = vsel %vm1002_vm1, %v2016_v52, %v2017_v53  ;;  %v1370_v4 = vrot.slane %v1368_v61, 3  ;;  %v1373_v5 = vrot.slane %v1371_v1, 4  ;;  %v2622_v9 = vshrl.u32 %v18676_v51, 16  ;;  %v18718_v13 = vld [vmem:[%s18667_s14 + $0x40] sm:$0xf]  ;;  %v17435_v37 = vld [vmem:[%s21651_s1 + $0x8] sm:$0xff]  }
  0xea   : >> { %15228 = vmatpush3.bf16.msra.mxu0 %v17422_v38  ;;  %15101 = vmatprep.subr.bf16.mxu1 %v17423_v39  ;;  %v1357_v63 = vor.u32 %v1356_v56, %v1353_v55  ;;  %v1365_v0 = vor.u32 %v1364_v58, %v1361_v57  ;;  %v1377_v10 = vshrl.u32 %v1311_v7, 16  ;;  %v1380_v11 = vshll.u32 %v1311_v7, 16  ;;  %v18723_v16 = vld [vmem:[%s18667_s14 + $0x30] sm:$0xf0]  ;;  %v1314_v34 = vld [vmem:[%s18667_s14 + $0x48] sm:$0xf8] }
  0xeb   : >> { %15229 = vmatprep.subr.bf16.mxu0 %v17424_v40  ;;  %15239 = vmatprep.mubr.bf16.mxu0 %v18693_v60  ;;  %v1385_v12 = vshrl.u32 %v18712_v8, 16  ;;  %v2625_v14 = vshll.u32 %v18676_v51, 16  ;;  %v1388_v15 = vshll.u32 %v18712_v8, 16  ;;  %v1374_v17 = vor.u32 %v1373_v5, %v1370_v4  ;;  %v17437_v47 = vld [vmem:[%s21651_s1 + $0x10] sm:$0xff]   ;;  %v18791_v4 = vld [vmem:[%s18667_s14 + $0x68] sm:$0xff] }
  0xec   : >> { %v18705_v3 = vsel %vm1323_vm4, %v1357_v63, %v1365_v0  ;;  %v1379_v19 = vrot.slane %v1377_v10, 3  ;;  %v1382_v20 = vrot.slane %v1380_v11, 4  ;;  %v2019_v22 = vrot.slane %v18681_v54, 4  ;;  %v17438_v56 = vld [vmem:[%s21651_s1 + $0x1d0] sm:$0xff]   ;;  %v1317_v7 = vld [vmem:[%s18667_s14 + $0x60] sm:$0xf8] }
  0xed   : >> { %15102 = vmatpush3.bf16.msra.mxu1 %v17423_v39  ;;  %15111 = vmatprep.mubr.bf16.mxu1 %v18705_v3  ;;  %v1387_v21 = vrot.slane %v1385_v12, 3  ;;  %v1390_v24 = vrot.slane %v1388_v15, 4  ;;  %v1394_v25 = vshrl.u32 %v18718_v13, 16  ;;  %v2021_v26 = vrot.slane %v18723_v16, 4 }
  0xee   : >> { %15230 = vmatpush3.bf16.msra.mxu0 %v17424_v40  ;;  %15103 = vmatprep.subr.bf16.mxu1 %v17425_v41  ;;  %v1397_v27 = vshll.u32 %v18718_v13, 16  ;;  %v1383_v28 = vor.u32 %v1382_v20, %v1379_v19  ;;  %v2022_v30 = vrot.slane %v18712_v8, 4  ;;  %v18741_v32 = vsel %vm1323_vm4, %v1365_v0, %v1374_v17 }
  0xef   : >> { %15231 = vmatprep.subr.bf16.mxu0 %v17426_v42  ;;  %v1391_v29 = vor.u32 %v1390_v24, %v1387_v21  ;;  %v1396_v31 = vrot.slane %v1394_v25, 3  ;;  %v18750_v36 = vsel %vm1002_vm1, %v2017_v53, %v2019_v22  ;;  %v1403_v38 = vshrl.u32 %v1314_v34, 16  ;;  %v18811_v21 = vld [vmem:[%s18667_s14 + $0x70] sm:$0xf] }
  0xf0   : >> { %v1399_v33 = vrot.slane %v1397_v27, 4  ;;  %v1406_v39 = vshll.u32 %v1314_v34, 16  ;;  %v1411_v40 = vshrl.u32 %v18745_v35, 16  ;;  %v18777_v54 = vsel %vm1002_vm1, %v2021_v26, %v2022_v30  ;;  %v18829_v27 = vld [vmem:[%s18667_s14 + $0x60] sm:$0xf0] }
  0xf1   : >> { %15104 = vmatpush3.bf16.msra.mxu1 %v17425_v41  ;;  %v17436_v41 = vld [vmem:[%s21651_s1 + $0x1c8] sm:$0xff]   ;;  %v18768_v45 = vsel %vm1323_vm4, %v1383_v28, %v1391_v29  ;;  %v1405_v48 = vrot.slane %v1403_v38, 3  ;;  %v2024_v58 = vrot.slane %v18718_v13, 4  ;;  %v1461_v10 = vshrl.u32 %v18791_v4, 16  ;;  %v17442_v34 = vld [vmem:[%s21651_s1 + $0x1e0] sm:$0xff]  }
  0xf2   : >> { %15232 = vmatpush3.bf16.msra.mxu0 %v17426_v42  ;;  %15105 = vmatprep.subr.bf16.mxu1 %v17427_v43  ;;  %v1414_v42 = vshll.u32 %v18745_v35, 16  ;;  %v1408_v52 = vrot.slane %v1406_v39, 4  ;;  %v1413_v53 = vrot.slane %v1411_v40, 3  ;;  %v1400_v55 = vor.u32 %v1399_v33, %v1396_v31  ;;  %v17441_v31 = vld [vmem:[%s21651_s1 + $0x20] sm:$0xff]  }
  0xf3   : >> { %15233 = vmatprep.subr.bf16.mxu0 %v17428_v44  ;;  %v1464_v11 = vshll.u32 %v18791_v4, 16  ;;  %v18802_v13 = vrot.slane %v2622_v9, 4  ;;  %v18805_v17 = vsel %vm1002_vm1, %v2022_v30, %v2024_v58  ;;  %v1453_v19 = vshrl.u32 %v1317_v7, 16  ;;  %v17440_v9 = vld [vmem:[%s21651_s1 + $0x1d8] sm:$0xff]  }
  0xf4   : >> { %v1416_v57 = vrot.slane %v1414_v42, 4  ;;  %v1409_v63 = vor.u32 %v1408_v52, %v1405_v48  ;;  %v18794_v5 = vsel %vm1323_vm4, %v1391_v29, %v1400_v55  ;;  %v1456_v20 = vshll.u32 %v1317_v7, 16  ;;  %v1305_v52 = vld [vmem:[%s18667_s14] sm:$0xf8] }
  0xf5   : >> { %15106 = vmatpush3.bf16.msra.mxu1 %v17427_v43  ;;  %v18761_v43 = vld [vmem:[%s18667_s14 + $0x48] sm:$0xf0]  ;;  %v18815_v22 = vrot.slane %v2625_v14, 5  ;;  %v1466_v24 = vrot.slane %v1464_v11, 4  ;;  %v1455_v51 = vrot.slane %v1453_v19, 3  ;;  %v1470_v29 = vshrl.u32 %v18811_v21, 16 }
  0xf6   : >> { %15234 = vmatpush3.bf16.msra.mxu0 %v17428_v44  ;;  %15107 = vmatprep.subr.bf16.mxu1 %v17429_v59  ;;  %v18764_v44 = vld [vmem:[%s18667_s14 + $0x58] sm:$0xf]  ;;  %v1417_v0 = vor.u32 %v1416_v57, %v1413_v53  ;;  %v1458_v14 = vrot.slane %v1456_v20, 4  ;;  %v1473_v30 = vshll.u32 %v18811_v21, 16  ;;  %v2629_v39 = vrot.slane %v1359_v49, 4  ;;  %v18855_v53 = vld [vmem:[%s18667_s14 + $0x8] sm:$0xff] }
  0xf7   : >> { %15235 = vmatprep.subr.bf16.mxu0 %v17430_v62  ;;  %v1420_v61 = vshrl.u32 %v18764_v44, 16  ;;  %v2029_v33 = vrot.slane %v18764_v44, 4  ;;  %v1472_v48 = vrot.slane %v1470_v29, 3  ;;  %v1328_v57 = vshll.u32 %v1305_v52, 16  ;;  %v18859_v49 = vld [vmem:[%s18667_s14 + $0x10] sm:$0xf] }
  0xf8   : >> { %v18826_v25 = vsel %vm1323_vm4, %v1409_v63, %v1417_v0  ;;  %v1475_v55 = vrot.slane %v1473_v30, 4  ;;  %v1333_v58 = vshrl.u32 %v18855_v53, 16  ;;  %v17443_v63 = vld [vmem:[%s21651_s1 + $0x28] sm:$0xff]   ;;  %v1342_v7 = vshrl.u32 %v18859_v49, 16 }
  0xf9   : >> { %15108 = vmatpush3.bf16.msra.mxu1 %v17429_v59  ;;  %v2026_v59 = vrot.slane %v18761_v43, 4  ;;  %v1422_v1 = vrot.slane %v1420_v61, 3  ;;  %v2646_v61 = vshll.u32 %v18723_v16, 16  ;;  %v1330_v20 = vrot.slane %v1328_v57, 4 }
  0xfa   : >> { %15236 = vmatpush3.bf16.msra.mxu0 %v17430_v62  ;;  %15109 = vmatprep.subr.bf16.mxu1 %v17431_v2  ;;  %v1423_v62 = vshll.u32 %v18764_v44, 16  ;;  %v2220_v44 = vrot.slane %v18829_v27, 4  ;;  %v1344_v29 = vrot.slane %v1342_v7, 3 }
  0xfb   : >> { %15237 = vmatprep.subr.bf16.mxu0 %v17432_v6 }
  0xfd   : >> { %15110 = vmatpush3.bf16.msra.mxu1 %v17431_v2  ;;  %v1425_v2 = vrot.slane %v1423_v62, 4 }
  0xfe   : >> { %15238 = vmatpush3.bf16.msra.mxu0 %v17432_v6  ;;  %15127 = vmatprep.subr.bf16.mxu1 %v17433_v18  ;;  %v2027_v6 = vrot.slane %v18745_v35, 4  ;;  %v17458_v35 = vld [vmem:[%s21651_s1 + $0xa0] sm:$0xff]  }
  0xff   : >> { %15255 = vmatprep.subr.bf16.mxu0 %v17434_v23  ;;  %v1426_v26 = vor.u32 %v1425_v2, %v1422_v1  ;;  %v17444_v1 = vld [vmem:[%s21651_s1 + $0x1e8] sm:$0xff]  }
 0x100   : >> { %15112 = vmatmul.mubr.bf16.vlgmr.msra.gmra.mrb[0].mxu1 %v18741_v32  ;;  %v18833_v28 = vsel %vm1002_vm1, %v2026_v59, %v2027_v6  ;;  %v2643_v59 = vshrl.u32 %v18723_v16, 16  ;;  %v18864_v62 = vsel %vm1002_vm1, %v2027_v6, %v2029_v33  ;;  %v2223_v16 = vrot.slane %v18811_v21, 4 }
 0x101   : >> { %15240 = vmatmul.mubr.bf16.vlgmr.msra.gmra.mrb[0].mxu0 %v18750_v36  ;;  %15128 = vmatpush3.bf16.msra.mxu1 %v17433_v18  ;;  %v17439_v18 = vld [vmem:[%s21651_s1 + $0x18] sm:$0xff]   ;;  %v1345_v6 = vshll.u32 %v18859_v49, 16  ;;  %v2628_v33 = vor.u32 %v18815_v22, %v18802_v13  ;;  %v2648_v13 = vrot.slane %v2646_v61, 5  ;;  %v2667_v61 = vshll.u32 %v18761_v43, 16 }
 0x102   : >> { %15256 = vmatpush3.bf16.msra.mxu0 %v17434_v23  ;;  %15129 = vmatprep.subr.bf16.mxu1 %v17435_v37  ;;  %v1463_v23 = vrot.slane %v1461_v10, 3 }
 0x103   : >> { %15257 = vmatprep.subr.bf16.mxu0 %v17436_v41  ;;  %15115 = vmatprep.mubr.bf16.mxu1 %v18768_v45 }
 0x104   : >> { %15243 = vmatprep.mubr.bf16.mxu0 %v18777_v54  ;;  %v1467_v38 = vor.u32 %v1466_v24, %v1463_v23  ;;  %v1476_v24 = vor.u32 %v1475_v55, %v1472_v48  ;;  %v2645_v48 = vrot.slane %v2643_v59, 4  ;;  %v2664_v59 = vshrl.u32 %v18761_v43, 16  ;;  %v17453_v43 = vld [vmem:[%s21651_s1 + $0x190] sm:$0xff]  }
 0x105   : >> { %15130 = vmatpush3.bf16.msra.mxu1 %v17435_v37  ;;  %v1459_v37 = vor.u32 %v1458_v14, %v1455_v51 }
 0x106   : >> { %15258 = vmatpush3.bf16.msra.mxu0 %v17436_v41  ;;  %15131 = vmatprep.subr.bf16.mxu1 %v17437_v47  ;;  %v18849_v41 = vsel %vm1323_vm4, %v1417_v0, %v1426_v26  ;;  %v1336_v0 = vshll.u32 %v18855_v53, 16  ;;  %v17446_v26 = vld [vmem:[%s21651_s1 + $0x1f0] sm:$0xff]   ;;  %v18897_v30 = vsel %vm1323_vm4, %v1467_v38, %v1476_v24  ;;  %v2649_v55 = vor.u32 %v2648_v13, %v2645_v48  ;;  %v18971_v24 = vld [vmem:[%s18667_s14] sm:$0xf0] }
 0x107   : >> { %15259 = vmatprep.subr.bf16.mxu0 %v17438_v56  ;;  %v18874_v2 = vsel %vm1323_vm4, %v1459_v37, %v1467_v38  ;;  %v17448_v38 = vld [vmem:[%s21651_s1 + $0x1f8] sm:$0xff]   ;;  %v2666_v7 = vrot.slane %v2664_v59, 4  ;;  %v2593_v48 = vld [vmem:[%s18667_s14 + $0x10] sm:$0x1f]  ;;  %v2608_v13 = vrot.slane %v1333_v58, 4 }
 0x108   : >> { %15116 = vmatmul.mubr.bf16.gmra.mrb[4].mxu1 %v18794_v5  ;;  %v1338_v23 = vrot.slane %v1336_v0, 4  ;;  %v2594_v59 = vld [vmem:[%s18667_s14 + $0x28] sm:$0x1f] }
 0x109   : >> { %15244 = vmatmul.mubr.bf16.gmra.mrb[4].mxu0 %v18805_v17  ;;  %15132 = vmatpush3.bf16.msra.mxu1 %v17437_v47  ;;  %v2221_v47 = vrot.slane %v18791_v4, 4 }
 0x10a   : >> { %15260 = vmatpush3.bf16.msra.mxu0 %v17438_v56  ;;  %15133 = vmatprep.subr.bf16.mxu1 %v17439_v18  ;;  %v1325_v56 = vshrl.u32 %v1305_v52, 16 }
 0x10b   : >> { %15261 = vmatprep.subr.bf16.mxu0 %v17440_v9  ;;  %15119 = vmatprep.mubr.bf16.mxu1 %v18826_v25  ;;  %v18889_v21 = vsel %vm1002_vm1, %v2220_v44, %v2221_v47  ;;  %v18904_v37 = vsel %vm1002_vm1, %v2221_v47, %v2223_v16  ;;  %v17447_v44 = vld [vmem:[%s21651_s1 + $0x38] sm:$0xff]   ;;  %v17454_v16 = vld [vmem:[%s21651_s1 + $0x90] sm:$0xff]  }
 0x10c   : >> { %15247 = vmatprep.mubr.bf16.mxu0 %v18833_v28  ;;  %v1327_v19 = vrot.slane %v1325_v56, 3  ;;  %v17449_v56 = vld [vmem:[%s21651_s1 + $0x180] sm:$0xff]  }
 0x10d   : >> { %15134 = vmatpush3.bf16.msra.mxu1 %v17439_v18  ;;  %v17445_v18 = vld [vmem:[%s21651_s1 + $0x30] sm:$0xff]  }
 0x10e   : >> { %15262 = vmatpush3.bf16.msra.mxu0 %v17440_v9  ;;  %15135 = vmatprep.subr.bf16.mxu1 %v17441_v31  ;;  %v1335_v9 = vrot.slane %v1333_v58, 3  ;;  %v1331_v51 = vor.u32 %v1330_v20, %v1327_v19  ;;  %v2671_v19 = vrot.slane %v1411_v40, 4  ;;  %v17461_v58 = vld [vmem:[%s21651_s1 + $0x1b0] sm:$0xff]  }
 0x10f   : >> { %15263 = vmatprep.subr.bf16.mxu0 %v17442_v34 }
 0x110   : >> { %15120 = vmatmul.mubr.bf16.gmra.mrb[8].mxu1 %v18849_v41  ;;  %v1339_v14 = vor.u32 %v1338_v23, %v1335_v9  ;;  %v2672_v9 = vrot.slane %v1414_v42, 5  ;;  %v18968_v23 = vld [vmem:[%s18667_s14 + $0x80] sm:$0xff] }
 0x111   : >> { %15248 = vmatmul.mubr.bf16.gmra.mrb[8].mxu0 %v18864_v62  ;;  %15136 = vmatpush3.bf16.msra.mxu1 %v17441_v31  ;;  %v1347_v31 = vrot.slane %v1345_v6, 4  ;;  %v2669_v6 = vrot.slane %v2667_v61, 5  ;;  %v2012_v61 = vrot.slane %v18855_v53, 4  ;;  %v17482_v53 = vld [vmem:[%s21651_s1 + $0x208] sm:$0xff]  }
 0x112   : >> { %15264 = vmatpush3.bf16.msra.mxu0 %v17442_v34  ;;  %15137 = vmatprep.subr.bf16.mxu1 %v17443_v63  ;;  %v2630_v34 = vrot.slane %v1362_v50, 5  ;;  %v1340_v46 = vsel %vm1323_vm4, %v1331_v51, %v1339_v14  ;;  %v2650_v50 = vrot.slane %v1385_v12, 4  ;;  %v17450_v12 = vld [vmem:[%s21651_s1 + $0x80] sm:$0xff]   ;;  %v18974_v40 = vor.u32 %v2672_v9, %v2671_v19  ;;  %v18980_v51 = vld [vmem:[%s18667_s14 + $0x78] sm:$0xf0] }
 0x113   : >> { %15265 = vmatprep.subr.bf16.mxu0 %v17444_v1  ;;  %15123 = vmatprep.mubr.bf16.mxu1 %v18874_v2  ;;  %v1348_v22 = vor.u32 %v1347_v31, %v1344_v29  ;;  %v2670_v20 = vor.u32 %v2669_v6, %v2666_v7  ;;  %v2601_v29 = vshrl.u32 %v18971_v24, 16  ;;  %v2408_v31 = vrot.slane %v18980_v51, 4  ;;  %v17464_v19 = vld [vmem:[%s21651_s1 + $0xb8] sm:$0xff]  }
 0x114   : >> { %15251 = vmatprep.mubr.bf16.mxu0 %v18889_v21  ;;  %v18912_v52 = vor.u32 %v2630_v34, %v2629_v39  ;;  %v2651_v39 = vrot.slane %v1388_v15, 5  ;;  %v2874_v34 = vshll.u32 %v18829_v27, 16  ;;  %v2878_v9 = vrot.slane %v1461_v10, 4  ;;  %v17466_v10 = vld [vmem:[%s21651_s1 + $0x140] sm:$0xff]  }
 0x115   : >> { %15138 = vmatpush3.bf16.msra.mxu1 %v17443_v63  ;;  %v1349_v8 = vsel %vm1323_vm4, %v1339_v14, %v1348_v22  ;;  %v17451_v63 = vld [vmem:[%s21651_s1 + $0x188] sm:$0xff]   ;;  %v18989_v42 = vsel %vm2599_vm5, %v2670_v20, %v18974_v40  ;;  %v2409_v14 = vrot.slane %v18968_v23, 4 }
 0x116   : >> { %15266 = vmatpush3.bf16.msra.mxu0 %v17444_v1  ;;  %15139 = vmatprep.subr.bf16.mxu1 %v17445_v18  ;;  %v18921_v47 = vsel %vm2599_vm5, %v2628_v33, %v18912_v52  ;;  %v18931_v57 = vor.u32 %v2651_v39, %v2650_v50  ;;  %v17452_v1 = vld [vmem:[%s21651_s1 + $0x88] sm:$0xff]   ;;  %v2604_v33 = vshll.u32 %v18971_v24, 16  ;;  %v3072_v39 = vshrl.u32 %v18980_v51, 16 }
 0x117   : >> { %15267 = vmatprep.subr.bf16.mxu0 %v17446_v26  ;;  %v2410_v50 = vsel %vm1002_vm1, %v2408_v31, %v2409_v14  ;;  %v2876_v20 = vrot.slane %v2874_v34, 5  ;;  %v1799_v34 = vshll.u32 %v18968_v23, 16 }
 0x118   : >> { %15124 = vmatmul.mubr.bf16.gmra.mrb[12].mxu1 %v18897_v30  ;;  %v18937_v15 = vsel %vm2599_vm5, %v2649_v55, %v18931_v57  ;;  %v2606_v22 = vrot.slane %v2604_v33, 5  ;;  %v2613_v55 = vshrl.u32 %v2593_v48, 16  ;;  %v3074_v31 = vrot.slane %v3072_v39, 4  ;;  %v1320_v39 = vld [vmem:[%s18667_s14 + $0x78] sm:$0xf8] }
 0x119   : >> { %15252 = vmatmul.mubr.bf16.gmra.mrb[12].mxu0 %v18904_v37  ;;  %15140 = vmatpush3.bf16.msra.mxu1 %v17445_v18  ;;  %v17455_v18 = vld [vmem:[%s21651_s1 + $0x198] sm:$0xff]   ;;  %v1796_v33 = vshrl.u32 %v18968_v23, 16 }
 0x11a   : >> { %15268 = vmatpush3.bf16.msra.mxu0 %v17446_v26  ;;  %15141 = vmatprep.subr.bf16.mxu1 %v17447_v44  ;;  %v17457_v26 = vld [vmem:[%s21651_s1 + $0x1a0] sm:$0xff]  }
 0x11b   : >> { %15269 = vmatprep.subr.bf16.mxu0 %v17448_v38  ;;  %15143 = vmatprep.mubr.bf16.mxu1 %v1340_v46  ;;  %v2609_v46 = vrot.slane %v1336_v0, 5  ;;  %v3075_v0 = vshll.u32 %v18980_v51, 16  ;;  %v2634_v51 = vshrl.u32 %v2594_v59, 16  ;;  %v3079_v23 = vrot.slane %v1796_v33, 4 }
 0x11c   : >> { %15271 = vmatprep.mubr.bf16.mxu0 %v18777_v54 }
 0x11d   : >> { %15142 = vmatpush3.bf16.msra.mxu1 %v17447_v44  ;;  %v17459_v44 = vld [vmem:[%s21651_s1 + $0x1a8] sm:$0xff]   ;;  %v3077_v4 = vrot.slane %v3075_v0, 5 }
 0x11e   : >> { %15270 = vmatpush3.bf16.msra.mxu0 %v17448_v38  ;;  %15159 = vmatprep.subr.bf16.mxu1 %v17449_v56  ;;  %v19005_v38 = vld [vmem:[%s18667_s14 + $0x88] sm:$0xf] }
 0x11f   : >> { %15287 = vmatprep.subr.bf16.mxu0 %v17450_v12 }
 0x120   : >> { %15144 = vmatmul.mubr.bf16.vlgmr.msra.gmra.mrb[0].mxu1 %v1349_v8  ;;  %v17463_v8 = vld [vmem:[%s21651_s1 + $0x1b8] sm:$0xff]  }
 0x121   : >> { %15272 = vmatmul.mubr.bf16.vlgmr.msra.gmra.mrb[0].mxu0 %v18805_v17  ;;  %15160 = vmatpush3.bf16.msra.mxu1 %v17449_v56  ;;  %v2411_v56 = vrot.slane %v19005_v38, 4 }
 0x122   : >> { %15288 = vmatpush3.bf16.msra.mxu0 %v17450_v12  ;;  %15161 = vmatprep.subr.bf16.mxu1 %v17451_v63  ;;  %v2616_v12 = vshll.u32 %v2593_v48, 16  ;;  %v3078_v48 = vor.u32 %v3077_v4, %v3074_v31 }
 0x123   : >> { %15289 = vmatprep.subr.bf16.mxu0 %v17452_v1  ;;  %15147 = vmatprep.mubr.bf16.mxu1 %v18705_v3  ;;  %v17456_v3 = vld [vmem:[%s21651_s1 + $0x98] sm:$0xff]   ;;  %v2412_v7 = vsel %vm1002_vm1, %v2409_v14, %v2411_v56  ;;  %v17469_v56 = vld [vmem:[%s21651_s1 + $0x50] sm:$0xff]  }
 0x124   : >> { %15275 = vmatprep.mubr.bf16.mxu0 %v18833_v28  ;;  %v2618_v6 = vrot.slane %v2616_v12, 5 }
 0x125   : >> { %15162 = vmatpush3.bf16.msra.mxu1 %v17451_v63 }
 0x126   : >> { %15290 = vmatpush3.bf16.msra.mxu0 %v17452_v1  ;;  %15163 = vmatprep.subr.bf16.mxu1 %v17453_v43  ;;  %v2610_v1 = vor.u32 %v2609_v46, %v2608_v13  ;;  %v17467_v13 = vld [vmem:[%s21651_s1 + $0x48] sm:$0xff]  }
 0x127   : >> { %15291 = vmatprep.subr.bf16.mxu0 %v17454_v16 }
 0x128   : >> { %15148 = vmatmul.mubr.bf16.gmra.mrb[4].mxu1 %v18741_v32  ;;  %v2871_v32 = vshrl.u32 %v18829_v27, 16  ;;  %v2603_v27 = vrot.slane %v2601_v29, 4  ;;  %v2637_v29 = vshll.u32 %v2594_v59, 16  ;;  %v1791_v59 = vshll.u32 %v1320_v39, 16 }
 0x129   : >> { %15276 = vmatmul.mubr.bf16.gmra.mrb[4].mxu0 %v18864_v62  ;;  %15164 = vmatpush3.bf16.msra.mxu1 %v17453_v43  ;;  %v2615_v43 = vrot.slane %v2613_v55, 4 }
 0x12a   : >> { %15292 = vmatpush3.bf16.msra.mxu0 %v17454_v16  ;;  %15165 = vmatprep.subr.bf16.mxu1 %v17455_v18  ;;  %v2607_v63 = vor.u32 %v2606_v22, %v2603_v27  ;;  %v2014_v16 = vrot.slane %v18859_v49, 4  ;;  %v17465_v49 = vld [vmem:[%s21651_s1 + $0x40] sm:$0xff]   ;;  %v2636_v27 = vrot.slane %v2634_v51, 4  ;;  %v2639_v46 = vrot.slane %v2637_v29, 5 }
 0x12b   : >> { %15293 = vmatprep.subr.bf16.mxu0 %v17456_v3  ;;  %15151 = vmatprep.mubr.bf16.mxu1 %v18768_v45  ;;  %v2619_v14 = vor.u32 %v2618_v6, %v2615_v43  ;;  %v2595_v22 = vld [vmem:[%s18667_s14 + $0x40] sm:$0x1f] }
 0x12c   : >> { %15279 = vmatprep.mubr.bf16.mxu0 %v18889_v21  ;;  %v17460_v21 = vld [vmem:[%s21651_s1 + $0xa8] sm:$0xff]   ;;  %v2640_v12 = vor.u32 %v2639_v46, %v2636_v27  ;;  %v2655_v0 = vshrl.u32 %v2595_v22, 16  ;;  %v17479_v27 = vld [vmem:[%s21651_s1 + $0x78] sm:$0xff]  }
 0x12d   : >> { %15166 = vmatpush3.bf16.msra.mxu1 %v17455_v18  ;;  %v2873_v18 = vrot.slane %v2871_v32, 4  ;;  %v17480_v46 = vld [vmem:[%s21651_s1 + $0x178] sm:$0xff]  }
 0x12e   : >> { %15294 = vmatpush3.bf16.msra.mxu0 %v17456_v3  ;;  %15167 = vmatprep.subr.bf16.mxu1 %v17457_v26  ;;  %v19037_v3 = vsel %vm1002_vm1, %v2012_v61, %v2014_v16  ;;  %v17472_v16 = vld [vmem:[%s21651_s1 + $0x158] sm:$0xff]  }
 0x12f   : >> { %15295 = vmatprep.subr.bf16.mxu0 %v17458_v35  ;;  %v2877_v32 = vor.u32 %v2876_v20, %v2873_v18  ;;  %v1793_v18 = vrot.slane %v1791_v59, 4  ;;  %v1801_v20 = vrot.slane %v1799_v34, 4 }
 0x130   : >> { %15152 = vmatmul.mubr.bf16.gmra.mrb[8].mxu1 %v18794_v5 }
 0x131   : >> { %15280 = vmatmul.mubr.bf16.gmra.mrb[8].mxu0 %v18904_v37  ;;  %15168 = vmatpush3.bf16.msra.mxu1 %v17457_v26  ;;  %v17462_v37 = vld [vmem:[%s21651_s1 + $0xb0] sm:$0xff]   ;;  %v2611_v26 = vsel %vm2599_vm5, %v2607_v63, %v2610_v1  ;;  %v19086_v63 = vsel %vm2599_vm5, %v18912_v52, %v2640_v12  ;;  %v1805_v52 = vshrl.u32 %v19005_v38, 16 }
 0x132   : >> { %15296 = vmatpush3.bf16.msra.mxu0 %v17458_v35  ;;  %15169 = vmatprep.subr.bf16.mxu1 %v17459_v44  ;;  %v2879_v35 = vrot.slane %v1464_v11, 5  ;;  %v17487_v12 = vld [vmem:[%s21651_s1 + $0x230] sm:$0xff]  }
 0x133   : >> { %15297 = vmatprep.subr.bf16.mxu0 %v17460_v21  ;;  %15155 = vmatprep.mubr.bf16.mxu1 %v18826_v25 }
 0x134   : >> { %15283 = vmatprep.mubr.bf16.mxu0 %v2410_v50  ;;  %v17468_v50 = vld [vmem:[%s21651_s1 + $0x148] sm:$0xff]  }
 0x135   : >> { %15170 = vmatpush3.bf16.msra.mxu1 %v17459_v44  ;;  %v19054_v44 = vor.u32 %v2879_v35, %v2878_v9  ;;  %v17473_v9 = vld [vmem:[%s21651_s1 + $0x60] sm:$0xff]  }
 0x136   : >> { %15298 = vmatpush3.bf16.msra.mxu0 %v17460_v21  ;;  %15171 = vmatprep.subr.bf16.mxu1 %v17461_v58  ;;  %v3080_v21 = vrot.slane %v1799_v34, 5 }
 0x137   : >> { %15299 = vmatprep.subr.bf16.mxu0 %v17462_v37  ;;  %v19058_v11 = vsel %vm2599_vm5, %v2877_v32, %v19054_v44  ;;  %v17474_v32 = vld [vmem:[%s21651_s1 + $0x160] sm:$0xff]  }
 0x138   : >> { %15156 = vmatmul.mubr.bf16.gmra.mrb[12].mxu1 %v18849_v41  ;;  %v19068_v55 = vor.u32 %v3080_v21, %v3079_v23  ;;  %v17478_v21 = vld [vmem:[%s21651_s1 + $0x170] sm:$0xff]  }
 0x139   : >> { %15284 = vmatmul.mubr.bf16.gmra.mrb[12].mxu0 %v2412_v7  ;;  %15172 = vmatpush3.bf16.msra.mxu1 %v17461_v58  ;;  %v2596_v7 = vld [vmem:[%s18667_s14 + $0x58] sm:$0x1f] }
 0x13a   : >> { %15300 = vmatpush3.bf16.msra.mxu0 %v17462_v37  ;;  %15173 = vmatprep.subr.bf16.mxu1 %v17463_v8  ;;  %v19074_v58 = vsel %vm2599_vm5, %v3078_v48, %v19068_v55  ;;  %v2658_v37 = vshll.u32 %v2595_v22, 16  ;;  %v2676_v51 = vshrl.u32 %v2596_v7, 16  ;;  %v17477_v48 = vld [vmem:[%s21651_s1 + $0x70] sm:$0xff]  }
 0x13b   : >> { %15301 = vmatprep.subr.bf16.mxu0 %v17464_v19  ;;  %15175 = vmatprep.mubr.bf16.mxu1 %v18768_v45  ;;  %v2620_v45 = vsel %vm2599_vm5, %v2610_v1, %v2619_v14  ;;  %v17471_v1 = vld [vmem:[%s21651_s1 + $0x58] sm:$0xff]   ;;  %v1807_v14 = vrot.slane %v1805_v52, 3 }
 0x13c   : >> { %15303 = vmatprep.mubr.bf16.mxu0 %v2611_v26  ;;  %v2660_v43 = vrot.slane %v2658_v37, 5  ;;  %v2598_v37 = vld [vmem:[%s18667_s14 + $0x88] sm:$0x1f] }
 0x13d   : >> { %15174 = vmatpush3.bf16.msra.mxu1 %v17463_v8  ;;  %v1788_v8 = vshrl.u32 %v1320_v39, 16 }
 0x13e   : >> { %15302 = vmatpush3.bf16.msra.mxu0 %v17464_v19  ;;  %15191 = vmatprep.subr.bf16.mxu1 %v17465_v49  ;;  %v1798_v19 = vrot.slane %v1796_v33, 3  ;;  %v2678_v33 = vrot.slane %v2676_v51, 4 }
 0x13f   : >> { %15319 = vmatprep.subr.bf16.mxu0 %v17466_v10  ;;  %v1790_v6 = vrot.slane %v1788_v8, 3 }
 0x140   : >> { %15176 = vmatmul.mubr.bf16.vlgmr.msra.gmra.mrb[0].mxu1 %v18794_v5  ;;  %v17470_v5 = vld [vmem:[%s21651_s1 + $0x150] sm:$0xff]   ;;  %v1802_v35 = vor.u32 %v1801_v20, %v1798_v19 }
 0x141   : >> { %15304 = vmatmul.mubr.bf16.vlgmr.msra.gmra.mrb[0].mxu0 %v2620_v45  ;;  %15192 = vmatpush3.bf16.msra.mxu1 %v17465_v49  ;;  %v1808_v49 = vshll.u32 %v19005_v38, 16  ;;  %v1794_v38 = vor.u32 %v1793_v18, %v1790_v6 }
 0x142   : >> { %15320 = vmatpush3.bf16.msra.mxu0 %v17466_v10  ;;  %15193 = vmatprep.subr.bf16.mxu1 %v17467_v13  ;;  %v17476_v10 = vld [vmem:[%s21651_s1 + $0x168] sm:$0xff]  }
 0x143   : >> { %15321 = vmatprep.subr.bf16.mxu0 %v17468_v50  ;;  %15179 = vmatprep.mubr.bf16.mxu1 %v18826_v25  ;;  %v2657_v25 = vrot.slane %v2655_v0, 4  ;;  %v1810_v29 = vrot.slane %v1808_v49, 4  ;;  %v1803_v4 = vsel %vm1323_vm4, %v1794_v38, %v1802_v35  ;;  %v17488_v0 = vld [vmem:[%s21651_s1 + $0x238] sm:$0xff]  }
 0x144   : >> { %15307 = vmatprep.mubr.bf16.mxu0 %v18921_v47 }
 0x145   : >> { %15194 = vmatpush3.bf16.msra.mxu1 %v17467_v13  ;;  %v2661_v26 = vor.u32 %v2660_v43, %v2657_v25 }
 0x146   : >> { %15322 = vmatpush3.bf16.msra.mxu0 %v17468_v50  ;;  %15195 = vmatprep.subr.bf16.mxu1 %v17469_v56 }
 0x147   : >> { %15323 = vmatprep.subr.bf16.mxu0 %v17470_v5  ;;  %v19109_v31 = vsel %vm2599_vm5, %v18931_v57, %v2661_v26  ;;  %v1811_v57 = vor.u32 %v1810_v29, %v1807_v14 }
 0x148   : >> { %15180 = vmatmul.mubr.bf16.gmra.mrb[4].mxu1 %v18849_v41  ;;  %v2679_v41 = vshll.u32 %v2596_v7, 16 }
 0x149   : >> { %15308 = vmatmul.mubr.bf16.gmra.mrb[4].mxu0 %v19086_v63  ;;  %15196 = vmatpush3.bf16.msra.mxu1 %v17469_v56  ;;  %v1812_v45 = vsel %vm1323_vm4, %v1802_v35, %v1811_v57  ;;  %v19208_v57 = vld [vmem:[%s21652_s2] ss:$0 sm:$0xff] }
 0x14a   : >> { %15324 = vmatpush3.bf16.msra.mxu0 %v17470_v5  ;;  %15197 = vmatprep.subr.bf16.mxu1 %v17471_v1  ;;  %v2681_v34 = vrot.slane %v2679_v41, 5  ;;  %v3084_v5 = vshrl.u32 %v2598_v37, 16 }
 0x14b   : >> { %15325 = vmatprep.subr.bf16.mxu0 %v17472_v16  ;;  %15183 = vmatprep.mubr.bf16.mxu1 %v18874_v2  ;;  %v17475_v2 = vld [vmem:[%s21651_s1 + $0x68] sm:$0xff]  }
 0x14c   : >> { %15311 = vmatprep.mubr.bf16.mxu0 %v18937_v15  ;;  %v2682_v23 = vor.u32 %v2681_v34, %v2678_v33 }
 0x14d   : >> { %15198 = vmatpush3.bf16.msra.mxu1 %v17471_v1 }
 0x14e   : >> { %15326 = vmatpush3.bf16.msra.mxu0 %v17472_v16  ;;  %15199 = vmatprep.subr.bf16.mxu1 %v17473_v9  ;;  %v19131_v13 = vsel %vm2599_vm5, %v18974_v40, %v2682_v23  ;;  %v17481_v40 = vld [vmem:[%s21651_s1 + $0x200] sm:$0xff]  }
 0x14f   : >> { %15327 = vmatprep.subr.bf16.mxu0 %v17474_v32 }
 0x150   : >> { %15184 = vmatmul.mubr.bf16.gmra.mrb[8].mxu1 %v18897_v30  ;;  %v2011_v30 = vrot.slane %v18971_v24, 4 }
 0x151   : >> { %15312 = vmatmul.mubr.bf16.gmra.mrb[8].mxu0 %v19109_v31  ;;  %15200 = vmatpush3.bf16.msra.mxu1 %v17473_v9 }
 0x152   : >> { %15328 = vmatpush3.bf16.msra.mxu0 %v17474_v32  ;;  %15201 = vmatprep.subr.bf16.mxu1 %v17475_v2  ;;  %v2013_v24 = vsel %vm1002_vm1, %v2011_v30, %v2012_v61  ;;  %v17484_v61 = vld [vmem:[%s21651_s1 + $0x218] sm:$0xff]  }
 0x153   : >> { %15329 = vmatprep.subr.bf16.mxu0 %v17476_v10  ;;  %15187 = vmatprep.mubr.bf16.mxu1 %v1803_v4 }
 0x154   : >> { %15315 = vmatprep.mubr.bf16.mxu0 %v18989_v42 }
 0x155   : >> { %15202 = vmatpush3.bf16.msra.mxu1 %v17475_v2 }
 0x156   : >> { %15330 = vmatpush3.bf16.msra.mxu0 %v17476_v10  ;;  %15203 = vmatprep.subr.bf16.mxu1 %v17477_v48 }
 0x157   : >> { %15331 = vmatprep.subr.bf16.mxu0 %v17478_v21 }
 0x158   : >> { %15188 = vmatmul.mubr.bf16.gmra.mrb[12].mxu1 %v1812_v45 }
 0x159   : >> { %15316 = vmatmul.mubr.bf16.gmra.mrb[12].mxu0 %v19131_v13  ;;  %15204 = vmatpush3.bf16.msra.mxu1 %v17477_v48 }
 0x15a   : >> { %15332 = vmatpush3.bf16.msra.mxu0 %v17478_v21  ;;  %15205 = vmatprep.subr.bf16.mxu1 %v17479_v27 }
 0x15b   : >> { %15333 = vmatprep.subr.bf16.mxu0 %v17480_v46  ;;  %15207 = vmatprep.mubr.bf16.mxu1 %v2013_v24 }
 0x15c   : >> { %15335 = vmatprep.mubr.bf16.mxu0 %v18921_v47  ;;  %v17483_v47 = vld [vmem:[%s21651_s1 + $0x210] sm:$0xff]  }
 0x15d   : >> { %15206 = vmatpush3.bf16.msra.mxu1 %v17479_v27 }
 0x15e   : >> { %15334 = vmatpush3.bf16.msra.mxu0 %v17480_v46  ;;  %16703 = vmatprep.subr.bf16.mxu1 %v17481_v40 }
 0x15f   : >> { %15351 = vmatprep.subr.bf16.mxu0 %v17481_v40 }
 0x160   : >> { %15208 = vmatmul.mubr.bf16.vlgmr.msra.gmra.mrb[0].mxu1 %v19037_v3  ;;  %v2597_v3 = vld [vmem:[%s18667_s14 + $0x70] sm:$0x1f] }
 0x161   : >> { %15336 = vmatmul.mubr.bf16.vlgmr.msra.gmra.mrb[0].mxu0 %v19086_v63  ;;  %16711 = vmatpush3.bf16.msra.mxu1 %v17481_v40  ;;  %v2883_v50 = vshrl.u32 %v2597_v3, 16  ;;  %v2886_v22 = vshll.u32 %v2597_v3, 16 }
 0x162   : >> { %15352 = vmatpush3.bf16.msra.mxu0 %v17481_v40  ;;  %16704 = vmatprep.subr.bf16.mxu1 %v17482_v53 }
 0x163   : >> { %15353 = vmatprep.subr.bf16.mxu0 %v17482_v53  ;;  %15211 = vmatprep.mubr.bf16.mxu1 %v18693_v60  ;;  %v17485_v60 = vld [vmem:[%s21651_s1 + $0x220] sm:$0xff]   ;;  %v2885_v39 = vrot.slane %v2883_v50, 4  ;;  %v2888_v56 = vrot.slane %v2886_v22, 5 }
 0x164   : >> { %15339 = vmatprep.mubr.bf16.mxu0 %v18937_v15 }
 0x165   : >> { %16712 = vmatpush3.bf16.msra.mxu1 %v17482_v53 }
 0x166   : >> { %15354 = vmatpush3.bf16.msra.mxu0 %v17482_v53  ;;  %16705 = vmatprep.subr.bf16.mxu1 %v17483_v47 }
 0x167   : >> { %15355 = vmatprep.subr.bf16.mxu0 %v17483_v47 }
 0x168   : >> { %15212 = vmatmul.mubr.bf16.gmra.mrb[4].mxu1 %v18750_v36  ;;  %v17486_v36 = vld [vmem:[%s21651_s1 + $0x228] sm:$0xff]  }
 0x169   : >> { %15340 = vmatmul.mubr.bf16.gmra.mrb[4].mxu0 %v19109_v31  ;;  %16713 = vmatpush3.bf16.msra.mxu1 %v17483_v47 }
 0x16a   : >> { %15356 = vmatpush3.bf16.msra.mxu0 %v17483_v47  ;;  %16706 = vmatprep.subr.bf16.mxu1 %v17484_v61 }
 0x16b   : >> { %15357 = vmatprep.subr.bf16.mxu0 %v17484_v61  ;;  %15215 = vmatprep.mubr.bf16.mxu1 %v18777_v54  ;;  %v2889_v54 = vor.u32 %v2888_v56, %v2885_v39 }
 0x16c   : >> { %15343 = vmatprep.mubr.bf16.mxu0 %v18989_v42 }
 0x16d   : >> { %16714 = vmatpush3.bf16.msra.mxu1 %v17484_v61 }
 0x16e   : >> { %15358 = vmatpush3.bf16.msra.mxu0 %v17484_v61  ;;  %16707 = vmatprep.subr.bf16.mxu1 %v17485_v60 }
 0x16f   : >> { %15359 = vmatprep.subr.bf16.mxu0 %v17485_v60 }
 0x170   : >> { %15216 = vmatmul.mubr.bf16.gmra.mrb[8].mxu1 %v18805_v17  ;;  %v2890_v17 = vsel %vm2599_vm5, %v19054_v44, %v2889_v54  ;;  %v3086_v44 = vrot.slane %v3084_v5, 4 }
 0x171   : >> { %15344 = vmatmul.mubr.bf16.gmra.mrb[8].mxu0 %v19131_v13  ;;  %16715 = vmatpush3.bf16.msra.mxu1 %v17485_v60 }
 0x172   : >> { %15360 = vmatpush3.bf16.msra.mxu0 %v17485_v60  ;;  %16708 = vmatprep.subr.bf16.mxu1 %v17486_v36 }
 0x173   : >> { %15361 = vmatprep.subr.bf16.mxu0 %v17486_v36  ;;  %15219 = vmatprep.mubr.bf16.mxu1 %v18833_v28  ;;  %v3087_v28 = vshll.u32 %v2598_v37, 16 }
 0x174   : >> { %15347 = vmatprep.mubr.bf16.mxu0 %v19058_v11 }
 0x175   : >> { %16716 = vmatpush3.bf16.msra.mxu1 %v17486_v36  ;;  %v3089_v8 = vrot.slane %v3087_v28, 5 }
 0x176   : >> { %15362 = vmatpush3.bf16.msra.mxu0 %v17486_v36  ;;  %16709 = vmatprep.subr.bf16.mxu1 %v17487_v12 }
 0x177   : >> { %15363 = vmatprep.subr.bf16.mxu0 %v17487_v12 }
 0x178   : >> { %15220 = vmatmul.mubr.bf16.gmra.mrb[12].mxu1 %v18864_v62  ;;  %v3090_v62 = vor.u32 %v3089_v8, %v3086_v44 }
 0x179   : >> { %15348 = vmatmul.mubr.bf16.gmra.mrb[12].mxu0 %v2890_v17  ;;  %16717 = vmatpush3.bf16.msra.mxu1 %v17487_v12 }
 0x17a   : >> { %15364 = vmatpush3.bf16.msra.mxu0 %v17487_v12  ;;  %16710 = vmatprep.subr.bf16.mxu1 %v17488_v0  ;;  %v3091_v59 = vsel %vm2599_vm5, %v19068_v55, %v3090_v62 }
 0x17b   : >> { %15365 = vmatprep.subr.bf16.mxu0 %v17488_v0  ;;  %15367 = vmatprep.mubr.bf16.mxu0 %v18937_v15 }
 0x17c   : >> { %15375 = vmatprep.mubr.bf16.mxu1 %v19058_v11 }
 0x17d   : >> { %16718 = vmatpush3.bf16.msra.mxu1 %v17488_v0 }
 0x17e   : >> { %15366 = vmatpush3.bf16.msra.mxu0 %v17488_v0 }
 0x180   : >> { %15376 = vmatmul.mubr.bf16.vlgmr.msra.gmra.mrb[16].mxu1 %v2890_v17 }
 0x181   : >> { %15368 = vmatmul.mubr.bf16.vlgmr.msra.gmra.mrb[0].mxu0 %v19109_v31  ;;  %15379 = vmatprep.mubr.bf16.mxu1 %v19074_v58 }
 0x182   : >> { %15371 = vmatprep.mubr.bf16.mxu0 %v18989_v42 }
 0x188   : >> { %15380 = vmatmul.mubr.bf16.gmra.mrb[20].mxu1 %v3091_v59 }
 0x189   : >> { %15372 = vmatmul.mubr.bf16.gmra.mrb[4].mxu0 %v19131_v13 }
 0x233   : >> { %v15209_v15 = vpop.f32.mrb[0].mxu1 }
 0x234   : >> { %v2138_v11 = vpop.f32.mrb[1].mxu1 }
 0x235   : >> { %v15210_v63 = vpop.f32.mrb[2].mxu1 }
 0x236   : >> { %v2141_v1 = vpop.f32.mrb[3].mxu1 }
 0x23b   : >> { %v19193_v25 = vpop.f32.mrb[4].mxu1 }
 0x23c   : >> { %v19195_v43 = vpop.f32.mrb[5].mxu1 }
 0x23d   : >> { %v19197_v16 = vpop.f32.mrb[6].mxu1 }
 0x23e   : >> { %v19199_v58 = vpop.f32.mrb[7].mxu1 }
 0x243   : >> { %v15217_v7 = vpop.f32.mrb[8].mxu1 }
 0x244   : >> { %v15345_v42 = vpop.f32.mrb[8].mxu0  ;;  %v2170_v6 = vpop.f32.mrb[9].mxu1 }
 0x245   : >> { %v16727_v18 = vadd.f32 %v15345_v42, %v15217_v7  ;;  %v3024_v55 = vpop.f32.mrb[9].mxu0  ;;  %v15218_v19 = vpop.f32.mrb[10].mxu1 }
 0x246   : >> { %v16729_v20 = vadd.f32 %v3024_v55, %v2170_v6  ;;  %v15346_v52 = vpop.f32.mrb[10].mxu0  ;;  %v2173_v49 = vpop.f32.mrb[11].mxu1 }
 0x247   : >> { %v16731_v9 = vadd.f32 %v15346_v52, %v15218_v19  ;;  %v3027_v26 = vpop.f32.mrb[11].mxu0 }
 0x248   : >> { %v16733_v51 = vadd.f32 %v3027_v26, %v2173_v49 }
 0x24b   : >> { %v15221_v41 = vpop.f32.mrb[12].mxu1 }
 0x24c   : >> { %v15349_v32 = vpop.f32.mrb[12].mxu0  ;;  %v2186_v38 = vpop.f32.mrb[13].mxu1 }
 0x24d   : >> { %v16735_v35 = vadd.f32 %v15349_v32, %v15221_v41  ;;  %v3040_v14 = vpop.f32.mrb[13].mxu0  ;;  %v15222_v29 = vpop.f32.mrb[14].mxu1 }
 0x24e   : >> { %v16737_v31 = vadd.f32 %v3040_v14, %v2186_v38  ;;  %v15350_v2 = vpop.f32.mrb[14].mxu0  ;;  %v2189_v33 = vpop.f32.mrb[15].mxu1 }
 0x24f   : >> { %v19201_v34 = vadd.f32 %v15350_v2, %v15222_v29  ;;  %v3043_v10 = vpop.f32.mrb[15].mxu0 }
 0x250   : >> { %v19203_v4 = vadd.f32 %v3043_v10, %v2189_v33 }
 0x253   : >> { %v15377_v48 = vpop.f32.mrb[16].mxu1 }
 0x254   : >> { %v15369_v23 = vpop.f32.mrb[0].mxu0  ;;  %v16728_v21 = vadd.f32 %v16727_v18, %v15377_v48  ;;  %v3225_v30 = vpop.f32.mrb[17].mxu1 }
 0x255   : >> { %v16719_v45 = vadd.f32 %v15369_v23, %v15209_v15  ;;  %v3193_v13 = vpop.f32.mrb[1].mxu0  ;;  %v16730_v27 = vadd.f32 %v16729_v20, %v3225_v30  ;;  %v15378_v46 = vpop.f32.mrb[18].mxu1 }
 0x256   : >> { %v3289_v24 = vadd.f32 %v16728_v21, %v19208_v57  ;;  %v16720_v40 = vadd.f32 %v3193_v13, %v2138_v11  ;;  %v15370_v53 = vpop.f32.mrb[2].mxu0  ;;  %v16732_v47 = vadd.f32 %v16731_v9, %v15378_v46  ;;  %v3228_v61 = vpop.f32.mrb[19].mxu1 }
 0x257   : >> { %v3281_v3 = vadd.f32 %v16719_v45, %v19208_v57  ;;  %v3287_v60 = vadd.f32 %v16730_v27, %v19208_v57  ;;  %v16721_v50 = vadd.f32 %v15370_v53, %v15210_v63  ;;  %v3196_v22 = vpop.f32.mrb[3].mxu0  ;;  %v16734_v36 = vadd.f32 %v16733_v51, %v3228_v61 }
 0x258   : >> { %v3279_v39 = vadd.f32 %v16720_v40, %v19208_v57  ;;  %v3290_v56 = vadd.f32 %v16732_v47, %v19208_v57  ;;  %v16722_v54 = vadd.f32 %v3196_v22, %v2141_v1  ;;  %v3305_v0 = vmax.f32 %v3289_v24, 0.0 }
 0x259   : >> { %v3282_v12 = vadd.f32 %v16721_v50, %v19208_v57  ;;  %v3288_v17 = vadd.f32 %v16734_v36, %v19208_v57  ;;  %v3297_v28 = vmax.f32 %v3281_v3, 0.0  ;;  %v3303_v44 = vmax.f32 %v3287_v60, 0.0 }
 0x25a   : >> { %v3306_v37 = vmax.f32 %v3290_v56, 0.0  ;;  %v3280_v5 = vadd.f32 %v16722_v54, %v19208_v57  ;;  %v3295_v15 = vmax.f32 %v3279_v39, 0.0 }
 0x25b   : >> { %v3298_v8 = vmax.f32 %v3282_v12, 0.0  ;;  %v3304_v62 = vmax.f32 %v3288_v17, 0.0  ;;  %v15381_v59 = vpop.f32.mrb[20].mxu1 }
 0x25c   : >> { %v3316_v11 = vpack.c.bf16 %v3306_v37, %v3305_v0  ;;  %v3296_v63 = vmax.f32 %v3280_v5, 0.0  ;;  %v15373_v7 = vpop.f32.mrb[4].mxu0  ;;  %v16736_v42 = vadd.f32 %v16735_v35, %v15381_v59  ;;  %v3241_v1 = vpop.f32.mrb[21].mxu1 }
 0x25d   : >> { %v3312_v6 = vpack.c.bf16 %v3298_v8, %v3297_v28  ;;  %v3315_v18 = vpack.c.bf16 %v3304_v62, %v3303_v44  ;;  %v16723_v55 = vadd.f32 %v15373_v7, %v19193_v25  ;;  %v3209_v19 = vpop.f32.mrb[5].mxu0  ;;  %v16738_v20 = vadd.f32 %v16737_v31, %v3241_v1  ;;  %v15382_v52 = vpop.f32.mrb[22].mxu1 }
 0x25e   : >> { %v3335_v49 = vrot.slane %v3316_v11, 4  ;;  %v3311_v9 = vpack.c.bf16 %v3296_v63, %v3295_v15  ;;  %v16724_v26 = vadd.f32 %v3209_v19, %v19195_v43  ;;  %v15374_v51 = vpop.f32.mrb[6].mxu0  ;;  %v3244_v41 = vpop.f32.mrb[23].mxu1  ;;  %v3293_v31 = vadd.f32 %v16736_v42, %v19208_v57 }
 0x25f   : >> { %v3329_v32 = vrot.slane %v3312_v6, 4  ;;  %v3334_v38 = vrot.slane %v3315_v18, 4  ;;  %v3212_v14 = vpop.f32.mrb[7].mxu0  ;;  %v3285_v35 = vadd.f32 %v16723_v55, %v19208_v57  ;;  %v16725_v43 = vadd.f32 %v15374_v51, %v19197_v16 }
 0x260   : >> { %13324 = vst [vmem:[%s19222_s24 + $0x58] sm:$0xf] %v3335_v49  ;;  %v3328_v25 = vrot.slane %v3311_v9, 4  ;;  %v16740_v2 = vadd.f32 %v19201_v34, %v15382_v52  ;;  %v3283_v10 = vadd.f32 %v16724_v26, %v19208_v57  ;;  %v16726_v23 = vadd.f32 %v3212_v14, %v19199_v58 }
 0x261   : >> { %13318 = vst [vmem:[%s19222_s24 + $0x28] sm:$0xf] %v3329_v32  ;;  %v3336_v29 = vsel %vm1002_vm1, %v3334_v38, %v3335_v49  ;;  %13322 = vst [vmem:[%s19222_s24 + $0x48] sm:$0xf0] %v3334_v38  ;;  %v3286_v48 = vadd.f32 %v16725_v43, %v19208_v57  ;;  %v3291_v16 = vadd.f32 %v16738_v20, %v19208_v57  ;;  %v3301_v45 = vmax.f32 %v3285_v35, 0.0 }
 0x262   : >> { %v3330_v33 = vsel %vm1002_vm1, %v3328_v25, %v3329_v32  ;;  %13316 = vst [vmem:[%s19222_s24 + $0x18] sm:$0xf0] %v3328_v25  ;;  %13323 = vst [vmem:[%s19222_s24 + $0x50] sm:$0xff] %v3336_v29  ;;  %v3294_v21 = vadd.f32 %v16740_v2, %v19208_v57  ;;  %v16742_v30 = vadd.f32 %v19203_v4, %v3244_v41  ;;  %v3309_v27 = vmax.f32 %v3293_v31, 0.0 }
 0x263   : >> { %13317 = vst [vmem:[%s19222_s24 + $0x20] sm:$0xff] %v3330_v33  ;;  %v3302_v34 = vmax.f32 %v3286_v48, 0.0  ;;  %v3284_v13 = vadd.f32 %v16726_v23, %v19208_v57  ;;  %v3299_v40 = vmax.f32 %v3283_v10, 0.0  ;;  %v3307_v47 = vmax.f32 %v3291_v16, 0.0 }
 0x264   : >> { %v3310_v46 = vmax.f32 %v3294_v21, 0.0  ;;  %v3292_v24 = vadd.f32 %v16742_v30, %v19208_v57 }
 0x265   : >> { %v3314_v58 = vpack.c.bf16 %v3302_v34, %v3301_v45  ;;  %v3300_v53 = vmax.f32 %v3284_v13, 0.0 }
 0x266   : >> { %v3318_v61 = vpack.c.bf16 %v3310_v46, %v3309_v27  ;;  %v3308_v4 = vmax.f32 %v3292_v24, 0.0 }
 0x267   : >> { %v3332_v3 = vrot.slane %v3314_v58, 4  ;;  %v3313_v60 = vpack.c.bf16 %v3300_v53, %v3299_v40  ;;  %1299 = sbr.rel (!%p1297_p11) target bundleno = 223 (0xdf), region = 193 }
 0x268   : >> { %v3338_v50 = vrot.slane %v3318_v61, 4  ;;  %v3317_v22 = vpack.c.bf16 %v3308_v4, %v3307_v47 }
 0x269   : >> { %13321 = vst [vmem:[%s19222_s24 + $0x40] sm:$0xf] %v3332_v3  ;;  %v3331_v36 = vrot.slane %v3313_v60, 4 }
 0x26a   : >> { %13327 = vst [vmem:[%s19222_s24 + $0x70] sm:$0xf] %v3338_v50  ;;  %v3337_v39 = vrot.slane %v3317_v22, 4 }
 0x26b   : >> { %v3333_v57 = vsel %vm1002_vm1, %v3331_v36, %v3332_v3  ;;  %13319 = vst [vmem:[%s19222_s24 + $0x30] sm:$0xf0] %v3331_v36 }
 0x26c   : >> { %13320 = vst [vmem:[%s19222_s24 + $0x38] sm:$0xff] %v3333_v57  ;;  %v3339_v56 = vsel %vm1002_vm1, %v3337_v39, %v3338_v50  ;;  %13325 = vst [vmem:[%s19222_s24 + $0x60] sm:$0xf0] %v3337_v39 }
 0x26d   : >> { %13326 = vst [vmem:[%s19222_s24 + $0x68] sm:$0xff] %v3339_v56 }
 0x26e LB: >> { %v17489_v54 = vld [vmem:[%s21653_s3 + $0xc0] sm:$0xff]   ;;  %v17491_v17 = vld [vmem:[%s21653_s3 + $0xc8] sm:$0xff]   ;;  %v17493_v37 = vld [vmem:[%s21653_s3 + $0xd0] sm:$0xff]   ;;  %s14283_s22 = smul.u32 96, %s17912_s23  ;;  %s3372_s23 = sadd.s32 1, %s17912_s23   ;;  %s17912_s23 = sphi %s19255_s23, %s3372_s23  }
 0x26f   : >> { %v17490_v12 = vld [vmem:[%s21653_s3 + $0x100] sm:$0xff]   ;;  %15383 = vmatprep.subr.bf16.mxu1 %v17489_v54  ;;  %v17492_v0 = vld [vmem:[%s21653_s3 + $0x108] sm:$0xff]   ;;  %v17494_v5 = vld [vmem:[%s21653_s3 + $0x110] sm:$0xff]   ;;  %p3369_p12 = scmp.ge.s32.totalorder %s3372_s23, 8  }
 0x270   : >> { %15511 = vmatprep.subr.bf16.mxu0 %v17490_v12  ;;  %15384 = vmatpush3.bf16.msra.mxu1 %v17489_v54  ;;  %v17495_v28 = vld [vmem:[%s21653_s3 + $0xd8] sm:$0xff]   ;;  %v17497_v8 = vld [vmem:[%s21653_s3 + $0xe0] sm:$0xff]   ;;  %v17499_v59 = vld [vmem:[%s21653_s3 + $0xe8] sm:$0xff]   ;;  %s19299_s21 = scalar_lea.vmem [#allocation3], %s14283_s22  ;;  %s19836_s27 = scalar_lea.vmem [#allocation2], %s14283_s22 }
 0x271   : >> { %15512 = vmatpush3.bf16.msra.mxu0 %v17490_v12  ;;  %15385 = vmatprep.subr.bf16.mxu1 %v17491_v17  ;;  %v17496_v44 = vld [vmem:[%s21653_s3 + $0x118] sm:$0xff]   ;;  %v17498_v62 = vld [vmem:[%s21653_s3 + $0x120] sm:$0xff]   ;;  %v17500_v15 = vld [vmem:[%s21653_s3 + $0x128] sm:$0xff]   ;;  %s19997_s14 = smov (%p3369_p12), 0  }
 0x272   : >> { %15513 = vmatprep.subr.bf16.mxu0 %v17492_v0  ;;  %v17501_v32 = vld [vmem:[%s21653_s3 + $0xf0] sm:$0xff]   ;;  %v17503_v33 = vld [vmem:[%s21653_s3 + $0xf8] sm:$0xff]   ;;  %v17505_v24 = vld [vmem:[%s21653_s3] sm:$0xff]  }
 0x273   : >> { %v17502_v38 = vld [vmem:[%s21653_s3 + $0x130] sm:$0xff]   ;;  %v17504_v30 = vld [vmem:[%s21653_s3 + $0x138] sm:$0xff]   ;;  %v17506_v61 = vld [vmem:[%s21653_s3 + $0x1c0] sm:$0xff]  }
 0x274   : >> { %15386 = vmatpush3.bf16.msra.mxu1 %v17491_v17  ;;  %v3380_v11 = vld [vmem:[%s19299_s21 + $0x18] sm:$0xf8]  ;;  %v19303_v63 = vld [vmem:[%s19299_s21 + $0x20] sm:$0xff]  ;;  %v3382_v55 = vld [vmem:[%s19299_s21 + $0x28] sm:$0xf] }
 0x275   : >> { %15514 = vmatpush3.bf16.msra.mxu0 %v17492_v0  ;;  %15387 = vmatprep.subr.bf16.mxu1 %v17493_v37  ;;  %v19306_v7 = vld [vmem:[%s19299_s21 + $0x18] sm:$0xf0]  ;;  %v3423_v42 = vshrl.u32 %v3380_v11, 16  ;;  %v3426_v1 = vshll.u32 %v3380_v11, 16  ;;  %v3431_v6 = vshrl.u32 %v19303_v63, 16  ;;  %v3434_v18 = vshll.u32 %v19303_v63, 16 }
 0x276   : >> { %15515 = vmatprep.subr.bf16.mxu0 %v17494_v5  ;;  %v4088_v19 = vrot.slane %v19306_v7, 4  ;;  %v4089_v20 = vrot.slane %v19303_v63, 4  ;;  %v3440_v52 = vshrl.u32 %v3382_v55, 16  ;;  %v3443_v49 = vshll.u32 %v3382_v55, 16  ;;  %v3383_v2 = vld [vmem:[%s19299_s21 + $0x30] sm:$0xf8] }
 0x277   : >> { %v3425_v9 = vrot.slane %v3423_v42, 3  ;;  %v3428_v26 = vrot.slane %v3426_v1, 4  ;;  %v3433_v51 = vrot.slane %v3431_v6, 3  ;;  %v3436_v41 = vrot.slane %v3434_v18, 4  ;;  %v19335_v48 = vld [vmem:[%s19299_s21 + $0x38] sm:$0xff]  ;;  %v17507_v17 = vld [vmem:[%s21653_s3 + $0x8] sm:$0xff]  }
 0x278   : >> { %15388 = vmatpush3.bf16.msra.mxu1 %v17493_v37  ;;  %v19324_v14 = vsel %vm1002_vm1, %v4088_v19, %v4089_v20  ;;  %v3442_v43 = vrot.slane %v3440_v52, 3  ;;  %v3445_v29 = vrot.slane %v3443_v49, 4  ;;  %v4091_v10 = vrot.slane %v3382_v55, 4  ;;  %v19345_v27 = vld [vmem:[%s19299_s21 + $0x40] sm:$0xf]  ;;  %v17508_v1 = vld [vmem:[%s21653_s3 + $0x1c8] sm:$0xff]  }
 0x279   : >> { %15516 = vmatpush3.bf16.msra.mxu0 %v17494_v5  ;;  %15389 = vmatprep.subr.bf16.mxu1 %v17495_v28  ;;  %v3429_v25 = vor.u32 %v3428_v26, %v3425_v9  ;;  %v3437_v35 = vor.u32 %v3436_v41, %v3433_v51  ;;  %v3449_v23 = vshrl.u32 %v3383_v2, 16  ;;  %v3452_v16 = vshll.u32 %v3383_v2, 16  ;;  %v19361_v60 = vld [vmem:[%s19299_s21 + $0x30] sm:$0xf0] }
 0x27a   : >> { %15517 = vmatprep.subr.bf16.mxu0 %v17496_v44  ;;  %15527 = vmatprep.mubr.bf16.mxu0 %v19324_v14  ;;  %v4694_v21 = vshrl.u32 %v19306_v7, 16  ;;  %v3446_v45 = vor.u32 %v3445_v29, %v3442_v43  ;;  %v3457_v34 = vshrl.u32 %v19335_v48, 16  ;;  %v3460_v13 = vshll.u32 %v19335_v48, 16  ;;  %v17509_v63 = vld [vmem:[%s21653_s3 + $0x10] sm:$0xff]  }
 0x27b   : >> { %v19328_v31 = vsel %vm1323_vm4, %v3429_v25, %v3437_v35  ;;  %v4697_v46 = vshll.u32 %v19306_v7, 16  ;;  %v3451_v40 = vrot.slane %v3449_v23, 3  ;;  %v3454_v58 = vrot.slane %v3452_v16, 4  ;;  %v19383_v7 = vld [vmem:[%s19299_s21 + $0x58] sm:$0xf]  ;;  %v17510_v51 = vld [vmem:[%s21653_s3 + $0x1d0] sm:$0xff]  }
 0x27c   : >> { %15390 = vmatpush3.bf16.msra.mxu1 %v17495_v28  ;;  %15399 = vmatprep.mubr.bf16.mxu1 %v19328_v31  ;;  %v3466_v53 = vshrl.u32 %v19345_v27, 16  ;;  %v3469_v47 = vshll.u32 %v19345_v27, 16  ;;  %v3459_v4 = vrot.slane %v3457_v34, 3  ;;  %v3462_v3 = vrot.slane %v3460_v13, 4  ;;  %v19424_v23 = vld [vmem:[%s19299_s21 + $0x68] sm:$0xff] }
 0x27d   : >> { %15518 = vmatpush3.bf16.msra.mxu0 %v17496_v44  ;;  %15391 = vmatprep.subr.bf16.mxu1 %v17497_v8  ;;  %v3455_v36 = vor.u32 %v3454_v58, %v3451_v40  ;;  %v4696_v57 = vrot.slane %v4694_v21, 4  ;;  %v4699_v56 = vrot.slane %v4697_v46, 5  ;;  %v19364_v54 = vsel %vm1323_vm4, %v3437_v35, %v3446_v45  ;;  %v3386_v44 = vld [vmem:[%s19299_s21 + $0x48] sm:$0xf8]  ;;  %v19433_v46 = vld [vmem:[%s19299_s21 + $0x60] sm:$0xf0] }
 0x27e   : >> { %15519 = vmatprep.subr.bf16.mxu0 %v17498_v62  ;;  %v3468_v50 = vrot.slane %v3466_v53, 3  ;;  %v3471_v22 = vrot.slane %v3469_v47, 4  ;;  %v3463_v39 = vor.u32 %v3462_v3, %v3459_v4  ;;  %v19367_v12 = vsel %vm1002_vm1, %v4089_v20, %v4091_v10  ;;  %v3389_v10 = vld [vmem:[%s19299_s21 + $0x60] sm:$0xf8]  ;;  %v17511_v40 = vld [vmem:[%s21653_s3 + $0x18] sm:$0xff]  }
 0x27f   : >> { %v4093_v0 = vrot.slane %v19361_v60, 4  ;;  %v4094_v37 = vrot.slane %v19335_v48, 4  ;;  %v4096_v28 = vrot.slane %v19345_v27, 4  ;;  %v4702_v42 = vrot.slane %v3434_v18, 5  ;;  %v19443_v53 = vld [vmem:[%s19299_s21 + $0x70] sm:$0xf] }
 0x280   : >> { %15392 = vmatpush3.bf16.msra.mxu1 %v17497_v8  ;;  %v3472_v5 = vor.u32 %v3471_v22, %v3468_v50  ;;  %v19377_v8 = vld [vmem:[%s19299_s21 + $0x50] sm:$0xff]  ;;  %v19391_v55 = vsel %vm1323_vm4, %v3455_v36, %v3463_v39  ;;  %v3492_v19 = vshrl.u32 %v19383_v7, 16  ;;  %v4700_v20 = vor.u32 %v4699_v56, %v4696_v57  ;;  %v17512_v47 = vld [vmem:[%s21653_s3 + $0x1d8] sm:$0xff]   ;;  %v17513_v22 = vld [vmem:[%s21653_s3 + $0x20] sm:$0xff]  }
 0x281   : >> { %15520 = vmatpush3.bf16.msra.mxu0 %v17498_v62  ;;  %15393 = vmatprep.subr.bf16.mxu1 %v17499_v59  ;;  %v4701_v62 = vrot.slane %v3431_v6, 4  ;;  %v3483_v11 = vshrl.u32 %v19377_v8, 16  ;;  %v3486_v6 = vshll.u32 %v19377_v8, 16  ;;  %v3495_v9 = vshll.u32 %v19383_v7, 16 }
 0x282   : >> { %15521 = vmatprep.subr.bf16.mxu0 %v17500_v15  ;;  %v19404_v26 = vsel %vm1002_vm1, %v4093_v0, %v4094_v37  ;;  %v19419_v2 = vsel %vm1323_vm4, %v3463_v39, %v3472_v5  ;;  %v4099_v21 = vrot.slane %v19377_v8, 4  ;;  %v3528_v45 = vshll.u32 %v3389_v10, 16  ;;  %v17514_v0 = vld [vmem:[%s21653_s3 + $0x1e0] sm:$0xff]  }
 0x283   : >> { %v3485_v49 = vrot.slane %v3483_v11, 3  ;;  %v3488_v41 = vrot.slane %v3486_v6, 4  ;;  %v3497_v25 = vrot.slane %v3495_v9, 4  ;;  %v19414_v35 = vor.u32 %v4702_v42, %v4701_v62  ;;  %v17515_v9 = vld [vmem:[%s21653_s3 + $0x28] sm:$0xff]  }
 0x284   : >> { %15394 = vmatpush3.bf16.msra.mxu1 %v17499_v59  ;;  %v3475_v59 = vshrl.u32 %v3386_v44, 16  ;;  %v3533_v27 = vshrl.u32 %v19424_v23, 16  ;;  %v3536_v58 = vshll.u32 %v19424_v23, 16  ;;  %v4101_v3 = vrot.slane %v19383_v7, 4 }
 0x285   : >> { %15522 = vmatpush3.bf16.msra.mxu0 %v17500_v15  ;;  %15395 = vmatprep.subr.bf16.mxu1 %v17501_v32  ;;  %v3478_v15 = vshll.u32 %v3386_v44, 16  ;;  %v3489_v29 = vor.u32 %v3488_v41, %v3485_v49  ;;  %v19428_v16 = vsel %vm2599_vm5, %v4700_v20, %v19414_v35  ;;  %v4292_v50 = vrot.slane %v19433_v46, 4  ;;  %v19472_v44 = vld [vmem:[%s19299_s21 + $0x8] sm:$0xff] }
 0x286   : >> { %15523 = vmatprep.subr.bf16.mxu0 %v17502_v38  ;;  %v3477_v18 = vrot.slane %v3475_v59, 3  ;;  %v3530_v39 = vrot.slane %v3528_v45, 4  ;;  %v3535_v57 = vrot.slane %v3533_v27, 3  ;;  %v3538_v56 = vrot.slane %v3536_v58, 4  ;;  %v3377_v59 = vld [vmem:[%s19299_s21] sm:$0xf8] }
 0x287   : >> { %v3480_v52 = vrot.slane %v3478_v15, 4  ;;  %v3545_v5 = vshll.u32 %v19443_v53, 16  ;;  %v3397_v42 = vshrl.u32 %v3377_v59, 16  ;;  %v19486_v49 = vsel %vm1002_vm1, %v4099_v21, %v4101_v3  ;;  %v17518_v3 = vld [vmem:[%s21653_s3 + $0x1f0] sm:$0xff]  }
 0x288   : >> { %15396 = vmatpush3.bf16.msra.mxu1 %v17501_v32  ;;  %v19412_v32 = vld [vmem:[%s19299_s21 + $0x48] sm:$0xf0]  ;;  %v3539_v7 = vor.u32 %v3538_v56, %v3535_v57  ;;  %v4715_v41 = vshrl.u32 %v19361_v60, 16  ;;  %v4722_v57 = vrot.slane %v3457_v34, 4  ;;  %v17520_v34 = vld [vmem:[%s21653_s3 + $0x1f8] sm:$0xff]  }
 0x289   : >> { %15524 = vmatpush3.bf16.msra.mxu0 %v17502_v38  ;;  %15397 = vmatprep.subr.bf16.mxu1 %v17503_v33  ;;  %v3494_v38 = vrot.slane %v3492_v19, 3  ;;  %v3481_v43 = vor.u32 %v3480_v52, %v3477_v18  ;;  %v19481_v19 = vld [vmem:[%s19299_s21 + $0x10] sm:$0xf]  ;;  %v3405_v18 = vshrl.u32 %v19472_v44, 16  ;;  %v3408_v52 = vshll.u32 %v19472_v44, 16 }
 0x28a   : >> { %15525 = vmatprep.subr.bf16.mxu0 %v17504_v30 }
 0x28b   : >> { %v3498_v4 = vor.u32 %v3497_v25, %v3494_v38  ;;  %v3399_v38 = vrot.slane %v3397_v42, 3  ;;  %v17522_v42 = vld [vmem:[%s21653_s3 + $0x80] sm:$0xff]  }
 0x28c   : >> { %15398 = vmatpush3.bf16.msra.mxu1 %v17503_v33  ;;  %v4098_v33 = vrot.slane %v19412_v32, 4 }
 0x28d   : >> { %15526 = vmatpush3.bf16.msra.mxu0 %v17504_v30  ;;  %15415 = vmatprep.subr.bf16.mxu1 %v17505_v24  ;;  %v3525_v30 = vshrl.u32 %v3389_v10, 16  ;;  %v19476_v62 = vsel %vm1323_vm4, %v3489_v29, %v3498_v4  ;;  %v3407_v10 = vrot.slane %v3405_v18, 3  ;;  %v4717_v4 = vrot.slane %v4715_v41, 4 }
 0x28e   : >> { %15543 = vmatprep.subr.bf16.mxu0 %v17506_v61  ;;  %v4736_v41 = vshrl.u32 %v19412_v32, 16 }
 0x28f   : >> { %15400 = vmatmul.mubr.bf16.vlgmr.msra.gmra.mrb[0].mxu1 %v19364_v54  ;;  %v3527_v36 = vrot.slane %v3525_v30, 3 }
 0x290   : >> { %15528 = vmatmul.mubr.bf16.vlgmr.msra.gmra.mrb[0].mxu0 %v19367_v12  ;;  %15416 = vmatpush3.bf16.msra.mxu1 %v17505_v24  ;;  %v19436_v24 = vsel %vm1002_vm1, %v4094_v37, %v4096_v28  ;;  %v3542_v37 = vshrl.u32 %v19443_v53, 16  ;;  %v4293_v28 = vrot.slane %v19424_v23, 4  ;;  %v17539_v23 = vld [vmem:[%s21653_s3 + $0x48] sm:$0xff]  }
 0x291   : >> { %15544 = vmatpush3.bf16.msra.mxu0 %v17506_v61  ;;  %15417 = vmatprep.subr.bf16.mxu1 %v17507_v17  ;;  %v19449_v61 = vsel %vm1323_vm4, %v3481_v43, %v3489_v29  ;;  %v3531_v15 = vor.u32 %v3530_v39, %v3527_v36  ;;  %v3414_v43 = vshrl.u32 %v19481_v19, 16  ;;  %v4718_v29 = vshll.u32 %v19361_v60, 16  ;;  %v17517_v60 = vld [vmem:[%s21653_s3 + $0x30] sm:$0xff]  }
 0x292   : >> { %15545 = vmatprep.subr.bf16.mxu0 %v17508_v1  ;;  %15403 = vmatprep.mubr.bf16.mxu1 %v19391_v55  ;;  %v3544_v20 = vrot.slane %v3542_v37, 3  ;;  %v19507_v30 = vsel %vm1002_vm1, %v4292_v50, %v4293_v28  ;;  %v4723_v37 = vrot.slane %v3460_v13, 5 }
 0x293   : >> { %15531 = vmatprep.mubr.bf16.mxu0 %v19404_v26  ;;  %v4720_v50 = vrot.slane %v4718_v29, 5  ;;  %v3416_v39 = vrot.slane %v3414_v43, 3  ;;  %v17529_v43 = vld [vmem:[%s21653_s3 + $0x1a0] sm:$0xff]  }
 0x294   : >> { %15418 = vmatpush3.bf16.msra.mxu1 %v17507_v17  ;;  %v19463_v17 = vsel %vm1002_vm1, %v4098_v33, %v4099_v21  ;;  %v19499_v33 = vsel %vm1323_vm4, %v3531_v15, %v3539_v7  ;;  %v3410_v21 = vrot.slane %v3408_v52, 4  ;;  %v19535_v15 = vor.u32 %v4723_v37, %v4722_v57  ;;  %v19580_v29 = vld [vmem:[%s19299_s21 + $0x80] sm:$0xff] }
 0x295   : >> { %15546 = vmatpush3.bf16.msra.mxu0 %v17508_v1  ;;  %15419 = vmatprep.subr.bf16.mxu1 %v17509_v63  ;;  %v3400_v1 = vshll.u32 %v3377_v59, 16  ;;  %v17519_v59 = vld [vmem:[%s21653_s3 + $0x38] sm:$0xff]   ;;  %v4681_v37 = vrot.slane %v3408_v52, 5 }
 0x296   : >> { %15547 = vmatprep.subr.bf16.mxu0 %v17510_v51  ;;  %v3411_v36 = vor.u32 %v3410_v21, %v3407_v10  ;;  %v4738_v10 = vrot.slane %v4736_v41, 4  ;;  %v17530_v21 = vld [vmem:[%s21653_s3 + $0xa0] sm:$0xff]  }
 0x297   : >> { %15404 = vmatmul.mubr.bf16.gmra.mrb[4].mxu1 %v19419_v2  ;;  %v3402_v25 = vrot.slane %v3400_v1, 4 }
 0x298   : >> { %15532 = vmatmul.mubr.bf16.gmra.mrb[4].mxu0 %v19436_v24  ;;  %15420 = vmatpush3.bf16.msra.mxu1 %v17509_v63  ;;  %v3547_v63 = vrot.slane %v3545_v5, 4 }
 0x299   : >> { %15548 = vmatpush3.bf16.msra.mxu0 %v17510_v51  ;;  %15421 = vmatprep.subr.bf16.mxu1 %v17511_v40  ;;  %v17516_v51 = vld [vmem:[%s21653_s3 + $0x1e8] sm:$0xff]  }
 0x29a   : >> { %15549 = vmatprep.subr.bf16.mxu0 %v17512_v47  ;;  %15407 = vmatprep.mubr.bf16.mxu1 %v19449_v61  ;;  %v3548_v45 = vor.u32 %v3547_v63, %v3544_v20  ;;  %v17523_v20 = vld [vmem:[%s21653_s3 + $0x188] sm:$0xff]  }
 0x29b   : >> { %15535 = vmatprep.mubr.bf16.mxu0 %v19463_v17  ;;  %v17524_v63 = vld [vmem:[%s21653_s3 + $0x88] sm:$0xff]  }
 0x29c   : >> { %15422 = vmatpush3.bf16.msra.mxu1 %v17511_v40  ;;  %v3417_v40 = vshll.u32 %v19481_v19, 16 }
 0x29d   : >> { %15550 = vmatpush3.bf16.msra.mxu0 %v17512_v47  ;;  %15423 = vmatprep.subr.bf16.mxu1 %v17513_v22  ;;  %v4295_v47 = vrot.slane %v19443_v53, 4  ;;  %v19522_v53 = vsel %vm1323_vm4, %v3539_v7, %v3548_v45  ;;  %v17521_v7 = vld [vmem:[%s21653_s3 + $0x180] sm:$0xff]  }
 0x29e   : >> { %15551 = vmatprep.subr.bf16.mxu0 %v17514_v0  ;;  %v3419_v56 = vrot.slane %v3417_v40, 4 }
 0x29f   : >> { %15408 = vmatmul.mubr.bf16.gmra.mrb[8].mxu1 %v19476_v62  ;;  %v19527_v5 = vsel %vm1002_vm1, %v4293_v28, %v4295_v47  ;;  %v4481_v47 = vrot.slane %v19580_v29, 4 }
 0x2a0   : >> { %15536 = vmatmul.mubr.bf16.gmra.mrb[8].mxu0 %v19486_v49  ;;  %15424 = vmatpush3.bf16.msra.mxu1 %v17513_v22  ;;  %v3403_v22 = vor.u32 %v3402_v25, %v3399_v38  ;;  %v3420_v13 = vor.u32 %v3419_v56, %v3416_v39  ;;  %v4739_v38 = vshll.u32 %v19412_v32, 16  ;;  %v17527_v25 = vld [vmem:[%s21653_s3 + $0x198] sm:$0xff]   ;;  %v17531_v39 = vld [vmem:[%s21653_s3 + $0x1a8] sm:$0xff]  }
 0x2a1   : >> { %15552 = vmatpush3.bf16.msra.mxu0 %v17514_v0  ;;  %15425 = vmatprep.subr.bf16.mxu1 %v17515_v9  ;;  %v4721_v0 = vor.u32 %v4720_v50, %v4717_v4  ;;  %v19583_v32 = vld [vmem:[%s19299_s21 + $0x78] sm:$0xf0]  ;;  %v19599_v4 = vld [vmem:[%s19299_s21 + $0x88] sm:$0xf] }
 0x2a2   : >> { %15553 = vmatprep.subr.bf16.mxu0 %v17516_v51  ;;  %15411 = vmatprep.mubr.bf16.mxu1 %v19499_v33  ;;  %v3412_v48 = vsel %vm1323_vm4, %v3403_v22, %v3411_v36  ;;  %v3421_v1 = vsel %vm1323_vm4, %v3411_v36, %v3420_v13  ;;  %v4741_v45 = vrot.slane %v4739_v38, 5  ;;  %v4480_v40 = vrot.slane %v19583_v32, 4  ;;  %v17535_v38 = vld [vmem:[%s21653_s3 + $0x1b8] sm:$0xff]  }
 0x2a3   : >> { %15539 = vmatprep.mubr.bf16.mxu0 %v19507_v30  ;;  %v19542_v28 = vsel %vm2599_vm5, %v4721_v0, %v19535_v15  ;;  %v4744_v36 = vrot.slane %v3486_v6, 5  ;;  %v4483_v8 = vrot.slane %v19599_v4, 4  ;;  %v4680_v6 = vrot.slane %v3405_v18, 4  ;;  %v17534_v18 = vld [vmem:[%s21653_s3 + $0xb0] sm:$0xff]  }
 0x2a4   : >> { %15426 = vmatpush3.bf16.msra.mxu1 %v17515_v9  ;;  %v17525_v9 = vld [vmem:[%s21653_s3 + $0x190] sm:$0xff]   ;;  %v4742_v22 = vor.u32 %v4741_v45, %v4738_v10  ;;  %v4482_v0 = vsel %vm1002_vm1, %v4480_v40, %v4481_v47 }
 0x2a5   : >> { %15554 = vmatpush3.bf16.msra.mxu0 %v17516_v51  ;;  %15427 = vmatprep.subr.bf16.mxu1 %v17517_v60  ;;  %v17526_v51 = vld [vmem:[%s21653_s3 + $0x90] sm:$0xff]   ;;  %v4484_v41 = vsel %vm1002_vm1, %v4481_v47, %v4483_v8 }
 0x2a6   : >> { %15555 = vmatprep.subr.bf16.mxu0 %v17518_v3 }
 0x2a7   : >> { %15412 = vmatmul.mubr.bf16.gmra.mrb[12].mxu1 %v19522_v53 }
 0x2a8   : >> { %15540 = vmatmul.mubr.bf16.gmra.mrb[12].mxu0 %v19527_v5  ;;  %15428 = vmatpush3.bf16.msra.mxu1 %v17517_v60  ;;  %v19592_v60 = vld [vmem:[%s19299_s21] sm:$0xf0] }
 0x2a9   : >> { %15556 = vmatpush3.bf16.msra.mxu0 %v17518_v3  ;;  %15429 = vmatprep.subr.bf16.mxu1 %v17519_v59  ;;  %v4665_v3 = vld [vmem:[%s19299_s21 + $0x10] sm:$0x1f]  ;;  %v4673_v50 = vshrl.u32 %v19592_v60, 16 }
 0x2aa   : >> { %15557 = vmatprep.subr.bf16.mxu0 %v17520_v34  ;;  %15431 = vmatprep.mubr.bf16.mxu1 %v3412_v48  ;;  %v4685_v57 = vshrl.u32 %v4665_v3, 16  ;;  %v4688_v13 = vshll.u32 %v4665_v3, 16 }
 0x2ab   : >> { %15559 = vmatprep.mubr.bf16.mxu0 %v19404_v26 }
 0x2ac   : >> { %15430 = vmatpush3.bf16.msra.mxu1 %v17519_v59  ;;  %v17533_v59 = vld [vmem:[%s21653_s3 + $0x1b0] sm:$0xff]   ;;  %v4687_v52 = vrot.slane %v4685_v57, 4  ;;  %v3392_v57 = vld [vmem:[%s19299_s21 + $0x78] sm:$0xf8] }
 0x2ad   : >> { %15558 = vmatpush3.bf16.msra.mxu0 %v17520_v34  ;;  %15447 = vmatprep.subr.bf16.mxu1 %v17521_v7  ;;  %v4675_v34 = vrot.slane %v4673_v50, 4  ;;  %v4951_v50 = vrot.slane %v3536_v58, 5 }
 0x2ae   : >> { %15575 = vmatprep.subr.bf16.mxu0 %v17522_v42 }
 0x2af   : >> { %15432 = vmatmul.mubr.bf16.vlgmr.msra.gmra.mrb[0].mxu1 %v3421_v1 }
 0x2b0   : >> { %15560 = vmatmul.mubr.bf16.vlgmr.msra.gmra.mrb[0].mxu0 %v19436_v24  ;;  %15448 = vmatpush3.bf16.msra.mxu1 %v17521_v7 }
 0x2b1   : >> { %15576 = vmatpush3.bf16.msra.mxu0 %v17522_v42  ;;  %15449 = vmatprep.subr.bf16.mxu1 %v17523_v20  ;;  %v4086_v42 = vrot.slane %v19481_v19, 4  ;;  %v4946_v19 = vshll.u32 %v19433_v46, 16 }
 0x2b2   : >> { %15577 = vmatprep.subr.bf16.mxu0 %v17524_v63  ;;  %15435 = vmatprep.mubr.bf16.mxu1 %v19328_v31  ;;  %v17528_v31 = vld [vmem:[%s21653_s3 + $0x98] sm:$0xff]  }
 0x2b3   : >> { %15563 = vmatprep.mubr.bf16.mxu0 %v19463_v17  ;;  %v4948_v10 = vrot.slane %v4946_v19, 5 }
 0x2b4   : >> { %15450 = vmatpush3.bf16.msra.mxu1 %v17523_v20  ;;  %v4682_v20 = vor.u32 %v4681_v37, %v4680_v6 }
 0x2b5   : >> { %15578 = vmatpush3.bf16.msra.mxu0 %v17524_v63  ;;  %15451 = vmatprep.subr.bf16.mxu1 %v17525_v9  ;;  %v4690_v63 = vrot.slane %v4688_v13, 5  ;;  %v3871_v13 = vshll.u32 %v19580_v29, 16 }
 0x2b6   : >> { %15579 = vmatprep.subr.bf16.mxu0 %v17526_v51 }
 0x2b7   : >> { %15436 = vmatmul.mubr.bf16.gmra.mrb[4].mxu1 %v19364_v54  ;;  %v4743_v54 = vrot.slane %v3483_v11, 4  ;;  %v4676_v11 = vshll.u32 %v19592_v60, 16  ;;  %v4691_v45 = vor.u32 %v4690_v63, %v4687_v52 }
 0x2b8   : >> { %15564 = vmatmul.mubr.bf16.gmra.mrb[4].mxu0 %v19486_v49  ;;  %15452 = vmatpush3.bf16.msra.mxu1 %v17525_v9  ;;  %v4666_v9 = vld [vmem:[%s19299_s21 + $0x28] sm:$0x1f] }
 0x2b9   : >> { %15580 = vmatpush3.bf16.msra.mxu0 %v17526_v51  ;;  %15453 = vmatprep.subr.bf16.mxu1 %v17527_v25  ;;  %v19612_v56 = vor.u32 %v4744_v36, %v4743_v54  ;;  %v4678_v48 = vrot.slane %v4676_v11, 5  ;;  %v4943_v51 = vshrl.u32 %v19433_v46, 16  ;;  %v4950_v54 = vrot.slane %v3533_v27, 4  ;;  %v17537_v46 = vld [vmem:[%s21653_s3 + $0x40] sm:$0xff]  }
 0x2ba   : >> { %15581 = vmatprep.subr.bf16.mxu0 %v17528_v31  ;;  %15439 = vmatprep.mubr.bf16.mxu1 %v19391_v55  ;;  %v4706_v40 = vshrl.u32 %v4666_v9, 16  ;;  %v4709_v47 = vshll.u32 %v4666_v9, 16  ;;  %v17538_v27 = vld [vmem:[%s21653_s3 + $0x140] sm:$0xff]  }
 0x2bb   : >> { %15567 = vmatprep.mubr.bf16.mxu0 %v19507_v30  ;;  %v17532_v30 = vld [vmem:[%s21653_s3 + $0xa8] sm:$0xff]   ;;  %v19627_v7 = vsel %vm2599_vm5, %v4742_v22, %v19612_v56  ;;  %v4679_v1 = vor.u32 %v4678_v48, %v4675_v34  ;;  %v19663_v11 = vor.u32 %v4951_v50, %v4950_v54  ;;  %v4692_v22 = vsel %vm2599_vm5, %v4682_v20, %v4691_v45 }
 0x2bc   : >> { %15454 = vmatpush3.bf16.msra.mxu1 %v17527_v25  ;;  %v4708_v58 = vrot.slane %v4706_v40, 4  ;;  %v4711_v36 = vrot.slane %v4709_v47, 5  ;;  %v3863_v34 = vshll.u32 %v3392_v57, 16  ;;  %v3868_v48 = vshrl.u32 %v19580_v29, 16 }
 0x2bd   : >> { %15582 = vmatpush3.bf16.msra.mxu0 %v17528_v31  ;;  %15455 = vmatprep.subr.bf16.mxu1 %v17529_v43  ;;  %v17536_v31 = vld [vmem:[%s21653_s3 + $0xb8] sm:$0xff]  }
 0x2be   : >> { %15583 = vmatprep.subr.bf16.mxu0 %v17530_v21  ;;  %v4712_v8 = vor.u32 %v4711_v36, %v4708_v58  ;;  %v3865_v9 = vrot.slane %v3863_v34, 4 }
 0x2bf   : >> { %15440 = vmatmul.mubr.bf16.gmra.mrb[8].mxu1 %v19419_v2 }
 0x2c0   : >> { %15568 = vmatmul.mubr.bf16.gmra.mrb[8].mxu0 %v19527_v5  ;;  %15456 = vmatpush3.bf16.msra.mxu1 %v17529_v43  ;;  %v4084_v5 = vrot.slane %v19472_v44, 4  ;;  %v4945_v43 = vrot.slane %v4943_v51, 4  ;;  %v3873_v51 = vrot.slane %v3871_v13, 4  ;;  %v17554_v44 = vld [vmem:[%s21653_s3 + $0x208] sm:$0xff]  }
 0x2c1   : >> { %15584 = vmatpush3.bf16.msra.mxu0 %v17530_v21  ;;  %15457 = vmatprep.subr.bf16.mxu1 %v17531_v39  ;;  %v4683_v21 = vsel %vm2599_vm5, %v4679_v1, %v4682_v20  ;;  %v17544_v1 = vld [vmem:[%s21653_s3 + $0x158] sm:$0xff]  }
 0x2c2   : >> { %15585 = vmatprep.subr.bf16.mxu0 %v17532_v30  ;;  %15443 = vmatprep.mubr.bf16.mxu1 %v19449_v61  ;;  %v19644_v25 = vsel %vm1002_vm1, %v4084_v5, %v4086_v42  ;;  %v4949_v3 = vor.u32 %v4948_v10, %v4945_v43  ;;  %v4668_v20 = vld [vmem:[%s19299_s21 + $0x58] sm:$0x1f]  ;;  %v17546_v10 = vld [vmem:[%s21653_s3 + $0x160] sm:$0xff]  }
 0x2c3   : >> { %15571 = vmatprep.mubr.bf16.mxu0 %v4482_v0  ;;  %v17541_v0 = vld [vmem:[%s21653_s3 + $0x50] sm:$0xff]   ;;  %v4751_v43 = vshll.u32 %v4668_v20, 16 }
 0x2c4   : >> { %15458 = vmatpush3.bf16.msra.mxu1 %v17531_v39  ;;  %v17540_v39 = vld [vmem:[%s21653_s3 + $0x148] sm:$0xff]  }
 0x2c5   : >> { %15586 = vmatpush3.bf16.msra.mxu0 %v17532_v30  ;;  %15459 = vmatprep.subr.bf16.mxu1 %v17533_v59  ;;  %v4667_v30 = vld [vmem:[%s19299_s21 + $0x40] sm:$0x1f]  ;;  %v4753_v47 = vrot.slane %v4751_v43, 5 }
 0x2c6   : >> { %15587 = vmatprep.subr.bf16.mxu0 %v17534_v18  ;;  %v4727_v6 = vshrl.u32 %v4667_v30, 16  ;;  %v4730_v37 = vshll.u32 %v4667_v30, 16  ;;  %v17552_v30 = vld [vmem:[%s21653_s3 + $0x178] sm:$0xff]  }
 0x2c7   : >> { %15444 = vmatmul.mubr.bf16.gmra.mrb[12].mxu1 %v19476_v62 }
 0x2c8   : >> { %15572 = vmatmul.mubr.bf16.gmra.mrb[12].mxu0 %v4484_v41  ;;  %15460 = vmatpush3.bf16.msra.mxu1 %v17533_v59  ;;  %v3860_v59 = vshrl.u32 %v3392_v57, 16  ;;  %v4729_v52 = vrot.slane %v4727_v6, 4  ;;  %v4732_v42 = vrot.slane %v4730_v37, 5  ;;  %v3877_v41 = vshrl.u32 %v19599_v4, 16  ;;  %v17559_v37 = vld [vmem:[%s21653_s3 + $0x230] sm:$0xff]  }
 0x2c9   : >> { %15588 = vmatpush3.bf16.msra.mxu0 %v17534_v18  ;;  %15461 = vmatprep.subr.bf16.mxu1 %v17535_v38  ;;  %v19691_v18 = vsel %vm2599_vm5, %v19414_v35, %v4712_v8  ;;  %v3870_v35 = vrot.slane %v3868_v48, 3 }
 0x2ca   : >> { %15589 = vmatprep.subr.bf16.mxu0 %v17536_v31  ;;  %15463 = vmatprep.mubr.bf16.mxu1 %v19391_v55  ;;  %v19671_v55 = vsel %vm2599_vm5, %v4949_v3, %v19663_v11  ;;  %v3862_v63 = vrot.slane %v3860_v59, 3  ;;  %v4733_v19 = vor.u32 %v4732_v42, %v4729_v52  ;;  %v3879_v45 = vrot.slane %v3877_v41, 3  ;;  %v17548_v3 = vld [vmem:[%s21653_s3 + $0x168] sm:$0xff]  }
 0x2cb   : >> { %15591 = vmatprep.mubr.bf16.mxu0 %v4683_v21  ;;  %v5147_v59 = vshll.u32 %v19583_v32, 16  ;;  %v4670_v52 = vld [vmem:[%s19299_s21 + $0x88] sm:$0x1f] }
 0x2cc   : >> { %15462 = vmatpush3.bf16.msra.mxu1 %v17535_v38  ;;  %v3880_v38 = vshll.u32 %v19599_v4, 16  ;;  %v3866_v21 = vor.u32 %v3865_v9, %v3862_v63  ;;  %v3874_v4 = vor.u32 %v3873_v51, %v3870_v35  ;;  %v5159_v42 = vshll.u32 %v4670_v52, 16 }
 0x2cd   : >> { %15590 = vmatpush3.bf16.msra.mxu0 %v17536_v31  ;;  %15479 = vmatprep.subr.bf16.mxu1 %v17537_v46  ;;  %v4748_v31 = vshrl.u32 %v4668_v20, 16 }
 0x2ce   : >> { %15607 = vmatprep.subr.bf16.mxu0 %v17538_v27  ;;  %v3882_v54 = vrot.slane %v3880_v38, 4  ;;  %v3875_v50 = vsel %vm1323_vm4, %v3866_v21, %v3874_v4 }
 0x2cf   : >> { %15464 = vmatmul.mubr.bf16.vlgmr.msra.gmra.mrb[0].mxu1 %v19419_v2  ;;  %v17542_v2 = vld [vmem:[%s21653_s3 + $0x150] sm:$0xff]   ;;  %v4750_v40 = vrot.slane %v4748_v31, 4 }
 0x2d0   : >> { %15592 = vmatmul.mubr.bf16.vlgmr.msra.gmra.mrb[0].mxu0 %v4692_v22  ;;  %15480 = vmatpush3.bf16.msra.mxu1 %v17537_v46  ;;  %v19718_v46 = vsel %vm2599_vm5, %v19535_v15, %v4733_v19  ;;  %v3883_v15 = vor.u32 %v3882_v54, %v3879_v45 }
 0x2d1   : >> { %15608 = vmatpush3.bf16.msra.mxu0 %v17538_v27  ;;  %15481 = vmatprep.subr.bf16.mxu1 %v17539_v23  ;;  %v17549_v27 = vld [vmem:[%s21653_s3 + $0x70] sm:$0xff]   ;;  %v4754_v22 = vor.u32 %v4753_v47, %v4750_v40 }
 0x2d2   : >> { %15609 = vmatprep.subr.bf16.mxu0 %v17540_v39  ;;  %15467 = vmatprep.mubr.bf16.mxu1 %v19449_v61  ;;  %v17543_v61 = vld [vmem:[%s21653_s3 + $0x58] sm:$0xff]   ;;  %v3884_v58 = vsel %vm1323_vm4, %v3874_v4, %v3883_v15 }
 0x2d3   : >> { %15595 = vmatprep.mubr.bf16.mxu0 %v19428_v16  ;;  %v19740_v36 = vsel %vm2599_vm5, %v19612_v56, %v4754_v22  ;;  %v17553_v56 = vld [vmem:[%s21653_s3 + $0x200] sm:$0xff]  }
 0x2d4   : >> { %15482 = vmatpush3.bf16.msra.mxu1 %v17539_v23  ;;  %v17550_v23 = vld [vmem:[%s21653_s3 + $0x170] sm:$0xff]  }
 0x2d5   : >> { %15610 = vmatpush3.bf16.msra.mxu0 %v17540_v39  ;;  %15483 = vmatprep.subr.bf16.mxu1 %v17541_v0  ;;  %v17551_v39 = vld [vmem:[%s21653_s3 + $0x78] sm:$0xff]  }
 0x2d6   : >> { %15611 = vmatprep.subr.bf16.mxu0 %v17542_v2 }
 0x2d7   : >> { %15468 = vmatmul.mubr.bf16.gmra.mrb[4].mxu1 %v19476_v62  ;;  %v17545_v62 = vld [vmem:[%s21653_s3 + $0x60] sm:$0xff]  }
 0x2d8   : >> { %15596 = vmatmul.mubr.bf16.gmra.mrb[4].mxu0 %v19691_v18  ;;  %15484 = vmatpush3.bf16.msra.mxu1 %v17541_v0 }
 0x2d9   : >> { %15612 = vmatpush3.bf16.msra.mxu0 %v17542_v2  ;;  %15485 = vmatprep.subr.bf16.mxu1 %v17543_v61  ;;  %v5144_v2 = vshrl.u32 %v19583_v32, 16  ;;  %v5149_v32 = vrot.slane %v5147_v59, 5 }
 0x2da   : >> { %15613 = vmatprep.subr.bf16.mxu0 %v17544_v1  ;;  %15471 = vmatprep.mubr.bf16.mxu1 %v19499_v33  ;;  %v17547_v33 = vld [vmem:[%s21653_s3 + $0x68] sm:$0xff]  }
 0x2db   : >> { %15599 = vmatprep.mubr.bf16.mxu0 %v19542_v28 }
 0x2dc   : >> { %15486 = vmatpush3.bf16.msra.mxu1 %v17543_v61  ;;  %v5146_v61 = vrot.slane %v5144_v2, 4 }
 0x2dd   : >> { %15614 = vmatpush3.bf16.msra.mxu0 %v17544_v1  ;;  %15487 = vmatprep.subr.bf16.mxu1 %v17545_v62 }
 0x2de   : >> { %15615 = vmatprep.subr.bf16.mxu0 %v17546_v10 }
 0x2df   : >> { %15472 = vmatmul.mubr.bf16.gmra.mrb[8].mxu1 %v19522_v53  ;;  %v4083_v53 = vrot.slane %v19592_v60, 4 }
 0x2e0   : >> { %15600 = vmatmul.mubr.bf16.gmra.mrb[8].mxu0 %v19718_v46  ;;  %15488 = vmatpush3.bf16.msra.mxu1 %v17545_v62 }
 0x2e1   : >> { %15616 = vmatpush3.bf16.msra.mxu0 %v17546_v10  ;;  %15489 = vmatprep.subr.bf16.mxu1 %v17547_v33  ;;  %v4085_v60 = vsel %vm1002_vm1, %v4083_v53, %v4084_v5  ;;  %v17556_v5 = vld [vmem:[%s21653_s3 + $0x218] sm:$0xff]  }
 0x2e2   : >> { %15617 = vmatprep.subr.bf16.mxu0 %v17548_v3  ;;  %15475 = vmatprep.mubr.bf16.mxu1 %v3875_v50 }
 0x2e3   : >> { %15603 = vmatprep.mubr.bf16.mxu0 %v19627_v7 }
 0x2e4   : >> { %15490 = vmatpush3.bf16.msra.mxu1 %v17547_v33 }
 0x2e5   : >> { %15618 = vmatpush3.bf16.msra.mxu0 %v17548_v3  ;;  %15491 = vmatprep.subr.bf16.mxu1 %v17549_v27 }
 0x2e6   : >> { %15619 = vmatprep.subr.bf16.mxu0 %v17550_v23 }
 0x2e7   : >> { %15476 = vmatmul.mubr.bf16.gmra.mrb[12].mxu1 %v3884_v58 }
 0x2e8   : >> { %15604 = vmatmul.mubr.bf16.gmra.mrb[12].mxu0 %v19740_v36  ;;  %15492 = vmatpush3.bf16.msra.mxu1 %v17549_v27 }
 0x2e9   : >> { %15620 = vmatpush3.bf16.msra.mxu0 %v17550_v23  ;;  %15493 = vmatprep.subr.bf16.mxu1 %v17551_v39 }
 0x2ea   : >> { %15621 = vmatprep.subr.bf16.mxu0 %v17552_v30  ;;  %15495 = vmatprep.mubr.bf16.mxu1 %v4085_v60  ;;  %v19822_v60 = vld [vmem:[%s21654_s4] ss:$0 sm:$0xff] }
 0x2eb   : >> { %15623 = vmatprep.mubr.bf16.mxu0 %v19428_v16  ;;  %v17555_v16 = vld [vmem:[%s21653_s3 + $0x210] sm:$0xff]  }
 0x2ec   : >> { %15494 = vmatpush3.bf16.msra.mxu1 %v17551_v39 }
 0x2ed   : >> { %15622 = vmatpush3.bf16.msra.mxu0 %v17552_v30  ;;  %16847 = vmatprep.subr.bf16.mxu1 %v17553_v56 }
 0x2ee   : >> { %15639 = vmatprep.subr.bf16.mxu0 %v17553_v56 }
 0x2ef   : >> { %15496 = vmatmul.mubr.bf16.vlgmr.msra.gmra.mrb[0].mxu1 %v19644_v25  ;;  %v4669_v25 = vld [vmem:[%s19299_s21 + $0x70] sm:$0x1f] }
 0x2f0   : >> { %15624 = vmatmul.mubr.bf16.vlgmr.msra.gmra.mrb[0].mxu0 %v19691_v18  ;;  %16855 = vmatpush3.bf16.msra.mxu1 %v17553_v56  ;;  %v4955_v57 = vshrl.u32 %v4669_v25, 16  ;;  %v4958_v0 = vshll.u32 %v4669_v25, 16  ;;  %v17560_v18 = vld [vmem:[%s21653_s3 + $0x238] sm:$0xff]  }
 0x2f1   : >> { %15640 = vmatpush3.bf16.msra.mxu0 %v17553_v56  ;;  %16848 = vmatprep.subr.bf16.mxu1 %v17554_v44 }
 0x2f2   : >> { %15641 = vmatprep.subr.bf16.mxu0 %v17554_v44  ;;  %15499 = vmatprep.mubr.bf16.mxu1 %v19324_v14  ;;  %v17557_v14 = vld [vmem:[%s21653_s3 + $0x220] sm:$0xff]   ;;  %v4957_v8 = vrot.slane %v4955_v57, 4  ;;  %v4960_v6 = vrot.slane %v4958_v0, 5 }
 0x2f3   : >> { %15627 = vmatprep.mubr.bf16.mxu0 %v19542_v28 }
 0x2f4   : >> { %16856 = vmatpush3.bf16.msra.mxu1 %v17554_v44 }
 0x2f5   : >> { %15642 = vmatpush3.bf16.msra.mxu0 %v17554_v44  ;;  %16849 = vmatprep.subr.bf16.mxu1 %v17555_v16 }
 0x2f6   : >> { %15643 = vmatprep.subr.bf16.mxu0 %v17555_v16 }
 0x2f7   : >> { %15500 = vmatmul.mubr.bf16.gmra.mrb[4].mxu1 %v19367_v12  ;;  %v17558_v12 = vld [vmem:[%s21653_s3 + $0x228] sm:$0xff]  }
 0x2f8   : >> { %15628 = vmatmul.mubr.bf16.gmra.mrb[4].mxu0 %v19718_v46  ;;  %16857 = vmatpush3.bf16.msra.mxu1 %v17555_v16 }
 0x2f9   : >> { %15644 = vmatpush3.bf16.msra.mxu0 %v17555_v16  ;;  %16850 = vmatprep.subr.bf16.mxu1 %v17556_v5 }
 0x2fa   : >> { %15645 = vmatprep.subr.bf16.mxu0 %v17556_v5  ;;  %15503 = vmatprep.mubr.bf16.mxu1 %v19404_v26  ;;  %v4961_v26 = vor.u32 %v4960_v6, %v4957_v8 }
 0x2fb   : >> { %15631 = vmatprep.mubr.bf16.mxu0 %v19627_v7 }
 0x2fc   : >> { %16858 = vmatpush3.bf16.msra.mxu1 %v17556_v5  ;;  %v4962_v34 = vsel %vm2599_vm5, %v19663_v11, %v4961_v26  ;;  %v5150_v11 = vor.u32 %v5149_v32, %v5146_v61 }
 0x2fd   : >> { %15646 = vmatpush3.bf16.msra.mxu0 %v17556_v5  ;;  %16851 = vmatprep.subr.bf16.mxu1 %v17557_v14 }
 0x2fe   : >> { %15647 = vmatprep.subr.bf16.mxu0 %v17557_v14 }
 0x2ff   : >> { %15504 = vmatmul.mubr.bf16.gmra.mrb[8].mxu1 %v19436_v24  ;;  %v5151_v24 = vrot.slane %v3868_v48, 4  ;;  %v5156_v48 = vshrl.u32 %v4670_v52, 16 }
 0x300   : >> { %15632 = vmatmul.mubr.bf16.gmra.mrb[8].mxu0 %v19740_v36  ;;  %16859 = vmatpush3.bf16.msra.mxu1 %v17557_v14 }
 0x301   : >> { %15648 = vmatpush3.bf16.msra.mxu0 %v17557_v14  ;;  %16852 = vmatprep.subr.bf16.mxu1 %v17558_v12  ;;  %v5158_v29 = vrot.slane %v5156_v48, 4 }
 0x302   : >> { %15649 = vmatprep.subr.bf16.mxu0 %v17558_v12  ;;  %15507 = vmatprep.mubr.bf16.mxu1 %v19463_v17  ;;  %v5152_v17 = vrot.slane %v3871_v13, 5  ;;  %v5161_v13 = vrot.slane %v5159_v42, 5 }
 0x303   : >> { %15635 = vmatprep.mubr.bf16.mxu0 %v19671_v55 }
 0x304   : >> { %16860 = vmatpush3.bf16.msra.mxu1 %v17558_v12  ;;  %v5153_v1 = vor.u32 %v5152_v17, %v5151_v24 }
 0x305   : >> { %15650 = vmatpush3.bf16.msra.mxu0 %v17558_v12  ;;  %16853 = vmatprep.subr.bf16.mxu1 %v17559_v37 }
 0x306   : >> { %15651 = vmatprep.subr.bf16.mxu0 %v17559_v37  ;;  %v5154_v20 = vsel %vm2599_vm5, %v5150_v11, %v5153_v1 }
 0x307   : >> { %15508 = vmatmul.mubr.bf16.gmra.mrb[12].mxu1 %v19486_v49  ;;  %v5162_v49 = vor.u32 %v5161_v13, %v5158_v29 }
 0x308   : >> { %15636 = vmatmul.mubr.bf16.gmra.mrb[12].mxu0 %v4962_v34  ;;  %16861 = vmatpush3.bf16.msra.mxu1 %v17559_v37 }
 0x309   : >> { %15652 = vmatpush3.bf16.msra.mxu0 %v17559_v37  ;;  %16854 = vmatprep.subr.bf16.mxu1 %v17560_v18  ;;  %v5163_v63 = vsel %vm2599_vm5, %v5153_v1, %v5162_v49 }
 0x30a   : >> { %15653 = vmatprep.subr.bf16.mxu0 %v17560_v18  ;;  %15655 = vmatprep.mubr.bf16.mxu0 %v19542_v28 }
 0x30b   : >> { %15663 = vmatprep.mubr.bf16.mxu1 %v19671_v55 }
 0x30c   : >> { %16862 = vmatpush3.bf16.msra.mxu1 %v17560_v18 }
 0x30d   : >> { %15654 = vmatpush3.bf16.msra.mxu0 %v17560_v18 }
 0x30f   : >> { %15664 = vmatmul.mubr.bf16.vlgmr.msra.gmra.mrb[16].mxu1 %v4962_v34 }
 0x310   : >> { %15656 = vmatmul.mubr.bf16.vlgmr.msra.gmra.mrb[0].mxu0 %v19718_v46  ;;  %15667 = vmatprep.mubr.bf16.mxu1 %v5154_v20 }
 0x311   : >> { %15659 = vmatprep.mubr.bf16.mxu0 %v19627_v7 }
 0x317   : >> { %15668 = vmatmul.mubr.bf16.gmra.mrb[20].mxu1 %v5163_v63 }
 0x318   : >> { %15660 = vmatmul.mubr.bf16.gmra.mrb[4].mxu0 %v19740_v36 }
 0x3c2   : >> { %v15497_v28 = vpop.f32.mrb[0].mxu1 }
 0x3c3   : >> { %v4210_v55 = vpop.f32.mrb[1].mxu1 }
 0x3c4   : >> { %v15498_v9 = vpop.f32.mrb[2].mxu1 }
 0x3c5   : >> { %v4213_v35 = vpop.f32.mrb[3].mxu1 }
 0x3ca   : >> { %v19807_v51 = vpop.f32.mrb[4].mxu1 }
 0x3cb   : >> { %v19809_v41 = vpop.f32.mrb[5].mxu1 }
 0x3cc   : >> { %v19811_v38 = vpop.f32.mrb[6].mxu1 }
 0x3cd   : >> { %v19813_v62 = vpop.f32.mrb[7].mxu1 }
 0x3d2   : >> { %v15505_v19 = vpop.f32.mrb[8].mxu1 }
 0x3d3   : >> { %v15633_v31 = vpop.f32.mrb[8].mxu0  ;;  %v4242_v7 = vpop.f32.mrb[9].mxu1 }
 0x3d4   : >> { %v16871_v43 = vadd.f32 %v15633_v31, %v15505_v19  ;;  %v5096_v10 = vpop.f32.mrb[9].mxu0  ;;  %v15506_v21 = vpop.f32.mrb[10].mxu1 }
 0x3d5   : >> { %v16873_v4 = vadd.f32 %v5096_v10, %v4242_v7  ;;  %v15634_v45 = vpop.f32.mrb[10].mxu0  ;;  %v4245_v54 = vpop.f32.mrb[11].mxu1 }
 0x3d6   : >> { %v16875_v46 = vadd.f32 %v15634_v45, %v15506_v21  ;;  %v5099_v33 = vpop.f32.mrb[11].mxu0 }
 0x3d7   : >> { %v16877_v40 = vadd.f32 %v5099_v33, %v4245_v54 }
 0x3da   : >> { %v15509_v47 = vpop.f32.mrb[12].mxu1 }
 0x3db   : >> { %v15637_v3 = vpop.f32.mrb[12].mxu0  ;;  %v4258_v50 = vpop.f32.mrb[13].mxu1 }
 0x3dc   : >> { %v16879_v15 = vadd.f32 %v15637_v3, %v15509_v47  ;;  %v5112_v27 = vpop.f32.mrb[13].mxu0  ;;  %v15510_v22 = vpop.f32.mrb[14].mxu1 }
 0x3dd   : >> { %v16881_v23 = vadd.f32 %v5112_v27, %v4258_v50  ;;  %v15638_v53 = vpop.f32.mrb[14].mxu0  ;;  %v4261_v58 = vpop.f32.mrb[15].mxu1 }
 0x3de   : >> { %v19815_v36 = vadd.f32 %v15638_v53, %v15510_v22  ;;  %v5115_v39 = vpop.f32.mrb[15].mxu0 }
 0x3df   : >> { %v19817_v30 = vadd.f32 %v5115_v39, %v4261_v58 }
 0x3e2   : >> { %v15665_v56 = vpop.f32.mrb[16].mxu1 }
 0x3e3   : >> { %v15657_v44 = vpop.f32.mrb[0].mxu0  ;;  %v16872_v16 = vadd.f32 %v16871_v43, %v15665_v56  ;;  %v5297_v5 = vpop.f32.mrb[17].mxu1 }
 0x3e4   : >> { %v16863_v25 = vadd.f32 %v15657_v44, %v15497_v28  ;;  %v5265_v14 = vpop.f32.mrb[1].mxu0  ;;  %v16874_v57 = vadd.f32 %v16873_v4, %v5297_v5  ;;  %v15666_v0 = vpop.f32.mrb[18].mxu1 }
 0x3e5   : >> { %v5361_v12 = vadd.f32 %v16872_v16, %v19822_v60  ;;  %v16864_v8 = vadd.f32 %v5265_v14, %v4210_v55  ;;  %v15658_v6 = vpop.f32.mrb[2].mxu0  ;;  %v16876_v26 = vadd.f32 %v16875_v46, %v15666_v0  ;;  %v5300_v37 = vpop.f32.mrb[19].mxu1 }
 0x3e6   : >> { %v5353_v2 = vadd.f32 %v16863_v25, %v19822_v60  ;;  %v5359_v59 = vadd.f32 %v16874_v57, %v19822_v60  ;;  %v16865_v24 = vadd.f32 %v15658_v6, %v15498_v9  ;;  %v5268_v34 = vpop.f32.mrb[3].mxu0  ;;  %v16878_v18 = vadd.f32 %v16877_v40, %v5300_v37 }
 0x3e7   : >> { %v5351_v61 = vadd.f32 %v16864_v8, %v19822_v60  ;;  %v5362_v32 = vadd.f32 %v16876_v26, %v19822_v60  ;;  %v16866_v17 = vadd.f32 %v5268_v34, %v4213_v35  ;;  %v5377_v42 = vmax.f32 %v5361_v12, 0.0 }
 0x3e8   : >> { %v5354_v52 = vadd.f32 %v16865_v24, %v19822_v60  ;;  %v5360_v48 = vadd.f32 %v16878_v18, %v19822_v60  ;;  %v5369_v29 = vmax.f32 %v5353_v2, 0.0  ;;  %v5375_v13 = vmax.f32 %v5359_v59, 0.0 }
 0x3e9   : >> { %v5378_v11 = vmax.f32 %v5362_v32, 0.0  ;;  %v5352_v1 = vadd.f32 %v16866_v17, %v19822_v60  ;;  %v5367_v28 = vmax.f32 %v5351_v61, 0.0 }
 0x3ea   : >> { %v5370_v20 = vmax.f32 %v5354_v52, 0.0  ;;  %v5376_v49 = vmax.f32 %v5360_v48, 0.0  ;;  %v15669_v63 = vpop.f32.mrb[20].mxu1 }
 0x3eb   : >> { %v5388_v55 = vpack.c.bf16 %v5378_v11, %v5377_v42  ;;  %v5368_v9 = vmax.f32 %v5352_v1, 0.0  ;;  %v15661_v19 = vpop.f32.mrb[4].mxu0  ;;  %v16880_v31 = vadd.f32 %v16879_v15, %v15669_v63  ;;  %v5313_v35 = vpop.f32.mrb[21].mxu1 }
 0x3ec   : >> { %v5384_v7 = vpack.c.bf16 %v5370_v20, %v5369_v29  ;;  %v5387_v43 = vpack.c.bf16 %v5376_v49, %v5375_v13  ;;  %v16867_v10 = vadd.f32 %v15661_v19, %v19807_v51  ;;  %v5281_v21 = vpop.f32.mrb[5].mxu0  ;;  %v16882_v4 = vadd.f32 %v16881_v23, %v5313_v35  ;;  %v15670_v45 = vpop.f32.mrb[22].mxu1 }
 0x3ed   : >> { %v5407_v54 = vrot.slane %v5388_v55, 4  ;;  %v5383_v46 = vpack.c.bf16 %v5368_v9, %v5367_v28  ;;  %v16868_v33 = vadd.f32 %v5281_v21, %v19809_v41  ;;  %v15662_v40 = vpop.f32.mrb[6].mxu0  ;;  %v5316_v47 = vpop.f32.mrb[23].mxu1  ;;  %v5365_v23 = vadd.f32 %v16880_v31, %v19822_v60 }
 0x3ee   : >> { %v5401_v3 = vrot.slane %v5384_v7, 4  ;;  %v5406_v50 = vrot.slane %v5387_v43, 4  ;;  %v5284_v27 = vpop.f32.mrb[7].mxu0  ;;  %v5357_v15 = vadd.f32 %v16867_v10, %v19822_v60  ;;  %v16869_v41 = vadd.f32 %v15662_v40, %v19811_v38 }
 0x3ef   : >> { %13542 = vst [vmem:[%s19836_s27 + $0x58] sm:$0xf] %v5407_v54  ;;  %v5400_v51 = vrot.slane %v5383_v46, 4  ;;  %v16884_v53 = vadd.f32 %v19815_v36, %v15670_v45  ;;  %v5355_v39 = vadd.f32 %v16868_v33, %v19822_v60  ;;  %v16870_v44 = vadd.f32 %v5284_v27, %v19813_v62  ;;  %v17561_v27 = vld [vmem:[%s21661_s11] sm:$0xff] (%p3369_p12)  }
 0x3f0   : >> { %13536 = vst [vmem:[%s19836_s27 + $0x28] sm:$0xf] %v5401_v3  ;;  %v5408_v22 = vsel %vm1002_vm1, %v5406_v50, %v5407_v54  ;;  %13540 = vst [vmem:[%s19836_s27 + $0x48] sm:$0xf0] %v5406_v50  ;;  %v5358_v56 = vadd.f32 %v16869_v41, %v19822_v60  ;;  %v5363_v38 = vadd.f32 %v16882_v4, %v19822_v60  ;;  %v5373_v25 = vmax.f32 %v5357_v15, 0.0 }
 0x3f1   : >> { %v5402_v58 = vsel %vm1002_vm1, %v5400_v51, %v5401_v3  ;;  %13534 = vst [vmem:[%s19836_s27 + $0x18] sm:$0xf0] %v5400_v51  ;;  %13541 = vst [vmem:[%s19836_s27 + $0x50] sm:$0xff] %v5408_v22  ;;  %v5366_v16 = vadd.f32 %v16884_v53, %v19822_v60  ;;  %v16886_v5 = vadd.f32 %v19817_v30, %v5316_v47  ;;  %v5381_v57 = vmax.f32 %v5365_v23, 0.0  ;;  %v17562_v51 = vld [vmem:[%s21662_s12] sm:$0xff] (%p3369_p12)  }
 0x3f2   : >> { %13535 = vst [vmem:[%s19836_s27 + $0x20] sm:$0xff] %v5402_v58  ;;  %v5374_v36 = vmax.f32 %v5358_v56, 0.0  ;;  %v5356_v14 = vadd.f32 %v16870_v44, %v19822_v60  ;;  %v5371_v8 = vmax.f32 %v5355_v39, 0.0  ;;  %v5379_v26 = vmax.f32 %v5363_v38, 0.0  ;;  %15687 = vmatprep.mubr.bf16.mxu0 (%p3369_p12), %v17561_v27  ;;  %15711 = vmatprep.mubr.bf16.mxu1 (%p3369_p12), %v17562_v51 }
 0x3f3   : >> { %v5382_v0 = vmax.f32 %v5366_v16, 0.0  ;;  %v5364_v12 = vadd.f32 %v16886_v5, %v19822_v60 }
 0x3f4   : >> { %v5386_v62 = vpack.c.bf16 %v5374_v36, %v5373_v25  ;;  %v5372_v6 = vmax.f32 %v5356_v14, 0.0 }
 0x3f5   : >> { %v5390_v37 = vpack.c.bf16 %v5382_v0, %v5381_v57  ;;  %v5380_v30 = vmax.f32 %v5364_v12, 0.0 }
 0x3f6   : >> { %v5404_v2 = vrot.slane %v5386_v62, 4  ;;  %v5385_v59 = vpack.c.bf16 %v5372_v6, %v5371_v8  ;;  %3371 = sbr.rel (!%p3369_p12) target bundleno = 622 (0x26e), region = 204 }
 0x3f7   : >> { %v5410_v24 = vrot.slane %v5390_v37, 4  ;;  %v5389_v34 = vpack.c.bf16 %v5380_v30, %v5379_v26 }
 0x3f8   : >> { %13539 = vst [vmem:[%s19836_s27 + $0x40] sm:$0xf] %v5404_v2  ;;  %v5403_v18 = vrot.slane %v5385_v59, 4 }
 0x3f9   : >> { %13545 = vst [vmem:[%s19836_s27 + $0x70] sm:$0xf] %v5410_v24  ;;  %v5409_v61 = vrot.slane %v5389_v34, 4 }
 0x3fa   : >> { %v5405_v60 = vsel %vm1002_vm1, %v5403_v18, %v5404_v2  ;;  %13537 = vst [vmem:[%s19836_s27 + $0x30] sm:$0xf0] %v5403_v18 }
 0x3fb   : >> { %13538 = vst [vmem:[%s19836_s27 + $0x38] sm:$0xff] %v5405_v60  ;;  %v5411_v32 = vsel %vm1002_vm1, %v5409_v61, %v5410_v24  ;;  %13543 = vst [vmem:[%s19836_s27 + $0x60] sm:$0xf0] %v5409_v61 }
 0x3fc   : >> { %13544 = vst [vmem:[%s19836_s27 + $0x68] sm:$0xff] %v5411_v32 }
 0x403   : > { %v5439_v17 = vld [vmem:[#allocation2 + $0x18] sm:$0xf0]  ;;  %v5440_v52 = vld [vmem:[#allocation2 + $0x20] sm:$0xff]  ;;  %v5442_v48 = vld [vmem:[#allocation2 + $0x30] sm:$0xf0] }
 0x404   : > { %v5443_v42 = vld [vmem:[#allocation2 + $0x38] sm:$0xff]  ;;  %v5463_v11 = vmax.bf16 %v5442_v48, %v5439_v17  ;;  %v5441_v1 = vld [vmem:[#allocation2 + $0x28] sm:$0xf]  ;;  %v5444_v29 = vld [vmem:[#allocation2 + $0x40] sm:$0xf] }
 0x405   : > { %v5464_v13 = vmax.bf16 %v5443_v42, %v5440_v52  ;;  %v5465_v20 = vmax.bf16 %v5444_v29, %v5441_v1  ;;  %v5445_v49 = vld [vmem:[#allocation2 + $0x48] sm:$0xf0]  ;;  %v5446_v63 = vld [vmem:[#allocation2 + $0x50] sm:$0xff]  ;;  %v5448_v28 = vld [vmem:[#allocation2 + $0x60] sm:$0xf0] }
 0x406   : > { %v5487_v55 = vrot.slane %v5463_v11, 4  ;;  %v5449_v9 = vld [vmem:[#allocation2 + $0x68] sm:$0xff]  ;;  %v5466_v19 = vmax.bf16 %v5448_v28, %v5445_v49  ;;  %v5447_v31 = vld [vmem:[#allocation2 + $0x58] sm:$0xf]  ;;  %v5450_v35 = vld [vmem:[#allocation2 + $0x70] sm:$0xf] }
 0x407   : > { %v5488_v7 = vrot.slane %v5464_v13, 4  ;;  %v5490_v43 = vrot.slane %v5465_v20, 4  ;;  %v5467_v10 = vmax.bf16 %v5449_v9, %v5446_v63  ;;  %v5468_v21 = vmax.bf16 %v5450_v35, %v5447_v31  ;;  %v5451_v33 = vld [vmem:[#allocation2 + $0x78] sm:$0xf0]  ;;  %v5452_v40 = vld [vmem:[#allocation2 + $0x80] sm:$0xff]  ;;  %v5458_v5 = vld [vmem:[#allocation2 + $0xb0] sm:$0xff] }
 0x408   : > { %v5492_v54 = vrot.slane %v5466_v19, 4  ;;  %v5454_v47 = vld [vmem:[#allocation2 + $0x90] sm:$0xf0]  ;;  %v5455_v3 = vld [vmem:[#allocation2 + $0x98] sm:$0xff]  ;;  %v5453_v50 = vld [vmem:[#allocation2 + $0x88] sm:$0xf] }
 0x409   : > { %v5489_v4 = vsel %vm1002_vm1, %v5487_v55, %v5488_v7  ;;  %v5491_v45 = vsel %vm1002_vm1, %v5488_v7, %v5490_v43  ;;  %v5493_v46 = vrot.slane %v5467_v10, 4  ;;  %v5495_v41 = vrot.slane %v5468_v21, 4  ;;  %v5456_v53 = vld [vmem:[#allocation2 + $0xa0] sm:$0xf]  ;;  %v5457_v58 = vld [vmem:[#allocation2 + $0xa8] sm:$0xf0] }
 0x40a   : > { %15671 = vmatprep.subr.bf16.mxu0 %v5489_v4  ;;  %15695 = vmatprep.subr.bf16.mxu1 %v5489_v4  ;;  %v5469_v22 = vmax.bf16 %v5454_v47, %v5451_v33  ;;  %v5470_v23 = vmax.bf16 %v5455_v3, %v5452_v40  ;;  %v5460_v39 = vld [vmem:[#allocation2 + $0xc0] sm:$0xf0]  ;;  %v5471_v16 = vmax.bf16 %v5456_v53, %v5453_v50  ;;  %v5461_v25 = vld [vmem:[#allocation2 + $0xc8] sm:$0xff]  ;;  %v5459_v12 = vld [vmem:[#allocation2 + $0xb8] sm:$0xf] }
 0x40b   : > { %15672 = vmatpush3.bf16.msra.mxu0 %v5489_v4  ;;  %15696 = vmatpush3.bf16.msra.mxu1 %v5489_v4  ;;  %v5494_v15 = vsel %vm1002_vm1, %v5492_v54, %v5493_v46  ;;  %v5496_v56 = vsel %vm1002_vm1, %v5493_v46, %v5495_v41  ;;  %v5472_v36 = vmax.bf16 %v5460_v39, %v5457_v58  ;;  %v5462_v8 = vld [vmem:[#allocation2 + $0xd0] sm:$0xf]  ;;  %v5743_v26 = vld [vmem:[#allocation2 + $0xd8] sm:$0xf0]  ;;  %v5744_v2 = vld [vmem:[#allocation2 + $0xe0] sm:$0xff] }
 0x40c   : > { %15673 = vmatprep.subr.bf16.mxu0 %v5491_v45  ;;  %15697 = vmatprep.subr.bf16.mxu1 %v5491_v45  ;;  %v5497_v44 = vrot.slane %v5469_v22, 4  ;;  %v5498_v38 = vrot.slane %v5470_v23, 4  ;;  %v5500_v57 = vrot.slane %v5471_v16, 4  ;;  %v5473_v0 = vmax.bf16 %v5461_v25, %v5458_v5  ;;  %v5746_v59 = vld [vmem:[#allocation2 + $0xf0] sm:$0xf0]  ;;  %v5747_v24 = vld [vmem:[#allocation2 + $0xf8] sm:$0xff] }
 0x40d   : > { %v5502_v62 = vrot.slane %v5472_v36, 4  ;;  %v5474_v6 = vmax.bf16 %v5462_v8, %v5459_v12  ;;  %v5767_v61 = vmax.bf16 %v5746_v59, %v5743_v26  ;;  %v5768_v60 = vmax.bf16 %v5747_v24, %v5744_v2  ;;  %v5745_v32 = vld [vmem:[#allocation2 + $0xe8] sm:$0xf]  ;;  %v5748_v17 = vld [vmem:[#allocation2 + $0x100] sm:$0xf]  ;;  %v5750_v13 = vld [vmem:[#allocation2 + $0x110] sm:$0xff] }
 0x40e   : > { %v5499_v14 = vsel %vm1002_vm1, %v5497_v44, %v5498_v38  ;;  %v5501_v37 = vsel %vm1002_vm1, %v5498_v38, %v5500_v57  ;;  %v5503_v30 = vrot.slane %v5473_v0, 4  ;;  %v5769_v11 = vmax.bf16 %v5748_v17, %v5745_v32  ;;  %v5749_v1 = vld [vmem:[#allocation2 + $0x108] sm:$0xf0]  ;;  %v5752_v29 = vld [vmem:[#allocation2 + $0x120] sm:$0xf0]  ;;  %v17565_v4 = vld [vmem:[%s21661_s11 + $0x10] sm:$0xff]  }
 0x40f   : > { %15674 = vmatpush3.bf16.msra.mxu0 %v5491_v45  ;;  %15698 = vmatpush3.bf16.msra.mxu1 %v5491_v45  ;;  %v5505_v34 = vrot.slane %v5474_v6, 4  ;;  %v5791_v48 = vrot.slane %v5767_v61, 4  ;;  %v5792_v42 = vrot.slane %v5768_v60, 4  ;;  %v5753_v20 = vld [vmem:[#allocation2 + $0x128] sm:$0xff]  ;;  %v5770_v49 = vmax.bf16 %v5752_v29, %v5749_v1  ;;  %v5751_v31 = vld [vmem:[#allocation2 + $0x118] sm:$0xf] }
 0x410   : > { %15675 = vmatprep.subr.bf16.mxu0 %v5494_v15  ;;  %15699 = vmatprep.subr.bf16.mxu1 %v5494_v15  ;;  %v5504_v18 = vsel %vm1002_vm1, %v5502_v62, %v5503_v30  ;;  %v17563_v63 = vld [vmem:[%s21661_s11 + $0x8] sm:$0xff]   ;;  %v5794_v55 = vrot.slane %v5769_v11, 4  ;;  %v5771_v9 = vmax.bf16 %v5753_v20, %v5750_v13  ;;  %v5754_v35 = vld [vmem:[#allocation2 + $0x130] sm:$0xf]  ;;  %v5755_v43 = vld [vmem:[#allocation2 + $0x138] sm:$0xf0] }
 0x411   : > { %v5506_v52 = vsel %vm1002_vm1, %v5503_v30, %v5505_v34  ;;  %v5793_v28 = vsel %vm1002_vm1, %v5791_v48, %v5792_v42  ;;  %v17564_v19 = vld [vmem:[%s21662_s12 + $0x8] sm:$0xff]   ;;  %v5796_v7 = vrot.slane %v5770_v49, 4  ;;  %v5756_v10 = vld [vmem:[#allocation2 + $0x140] sm:$0xff]  ;;  %v5758_v21 = vld [vmem:[#allocation2 + $0x150] sm:$0xf0]  ;;  %v5772_v46 = vmax.bf16 %v5754_v35, %v5751_v31 }
 0x412   : > { %v5795_v45 = vsel %vm1002_vm1, %v5792_v42, %v5794_v55  ;;  %v5797_v54 = vrot.slane %v5771_v9, 4  ;;  %v17566_v33 = vld [vmem:[%s21662_s12 + $0x10] sm:$0xff]   ;;  %v5759_v40 = vld [vmem:[#allocation2 + $0x158] sm:$0xff]  ;;  %v5757_v47 = vld [vmem:[#allocation2 + $0x148] sm:$0xf]  ;;  %v5773_v51 = vmax.bf16 %v5758_v21, %v5755_v43 }
 0x413   : > { %15676 = vmatpush3.bf16.msra.mxu0 %v5494_v15  ;;  %15700 = vmatpush3.bf16.msra.mxu1 %v5494_v15  ;;  %v5760_v3 = vld [vmem:[#allocation2 + $0x160] sm:$0xf]  ;;  %v5799_v27 = vrot.slane %v5772_v46, 4  ;;  %v5774_v15 = vmax.bf16 %v5759_v40, %v5756_v10  ;;  %v17567_v41 = vld [vmem:[%s21661_s11 + $0x18] sm:$0xff]   ;;  %v5761_v23 = vld [vmem:[#allocation2 + $0x168] sm:$0xf0] }
 0x414   : > { %15677 = vmatprep.subr.bf16.mxu0 %v5496_v56  ;;  %15701 = vmatprep.subr.bf16.mxu1 %v5496_v56  ;;  %v5798_v50 = vsel %vm1002_vm1, %v5796_v7, %v5797_v54  ;;  %v17568_v22 = vld [vmem:[%s21662_s12 + $0x18] sm:$0xff]   ;;  %v5764_v53 = vld [vmem:[#allocation2 + $0x180] sm:$0xf0]  ;;  %v5801_v39 = vrot.slane %v5773_v51, 4  ;;  %v5775_v44 = vmax.bf16 %v5760_v3, %v5757_v47  ;;  %v5762_v5 = vld [vmem:[#allocation2 + $0x170] sm:$0xff] }
 0x415   : > { %v5800_v58 = vsel %vm1002_vm1, %v5797_v54, %v5799_v27  ;;  %v17569_v38 = vld [vmem:[%s21661_s11] sm:$0xff]   ;;  %v5765_v25 = vld [vmem:[#allocation2 + $0x188] sm:$0xff]  ;;  %v5776_v36 = vmax.bf16 %v5764_v53, %v5761_v23  ;;  %v5763_v12 = vld [vmem:[#allocation2 + $0x178] sm:$0xf] }
 0x416   : > { %v17570_v16 = vld [vmem:[%s21662_s12] sm:$0xff]   ;;  %v5804_v57 = vrot.slane %v5775_v44, 4  ;;  %v5777_v0 = vmax.bf16 %v5765_v25, %v5762_v5  ;;  %v5766_v8 = vld [vmem:[#allocation2 + $0x190] sm:$0xf]  ;;  %v6047_v30 = vld [vmem:[#allocation2 + $0x198] sm:$0xf0] }
 0x417   : > { %15678 = vmatpush3.bf16.msra.mxu0 %v5496_v56  ;;  %15702 = vmatpush3.bf16.msra.mxu1 %v5496_v56  ;;  %v5802_v56 = vrot.slane %v5774_v15, 4  ;;  %v5806_v62 = vrot.slane %v5776_v36, 4  ;;  %v6048_v2 = vld [vmem:[#allocation2 + $0x1a0] sm:$0xff]  ;;  %v6050_v59 = vld [vmem:[#allocation2 + $0x1b0] sm:$0xf0]  ;;  %v6051_v24 = vld [vmem:[#allocation2 + $0x1b8] sm:$0xff] }
 0x418   : > { %15679 = vmatprep.subr.bf16.mxu0 %v5499_v14  ;;  %15703 = vmatprep.subr.bf16.mxu1 %v5499_v14  ;;  %v5807_v26 = vrot.slane %v5777_v0, 4  ;;  %v6071_v61 = vmax.bf16 %v6050_v59, %v6047_v30  ;;  %v6072_v60 = vmax.bf16 %v6051_v24, %v6048_v2  ;;  %v6049_v32 = vld [vmem:[#allocation2 + $0x1a8] sm:$0xf]  ;;  %v6052_v17 = vld [vmem:[#allocation2 + $0x1c0] sm:$0xf]  ;;  %v6054_v48 = vld [vmem:[#allocation2 + $0x1d0] sm:$0xff] }
 0x419   : > { %v5805_v6 = vsel %vm1002_vm1, %v5802_v56, %v5804_v57  ;;  %v6056_v42 = vld [vmem:[#allocation2 + $0x1e0] sm:$0xf0]  ;;  %v6073_v13 = vmax.bf16 %v6052_v17, %v6049_v32  ;;  %v6057_v20 = vld [vmem:[#allocation2 + $0x1e8] sm:$0xff]  ;;  %v6055_v31 = vld [vmem:[#allocation2 + $0x1d8] sm:$0xf] }
 0x41a   : > { %v5808_v34 = vsel %vm1002_vm1, %v5806_v62, %v5807_v26  ;;  %v6095_v1 = vrot.slane %v6071_v61, 4  ;;  %v6096_v29 = vrot.slane %v6072_v60, 4  ;;  %v17571_v49 = vld [vmem:[%s21661_s11 + $0x8] sm:$0xff]   ;;  %v6075_v9 = vmax.bf16 %v6057_v20, %v6054_v48  ;;  %v6058_v35 = vld [vmem:[#allocation2 + $0x1f0] sm:$0xf]  ;;  %v6060_v46 = vld [vmem:[#allocation2 + $0x200] sm:$0xff] }
 0x41b   : > { %15680 = vmatpush3.bf16.msra.mxu0 %v5499_v14  ;;  %15704 = vmatpush3.bf16.msra.mxu1 %v5499_v14  ;;  %v5803_v14 = vsel %vm1002_vm1, %v5801_v39, %v5802_v56  ;;  %v6076_v21 = vmax.bf16 %v6058_v35, %v6055_v31  ;;  %v17574_v54 = vld [vmem:[%s21662_s12 + $0x10] sm:$0xff]   ;;  %v6063_v40 = vld [vmem:[#allocation2 + $0x218] sm:$0xff]  ;;  %v6061_v51 = vld [vmem:[#allocation2 + $0x208] sm:$0xf] }
 0x41c   : > { %15681 = vmatprep.subr.bf16.mxu0 %v5501_v37  ;;  %15705 = vmatprep.subr.bf16.mxu1 %v5501_v37  ;;  %v6101_v10 = vrot.slane %v6075_v9, 4  ;;  %v6078_v27 = vmax.bf16 %v6063_v40, %v6060_v46  ;;  %v6064_v15 = vld [vmem:[#allocation2 + $0x220] sm:$0xf]  ;;  %v6065_v56 = vld [vmem:[#allocation2 + $0x228] sm:$0xf0]  ;;  %v6355_v24 = vld [vmem:[#allocation2 + $0x278] sm:$0xff] }
 0x41d   : > { %v6103_v3 = vrot.slane %v6076_v21, 4  ;;  %v6079_v39 = vmax.bf16 %v6064_v15, %v6061_v51  ;;  %v17577_v44 = vld [vmem:[%s21661_s11] sm:$0xff]   ;;  %v6069_v25 = vld [vmem:[#allocation2 + $0x248] sm:$0xff]  ;;  %v6351_v30 = vld [vmem:[#allocation2 + $0x258] sm:$0xf0] }
 0x41e   : > { %v6068_v5 = vld [vmem:[#allocation2 + $0x240] sm:$0xf0]  ;;  %v6354_v59 = vld [vmem:[#allocation2 + $0x270] sm:$0xf0]  ;;  %v6353_v32 = vld [vmem:[#allocation2 + $0x268] sm:$0xf] }
 0x41f   : > { %15682 = vmatpush3.bf16.msra.mxu0 %v5501_v37  ;;  %15706 = vmatpush3.bf16.msra.mxu1 %v5501_v37  ;;  %v5778_v37 = vmax.bf16 %v5766_v8, %v5763_v12  ;;  %v6104_v23 = vsel %vm1002_vm1, %v6101_v10, %v6103_v3  ;;  %v6080_v57 = vmax.bf16 %v6068_v5, %v6065_v56  ;;  %v6067_v12 = vld [vmem:[#allocation2 + $0x238] sm:$0xf]  ;;  %v6070_v8 = vld [vmem:[#allocation2 + $0x250] sm:$0xf]  ;;  %v6352_v2 = vld [vmem:[#allocation2 + $0x260] sm:$0xff] }
 0x420   : > { %15683 = vmatprep.subr.bf16.mxu0 %v5504_v18  ;;  %15707 = vmatprep.subr.bf16.mxu1 %v5504_v18  ;;  %v6375_v61 = vmax.bf16 %v6354_v59, %v6351_v30  ;;  %v6376_v60 = vmax.bf16 %v6355_v24, %v6352_v2  ;;  %v6356_v17 = vld [vmem:[#allocation2 + $0x280] sm:$0xf]  ;;  %v6361_v20 = vld [vmem:[#allocation2 + $0x2a8] sm:$0xff]  ;;  %v6359_v31 = vld [vmem:[#allocation2 + $0x298] sm:$0xf] }
 0x421   : > { %v6362_v35 = vld [vmem:[#allocation2 + $0x2b0] sm:$0xf]  ;;  %v6364_v46 = vld [vmem:[#allocation2 + $0x2c0] sm:$0xff]  ;;  %v6367_v40 = vld [vmem:[#allocation2 + $0x2d8] sm:$0xff] }
 0x422   : > { %v6399_v48 = vrot.slane %v6375_v61, 4  ;;  %v6380_v21 = vmax.bf16 %v6362_v35, %v6359_v31  ;;  %v6365_v51 = vld [vmem:[#allocation2 + $0x2c8] sm:$0xf]  ;;  %v6368_v15 = vld [vmem:[#allocation2 + $0x2e0] sm:$0xf]  ;;  %v17590_v61 = vld [vmem:[%s21662_s12 + $0x10] sm:$0xff]  }
 0x423   : > { %15684 = vmatpush3.bf16.msra.mxu0 %v5504_v18  ;;  %15708 = vmatpush3.bf16.msra.mxu1 %v5504_v18  ;;  %v5809_v18 = vrot.slane %v5778_v37, 4  ;;  %v6082_v37 = vmax.bf16 %v6070_v8, %v6067_v12  ;;  %v6369_v56 = vld [vmem:[#allocation2 + $0x2e8] sm:$0xf0]  ;;  %v6372_v5 = vld [vmem:[#allocation2 + $0x300] sm:$0xf0] }
 0x424   : > { %15685 = vmatprep.subr.bf16.mxu0 %v5506_v52  ;;  %15709 = vmatprep.subr.bf16.mxu1 %v5506_v52  ;;  %v6407_v3 = vrot.slane %v6380_v21, 4  ;;  %v6371_v12 = vld [vmem:[#allocation2 + $0x2f8] sm:$0xf]  ;;  %v6374_v8 = vld [vmem:[#allocation2 + $0x310] sm:$0xf]  ;;  %v17587_v24 = vld [vmem:[%s21661_s11 + $0x8] sm:$0xff]  }
 0x425   : > { %v5810_v11 = vsel %vm1002_vm1, %v5807_v26, %v5809_v18  ;;  %v6113_v18 = vrot.slane %v6082_v37, 4  ;;  %v6386_v37 = vmax.bf16 %v6374_v8, %v6371_v12 }
 0x427   : > { %15686 = vmatpush3.bf16.msra.mxu0 %v5506_v52  ;;  %15710 = vmatpush3.bf16.msra.mxu1 %v5506_v52  ;;  %v6053_v52 = vld [vmem:[#allocation2 + $0x1c8] sm:$0xf0]  ;;  %v6417_v2 = vrot.slane %v6386_v37, 4 }
 0x428   : > { %15719 = vmatprep.subr.bf16.mxu0 %v5793_v28  ;;  %15743 = vmatprep.subr.bf16.mxu1 %v5793_v28  ;;  %v6074_v55 = vmax.bf16 %v6056_v42, %v6053_v52  ;;  %v6400_v42 = vrot.slane %v6376_v60, 4  ;;  %v17591_v60 = vld [vmem:[%s21661_s11 + $0x18] sm:$0xff]  }
 0x42a   : > { %15688 = vmatmul.mubr.bf16.vlgmr.msra.gmra.mrb[0].mxu0 %v17563_v63  ;;  %15712 = vmatmul.mubr.bf16.vlgmr.msra.gmra.mrb[0].mxu1 %v17564_v19  ;;  %v6097_v63 = vsel %vm1002_vm1, %v6095_v1, %v6096_v29  ;;  %v17572_v19 = vld [vmem:[%s21662_s12 + $0x8] sm:$0xff]   ;;  %v6100_v43 = vrot.slane %v6074_v55, 4 }
 0x42b   : > { %15720 = vmatpush3.bf16.msra.mxu0 %v5793_v28  ;;  %15744 = vmatpush3.bf16.msra.mxu1 %v5793_v28  ;;  %v6098_v28 = vrot.slane %v6073_v13, 4  ;;  %v6357_v1 = vld [vmem:[#allocation2 + $0x288] sm:$0xf0]  ;;  %v6360_v13 = vld [vmem:[#allocation2 + $0x2a0] sm:$0xf0] }
 0x42c   : > { %15721 = vmatprep.subr.bf16.mxu0 %v5795_v45  ;;  %15745 = vmatprep.subr.bf16.mxu1 %v5795_v45  ;;  %v6102_v47 = vsel %vm1002_vm1, %v6100_v43, %v6101_v10  ;;  %v6378_v55 = vmax.bf16 %v6360_v13, %v6357_v1 }
 0x42d   : > { %15691 = vmatprep.mubr.bf16.mxu0 %v17565_v4  ;;  %15715 = vmatprep.mubr.bf16.mxu1 %v17566_v33  ;;  %v6099_v7 = vsel %vm1002_vm1, %v6096_v29, %v6098_v28  ;;  %v6059_v4 = vld [vmem:[#allocation2 + $0x1f8] sm:$0xf0]  ;;  %v6062_v33 = vld [vmem:[#allocation2 + $0x210] sm:$0xf0] }
 0x42e   : > { %v6358_v29 = vld [vmem:[#allocation2 + $0x290] sm:$0xff]  ;;  %v6404_v43 = vrot.slane %v6378_v55, 4 }
 0x42f   : > { %15722 = vmatpush3.bf16.msra.mxu0 %v5795_v45  ;;  %15746 = vmatpush3.bf16.msra.mxu1 %v5795_v45  ;;  %v17573_v45 = vld [vmem:[%s21661_s11 + $0x10] sm:$0xff]   ;;  %v6379_v9 = vmax.bf16 %v6361_v20, %v6358_v29 }
 0x430   : > { %15723 = vmatprep.subr.bf16.mxu0 %v5798_v50  ;;  %15747 = vmatprep.subr.bf16.mxu1 %v5798_v50 }
 0x431   : > { %v6405_v10 = vrot.slane %v6379_v9, 4 }
 0x432   : > { %15692 = vmatmul.mubr.bf16.gmra.mrb[4].mxu0 %v17567_v41  ;;  %15716 = vmatmul.mubr.bf16.gmra.mrb[4].mxu1 %v17568_v22  ;;  %v17575_v41 = vld [vmem:[%s21661_s11 + $0x18] sm:$0xff]  }
 0x433   : > { %15724 = vmatpush3.bf16.msra.mxu0 %v5798_v50  ;;  %15748 = vmatpush3.bf16.msra.mxu1 %v5798_v50  ;;  %v6077_v50 = vmax.bf16 %v6062_v33, %v6059_v4  ;;  %v17576_v22 = vld [vmem:[%s21662_s12 + $0x18] sm:$0xff]   ;;  %v6366_v33 = vld [vmem:[#allocation2 + $0x2d0] sm:$0xf0] }
 0x434   : > { %15725 = vmatprep.subr.bf16.mxu0 %v5800_v58  ;;  %15749 = vmatprep.subr.bf16.mxu1 %v5800_v58  ;;  %v6363_v4 = vld [vmem:[#allocation2 + $0x2b8] sm:$0xf0] }
 0x435   : > { %15735 = vmatprep.mubr.bf16.mxu0 %v17569_v38  ;;  %15759 = vmatprep.mubr.bf16.mxu1 %v17570_v16  ;;  %v6105_v53 = vrot.slane %v6077_v50, 4  ;;  %v17578_v38 = vld [vmem:[%s21662_s12] sm:$0xff]   ;;  %v6066_v16 = vld [vmem:[#allocation2 + $0x230] sm:$0xff]  ;;  %v6381_v50 = vmax.bf16 %v6366_v33, %v6363_v4 }
 0x436   : > { %v6081_v0 = vmax.bf16 %v6069_v25, %v6066_v16  ;;  %v6370_v16 = vld [vmem:[#allocation2 + $0x2f0] sm:$0xff]  ;;  %v6373_v25 = vld [vmem:[#allocation2 + $0x308] sm:$0xff] }
 0x437   : > { %15726 = vmatpush3.bf16.msra.mxu0 %v5800_v58  ;;  %15750 = vmatpush3.bf16.msra.mxu1 %v5800_v58  ;;  %v6106_v58 = vrot.slane %v6078_v27, 4  ;;  %v6382_v27 = vmax.bf16 %v6367_v40, %v6364_v46 }
 0x438   : > { %15727 = vmatprep.subr.bf16.mxu0 %v5803_v14  ;;  %15751 = vmatprep.subr.bf16.mxu1 %v5803_v14  ;;  %v6111_v26 = vrot.slane %v6081_v0, 4  ;;  %v6385_v0 = vmax.bf16 %v6373_v25, %v6370_v16 }
 0x439   : > { %v6107_v36 = vsel %vm1002_vm1, %v6105_v53, %v6106_v58  ;;  %v6409_v53 = vrot.slane %v6381_v50, 4 }
 0x43a   : > { %v6114_v52 = vsel %vm1002_vm1, %v6111_v26, %v6113_v18  ;;  %v17589_v18 = vld [vmem:[%s21661_s11 + $0x10] sm:$0xff]  }
 0x43b   : > { %15728 = vmatpush3.bf16.msra.mxu0 %v5803_v14  ;;  %15752 = vmatpush3.bf16.msra.mxu1 %v5803_v14  ;;  %v6108_v14 = vrot.slane %v6079_v39, 4  ;;  %v6383_v39 = vmax.bf16 %v6368_v15, %v6365_v51 }
 0x43c   : > { %15729 = vmatprep.subr.bf16.mxu0 %v5805_v6  ;;  %15753 = vmatprep.subr.bf16.mxu1 %v5805_v6 }
 0x43d   : > { %v6109_v62 = vsel %vm1002_vm1, %v6106_v58, %v6108_v14  ;;  %v6410_v58 = vrot.slane %v6382_v27, 4  ;;  %v6412_v14 = vrot.slane %v6383_v39, 4 }
 0x43f   : > { %15730 = vmatpush3.bf16.msra.mxu0 %v5805_v6  ;;  %15754 = vmatpush3.bf16.msra.mxu1 %v5805_v6  ;;  %v6110_v6 = vrot.slane %v6080_v57, 4  ;;  %v6384_v57 = vmax.bf16 %v6372_v5, %v6369_v56 }
 0x440   : > { %15731 = vmatprep.subr.bf16.mxu0 %v5808_v34  ;;  %15755 = vmatprep.subr.bf16.mxu1 %v5808_v34 }
 0x443   : > { %15732 = vmatpush3.bf16.msra.mxu0 %v5808_v34  ;;  %15756 = vmatpush3.bf16.msra.mxu1 %v5808_v34  ;;  %v6112_v34 = vsel %vm1002_vm1, %v6110_v6, %v6111_v26  ;;  %v6414_v6 = vrot.slane %v6384_v57, 4  ;;  %v6415_v26 = vrot.slane %v6385_v0, 4 }
 0x444   : > { %15733 = vmatprep.subr.bf16.mxu0 %v5810_v11  ;;  %15757 = vmatprep.subr.bf16.mxu1 %v5810_v11 }
 0x445   : > { %v6416_v30 = vsel %vm1002_vm1, %v6414_v6, %v6415_v26  ;;  %v6418_v59 = vsel %vm1002_vm1, %v6415_v26, %v6417_v2 }
 0x447   : > { %15734 = vmatpush3.bf16.msra.mxu0 %v5810_v11  ;;  %15758 = vmatpush3.bf16.msra.mxu1 %v5810_v11  ;;  %v6377_v11 = vmax.bf16 %v6356_v17, %v6353_v32  ;;  %v17592_v32 = vld [vmem:[%s21662_s12 + $0x18] sm:$0xff]  }
 0x448   : > { %15767 = vmatprep.subr.bf16.mxu0 %v6097_v63  ;;  %15791 = vmatprep.subr.bf16.mxu1 %v6097_v63 }
 0x449   : > { %v6402_v28 = vrot.slane %v6377_v11, 4 }
 0x44a   : > { %15736 = vmatmul.mubr.bf16.vlgmr.msra.gmra.mrb[8].mxu0 %v17571_v49  ;;  %15760 = vmatmul.mubr.bf16.vlgmr.msra.gmra.mrb[8].mxu1 %v17572_v19  ;;  %v17579_v49 = vld [vmem:[%s21661_s11 + $0x8] sm:$0xff]  }
 0x44b   : > { %15768 = vmatpush3.bf16.msra.mxu0 %v6097_v63  ;;  %15792 = vmatpush3.bf16.msra.mxu1 %v6097_v63  ;;  %v6401_v63 = vsel %vm1002_vm1, %v6399_v48, %v6400_v42  ;;  %v17580_v19 = vld [vmem:[%s21662_s12 + $0x8] sm:$0xff]  }
 0x44c   : > { %15769 = vmatprep.subr.bf16.mxu0 %v6099_v7  ;;  %15793 = vmatprep.subr.bf16.mxu1 %v6099_v7 }
 0x44d   : > { %15739 = vmatprep.mubr.bf16.mxu0 %v17573_v45  ;;  %15763 = vmatprep.mubr.bf16.mxu1 %v17574_v54  ;;  %v17581_v45 = vld [vmem:[%s21661_s11 + $0x10] sm:$0xff]  }
 0x44e   : > { %v17582_v54 = vld [vmem:[%s21662_s12 + $0x10] sm:$0xff]  }
 0x44f   : > { %15770 = vmatpush3.bf16.msra.mxu0 %v6099_v7  ;;  %15794 = vmatpush3.bf16.msra.mxu1 %v6099_v7  ;;  %v6403_v7 = vsel %vm1002_vm1, %v6400_v42, %v6402_v28 }
 0x450   : > { %15771 = vmatprep.subr.bf16.mxu0 %v6102_v47  ;;  %15795 = vmatprep.subr.bf16.mxu1 %v6102_v47 }
 0x452   : > { %15740 = vmatmul.mubr.bf16.gmra.mrb[12].mxu0 %v17575_v41  ;;  %15764 = vmatmul.mubr.bf16.gmra.mrb[12].mxu1 %v17576_v22  ;;  %v17583_v41 = vld [vmem:[%s21661_s11 + $0x18] sm:$0xff]  }
 0x453   : > { %15772 = vmatpush3.bf16.msra.mxu0 %v6102_v47  ;;  %15796 = vmatpush3.bf16.msra.mxu1 %v6102_v47  ;;  %v6406_v47 = vsel %vm1002_vm1, %v6404_v43, %v6405_v10  ;;  %v17584_v22 = vld [vmem:[%s21662_s12 + $0x18] sm:$0xff]  }
 0x454   : > { %15773 = vmatprep.subr.bf16.mxu0 %v6104_v23  ;;  %15797 = vmatprep.subr.bf16.mxu1 %v6104_v23 }
 0x455   : > { %15783 = vmatprep.mubr.bf16.mxu0 %v17577_v44  ;;  %15807 = vmatprep.mubr.bf16.mxu1 %v17578_v38  ;;  %v17585_v44 = vld [vmem:[%s21661_s11] sm:$0xff]  }
 0x456   : > { %v17586_v38 = vld [vmem:[%s21662_s12] sm:$0xff]  }
 0x457   : > { %15774 = vmatpush3.bf16.msra.mxu0 %v6104_v23  ;;  %15798 = vmatpush3.bf16.msra.mxu1 %v6104_v23  ;;  %v6408_v23 = vsel %vm1002_vm1, %v6405_v10, %v6407_v3 }
 0x458   : > { %15775 = vmatprep.subr.bf16.mxu0 %v6107_v36  ;;  %15799 = vmatprep.subr.bf16.mxu1 %v6107_v36 }
 0x45b   : > { %15776 = vmatpush3.bf16.msra.mxu0 %v6107_v36  ;;  %15800 = vmatpush3.bf16.msra.mxu1 %v6107_v36  ;;  %v6411_v36 = vsel %vm1002_vm1, %v6409_v53, %v6410_v58 }
 0x45c   : > { %15777 = vmatprep.subr.bf16.mxu0 %v6109_v62  ;;  %15801 = vmatprep.subr.bf16.mxu1 %v6109_v62 }
 0x45f   : > { %15778 = vmatpush3.bf16.msra.mxu0 %v6109_v62  ;;  %15802 = vmatpush3.bf16.msra.mxu1 %v6109_v62  ;;  %v6413_v62 = vsel %vm1002_vm1, %v6410_v58, %v6412_v14 }
 0x460   : > { %15779 = vmatprep.subr.bf16.mxu0 %v6112_v34  ;;  %15803 = vmatprep.subr.bf16.mxu1 %v6112_v34 }
 0x463   : > { %15780 = vmatpush3.bf16.msra.mxu0 %v6112_v34  ;;  %15804 = vmatpush3.bf16.msra.mxu1 %v6112_v34  ;;  %v17588_v34 = vld [vmem:[%s21662_s12 + $0x8] sm:$0xff]  }
 0x464   : > { %15781 = vmatprep.subr.bf16.mxu0 %v6114_v52  ;;  %15805 = vmatprep.subr.bf16.mxu1 %v6114_v52 }
 0x467   : > { %15782 = vmatpush3.bf16.msra.mxu0 %v6114_v52  ;;  %15806 = vmatpush3.bf16.msra.mxu1 %v6114_v52 }
 0x468   : > { %15815 = vmatprep.subr.bf16.mxu0 %v6401_v63  ;;  %15839 = vmatprep.subr.bf16.mxu1 %v6401_v63 }
 0x46a   : > { %15784 = vmatmul.mubr.bf16.vlgmr.msra.gmra.mrb[16].mxu0 %v17579_v49  ;;  %15808 = vmatmul.mubr.bf16.vlgmr.msra.gmra.mrb[16].mxu1 %v17580_v19 }
 0x46b   : > { %15816 = vmatpush3.bf16.msra.mxu0 %v6401_v63  ;;  %15840 = vmatpush3.bf16.msra.mxu1 %v6401_v63 }
 0x46c   : > { %15817 = vmatprep.subr.bf16.mxu0 %v6403_v7  ;;  %15841 = vmatprep.subr.bf16.mxu1 %v6403_v7 }
 0x46d   : > { %15787 = vmatprep.mubr.bf16.mxu0 %v17581_v45  ;;  %15811 = vmatprep.mubr.bf16.mxu1 %v17582_v54 }
 0x46f   : > { %15818 = vmatpush3.bf16.msra.mxu0 %v6403_v7  ;;  %15842 = vmatpush3.bf16.msra.mxu1 %v6403_v7 }
 0x470   : > { %15819 = vmatprep.subr.bf16.mxu0 %v6406_v47  ;;  %15843 = vmatprep.subr.bf16.mxu1 %v6406_v47 }
 0x472   : > { %15788 = vmatmul.mubr.bf16.gmra.mrb[20].mxu0 %v17583_v41  ;;  %15812 = vmatmul.mubr.bf16.gmra.mrb[20].mxu1 %v17584_v22 }
 0x473   : > { %15820 = vmatpush3.bf16.msra.mxu0 %v6406_v47  ;;  %15844 = vmatpush3.bf16.msra.mxu1 %v6406_v47 }
 0x474   : > { %15821 = vmatprep.subr.bf16.mxu0 %v6408_v23  ;;  %15845 = vmatprep.subr.bf16.mxu1 %v6408_v23 }
 0x475   : > { %15831 = vmatprep.mubr.bf16.mxu0 %v17585_v44  ;;  %15855 = vmatprep.mubr.bf16.mxu1 %v17586_v38 }
 0x477   : > { %15822 = vmatpush3.bf16.msra.mxu0 %v6408_v23  ;;  %15846 = vmatpush3.bf16.msra.mxu1 %v6408_v23 }
 0x478   : > { %15823 = vmatprep.subr.bf16.mxu0 %v6411_v36  ;;  %15847 = vmatprep.subr.bf16.mxu1 %v6411_v36 }
 0x47b   : > { %15824 = vmatpush3.bf16.msra.mxu0 %v6411_v36  ;;  %15848 = vmatpush3.bf16.msra.mxu1 %v6411_v36 }
 0x47c   : > { %15825 = vmatprep.subr.bf16.mxu0 %v6413_v62  ;;  %15849 = vmatprep.subr.bf16.mxu1 %v6413_v62 }
 0x47f   : > { %15826 = vmatpush3.bf16.msra.mxu0 %v6413_v62  ;;  %15850 = vmatpush3.bf16.msra.mxu1 %v6413_v62 }
 0x480   : > { %15827 = vmatprep.subr.bf16.mxu0 %v6416_v30  ;;  %15851 = vmatprep.subr.bf16.mxu1 %v6416_v30 }
 0x483   : > { %15828 = vmatpush3.bf16.msra.mxu0 %v6416_v30  ;;  %15852 = vmatpush3.bf16.msra.mxu1 %v6416_v30 }
 0x484   : > { %15829 = vmatprep.subr.bf16.mxu0 %v6418_v59  ;;  %15853 = vmatprep.subr.bf16.mxu1 %v6418_v59 }
 0x487   : > { %15830 = vmatpush3.bf16.msra.mxu0 %v6418_v59  ;;  %15854 = vmatpush3.bf16.msra.mxu1 %v6418_v59 }
 0x48a   : > { %15832 = vmatmul.mubr.bf16.vlgmr.msra.gmra.mrb[24].mxu0 %v17587_v24  ;;  %15856 = vmatmul.mubr.bf16.vlgmr.msra.gmra.mrb[24].mxu1 %v17588_v34 }
 0x48b   : > { %15835 = vmatprep.mubr.bf16.mxu0 %v17589_v18  ;;  %15859 = vmatprep.mubr.bf16.mxu1 %v17590_v61 }
 0x492   : > { %15836 = vmatmul.mubr.bf16.gmra.mrb[28].mxu0 %v17591_v60  ;;  %15860 = vmatmul.mubr.bf16.gmra.mrb[28].mxu1 %v17592_v32 }
 0x4fd   : > { %v15689_v17 = vpop.f32.mrb[0].mxu0  ;;  %v15713_v52 = vpop.f32.mrb[0].mxu1 }
 0x4fe   : > { %v5711_v48 = vmax.f32 %v15689_v17, %v15713_v52  ;;  %v5581_v42 = vpop.f32.mrb[1].mxu0  ;;  %v5678_v11 = vpop.f32.mrb[1].mxu1 }
 0x4ff   : > { %v5709_v1 = vmax.f32 %v5581_v42, %v5678_v11  ;;  %v15690_v29 = vpop.f32.mrb[2].mxu0  ;;  %v15714_v13 = vpop.f32.mrb[2].mxu1 }
 0x500   : > { %v5712_v20 = vmax.f32 %v15690_v29, %v15714_v13  ;;  %v5584_v49 = vpop.f32.mrb[3].mxu0  ;;  %v5681_v63 = vpop.f32.mrb[3].mxu1 }
 0x501   : > { %v5710_v28 = vmax.f32 %v5584_v49, %v5681_v63 }
 0x502   : > { %v5718_v55 = vpack.c.bf16 %v5712_v20, %v5711_v48 }
 0x503   : > { %v5717_v9 = vpack.c.bf16 %v5710_v28, %v5709_v1 }
 0x504   : > { %v5726_v19 = vrot.slane %v5718_v55, 4 }
 0x505   : > { %v5725_v31 = vrot.slane %v5717_v9, 4  ;;  %v15693_v35 = vpop.f32.mrb[4].mxu0  ;;  %v15717_v7 = vpop.f32.mrb[4].mxu1 }
 0x506   : > { %5736 = vst [vmem:[#allocation4 + $0x28] ss:$-4 sps:$4 sm:$0xff] %v5726_v19   ;;  %v5715_v43 = vmax.f32 %v15693_v35, %v15717_v7  ;;  %v5597_v10 = vpop.f32.mrb[5].mxu0  ;;  %v5694_v21 = vpop.f32.mrb[5].mxu1 }
 0x507   : > { %5734 = vst [vmem:[#allocation4 + $0x18] ss:$-4 sps:$4 sm:$0xff] %v5725_v31   ;;  %v5713_v4 = vmax.f32 %v5597_v10, %v5694_v21  ;;  %v15694_v45 = vpop.f32.mrb[6].mxu0  ;;  %v15718_v54 = vpop.f32.mrb[6].mxu1 }
 0x508   : > { %v5716_v46 = vmax.f32 %v15694_v45, %v15718_v54  ;;  %v5600_v33 = vpop.f32.mrb[7].mxu0  ;;  %v5697_v40 = vpop.f32.mrb[7].mxu1 }
 0x509   : > { %v5714_v47 = vmax.f32 %v5600_v33, %v5697_v40 }
 0x50a   : > { %v5720_v3 = vpack.c.bf16 %v5716_v46, %v5715_v43 }
 0x50b   : > { %v5719_v50 = vpack.c.bf16 %v5714_v47, %v5713_v4 }
 0x50c   : > { %v5728_v27 = vrot.slane %v5720_v3, 4 }
 0x50d   : > { %v5727_v51 = vrot.slane %v5719_v50, 4 }
 0x50e   : > { %5740 = vst [vmem:[#allocation4 + $0x48] ss:$-4 sps:$4 sm:$0xff] %v5728_v27  }
 0x50f   : > { %5738 = vst [vmem:[#allocation4 + $0x38] ss:$-4 sps:$4 sm:$0xff] %v5727_v51  }
 0x51d   : > { %v15737_v15 = vpop.f32.mrb[8].mxu0  ;;  %v15761_v41 = vpop.f32.mrb[8].mxu1 }
 0x51e   : > { %v6015_v22 = vmax.f32 %v15737_v15, %v15761_v41  ;;  %v5885_v23 = vpop.f32.mrb[9].mxu0  ;;  %v5982_v53 = vpop.f32.mrb[9].mxu1 }
 0x51f   : > { %v6013_v58 = vmax.f32 %v5885_v23, %v5982_v53  ;;  %v15738_v39 = vpop.f32.mrb[10].mxu0  ;;  %v15762_v56 = vpop.f32.mrb[10].mxu1 }
 0x520   : > { %v6016_v44 = vmax.f32 %v15738_v39, %v15762_v56  ;;  %v5888_v38 = vpop.f32.mrb[11].mxu0  ;;  %v5985_v16 = vpop.f32.mrb[11].mxu1 }
 0x521   : > { %v6014_v5 = vmax.f32 %v5888_v38, %v5985_v16 }
 0x522   : > { %v6022_v25 = vpack.c.bf16 %v6016_v44, %v6015_v22 }
 0x523   : > { %v6021_v36 = vpack.c.bf16 %v6014_v5, %v6013_v58 }
 0x524   : > { %v6030_v14 = vrot.slane %v6022_v25, 4 }
 0x525   : > { %v6029_v57 = vrot.slane %v6021_v36, 4  ;;  %v15741_v0 = vpop.f32.mrb[12].mxu0  ;;  %v15765_v12 = vpop.f32.mrb[12].mxu1 }
 0x526   : > { %6040 = vst [vmem:[#allocation4 + $0x68] ss:$-4 sps:$4 sm:$0xff] %v6030_v14   ;;  %v6019_v8 = vmax.f32 %v15741_v0, %v15765_v12  ;;  %v5901_v62 = vpop.f32.mrb[13].mxu0  ;;  %v5998_v6 = vpop.f32.mrb[13].mxu1 }
 0x527   : > { %6038 = vst [vmem:[#allocation4 + $0x58] ss:$-4 sps:$4 sm:$0xff] %v6029_v57   ;;  %v6017_v26 = vmax.f32 %v5901_v62, %v5998_v6  ;;  %v15742_v37 = vpop.f32.mrb[14].mxu0  ;;  %v15766_v30 = vpop.f32.mrb[14].mxu1 }
 0x528   : > { %v6020_v2 = vmax.f32 %v15742_v37, %v15766_v30  ;;  %v5904_v59 = vpop.f32.mrb[15].mxu0  ;;  %v6001_v24 = vpop.f32.mrb[15].mxu1 }
 0x529   : > { %v6018_v34 = vmax.f32 %v5904_v59, %v6001_v24 }
 0x52a   : > { %v6024_v18 = vpack.c.bf16 %v6020_v2, %v6019_v8 }
 0x52b   : > { %v6023_v61 = vpack.c.bf16 %v6018_v34, %v6017_v26 }
 0x52c   : > { %v6032_v60 = vrot.slane %v6024_v18, 4 }
 0x52d   : > { %v6031_v32 = vrot.slane %v6023_v61, 4 }
 0x52e   : > { %6044 = vst [vmem:[#allocation4 + $0x88] ss:$-4 sps:$4 sm:$0xff] %v6032_v60  }
 0x52f   : > { %6042 = vst [vmem:[#allocation4 + $0x78] ss:$-4 sps:$4 sm:$0xff] %v6031_v32  }
 0x53d   : > { %v15785_v17 = vpop.f32.mrb[16].mxu0  ;;  %v15809_v52 = vpop.f32.mrb[16].mxu1 }
 0x53e   : > { %v6319_v48 = vmax.f32 %v15785_v17, %v15809_v52  ;;  %v6189_v42 = vpop.f32.mrb[17].mxu0  ;;  %v6286_v11 = vpop.f32.mrb[17].mxu1 }
 0x53f   : > { %v6317_v1 = vmax.f32 %v6189_v42, %v6286_v11  ;;  %v15786_v29 = vpop.f32.mrb[18].mxu0  ;;  %v15810_v13 = vpop.f32.mrb[18].mxu1 }
 0x540   : > { %v6320_v20 = vmax.f32 %v15786_v29, %v15810_v13  ;;  %v6192_v49 = vpop.f32.mrb[19].mxu0  ;;  %v6289_v63 = vpop.f32.mrb[19].mxu1 }
 0x541   : > { %v6318_v28 = vmax.f32 %v6192_v49, %v6289_v63 }
 0x542   : > { %v6326_v55 = vpack.c.bf16 %v6320_v20, %v6319_v48 }
 0x543   : > { %v6325_v9 = vpack.c.bf16 %v6318_v28, %v6317_v1 }
 0x544   : > { %v6334_v19 = vrot.slane %v6326_v55, 4 }
 0x545   : > { %v6333_v31 = vrot.slane %v6325_v9, 4  ;;  %v15789_v35 = vpop.f32.mrb[20].mxu0  ;;  %v15813_v7 = vpop.f32.mrb[20].mxu1 }
 0x546   : > { %6344 = vst [vmem:[#allocation4 + $0xa8] ss:$-4 sps:$4 sm:$0xff] %v6334_v19   ;;  %v6323_v43 = vmax.f32 %v15789_v35, %v15813_v7  ;;  %v6205_v10 = vpop.f32.mrb[21].mxu0  ;;  %v6302_v21 = vpop.f32.mrb[21].mxu1 }
 0x547   : > { %6342 = vst [vmem:[#allocation4 + $0x98] ss:$-4 sps:$4 sm:$0xff] %v6333_v31   ;;  %v6321_v4 = vmax.f32 %v6205_v10, %v6302_v21  ;;  %v15790_v45 = vpop.f32.mrb[22].mxu0  ;;  %v15814_v54 = vpop.f32.mrb[22].mxu1 }
 0x548   : > { %v6324_v46 = vmax.f32 %v15790_v45, %v15814_v54  ;;  %v6208_v33 = vpop.f32.mrb[23].mxu0  ;;  %v6305_v40 = vpop.f32.mrb[23].mxu1 }
 0x549   : > { %v6322_v47 = vmax.f32 %v6208_v33, %v6305_v40 }
 0x54a   : > { %v6328_v3 = vpack.c.bf16 %v6324_v46, %v6323_v43 }
 0x54b   : > { %v6327_v50 = vpack.c.bf16 %v6322_v47, %v6321_v4 }
 0x54c   : > { %v6336_v27 = vrot.slane %v6328_v3, 4 }
 0x54d   : > { %v6335_v51 = vrot.slane %v6327_v50, 4 }
 0x54e   : > { %6348 = vst [vmem:[#allocation4 + $0xc8] ss:$-4 sps:$4 sm:$0xff] %v6336_v27  }
 0x54f   : > { %6346 = vst [vmem:[#allocation4 + $0xb8] ss:$-4 sps:$4 sm:$0xff] %v6335_v51  }
 0x55d   : > { %v15833_v15 = vpop.f32.mrb[24].mxu0  ;;  %v15857_v41 = vpop.f32.mrb[24].mxu1 }
 0x55e   : > { %v6623_v22 = vmax.f32 %v15833_v15, %v15857_v41  ;;  %v6493_v23 = vpop.f32.mrb[25].mxu0  ;;  %v6590_v53 = vpop.f32.mrb[25].mxu1 }
 0x55f   : > { %v6621_v58 = vmax.f32 %v6493_v23, %v6590_v53  ;;  %v15834_v39 = vpop.f32.mrb[26].mxu0  ;;  %v15858_v56 = vpop.f32.mrb[26].mxu1 }
 0x560   : > { %v6624_v44 = vmax.f32 %v15834_v39, %v15858_v56  ;;  %v6496_v38 = vpop.f32.mrb[27].mxu0  ;;  %v6593_v16 = vpop.f32.mrb[27].mxu1 }
 0x561   : > { %v6622_v5 = vmax.f32 %v6496_v38, %v6593_v16 }
 0x562   : > { %v6630_v25 = vpack.c.bf16 %v6624_v44, %v6623_v22 }
 0x563   : > { %v6629_v36 = vpack.c.bf16 %v6622_v5, %v6621_v58 }
 0x564   : > { %v6638_v14 = vrot.slane %v6630_v25, 4 }
 0x565   : > { %v6637_v57 = vrot.slane %v6629_v36, 4  ;;  %v15837_v0 = vpop.f32.mrb[28].mxu0  ;;  %v15861_v12 = vpop.f32.mrb[28].mxu1 }
 0x566   : > { %6648 = vst [vmem:[#allocation4 + $0xe8] ss:$-4 sps:$4 sm:$0xff] %v6638_v14   ;;  %v6627_v8 = vmax.f32 %v15837_v0, %v15861_v12  ;;  %v6509_v62 = vpop.f32.mrb[29].mxu0  ;;  %v6606_v6 = vpop.f32.mrb[29].mxu1 }
 0x567   : > { %6646 = vst [vmem:[#allocation4 + $0xd8] ss:$-4 sps:$4 sm:$0xff] %v6637_v57   ;;  %v6625_v26 = vmax.f32 %v6509_v62, %v6606_v6  ;;  %v15838_v37 = vpop.f32.mrb[30].mxu0  ;;  %v15862_v30 = vpop.f32.mrb[30].mxu1 }
 0x568   : > { %v6628_v2 = vmax.f32 %v15838_v37, %v15862_v30  ;;  %v6512_v59 = vpop.f32.mrb[31].mxu0  ;;  %v6609_v24 = vpop.f32.mrb[31].mxu1 }
 0x569   : > { %v6626_v34 = vmax.f32 %v6512_v59, %v6609_v24 }
 0x56a   : > { %v6632_v18 = vpack.c.bf16 %v6628_v2, %v6627_v8 }
 0x56b   : > { %v6631_v61 = vpack.c.bf16 %v6626_v34, %v6625_v26 }
 0x56c   : > { %v6640_v60 = vrot.slane %v6632_v18, 4 }
 0x56d   : > { %v6639_v32 = vrot.slane %v6631_v61, 4 }
 0x56e   : > { %6652 = vst [vmem:[#allocation4 + $0x108] ss:$-4 sps:$4 sm:$0xff] %v6640_v60  }
 0x56f   : > { %6650 = vst [vmem:[#allocation4 + $0xf8] ss:$-4 sps:$4 sm:$0xff] %v6639_v32  }
 0x570 LB: >> { %v17593_v17 = vld [vmem:[%s21655_s5 + $0xc0] sm:$0xff]   ;;  %v17595_v48 = vld [vmem:[%s21655_s5 + $0xc8] sm:$0xff]   ;;  %v17597_v11 = vld [vmem:[%s21655_s5 + $0xd0] sm:$0xff]   ;;  %s14285_s0 = sshll.u32 %s17916_s14, 7  ;;  %s6659_s14 = sadd.s32 1, %s17916_s14   ;;  %s17916_s14 = sphi %s19997_s14, %s6659_s14  }
 0x571   : >> { %v17594_v52 = vld [vmem:[%s21655_s5 + $0x100] sm:$0xff]   ;;  %15863 = vmatprep.subr.bf16.mxu1 %v17593_v17  ;;  %v17596_v42 = vld [vmem:[%s21655_s5 + $0x108] sm:$0xff]   ;;  %v17598_v1 = vld [vmem:[%s21655_s5 + $0x110] sm:$0xff]   ;;  %s20041_s15 = scalar_lea.vmem [#allocation4], %s14285_s0  ;;  %s20522_s17 = scalar_lea.vmem [#allocation5], %s14285_s0 }
 0x572   : >> { %15991 = vmatprep.subr.bf16.mxu0 %v17594_v52  ;;  %15864 = vmatpush3.bf16.msra.mxu1 %v17593_v17  ;;  %v17599_v29 = vld [vmem:[%s21655_s5 + $0xd8] sm:$0xff]   ;;  %v17601_v20 = vld [vmem:[%s21655_s5 + $0xe0] sm:$0xff]   ;;  %v17603_v63 = vld [vmem:[%s21655_s5 + $0xe8] sm:$0xff]   ;;  %p6656_p13 = scmp.ge.s32.totalorder %s6659_s14, 2  }
 0x573   : >> { %15992 = vmatpush3.bf16.msra.mxu0 %v17594_v52  ;;  %15865 = vmatprep.subr.bf16.mxu1 %v17595_v48  ;;  %v17600_v13 = vld [vmem:[%s21655_s5 + $0x118] sm:$0xff]   ;;  %v17602_v49 = vld [vmem:[%s21655_s5 + $0x120] sm:$0xff]   ;;  %v17604_v28 = vld [vmem:[%s21655_s5 + $0x128] sm:$0xff]   ;;  %s20547_s0 = smov (%p6656_p13), 0  }
 0x574   : >> { %15993 = vmatprep.subr.bf16.mxu0 %v17596_v42  ;;  %v17605_v47 = vld [vmem:[%s21655_s5 + $0xf0] sm:$0xff]   ;;  %v17607_v58 = vld [vmem:[%s21655_s5 + $0xf8] sm:$0xff]   ;;  %v17609_v26 = vld [vmem:[%s21655_s5] sm:$0xff]  }
 0x575   : >> { %v17606_v27 = vld [vmem:[%s21655_s5 + $0x130] sm:$0xff]   ;;  %v17608_v16 = vld [vmem:[%s21655_s5 + $0x138] sm:$0xff]   ;;  %v17610_v59 = vld [vmem:[%s21655_s5 + $0x1c0] sm:$0xff]  }
 0x576   : >> { %15866 = vmatpush3.bf16.msra.mxu1 %v17595_v48  ;;  %v6666_v55 = vld [vmem:[%s20041_s15 + $0x10] sm:$0xf8]  ;;  %v6667_v9 = vld [vmem:[%s20041_s15 + $0x18] sm:$0xf]  ;;  %v6668_v10 = vld [vmem:[%s20041_s15 + $0x20] sm:$0xf8] }
 0x577   : >> { %15994 = vmatpush3.bf16.msra.mxu0 %v17596_v42  ;;  %15867 = vmatprep.subr.bf16.mxu1 %v17597_v11  ;;  %v20046_v19 = vld [vmem:[%s20041_s15 + $0x10] sm:$0xf0]  ;;  %v6703_v31 = vshrl.u32 %v6666_v55, 16  ;;  %v6706_v35 = vshll.u32 %v6666_v55, 16  ;;  %v6711_v7 = vshrl.u32 %v6667_v9, 16  ;;  %v6714_v43 = vshll.u32 %v6667_v9, 16 }
 0x578   : >> { %15995 = vmatprep.subr.bf16.mxu0 %v17598_v1  ;;  %v7395_v21 = vrot.slane %v20046_v19, 4  ;;  %v7396_v4 = vrot.slane %v6667_v9, 4  ;;  %v20051_v45 = vld [vmem:[%s20041_s15 + $0x28] sm:$0xf]  ;;  %v6720_v50 = vshrl.u32 %v6668_v10, 16  ;;  %v6723_v41 = vshll.u32 %v6668_v10, 16 }
 0x579   : >> { %v6705_v54 = vrot.slane %v6703_v31, 3  ;;  %v6708_v46 = vrot.slane %v6706_v35, 4  ;;  %v6713_v33 = vrot.slane %v6711_v7, 3  ;;  %v6716_v40 = vrot.slane %v6714_v43, 4  ;;  %v20066_v53 = vld [vmem:[%s20041_s15 + $0x20] sm:$0xf0] }
 0x57a   : >> { %15868 = vmatpush3.bf16.msra.mxu1 %v17597_v11  ;;  %v20057_v3 = vsel %vm1002_vm1, %v7395_v21, %v7396_v4  ;;  %v6728_v22 = vshrl.u32 %v20051_v45, 16  ;;  %v6731_v23 = vshll.u32 %v20051_v45, 16  ;;  %v6722_v56 = vrot.slane %v6720_v50, 3  ;;  %v6670_v25 = vld [vmem:[%s20041_s15 + $0x30] sm:$0xf8] }
 0x57b   : >> { %15996 = vmatpush3.bf16.msra.mxu0 %v17598_v1  ;;  %15869 = vmatprep.subr.bf16.mxu1 %v17599_v29  ;;  %v6709_v51 = vor.u32 %v6708_v46, %v6705_v54  ;;  %v6717_v15 = vor.u32 %v6716_v40, %v6713_v33  ;;  %v6725_v44 = vrot.slane %v6723_v41, 4  ;;  %v6671_v36 = vld [vmem:[%s20041_s15 + $0x38] sm:$0xf]  ;;  %v7398_v14 = vrot.slane %v20066_v53, 4  ;;  %v20082_v8 = vld [vmem:[%s20041_s15 + $0x30] sm:$0xf0] }
 0x57c   : >> { %15997 = vmatprep.subr.bf16.mxu0 %v17600_v13  ;;  %16007 = vmatprep.mubr.bf16.mxu0 %v20057_v3  ;;  %v6730_v38 = vrot.slane %v6728_v22, 3  ;;  %v6733_v5 = vrot.slane %v6731_v23, 4  ;;  %v6737_v57 = vshrl.u32 %v6670_v25, 16  ;;  %v6740_v0 = vshll.u32 %v6670_v25, 16  ;;  %v6672_v2 = vld [vmem:[%s20041_s15 + $0x40] sm:$0xf8] }
 0x57d   : >> { %v20072_v39 = vsel %vm1323_vm4, %v6709_v51, %v6717_v15  ;;  %v6745_v12 = vshrl.u32 %v6671_v36, 16  ;;  %v6726_v62 = vor.u32 %v6725_v44, %v6722_v56  ;;  %v7399_v37 = vrot.slane %v20051_v45, 4  ;;  %v20093_v61 = vld [vmem:[%s20041_s15 + $0x48] sm:$0xf]  ;;  %v20111_v35 = vld [vmem:[%s20041_s15 + $0x40] sm:$0xf0] }
 0x57e   : >> { %15870 = vmatpush3.bf16.msra.mxu1 %v17599_v29  ;;  %15879 = vmatprep.mubr.bf16.mxu1 %v20072_v39  ;;  %v6734_v6 = vor.u32 %v6733_v5, %v6730_v38  ;;  %v6748_v30 = vshll.u32 %v6671_v36, 16  ;;  %v6739_v24 = vrot.slane %v6737_v57, 3  ;;  %v6742_v34 = vrot.slane %v6740_v0, 4  ;;  %v17613_v4 = vld [vmem:[%s21655_s5 + $0x10] sm:$0xff]   ;;  %v6675_v54 = vld [vmem:[%s20041_s15 + $0x58] sm:$0xf] }
 0x57f   : >> { %15998 = vmatpush3.bf16.msra.mxu0 %v17600_v13  ;;  %15871 = vmatprep.subr.bf16.mxu1 %v17601_v20  ;;  %v6747_v18 = vrot.slane %v6745_v12, 3  ;;  %v7401_v32 = vrot.slane %v20082_v8, 4  ;;  %v6754_v17 = vshrl.u32 %v6672_v2, 16  ;;  %v6757_v52 = vshll.u32 %v6672_v2, 16  ;;  %v17611_v13 = vld [vmem:[%s21655_s5 + $0x8] sm:$0xff]   ;;  %v17614_v46 = vld [vmem:[%s21655_s5 + $0x1d0] sm:$0xff]  }
 0x580   : >> { %15999 = vmatprep.subr.bf16.mxu0 %v17602_v49  ;;  %v6750_v60 = vrot.slane %v6748_v30, 4  ;;  %v6743_v48 = vor.u32 %v6742_v34, %v6739_v24  ;;  %v7402_v42 = vrot.slane %v6671_v36, 4  ;;  %v6762_v11 = vshrl.u32 %v20093_v61, 16  ;;  %v6674_v45 = vld [vmem:[%s20041_s15 + $0x50] sm:$0xf8] }
 0x581   : >> { %v6765_v1 = vshll.u32 %v20093_v61, 16  ;;  %v20099_v29 = vsel %vm1323_vm4, %v6726_v62, %v6734_v6  ;;  %v20108_v55 = vsel %vm1002_vm1, %v7398_v14, %v7399_v37  ;;  %v6771_v33 = vshrl.u32 %v6674_v45, 16  ;;  %v6676_v22 = vld [vmem:[%s20041_s15 + $0x60] sm:$0xf8]  ;;  %v20139_v23 = vld [vmem:[%s20041_s15 + $0x68] sm:$0xf] }
 0x582   : >> { %15872 = vmatpush3.bf16.msra.mxu1 %v17601_v20  ;;  %v17612_v20 = vld [vmem:[%s21655_s5 + $0x1c8] sm:$0xff]   ;;  %v6764_v9 = vrot.slane %v6762_v11, 3  ;;  %v20118_v10 = vsel %vm1002_vm1, %v7401_v32, %v7402_v42  ;;  %v6774_v40 = vshll.u32 %v6674_v45, 16  ;;  %v6782_v50 = vshll.u32 %v6675_v54, 16  ;;  %v20150_v6 = vld [vmem:[%s20041_s15 + $0x60] sm:$0xf0] }
 0x583   : >> { %16000 = vmatpush3.bf16.msra.mxu0 %v17602_v49  ;;  %15873 = vmatprep.subr.bf16.mxu1 %v17603_v63  ;;  %v6751_v49 = vor.u32 %v6750_v60, %v6747_v18  ;;  %v6767_v31 = vrot.slane %v6765_v1, 4  ;;  %v7404_v15 = vrot.slane %v20111_v35, 4  ;;  %v7405_v41 = vrot.slane %v20093_v61, 4  ;;  %v17616_v37 = vld [vmem:[%s21655_s5 + $0x1d8] sm:$0xff]   ;;  %v17617_v60 = vld [vmem:[%s21655_s5 + $0x20] sm:$0xff]  }
 0x584   : >> { %16001 = vmatprep.subr.bf16.mxu0 %v17604_v28  ;;  %v6776_v56 = vrot.slane %v6774_v40, 4  ;;  %v6784_v38 = vrot.slane %v6782_v50, 4  ;;  %v6788_v25 = vshrl.u32 %v6676_v22, 16  ;;  %v6791_v36 = vshll.u32 %v6676_v22, 16  ;;  %v6678_v32 = vld [vmem:[%s20041_s15 + $0x70] sm:$0xf8] }
 0x585   : >> { %v20115_v43 = vsel %vm1323_vm4, %v6743_v48, %v6751_v49  ;;  %v6768_v21 = vor.u32 %v6767_v31, %v6764_v9  ;;  %v6796_v14 = vshrl.u32 %v20139_v23, 16  ;;  %v7408_v12 = vrot.slane %v6675_v54, 4  ;;  %v17618_v48 = vld [vmem:[%s21655_s5 + $0x1e0] sm:$0xff]   ;;  %v6679_v42 = vld [vmem:[%s20041_s15 + $0x78] sm:$0xf] }
 0x586   : >> { %15874 = vmatpush3.bf16.msra.mxu1 %v17603_v63  ;;  %v6756_v63 = vrot.slane %v6754_v17, 3  ;;  %v6799_v62 = vshll.u32 %v20139_v23, 16  ;;  %v6790_v30 = vrot.slane %v6788_v25, 3  ;;  %v6793_v2 = vrot.slane %v6791_v36, 4  ;;  %v6680_v9 = vld [vmem:[%s20041_s15 + $0x80] sm:$0xf8] }
 0x587   : >> { %16002 = vmatpush3.bf16.msra.mxu0 %v17604_v28  ;;  %15875 = vmatprep.subr.bf16.mxu1 %v17605_v47  ;;  %v6759_v28 = vrot.slane %v6757_v52, 4  ;;  %v7411_v34 = vrot.slane %v20139_v23, 4  ;;  %v6805_v11 = vshrl.u32 %v6678_v32, 16  ;;  %v6808_v1 = vshll.u32 %v6678_v32, 16 }
 0x588   : >> { %16003 = vmatprep.subr.bf16.mxu0 %v17606_v27  ;;  %v6801_v24 = vrot.slane %v6799_v62, 4  ;;  %v6794_v61 = vor.u32 %v6793_v2, %v6790_v30  ;;  %v6813_v49 = vshrl.u32 %v6679_v42, 16  ;;  %v6846_v45 = vshrl.u32 %v6680_v9, 16  ;;  %v20213_v30 = vld [vmem:[%s20041_s15 + $0x8] sm:$0xf] }
 0x589   : >> { %v6760_v7 = vor.u32 %v6759_v28, %v6756_v63  ;;  %v6816_v63 = vshll.u32 %v6679_v42, 16  ;;  %v6807_v31 = vrot.slane %v6805_v11, 3  ;;  %v6849_v40 = vshll.u32 %v6680_v9, 16  ;;  %v17625_v9 = vld [vmem:[%s21655_s5 + $0x180] sm:$0xff]  }
 0x58a   : >> { %15876 = vmatpush3.bf16.msra.mxu1 %v17605_v47  ;;  %v6779_v47 = vshrl.u32 %v6675_v54, 16 }
 0x58b   : >> { %16004 = vmatpush3.bf16.msra.mxu0 %v17606_v27  ;;  %15877 = vmatprep.subr.bf16.mxu1 %v17607_v58  ;;  %v20130_v27 = vld [vmem:[%s20041_s15 + $0x50] sm:$0xf0]  ;;  %v20133_v51 = vsel %vm1323_vm4, %v6760_v7, %v6768_v21  ;;  %v6810_v7 = vrot.slane %v6808_v1, 4  ;;  %v7414_v21 = vrot.slane %v6679_v42, 4  ;;  %v17623_v1 = vld [vmem:[%s21655_s5 + $0x38] sm:$0xff]  }
 0x58c   : >> { %16005 = vmatprep.subr.bf16.mxu0 %v17608_v16  ;;  %v6781_v44 = vrot.slane %v6779_v47, 3  ;;  %v7407_v5 = vrot.slane %v20130_v27, 4  ;;  %v17619_v47 = vld [vmem:[%s21655_s5 + $0x28] sm:$0xff]  }
 0x58d   : >> { %v6811_v50 = vor.u32 %v6810_v7, %v6807_v31  ;;  %v17626_v31 = vld [vmem:[%s21655_s5 + $0x80] sm:$0xff]   ;;  %v17627_v7 = vld [vmem:[%s21655_s5 + $0x188] sm:$0xff]  }
 0x58e   : >> { %15878 = vmatpush3.bf16.msra.mxu1 %v17607_v58  ;;  %v6773_v58 = vrot.slane %v6771_v33, 3  ;;  %v6785_v0 = vor.u32 %v6784_v38, %v6781_v44  ;;  %v20169_v17 = vsel %vm1002_vm1, %v7407_v5, %v7408_v12  ;;  %v6818_v33 = vrot.slane %v6816_v63, 4  ;;  %v20197_v38 = vld [vmem:[%s20041_s15 + $0x80] sm:$0xf0]  ;;  %v17624_v63 = vld [vmem:[%s21655_s5 + $0x1f8] sm:$0xff]  }
 0x58f   : >> { %16006 = vmatpush3.bf16.msra.mxu0 %v17608_v16  ;;  %15895 = vmatprep.subr.bf16.mxu1 %v17609_v26  ;;  %v17615_v16 = vld [vmem:[%s21655_s5 + $0x18] sm:$0xff]   ;;  %v6851_v44 = vrot.slane %v6849_v40, 4  ;;  %v7604_v25 = vrot.slane %v20197_v38, 4  ;;  %v7970_v40 = vld [vmem:[%s20041_s15 + $0x8] sm:$0x1f] }
 0x590   : >> { %16023 = vmatprep.subr.bf16.mxu0 %v17610_v59  ;;  %v6777_v57 = vor.u32 %v6776_v56, %v6773_v58  ;;  %v17620_v58 = vld [vmem:[%s21655_s5 + $0x1e8] sm:$0xff]  }
 0x591   : >> { %15880 = vmatmul.mubr.bf16.vlgmr.msra.gmra.mrb[0].mxu1 %v20099_v29 }
 0x592   : >> { %16008 = vmatmul.mubr.bf16.vlgmr.msra.gmra.mrb[0].mxu0 %v20108_v55  ;;  %15896 = vmatpush3.bf16.msra.mxu1 %v17609_v26  ;;  %v20153_v26 = vsel %vm1002_vm1, %v7404_v15, %v7405_v41  ;;  %v20161_v18 = vsel %vm1323_vm4, %v6777_v57, %v6785_v0  ;;  %v6848_v15 = vrot.slane %v6846_v45, 3  ;;  %v17621_v57 = vld [vmem:[%s21655_s5 + $0x30] sm:$0xff]  }
 0x593   : >> { %16024 = vmatpush3.bf16.msra.mxu0 %v17610_v59  ;;  %15897 = vmatprep.subr.bf16.mxu1 %v17611_v13  ;;  %v6798_v59 = vrot.slane %v6796_v14, 3  ;;  %v17630_v45 = vld [vmem:[%s21655_s5 + $0x90] sm:$0xff]  }
 0x594   : >> { %16025 = vmatprep.subr.bf16.mxu0 %v17612_v20  ;;  %15883 = vmatprep.mubr.bf16.mxu1 %v20115_v43  ;;  %v6852_v12 = vor.u32 %v6851_v44, %v6848_v15  ;;  %v17633_v15 = vld [vmem:[%s21655_s5 + $0x1a0] sm:$0xff]   ;;  %v7990_v44 = vshrl.u32 %v7970_v40, 16 }
 0x595   : >> { %16011 = vmatprep.mubr.bf16.mxu0 %v20118_v10  ;;  %v6802_v52 = vor.u32 %v6801_v24, %v6798_v59  ;;  %v6694_v24 = vshrl.u32 %v20213_v30, 16 }
 0x596   : >> { %15898 = vmatpush3.bf16.msra.mxu1 %v17611_v13  ;;  %v20176_v13 = vld [vmem:[%s20041_s15 + $0x70] sm:$0xf0] }
 0x597   : >> { %16026 = vmatpush3.bf16.msra.mxu0 %v17612_v20  ;;  %15899 = vmatprep.subr.bf16.mxu1 %v17613_v4  ;;  %v7410_v20 = vrot.slane %v20150_v6, 4  ;;  %v7413_v28 = vrot.slane %v20176_v13, 4  ;;  %v20185_v54 = vsel %vm1323_vm4, %v6794_v61, %v6802_v52  ;;  %v17622_v61 = vld [vmem:[%s21655_s5 + $0x1f0] sm:$0xff]   ;;  %v6696_v52 = vrot.slane %v6694_v24, 3 }
 0x598   : >> { %16027 = vmatprep.subr.bf16.mxu0 %v17614_v46 }
 0x599   : >> { %15884 = vmatmul.mubr.bf16.gmra.mrb[4].mxu1 %v20133_v51  ;;  %v20191_v23 = vsel %vm1002_vm1, %v7410_v20, %v7411_v34  ;;  %v20209_v0 = vsel %vm1002_vm1, %v7413_v28, %v7414_v21  ;;  %v6697_v34 = vshll.u32 %v20213_v30, 16  ;;  %v17628_v21 = vld [vmem:[%s21655_s5 + $0x88] sm:$0xff]  }
 0x59a   : >> { %16012 = vmatmul.mubr.bf16.gmra.mrb[4].mxu0 %v20153_v26  ;;  %15900 = vmatpush3.bf16.msra.mxu1 %v17613_v4  ;;  %v6681_v4 = vld [vmem:[%s20041_s15 + $0x88] sm:$0xf] }
 0x59b   : >> { %16028 = vmatpush3.bf16.msra.mxu0 %v17614_v46  ;;  %15901 = vmatprep.subr.bf16.mxu1 %v17615_v16  ;;  %v6815_v46 = vrot.slane %v6813_v49, 3  ;;  %v6854_v41 = vshrl.u32 %v6681_v4, 16  ;;  %v6857_v22 = vshll.u32 %v6681_v4, 16  ;;  %v7605_v36 = vrot.slane %v6681_v4, 4  ;;  %v17629_v4 = vld [vmem:[%s21655_s5 + $0x190] sm:$0xff]  }
 0x59c   : >> { %16029 = vmatprep.subr.bf16.mxu0 %v17616_v37  ;;  %15887 = vmatprep.mubr.bf16.mxu1 %v20161_v18 }
 0x59d   : >> { %16015 = vmatprep.mubr.bf16.mxu0 %v20169_v17  ;;  %v6819_v56 = vor.u32 %v6818_v33, %v6815_v46  ;;  %v6859_v5 = vrot.slane %v6857_v22, 4  ;;  %v20226_v11 = vsel %vm1002_vm1, %v7604_v25, %v7605_v36  ;;  %v17632_v46 = vld [vmem:[%s21655_s5 + $0x98] sm:$0xff]   ;;  %v20268_v33 = vld [vmem:[%s20041_s15] sm:$0xf0]  ;;  %v8016_v22 = vshrl.u32 %v20066_v53, 16 }
 0x59e   : >> { %15902 = vmatpush3.bf16.msra.mxu1 %v17615_v16  ;;  %v6856_v16 = vrot.slane %v6854_v41, 3  ;;  %v17634_v41 = vld [vmem:[%s21655_s5 + $0xa0] sm:$0xff]   ;;  %v20292_v25 = vld [vmem:[%s20041_s15 + $0x90] sm:$0xf0]  ;;  %v7971_v36 = vld [vmem:[%s20041_s15 + $0x18] sm:$0x1f] }
 0x59f   : >> { %16030 = vmatpush3.bf16.msra.mxu0 %v17616_v37  ;;  %15903 = vmatprep.subr.bf16.mxu1 %v17617_v60  ;;  %v20202_v14 = vsel %vm1323_vm4, %v6811_v50, %v6819_v56  ;;  %v6664_v37 = vld [vmem:[%s20041_s15] sm:$0xf8]  ;;  %v8002_v50 = vshll.u32 %v20046_v19, 16  ;;  %v7985_v56 = vshll.u32 %v20268_v33, 16 }
 0x5a0   : >> { %16031 = vmatprep.subr.bf16.mxu0 %v17618_v48  ;;  %v6860_v62 = vor.u32 %v6859_v5, %v6856_v16  ;;  %v6686_v2 = vshrl.u32 %v6664_v37, 16  ;;  %v6689_v59 = vshll.u32 %v6664_v37, 16  ;;  %v7993_v16 = vshll.u32 %v7970_v40, 16  ;;  %v20289_v5 = vld [vmem:[%s20041_s15 + $0x98] sm:$0xf] }
 0x5a1   : >> { %15888 = vmatmul.mubr.bf16.gmra.mrb[8].mxu1 %v20185_v54  ;;  %v7973_v40 = vld [vmem:[%s20041_s15 + $0x38] sm:$0x1f] }
 0x5a2   : >> { %16016 = vmatmul.mubr.bf16.gmra.mrb[8].mxu0 %v20191_v23  ;;  %15904 = vmatpush3.bf16.msra.mxu1 %v17617_v60  ;;  %v6688_v60 = vrot.slane %v6686_v2, 3  ;;  %v6691_v32 = vrot.slane %v6689_v59, 4  ;;  %v20223_v42 = vsel %vm1323_vm4, %v6852_v12, %v6860_v62  ;;  %v8019_v12 = vshll.u32 %v20066_v53, 16  ;;  %v17637_v62 = vld [vmem:[%s21655_s5 + $0x1b0] sm:$0xff]   ;;  %v7972_v53 = vld [vmem:[%s20041_s15 + $0x28] sm:$0x1f] }
 0x5a3   : >> { %16032 = vmatpush3.bf16.msra.mxu0 %v17618_v48  ;;  %15905 = vmatprep.subr.bf16.mxu1 %v17619_v47  ;;  %v6699_v48 = vrot.slane %v6697_v34, 4  ;;  %v7987_v2 = vrot.slane %v7985_v56, 5  ;;  %v7992_v59 = vrot.slane %v7990_v44, 4  ;;  %v7995_v24 = vrot.slane %v7993_v16, 5 }
 0x5a4   : >> { %16033 = vmatprep.subr.bf16.mxu0 %v17620_v58  ;;  %15891 = vmatprep.mubr.bf16.mxu1 %v20202_v14  ;;  %v6692_v20 = vor.u32 %v6691_v32, %v6688_v60  ;;  %v7788_v34 = vrot.slane %v20292_v25, 4  ;;  %v8007_v60 = vshrl.u32 %v7971_v36, 16  ;;  %v8010_v32 = vshll.u32 %v7971_v36, 16 }
 0x5a5   : >> { %16019 = vmatprep.mubr.bf16.mxu0 %v20209_v0  ;;  %v6700_v49 = vor.u32 %v6699_v48, %v6696_v52  ;;  %v17638_v52 = vld [vmem:[%s21655_s5 + $0xb0] sm:$0xff]   ;;  %v8033_v48 = vshrl.u32 %v20082_v8, 16  ;;  %v8041_v16 = vshrl.u32 %v7973_v40, 16  ;;  %v8044_v36 = vshll.u32 %v7973_v40, 16 }
 0x5a6   : >> { %15906 = vmatpush3.bf16.msra.mxu1 %v17619_v47  ;;  %v7999_v47 = vshrl.u32 %v20046_v19, 16  ;;  %v17635_v19 = vld [vmem:[%s21655_s5 + $0x1a8] sm:$0xff]  }
 0x5a7   : >> { %16034 = vmatpush3.bf16.msra.mxu0 %v17620_v58  ;;  %15907 = vmatprep.subr.bf16.mxu1 %v17621_v57  ;;  %v6701_v28 = vsel %vm1323_vm4, %v6692_v20, %v6700_v49  ;;  %v7982_v58 = vshrl.u32 %v20268_v33, 16  ;;  %v8050_v20 = vshrl.u32 %v20111_v35, 16 }
 0x5a8   : >> { %16035 = vmatprep.subr.bf16.mxu0 %v17622_v61 }
 0x5a9   : >> { %15892 = vmatmul.mubr.bf16.gmra.mrb[12].mxu1 %v20223_v42  ;;  %v7984_v37 = vrot.slane %v7982_v58, 4 }
 0x5aa   : >> { %16020 = vmatmul.mubr.bf16.gmra.mrb[12].mxu0 %v20226_v11  ;;  %15908 = vmatpush3.bf16.msra.mxu1 %v17621_v57  ;;  %v17636_v57 = vld [vmem:[%s21655_s5 + $0xa8] sm:$0xff]  }
 0x5ab   : >> { %16036 = vmatpush3.bf16.msra.mxu0 %v17622_v61  ;;  %15909 = vmatprep.subr.bf16.mxu1 %v17623_v1  ;;  %v7789_v61 = vrot.slane %v20289_v5, 4  ;;  %v7988_v49 = vor.u32 %v7987_v2, %v7984_v37 }
 0x5ac   : >> { %16037 = vmatprep.subr.bf16.mxu0 %v17624_v63  ;;  %15911 = vmatprep.mubr.bf16.mxu1 %v6701_v28  ;;  %v8053_v28 = vshll.u32 %v20111_v35, 16  ;;  %v17640_v35 = vld [vmem:[%s21655_s5 + $0xb8] sm:$0xff]  }
 0x5ad   : >> { %16039 = vmatprep.mubr.bf16.mxu0 %v20108_v55 }
 0x5ae   : >> { %15910 = vmatpush3.bf16.msra.mxu1 %v17623_v1  ;;  %v8036_v1 = vshll.u32 %v20082_v8, 16  ;;  %v7790_v8 = vsel %vm1002_vm1, %v7788_v34, %v7789_v61  ;;  %v20333_v58 = vrot.slane %v8053_v28, 5  ;;  %v8084_v34 = vshrl.u32 %v20150_v6, 16 }
 0x5af   : >> { %16038 = vmatpush3.bf16.msra.mxu0 %v17624_v63  ;;  %15927 = vmatprep.subr.bf16.mxu1 %v17625_v9  ;;  %v7996_v63 = vor.u32 %v7995_v24, %v7992_v59  ;;  %v8070_v59 = vshll.u32 %v20130_v27, 16  ;;  %v7975_v24 = vld [vmem:[%s20041_s15 + $0x58] sm:$0x1f] }
 0x5b0   : >> { %16055 = vmatprep.subr.bf16.mxu0 %v17626_v31 }
 0x5b1   : >> { %15912 = vmatmul.mubr.bf16.vlgmr.msra.gmra.mrb[0].mxu1 %v20072_v39  ;;  %v17631_v39 = vld [vmem:[%s21655_s5 + $0x198] sm:$0xff]  }
 0x5b2   : >> { %16040 = vmatmul.mubr.bf16.vlgmr.msra.gmra.mrb[0].mxu0 %v20118_v10  ;;  %15928 = vmatpush3.bf16.msra.mxu1 %v17625_v9  ;;  %v8067_v9 = vshrl.u32 %v20130_v27, 16  ;;  %v17644_v27 = vld [vmem:[%s21655_s5 + $0x148] sm:$0xff]  }
 0x5b3   : >> { %16056 = vmatpush3.bf16.msra.mxu0 %v17626_v31  ;;  %15929 = vmatprep.subr.bf16.mxu1 %v17627_v7  ;;  %v8001_v31 = vrot.slane %v7999_v47, 4  ;;  %v8021_v47 = vrot.slane %v8019_v12, 5  ;;  %v17641_v12 = vld [vmem:[%s21655_s5 + $0x40] sm:$0xff]  }
 0x5b4   : >> { %16057 = vmatprep.subr.bf16.mxu0 %v17628_v21  ;;  %15915 = vmatprep.mubr.bf16.mxu1 %v20099_v29 }
 0x5b5   : >> { %16043 = vmatprep.mubr.bf16.mxu0 %v20153_v26 }
 0x5b6   : >> { %15930 = vmatpush3.bf16.msra.mxu1 %v17627_v7  ;;  %v8004_v7 = vrot.slane %v8002_v50, 5  ;;  %v20325_v50 = vrot.slane %v8033_v48, 4  ;;  %v8046_v48 = vrot.slane %v8044_v36, 5 }
 0x5b7   : >> { %16058 = vmatpush3.bf16.msra.mxu0 %v17628_v21  ;;  %15931 = vmatprep.subr.bf16.mxu1 %v17629_v4  ;;  %v8024_v21 = vshrl.u32 %v7972_v53, 16 }
 0x5b8   : >> { %16059 = vmatprep.subr.bf16.mxu0 %v17630_v45  ;;  %v8005_v37 = vor.u32 %v8004_v7, %v8001_v31  ;;  %v7976_v31 = vld [vmem:[%s20041_s15 + $0x68] sm:$0x1f]  ;;  %v17645_v7 = vld [vmem:[%s21655_s5 + $0x50] sm:$0xff]  }
 0x5b9   : >> { %15916 = vmatmul.mubr.bf16.gmra.mrb[4].mxu1 %v20115_v43  ;;  %v8026_v56 = vrot.slane %v8024_v21, 4 }
 0x5ba   : >> { %16044 = vmatmul.mubr.bf16.gmra.mrb[4].mxu0 %v20169_v17  ;;  %15932 = vmatpush3.bf16.msra.mxu1 %v17629_v4  ;;  %v8027_v4 = vshll.u32 %v7972_v53, 16 }
 0x5bb   : >> { %16060 = vmatpush3.bf16.msra.mxu0 %v17630_v45  ;;  %15933 = vmatprep.subr.bf16.mxu1 %v17631_v39  ;;  %v8009_v45 = vrot.slane %v8007_v60, 4 }
 0x5bc   : >> { %16061 = vmatprep.subr.bf16.mxu0 %v17632_v46  ;;  %15919 = vmatprep.mubr.bf16.mxu1 %v20133_v51  ;;  %v8029_v44 = vrot.slane %v8027_v4, 5  ;;  %v8072_v4 = vrot.slane %v8070_v59, 5  ;;  %v8101_v59 = vshrl.u32 %v20176_v13, 16 }
 0x5bd   : >> { %16047 = vmatprep.mubr.bf16.mxu0 %v20191_v23 }
 0x5be   : >> { %15934 = vmatpush3.bf16.msra.mxu1 %v17631_v39  ;;  %v8012_v39 = vrot.slane %v8010_v32, 5  ;;  %v17643_v32 = vld [vmem:[%s21655_s5 + $0x48] sm:$0xff]   ;;  %v8030_v53 = vor.u32 %v8029_v44, %v8026_v56  ;;  %v7977_v56 = vld [vmem:[%s20041_s15 + $0x78] sm:$0x1f] }
 0x5bf   : >> { %16062 = vmatpush3.bf16.msra.mxu0 %v17632_v46  ;;  %15935 = vmatprep.subr.bf16.mxu1 %v17633_v15  ;;  %v8018_v46 = vrot.slane %v8016_v22, 4  ;;  %v20335_v22 = vrot.slane %v8067_v9, 4 }
 0x5c0   : >> { %16063 = vmatprep.subr.bf16.mxu0 %v17634_v41  ;;  %v8013_v2 = vor.u32 %v8012_v39, %v8009_v45  ;;  %v8087_v39 = vshll.u32 %v20150_v6, 16  ;;  %v17647_v6 = vld [vmem:[%s21655_s5 + $0x58] sm:$0xff]  }
 0x5c1   : >> { %15920 = vmatmul.mubr.bf16.gmra.mrb[8].mxu1 %v20161_v18 }
 0x5c2   : >> { %16048 = vmatmul.mubr.bf16.gmra.mrb[8].mxu0 %v20209_v0  ;;  %15936 = vmatpush3.bf16.msra.mxu1 %v17633_v15  ;;  %v20327_v15 = vrot.slane %v8036_v1, 5  ;;  %v20355_v1 = vsel %vm2599_vm5, %v8005_v37, %v8013_v2 }
 0x5c3   : >> { %16064 = vmatpush3.bf16.msra.mxu0 %v17634_v41  ;;  %15937 = vmatprep.subr.bf16.mxu1 %v17635_v19  ;;  %v7997_v41 = vsel %vm2599_vm5, %v7988_v49, %v7996_v63  ;;  %v8078_v49 = vshll.u32 %v7975_v24, 16 }
 0x5c4   : >> { %16065 = vmatprep.subr.bf16.mxu0 %v17636_v57  ;;  %15923 = vmatprep.mubr.bf16.mxu1 %v20185_v54  ;;  %v8039_v21 = vor.u32 %v20327_v15, %v20325_v50  ;;  %v6682_v50 = vld [vmem:[%s20041_s15 + $0x90] sm:$0xf8]  ;;  %v17648_v15 = vld [vmem:[%s21655_s5 + $0x158] sm:$0xff]  }
 0x5c5   : >> { %16051 = vmatprep.mubr.bf16.mxu0 %v20226_v11  ;;  %v17639_v11 = vld [vmem:[%s21655_s5 + $0x1b8] sm:$0xff]   ;;  %v8080_v45 = vrot.slane %v8078_v49, 5  ;;  %v7171_v36 = vshrl.u32 %v6682_v50, 16 }
 0x5c6   : >> { %15938 = vmatpush3.bf16.msra.mxu1 %v17635_v19  ;;  %v20331_v19 = vrot.slane %v8050_v20, 4  ;;  %v8075_v20 = vshrl.u32 %v7975_v24, 16  ;;  %v8109_v24 = vshrl.u32 %v7977_v56, 16 }
 0x5c7   : >> { %16066 = vmatpush3.bf16.msra.mxu0 %v17636_v57  ;;  %15939 = vmatprep.subr.bf16.mxu1 %v17637_v62  ;;  %v7974_v57 = vld [vmem:[%s20041_s15 + $0x48] sm:$0x1f] }
 0x5c8   : >> { %16067 = vmatprep.subr.bf16.mxu0 %v17638_v52  ;;  %v8058_v61 = vshrl.u32 %v7974_v57, 16  ;;  %v8061_v60 = vshll.u32 %v7974_v57, 16  ;;  %v7174_v57 = vshll.u32 %v6682_v50, 16  ;;  %v8307_v50 = vshll.u32 %v20197_v38, 16 }
 0x5c9   : >> { %15924 = vmatmul.mubr.bf16.gmra.mrb[12].mxu1 %v20202_v14 }
 0x5ca   : >> { %16052 = vmatmul.mubr.bf16.gmra.mrb[12].mxu0 %v7790_v8  ;;  %15940 = vmatpush3.bf16.msra.mxu1 %v17637_v62  ;;  %v17642_v62 = vld [vmem:[%s21655_s5 + $0x140] sm:$0xff]   ;;  %v8060_v63 = vrot.slane %v8058_v61, 4  ;;  %v8063_v28 = vrot.slane %v8061_v60, 5  ;;  %v17646_v8 = vld [vmem:[%s21655_s5 + $0x150] sm:$0xff]   ;;  %v7173_v60 = vrot.slane %v7171_v36, 3  ;;  %v17664_v36 = vld [vmem:[%s21655_s5 + $0x238] sm:$0xff]  }
 0x5cb   : >> { %16068 = vmatpush3.bf16.msra.mxu0 %v17638_v52  ;;  %15941 = vmatprep.subr.bf16.mxu1 %v17639_v11  ;;  %v8043_v52 = vrot.slane %v8041_v16, 4  ;;  %v8089_v16 = vrot.slane %v8087_v39, 5  ;;  %v17650_v61 = vld [vmem:[%s21655_s5 + $0x160] sm:$0xff]  }
 0x5cc   : >> { %16069 = vmatprep.subr.bf16.mxu0 %v17640_v35  ;;  %15943 = vmatprep.mubr.bf16.mxu1 %v20099_v29  ;;  %v8022_v29 = vor.u32 %v8021_v47, %v8018_v46  ;;  %v8056_v46 = vor.u32 %v20333_v58, %v20331_v19  ;;  %v8064_v40 = vor.u32 %v8063_v28, %v8060_v63  ;;  %v8095_v47 = vshll.u32 %v7976_v31, 16  ;;  %v17652_v63 = vld [vmem:[%s21655_s5 + $0x168] sm:$0xff]  }
 0x5cd   : >> { %16071 = vmatprep.mubr.bf16.mxu0 %v7997_v41  ;;  %v8073_v41 = vor.u32 %v8072_v4, %v20335_v22  ;;  %v8086_v19 = vrot.slane %v8084_v34, 4  ;;  %v7179_v58 = vshrl.u32 %v20289_v5, 16  ;;  %v7182_v22 = vshll.u32 %v20289_v5, 16 }
 0x5ce   : >> { %15942 = vmatpush3.bf16.msra.mxu1 %v17639_v11  ;;  %v20360_v9 = vsel %vm2599_vm5, %v8022_v29, %v8030_v53  ;;  %v8077_v11 = vrot.slane %v8075_v20, 4  ;;  %v20391_v44 = vsel %vm2599_vm5, %v8056_v46, %v8064_v40  ;;  %v8097_v2 = vrot.slane %v8095_v47, 5  ;;  %v17656_v46 = vld [vmem:[%s21655_s5 + $0x178] sm:$0xff]   ;;  %v17658_v40 = vld [vmem:[%s21655_s5 + $0x208] sm:$0xff]  }
 0x5cf   : >> { %16070 = vmatpush3.bf16.msra.mxu0 %v17640_v35  ;;  %15959 = vmatprep.subr.bf16.mxu1 %v17641_v12  ;;  %v8092_v35 = vshrl.u32 %v7976_v31, 16  ;;  %v8112_v34 = vshll.u32 %v7977_v56, 16  ;;  %v8090_v5 = vor.u32 %v8089_v16, %v8086_v19  ;;  %v7184_v53 = vrot.slane %v7182_v22, 4  ;;  %v17663_v16 = vld [vmem:[%s21655_s5 + $0x230] sm:$0xff]  }
 0x5d0   : >> { %16087 = vmatprep.subr.bf16.mxu0 %v17642_v62  ;;  %v8111_v20 = vrot.slane %v8109_v24, 4  ;;  %v8304_v47 = vshrl.u32 %v20197_v38, 16  ;;  %v8309_v19 = vrot.slane %v8307_v50, 5 }
 0x5d1   : >> { %15944 = vmatmul.mubr.bf16.vlgmr.msra.gmra.mrb[0].mxu1 %v20115_v43  ;;  %v8047_v43 = vor.u32 %v8046_v48, %v8043_v52  ;;  %v8094_v37 = vrot.slane %v8092_v35, 4  ;;  %v8103_v52 = vrot.slane %v8101_v59, 4  ;;  %v8114_v49 = vrot.slane %v8112_v34, 5  ;;  %v7978_v35 = vld [vmem:[%s20041_s15 + $0x88] sm:$0x1f] }
 0x5d2   : >> { %16072 = vmatmul.mubr.bf16.vlgmr.msra.gmra.mrb[0].mxu0 %v20355_v1  ;;  %15960 = vmatpush3.bf16.msra.mxu1 %v17641_v12  ;;  %v8081_v12 = vor.u32 %v8080_v45, %v8077_v11  ;;  %v7393_v11 = vrot.slane %v20213_v30, 4 }
 0x5d3   : >> { %16088 = vmatpush3.bf16.msra.mxu0 %v17642_v62  ;;  %15961 = vmatprep.subr.bf16.mxu1 %v17643_v32  ;;  %v8104_v62 = vshll.u32 %v20176_v13, 16  ;;  %v8098_v29 = vor.u32 %v8097_v2, %v8094_v37  ;;  %v7176_v13 = vrot.slane %v7174_v57, 4  ;;  %v8115_v4 = vor.u32 %v8114_v49, %v8111_v20  ;;  %v7979_v57 = vld [vmem:[%s20041_s15 + $0x98] sm:$0x1f] }
 0x5d4   : >> { %16089 = vmatprep.subr.bf16.mxu0 %v17644_v27  ;;  %15947 = vmatprep.mubr.bf16.mxu1 %v20133_v51  ;;  %v20378_v51 = vsel %vm2599_vm5, %v8039_v21, %v8047_v43  ;;  %v17653_v21 = vld [vmem:[%s21655_s5 + $0x70] sm:$0xff]   ;;  %v8508_v37 = vshrl.u32 %v7979_v57, 16  ;;  %v8511_v2 = vshll.u32 %v7979_v57, 16 }
 0x5d5   : >> { %16075 = vmatprep.mubr.bf16.mxu0 %v20360_v9  ;;  %v8106_v48 = vrot.slane %v8104_v62, 5  ;;  %v20417_v28 = vsel %vm2599_vm5, %v8090_v5, %v8098_v29  ;;  %v7177_v31 = vor.u32 %v7176_v13, %v7173_v60 }
 0x5d6   : >> { %15962 = vmatpush3.bf16.msra.mxu1 %v17643_v32  ;;  %v7181_v32 = vrot.slane %v7179_v58, 3  ;;  %v8510_v59 = vrot.slane %v8508_v37, 4 }
 0x5d7   : >> { %16090 = vmatpush3.bf16.msra.mxu0 %v17644_v27  ;;  %15963 = vmatprep.subr.bf16.mxu1 %v17645_v7  ;;  %v20406_v27 = vsel %vm2599_vm5, %v8073_v41, %v8081_v12  ;;  %v8107_v43 = vor.u32 %v8106_v48, %v8103_v52  ;;  %v8306_v41 = vrot.slane %v8304_v47, 4  ;;  %v8500_v12 = vshrl.u32 %v20292_v25, 16 }
 0x5d8   : >> { %16091 = vmatprep.subr.bf16.mxu0 %v17646_v8 }
 0x5d9   : >> { %15948 = vmatmul.mubr.bf16.gmra.mrb[4].mxu1 %v20161_v18  ;;  %v17649_v18 = vld [vmem:[%s21655_s5 + $0x60] sm:$0xff]   ;;  %v20431_v39 = vsel %vm2599_vm5, %v8107_v43, %v8115_v4  ;;  %v8502_v22 = vrot.slane %v8500_v12, 4 }
 0x5da   : >> { %16076 = vmatmul.mubr.bf16.gmra.mrb[4].mxu0 %v20378_v51  ;;  %15964 = vmatpush3.bf16.msra.mxu1 %v17645_v7  ;;  %v7185_v7 = vor.u32 %v7184_v53, %v7181_v32 }
 0x5db   : >> { %16092 = vmatpush3.bf16.msra.mxu0 %v17646_v8  ;;  %15965 = vmatprep.subr.bf16.mxu1 %v17647_v6  ;;  %v7392_v8 = vrot.slane %v20268_v33, 4  ;;  %v17657_v33 = vld [vmem:[%s21655_s5 + $0x200] sm:$0xff]  }
 0x5dc   : >> { %16093 = vmatprep.subr.bf16.mxu0 %v17648_v15  ;;  %15951 = vmatprep.mubr.bf16.mxu1 %v20185_v54  ;;  %v17651_v54 = vld [vmem:[%s21655_s5 + $0x68] sm:$0xff]   ;;  %v7186_v45 = vsel %vm1323_vm4, %v7177_v31, %v7185_v7 }
 0x5dd   : >> { %16079 = vmatprep.mubr.bf16.mxu0 %v20391_v44  ;;  %v7394_v30 = vsel %vm1002_vm1, %v7392_v8, %v7393_v11 }
 0x5de   : >> { %15966 = vmatpush3.bf16.msra.mxu1 %v17647_v6  ;;  %v8312_v6 = vshrl.u32 %v7978_v35, 16 }
 0x5df   : >> { %16094 = vmatpush3.bf16.msra.mxu0 %v17648_v15  ;;  %15967 = vmatprep.subr.bf16.mxu1 %v17649_v18  ;;  %v8315_v15 = vshll.u32 %v7978_v35, 16 }
 0x5e0   : >> { %16095 = vmatprep.subr.bf16.mxu0 %v17650_v61  ;;  %v8314_v58 = vrot.slane %v8312_v6, 4 }
 0x5e1   : >> { %15952 = vmatmul.mubr.bf16.gmra.mrb[8].mxu1 %v20202_v14  ;;  %v17654_v14 = vld [vmem:[%s21655_s5 + $0x170] sm:$0xff]   ;;  %v8317_v56 = vrot.slane %v8315_v15, 5 }
 0x5e2   : >> { %16080 = vmatmul.mubr.bf16.gmra.mrb[8].mxu0 %v20406_v27  ;;  %15968 = vmatpush3.bf16.msra.mxu1 %v17649_v18 }
 0x5e3   : >> { %16096 = vmatpush3.bf16.msra.mxu0 %v17650_v61  ;;  %15969 = vmatprep.subr.bf16.mxu1 %v17651_v54  ;;  %v8318_v38 = vor.u32 %v8317_v56, %v8314_v58 }
 0x5e4   : >> { %16097 = vmatprep.subr.bf16.mxu0 %v17652_v63  ;;  %15955 = vmatprep.mubr.bf16.mxu1 %v20223_v42  ;;  %v17655_v42 = vld [vmem:[%s21655_s5 + $0x78] sm:$0xff]  }
 0x5e5   : >> { %16083 = vmatprep.mubr.bf16.mxu0 %v20417_v28 }
 0x5e6   : >> { %15970 = vmatpush3.bf16.msra.mxu1 %v17651_v54 }
 0x5e7   : >> { %16098 = vmatpush3.bf16.msra.mxu0 %v17652_v63  ;;  %15971 = vmatprep.subr.bf16.mxu1 %v17653_v21 }
 0x5e8   : >> { %16099 = vmatprep.subr.bf16.mxu0 %v17654_v14 }
 0x5e9   : >> { %15956 = vmatmul.mubr.bf16.gmra.mrb[12].mxu1 %v7186_v45 }
 0x5ea   : >> { %16084 = vmatmul.mubr.bf16.gmra.mrb[12].mxu0 %v20431_v39  ;;  %15972 = vmatpush3.bf16.msra.mxu1 %v17653_v21 }
 0x5eb   : >> { %16100 = vmatpush3.bf16.msra.mxu0 %v17654_v14  ;;  %15973 = vmatprep.subr.bf16.mxu1 %v17655_v42 }
 0x5ec   : >> { %16101 = vmatprep.subr.bf16.mxu0 %v17656_v46  ;;  %15975 = vmatprep.mubr.bf16.mxu1 %v7394_v30 }
 0x5ed   : >> { %16103 = vmatprep.mubr.bf16.mxu0 %v20355_v1  ;;  %v17659_v1 = vld [vmem:[%s21655_s5 + $0x210] sm:$0xff]  }
 0x5ee   : >> { %15974 = vmatpush3.bf16.msra.mxu1 %v17655_v42 }
 0x5ef   : >> { %16102 = vmatpush3.bf16.msra.mxu0 %v17656_v46  ;;  %16991 = vmatprep.subr.bf16.mxu1 %v17657_v33 }
 0x5f0   : >> { %16119 = vmatprep.subr.bf16.mxu0 %v17657_v33 }
 0x5f1   : >> { %15976 = vmatmul.mubr.bf16.vlgmr.msra.gmra.mrb[0].mxu1 %v20057_v3  ;;  %v17660_v3 = vld [vmem:[%s21655_s5 + $0x218] sm:$0xff]  }
 0x5f2   : >> { %16104 = vmatmul.mubr.bf16.vlgmr.msra.gmra.mrb[0].mxu0 %v20360_v9  ;;  %16999 = vmatpush3.bf16.msra.mxu1 %v17657_v33 }
 0x5f3   : >> { %16120 = vmatpush3.bf16.msra.mxu0 %v17657_v33  ;;  %16992 = vmatprep.subr.bf16.mxu1 %v17658_v40  ;;  %v20508_v33 = vld [vmem:[%s21656_s6] ss:$0 sm:$0xff] }
 0x5f4   : >> { %16121 = vmatprep.subr.bf16.mxu0 %v17658_v40  ;;  %15979 = vmatprep.mubr.bf16.mxu1 %v20108_v55  ;;  %v17661_v55 = vld [vmem:[%s21655_s5 + $0x220] sm:$0xff]  }
 0x5f5   : >> { %16107 = vmatprep.mubr.bf16.mxu0 %v20378_v51 }
 0x5f6   : >> { %17000 = vmatpush3.bf16.msra.mxu1 %v17658_v40 }
 0x5f7   : >> { %16122 = vmatpush3.bf16.msra.mxu0 %v17658_v40  ;;  %16993 = vmatprep.subr.bf16.mxu1 %v17659_v1 }
 0x5f8   : >> { %16123 = vmatprep.subr.bf16.mxu0 %v17659_v1 }
 0x5f9   : >> { %15980 = vmatmul.mubr.bf16.gmra.mrb[4].mxu1 %v20118_v10  ;;  %v17662_v10 = vld [vmem:[%s21655_s5 + $0x228] sm:$0xff]  }
 0x5fa   : >> { %16108 = vmatmul.mubr.bf16.gmra.mrb[4].mxu0 %v20391_v44  ;;  %17001 = vmatpush3.bf16.msra.mxu1 %v17659_v1 }
 0x5fb   : >> { %16124 = vmatpush3.bf16.msra.mxu0 %v17659_v1  ;;  %16994 = vmatprep.subr.bf16.mxu1 %v17660_v3 }
 0x5fc   : >> { %16125 = vmatprep.subr.bf16.mxu0 %v17660_v3  ;;  %15983 = vmatprep.mubr.bf16.mxu1 %v20153_v26  ;;  %v8310_v26 = vor.u32 %v8309_v19, %v8306_v41 }
 0x5fd   : >> { %16111 = vmatprep.mubr.bf16.mxu0 %v20406_v27 }
 0x5fe   : >> { %17002 = vmatpush3.bf16.msra.mxu1 %v17660_v3 }
 0x5ff   : >> { %16126 = vmatpush3.bf16.msra.mxu0 %v17660_v3  ;;  %16995 = vmatprep.subr.bf16.mxu1 %v17661_v55 }
 0x600   : >> { %16127 = vmatprep.subr.bf16.mxu0 %v17661_v55 }
 0x601   : >> { %15984 = vmatmul.mubr.bf16.gmra.mrb[8].mxu1 %v20169_v17  ;;  %v8319_v17 = vsel %vm2599_vm5, %v8310_v26, %v8318_v38 }
 0x602   : >> { %16112 = vmatmul.mubr.bf16.gmra.mrb[8].mxu0 %v20417_v28  ;;  %17003 = vmatpush3.bf16.msra.mxu1 %v17661_v55 }
 0x603   : >> { %16128 = vmatpush3.bf16.msra.mxu0 %v17661_v55  ;;  %16996 = vmatprep.subr.bf16.mxu1 %v17662_v10 }
 0x604   : >> { %16129 = vmatprep.subr.bf16.mxu0 %v17662_v10  ;;  %15987 = vmatprep.mubr.bf16.mxu1 %v20191_v23  ;;  %v8503_v23 = vshll.u32 %v20292_v25, 16 }
 0x605   : >> { %16115 = vmatprep.mubr.bf16.mxu0 %v20431_v39 }
 0x606   : >> { %17004 = vmatpush3.bf16.msra.mxu1 %v17662_v10  ;;  %v8505_v18 = vrot.slane %v8503_v23, 5 }
 0x607   : >> { %16130 = vmatpush3.bf16.msra.mxu0 %v17662_v10  ;;  %16997 = vmatprep.subr.bf16.mxu1 %v17663_v16 }
 0x608   : >> { %16131 = vmatprep.subr.bf16.mxu0 %v17663_v16  ;;  %v8506_v25 = vor.u32 %v8505_v18, %v8502_v22 }
 0x609   : >> { %15988 = vmatmul.mubr.bf16.gmra.mrb[12].mxu1 %v20209_v0  ;;  %v8513_v0 = vrot.slane %v8511_v2, 5 }
 0x60a   : >> { %16116 = vmatmul.mubr.bf16.gmra.mrb[12].mxu0 %v8319_v17  ;;  %17005 = vmatpush3.bf16.msra.mxu1 %v17663_v16 }
 0x60b   : >> { %16132 = vmatpush3.bf16.msra.mxu0 %v17663_v16  ;;  %16998 = vmatprep.subr.bf16.mxu1 %v17664_v36  ;;  %v8514_v62 = vor.u32 %v8513_v0, %v8510_v59 }
 0x60c   : >> { %16133 = vmatprep.subr.bf16.mxu0 %v17664_v36  ;;  %16135 = vmatprep.mubr.bf16.mxu0 %v20360_v9 }
 0x60d   : >> { %16143 = vmatprep.mubr.bf16.mxu1 %v20417_v28  ;;  %v8515_v24 = vsel %vm2599_vm5, %v8506_v25, %v8514_v62 }
 0x60e   : >> { %17006 = vmatpush3.bf16.msra.mxu1 %v17664_v36 }
 0x60f   : >> { %16134 = vmatpush3.bf16.msra.mxu0 %v17664_v36 }
 0x611   : >> { %16144 = vmatmul.mubr.bf16.vlgmr.msra.gmra.mrb[16].mxu1 %v20431_v39 }
 0x612   : >> { %16136 = vmatmul.mubr.bf16.vlgmr.msra.gmra.mrb[0].mxu0 %v20378_v51  ;;  %16147 = vmatprep.mubr.bf16.mxu1 %v8319_v17 }
 0x613   : >> { %16139 = vmatprep.mubr.bf16.mxu0 %v20391_v44 }
 0x619   : >> { %16148 = vmatmul.mubr.bf16.gmra.mrb[20].mxu1 %v8515_v24 }
 0x61a   : >> { %16140 = vmatmul.mubr.bf16.gmra.mrb[4].mxu0 %v20406_v27 }
 0x6c4   : >> { %v15977_v9 = vpop.f32.mrb[0].mxu1 }
 0x6c5   : >> { %v7523_v34 = vpop.f32.mrb[1].mxu1 }
 0x6c6   : >> { %v15978_v61 = vpop.f32.mrb[2].mxu1 }
 0x6c7   : >> { %v7526_v5 = vpop.f32.mrb[3].mxu1 }
 0x6cc   : >> { %v20493_v60 = vpop.f32.mrb[4].mxu1 }
 0x6cd   : >> { %v20495_v32 = vpop.f32.mrb[5].mxu1 }
 0x6ce   : >> { %v20497_v29 = vpop.f32.mrb[6].mxu1 }
 0x6cf   : >> { %v20499_v51 = vpop.f32.mrb[7].mxu1 }
 0x6d4   : >> { %v15985_v13 = vpop.f32.mrb[8].mxu1 }
 0x6d5   : >> { %v16113_v53 = vpop.f32.mrb[8].mxu0  ;;  %v7555_v44 = vpop.f32.mrb[9].mxu1 }
 0x6d6   : >> { %v17015_v54 = vadd.f32 %v16113_v53, %v15985_v13  ;;  %v8452_v52 = vpop.f32.mrb[9].mxu0  ;;  %v15986_v48 = vpop.f32.mrb[10].mxu1 }
 0x6d7   : >> { %v17017_v20 = vadd.f32 %v8452_v52, %v7555_v44  ;;  %v16114_v27 = vpop.f32.mrb[10].mxu0  ;;  %v7558_v49 = vpop.f32.mrb[11].mxu1 }
 0x6d8   : >> { %v17019_v63 = vadd.f32 %v16114_v27, %v15986_v48  ;;  %v8455_v28 = vpop.f32.mrb[11].mxu0 }
 0x6d9   : >> { %v17021_v31 = vadd.f32 %v8455_v28, %v7558_v49 }
 0x6dc   : >> { %v15989_v7 = vpop.f32.mrb[12].mxu1 }
 0x6dd   : >> { %v16117_v21 = vpop.f32.mrb[12].mxu0  ;;  %v7571_v43 = vpop.f32.mrb[13].mxu1 }
 0x6de   : >> { %v17023_v4 = vadd.f32 %v16117_v21, %v15989_v7  ;;  %v8468_v14 = vpop.f32.mrb[13].mxu0  ;;  %v15990_v8 = vpop.f32.mrb[14].mxu1 }
 0x6df   : >> { %v17025_v11 = vadd.f32 %v8468_v14, %v7571_v43  ;;  %v16118_v45 = vpop.f32.mrb[14].mxu0  ;;  %v7574_v39 = vpop.f32.mrb[15].mxu1 }
 0x6e0   : >> { %v20501_v42 = vadd.f32 %v16118_v45, %v15990_v8  ;;  %v8471_v46 = vpop.f32.mrb[15].mxu0 }
 0x6e1   : >> { %v20503_v30 = vadd.f32 %v8471_v46, %v7574_v39 }
 0x6e4   : >> { %v16145_v40 = vpop.f32.mrb[16].mxu1 }
 0x6e5   : >> { %v16137_v1 = vpop.f32.mrb[0].mxu0  ;;  %v17016_v3 = vadd.f32 %v17015_v54, %v16145_v40  ;;  %v8648_v35 = vpop.f32.mrb[17].mxu1 }
 0x6e6   : >> { %v17007_v55 = vadd.f32 %v16137_v1, %v15977_v9  ;;  %v8616_v47 = vpop.f32.mrb[1].mxu0  ;;  %v17018_v50 = vadd.f32 %v17017_v20, %v8648_v35  ;;  %v16146_v6 = vpop.f32.mrb[18].mxu1 }
 0x6e7   : >> { %v8712_v15 = vadd.f32 %v17016_v3, %v20508_v33  ;;  %v17008_v10 = vadd.f32 %v8616_v47, %v7523_v34  ;;  %v16138_v41 = vpop.f32.mrb[2].mxu0  ;;  %v17020_v19 = vadd.f32 %v17019_v63, %v16146_v6  ;;  %v8651_v58 = vpop.f32.mrb[19].mxu1 }
 0x6e8   : >> { %v8704_v56 = vadd.f32 %v17007_v55, %v20508_v33  ;;  %v8710_v26 = vadd.f32 %v17018_v50, %v20508_v33  ;;  %v17009_v38 = vadd.f32 %v16138_v41, %v15978_v61  ;;  %v8619_v16 = vpop.f32.mrb[3].mxu0  ;;  %v17022_v17 = vadd.f32 %v17021_v31, %v8651_v58 }
 0x6e9   : >> { %v8702_v36 = vadd.f32 %v17008_v10, %v20508_v33  ;;  %v8713_v57 = vadd.f32 %v17020_v19, %v20508_v33  ;;  %v17010_v12 = vadd.f32 %v8619_v16, %v7526_v5  ;;  %v8728_v2 = vmax.f32 %v8712_v15, 0.0 }
 0x6ea   : >> { %v8705_v23 = vadd.f32 %v17009_v38, %v20508_v33  ;;  %v8711_v37 = vadd.f32 %v17022_v17, %v20508_v33  ;;  %v8720_v59 = vmax.f32 %v8704_v56, 0.0  ;;  %v8726_v0 = vmax.f32 %v8710_v26, 0.0 }
 0x6eb   : >> { %v8729_v22 = vmax.f32 %v8713_v57, 0.0  ;;  %v8703_v18 = vadd.f32 %v17010_v12, %v20508_v33  ;;  %v8718_v9 = vmax.f32 %v8702_v36, 0.0 }
 0x6ec   : >> { %v8721_v25 = vmax.f32 %v8705_v23, 0.0  ;;  %v8727_v62 = vmax.f32 %v8711_v37, 0.0  ;;  %v16149_v24 = vpop.f32.mrb[20].mxu1 }
 0x6ed   : >> { %v8739_v34 = vpack.c.bf16 %v8729_v22, %v8728_v2  ;;  %v8719_v61 = vmax.f32 %v8703_v18, 0.0  ;;  %v16141_v13 = vpop.f32.mrb[4].mxu0  ;;  %v17024_v53 = vadd.f32 %v17023_v4, %v16149_v24  ;;  %v8664_v5 = vpop.f32.mrb[21].mxu1 }
 0x6ee   : >> { %v8735_v44 = vpack.c.bf16 %v8721_v25, %v8720_v59  ;;  %v8738_v54 = vpack.c.bf16 %v8727_v62, %v8726_v0  ;;  %v17011_v52 = vadd.f32 %v16141_v13, %v20493_v60  ;;  %v8632_v48 = vpop.f32.mrb[5].mxu0  ;;  %v17026_v20 = vadd.f32 %v17025_v11, %v8664_v5  ;;  %v16150_v27 = vpop.f32.mrb[22].mxu1 }
 0x6ef   : >> { %v8756_v49 = vrot.slane %v8739_v34, 4  ;;  %v8734_v63 = vpack.c.bf16 %v8719_v61, %v8718_v9  ;;  %v17012_v28 = vadd.f32 %v8632_v48, %v20495_v32  ;;  %v16142_v31 = vpop.f32.mrb[6].mxu0  ;;  %v8667_v7 = vpop.f32.mrb[23].mxu1  ;;  %v8716_v32 = vadd.f32 %v17024_v53, %v20508_v33 }
 0x6f0   : >> { %v8752_v21 = vrot.slane %v8735_v44, 4  ;;  %v8755_v43 = vrot.slane %v8738_v54, 4  ;;  %v8635_v14 = vpop.f32.mrb[7].mxu0  ;;  %v8708_v4 = vadd.f32 %v17011_v52, %v20508_v33  ;;  %v17013_v8 = vadd.f32 %v16142_v31, %v20497_v29 }
 0x6f1   : >> { %13794 = vst [vmem:[%s20522_s17 + $0x68] ss:$-4 sps:$4 sm:$0xff] %v8756_v49   ;;  %v8751_v60 = vrot.slane %v8734_v63, 4  ;;  %v8706_v11 = vadd.f32 %v17012_v28, %v20508_v33  ;;  %v17028_v45 = vadd.f32 %v20501_v42, %v16150_v27  ;;  %v17014_v39 = vadd.f32 %v8635_v14, %v20499_v51 }
 0x6f2   : >> { %13786 = vst [vmem:[%s20522_s17 + $0x28] ss:$-4 sps:$4 sm:$0xff] %v8752_v21   ;;  %13792 = vst [vmem:[%s20522_s17 + $0x58] ss:$-4 sps:$4 sm:$0xff] %v8755_v43   ;;  %v8714_v46 = vadd.f32 %v17026_v20, %v20508_v33  ;;  %v8709_v40 = vadd.f32 %v17013_v8, %v20508_v33  ;;  %v17030_v1 = vadd.f32 %v20503_v30, %v8667_v7  ;;  %v8724_v35 = vmax.f32 %v8708_v4, 0.0 }
 0x6f3   : >> { %13784 = vst [vmem:[%s20522_s17 + $0x18] ss:$-4 sps:$4 sm:$0xff] %v8751_v60   ;;  %v8717_v3 = vadd.f32 %v17028_v45, %v20508_v33  ;;  %v8707_v29 = vadd.f32 %v17014_v39, %v20508_v33  ;;  %v8732_v42 = vmax.f32 %v8716_v32, 0.0  ;;  %v8722_v51 = vmax.f32 %v8706_v11, 0.0 }
 0x6f4   : >> { %v8725_v55 = vmax.f32 %v8709_v40, 0.0  ;;  %v8715_v47 = vadd.f32 %v17030_v1, %v20508_v33  ;;  %v8730_v15 = vmax.f32 %v8714_v46, 0.0 }
 0x6f5   : >> { %v8733_v50 = vmax.f32 %v8717_v3, 0.0  ;;  %v8723_v6 = vmax.f32 %v8707_v29, 0.0 }
 0x6f6   : >> { %v8737_v10 = vpack.c.bf16 %v8725_v55, %v8724_v35  ;;  %v8731_v41 = vmax.f32 %v8715_v47, 0.0  ;;  %6658 = sbr.rel (!%p6656_p13) target bundleno = 1392 (0x570), region = 215 }
 0x6f7   : >> { %v8741_v30 = vpack.c.bf16 %v8733_v50, %v8732_v42  ;;  %v8736_v19 = vpack.c.bf16 %v8723_v6, %v8722_v51 }
 0x6f8   : >> { %v8754_v58 = vrot.slane %v8737_v10, 4  ;;  %v8740_v56 = vpack.c.bf16 %v8731_v41, %v8730_v15 }
 0x6f9   : >> { %v8758_v26 = vrot.slane %v8741_v30, 4  ;;  %v8753_v38 = vrot.slane %v8736_v19, 4 }
 0x6fa   : >> { %13790 = vst [vmem:[%s20522_s17 + $0x48] ss:$-4 sps:$4 sm:$0xff] %v8754_v58   ;;  %v8757_v16 = vrot.slane %v8740_v56, 4 }
 0x6fb   : >> { %13798 = vst [vmem:[%s20522_s17 + $0x88] ss:$-4 sps:$4 sm:$0xff] %v8758_v26   ;;  %13788 = vst [vmem:[%s20522_s17 + $0x38] ss:$-4 sps:$4 sm:$0xff] %v8753_v38  }
 0x6fc   : >> { %13796 = vst [vmem:[%s20522_s17 + $0x78] ss:$-4 sps:$4 sm:$0xff] %v8757_v16  }
 0x6fd LB: >> { %v17665_v33 = vld [vmem:[%s21657_s7 + $0xc0] sm:$0xff]   ;;  %v17667_v36 = vld [vmem:[%s21657_s7 + $0xc8] sm:$0xff]   ;;  %v17669_v12 = vld [vmem:[%s21657_s7 + $0xd0] sm:$0xff]   ;;  %s14288_s14 = sshll.u32 %s17920_s0, 7  ;;  %s8791_s0 = sadd.s32 1, %s17920_s0   ;;  %s17920_s0 = sphi %s20547_s0, %s8791_s0  }
 0x6fe   : >> { %v17666_v17 = vld [vmem:[%s21657_s7 + $0x100] sm:$0xff]   ;;  %16151 = vmatprep.subr.bf16.mxu1 %v17665_v33  ;;  %v17668_v57 = vld [vmem:[%s21657_s7 + $0x108] sm:$0xff]   ;;  %v17670_v23 = vld [vmem:[%s21657_s7 + $0x110] sm:$0xff]   ;;  %s20591_s30 = scalar_lea.vmem [#allocation5], %s14288_s14  ;;  %s21072_s20 = scalar_lea.vmem [#allocation4], %s14288_s14 }
 0x6ff   : >> { %16279 = vmatprep.subr.bf16.mxu0 %v17666_v17  ;;  %16152 = vmatpush3.bf16.msra.mxu1 %v17665_v33  ;;  %v17671_v37 = vld [vmem:[%s21657_s7 + $0xd8] sm:$0xff]   ;;  %v17673_v22 = vld [vmem:[%s21657_s7 + $0xe0] sm:$0xff]   ;;  %v17675_v59 = vld [vmem:[%s21657_s7 + $0xe8] sm:$0xff]   ;;  %p8788_p0 = scmp.ge.s32.totalorder %s8791_s0, 2  }
 0x700   : >> { %16280 = vmatpush3.bf16.msra.mxu0 %v17666_v17  ;;  %16153 = vmatprep.subr.bf16.mxu1 %v17667_v36  ;;  %v17672_v2 = vld [vmem:[%s21657_s7 + $0x118] sm:$0xff]   ;;  %v17674_v18 = vld [vmem:[%s21657_s7 + $0x120] sm:$0xff]   ;;  %v17676_v0 = vld [vmem:[%s21657_s7 + $0x128] sm:$0xff]   ;;  %vm10980_vm6 = vcmask (%p8788_p0), 523264   ;;  %vm11337_vm7 = vsmask.f32 (%p8788_p0), 256 }
 0x701   : >> { %16281 = vmatprep.subr.bf16.mxu0 %v17668_v57  ;;  %v17677_v49 = vld [vmem:[%s21657_s7 + $0xf0] sm:$0xff]   ;;  %v17679_v8 = vld [vmem:[%s21657_s7 + $0xf8] sm:$0xff]   ;;  %v17681_v6 = vld [vmem:[%s21657_s7] sm:$0xff]   ;;  %vm11338_vm8 = vsmask.f32 (%p8788_p0), 4368  ;;  %s12997_s15 = sshll.u32 (%p8788_p0), %s18621_s16, 4  ;;  %s21599_s15 = int_to_ptr.vmem [resolvable:$true] %s12997_s15 }
 0x702   : >> { %v17678_v31 = vld [vmem:[%s21657_s7 + $0x130] sm:$0xff]   ;;  %v17680_v46 = vld [vmem:[%s21657_s7 + $0x138] sm:$0xff]   ;;  %v17682_v30 = vld [vmem:[%s21657_s7 + $0x1c0] sm:$0xff]   ;;  %vm12368_vm10 = vsmask.f32 (%p8788_p0), 7440  ;;  %s17826_s21 = scalar_lea.vmem (%p8788_p0), %s21599_s15, 1024 }
 0x703   : >> { %16154 = vmatpush3.bf16.msra.mxu1 %v17667_v36  ;;  %v8798_v25 = vld [vmem:[%s20591_s30 + $0x10] sm:$0xf8]  ;;  %v8799_v62 = vld [vmem:[%s20591_s30 + $0x18] sm:$0xf]  ;;  %v8800_v53 = vld [vmem:[%s20591_s30 + $0x20] sm:$0xf8]  ;;  %p17827_p1 = scmp.ne.s32.totalorder (%p8788_p0), %s21599_s15, %s17826_s21 }
 0x704   : >> { %16282 = vmatpush3.bf16.msra.mxu0 %v17668_v57  ;;  %16155 = vmatprep.subr.bf16.mxu1 %v17669_v12  ;;  %v20596_v24 = vld [vmem:[%s20591_s30 + $0x10] sm:$0xf0]  ;;  %v8835_v9 = vshrl.u32 %v8798_v25, 16  ;;  %v8838_v34 = vshll.u32 %v8798_v25, 16  ;;  %v8843_v61 = vshrl.u32 %v8799_v62, 16  ;;  %v8846_v13 = vshll.u32 %v8799_v62, 16  ;;  %vm21238_vm9 = vmor (%p8788_p0), %vm11337_vm7, %vm11338_vm8 }
 0x705   : >> { %16283 = vmatprep.subr.bf16.mxu0 %v17670_v23  ;;  %v9527_v5 = vrot.slane %v20596_v24, 4  ;;  %v9528_v44 = vrot.slane %v8799_v62, 4  ;;  %v20601_v54 = vld [vmem:[%s20591_s30 + $0x28] sm:$0xf]  ;;  %v8852_v28 = vshrl.u32 %v8800_v53, 16  ;;  %v8855_v43 = vshll.u32 %v8800_v53, 16  ;;  %vm21383_vm11 = vmor (%p8788_p0), %vm2599_vm5, %vm12368_vm10  ;;  %p17828_p2 = pnand (%p8788_p0), %p17827_p1, %p18034_p5 }
 0x706   : >> { %v8837_v52 = vrot.slane %v8835_v9, 3  ;;  %v8840_v48 = vrot.slane %v8838_v34, 4  ;;  %v8845_v20 = vrot.slane %v8843_v61, 3  ;;  %v8848_v27 = vrot.slane %v8846_v13, 4  ;;  %v20616_v4 = vld [vmem:[%s20591_s30 + $0x20] sm:$0xf0] }
 0x707   : >> { %16156 = vmatpush3.bf16.msra.mxu1 %v17669_v12  ;;  %v20607_v63 = vsel %vm1002_vm1, %v9527_v5, %v9528_v44  ;;  %v8860_v14 = vshrl.u32 %v20601_v54, 16  ;;  %v8863_v60 = vshll.u32 %v20601_v54, 16  ;;  %v8854_v11 = vrot.slane %v8852_v28, 3  ;;  %v8802_v1 = vld [vmem:[%s20591_s30 + $0x30] sm:$0xf8]  ;;  %p17829_p3 = pneg (%p8788_p0), %p17828_p2  ;;  %s17923_s27 = smov (%p8788_p0), [#allocation7]  }
 0x708   : >> { %16284 = vmatpush3.bf16.msra.mxu0 %v17670_v23  ;;  %16157 = vmatprep.subr.bf16.mxu1 %v17671_v37  ;;  %v8841_v7 = vor.u32 %v8840_v48, %v8837_v52  ;;  %v8849_v21 = vor.u32 %v8848_v27, %v8845_v20  ;;  %v8857_v45 = vrot.slane %v8855_v43, 4  ;;  %v8803_v3 = vld [vmem:[%s20591_s30 + $0x38] sm:$0xf]  ;;  %v9530_v29 = vrot.slane %v20616_v4, 4  ;;  %v20632_v42 = vld [vmem:[%s20591_s30 + $0x30] sm:$0xf0] }
 0x709   : >> { %16285 = vmatprep.subr.bf16.mxu0 %v17672_v2  ;;  %16295 = vmatprep.mubr.bf16.mxu0 %v20607_v63  ;;  %v8862_v39 = vrot.slane %v8860_v14, 3  ;;  %v8865_v40 = vrot.slane %v8863_v60, 4  ;;  %v8869_v35 = vshrl.u32 %v8802_v1, 16  ;;  %v8872_v55 = vshll.u32 %v8802_v1, 16  ;;  %v8804_v41 = vld [vmem:[%s20591_s30 + $0x40] sm:$0xf8] }
 0x70a   : >> { %v20622_v32 = vsel %vm1323_vm4, %v8841_v7, %v8849_v21  ;;  %v8877_v47 = vshrl.u32 %v8803_v3, 16  ;;  %v8858_v51 = vor.u32 %v8857_v45, %v8854_v11  ;;  %v9531_v15 = vrot.slane %v20601_v54, 4  ;;  %v20643_v26 = vld [vmem:[%s20591_s30 + $0x48] sm:$0xf]  ;;  %v20661_v34 = vld [vmem:[%s20591_s30 + $0x40] sm:$0xf0] }
 0x70b   : >> { %16158 = vmatpush3.bf16.msra.mxu1 %v17671_v37  ;;  %16167 = vmatprep.mubr.bf16.mxu1 %v20622_v32  ;;  %v8866_v50 = vor.u32 %v8865_v40, %v8862_v39  ;;  %v8880_v10 = vshll.u32 %v8803_v3, 16  ;;  %v8871_v19 = vrot.slane %v8869_v35, 3  ;;  %v8874_v58 = vrot.slane %v8872_v55, 4  ;;  %v17685_v44 = vld [vmem:[%s21657_s7 + $0x10] sm:$0xff]   ;;  %v8807_v52 = vld [vmem:[%s20591_s30 + $0x58] sm:$0xf] }
 0x70c   : >> { %16286 = vmatpush3.bf16.msra.mxu0 %v17672_v2  ;;  %16159 = vmatprep.subr.bf16.mxu1 %v17673_v22  ;;  %v8879_v56 = vrot.slane %v8877_v47, 3  ;;  %v9533_v16 = vrot.slane %v20632_v42, 4  ;;  %v8886_v33 = vshrl.u32 %v8804_v41, 16  ;;  %v8889_v17 = vshll.u32 %v8804_v41, 16  ;;  %v17683_v2 = vld [vmem:[%s21657_s7 + $0x8] sm:$0xff]   ;;  %v17686_v48 = vld [vmem:[%s21657_s7 + $0x1d0] sm:$0xff]  }
 0x70d   : >> { %16287 = vmatprep.subr.bf16.mxu0 %v17674_v18  ;;  %v8882_v38 = vrot.slane %v8880_v10, 4  ;;  %v8875_v36 = vor.u32 %v8874_v58, %v8871_v19  ;;  %v9534_v57 = vrot.slane %v8803_v3, 4  ;;  %v8894_v12 = vshrl.u32 %v20643_v26, 16  ;;  %v8806_v54 = vld [vmem:[%s20591_s30 + $0x50] sm:$0xf8]  ;;  %s17830_s23 = sshll.u32 (%p8788_p0), %s17923_s27, 4  ;;  %s17831_s23 = int_to_ptr.vmem [resolvable:$false] %s17830_s23 }
 0x70e   : >> { %v8897_v23 = vshll.u32 %v20643_v26, 16  ;;  %v20649_v37 = vsel %vm1323_vm4, %v8858_v51, %v8866_v50  ;;  %v20658_v25 = vsel %vm1002_vm1, %v9530_v29, %v9531_v15  ;;  %v8903_v20 = vshrl.u32 %v8806_v54, 16  ;;  %v8808_v14 = vld [vmem:[%s20591_s30 + $0x60] sm:$0xf8]  ;;  %v20689_v60 = vld [vmem:[%s20591_s30 + $0x68] sm:$0xf]  ;;  %p17833_p4 = scmp.lt.s32.totalorder (%p8788_p0), %s21599_s15, %s17831_s23 }
 0x70f   : >> { %16160 = vmatpush3.bf16.msra.mxu1 %v17673_v22  ;;  %v17684_v22 = vld [vmem:[%s21657_s7 + $0x1c8] sm:$0xff]   ;;  %v8896_v62 = vrot.slane %v8894_v12, 3  ;;  %v20668_v53 = vsel %vm1002_vm1, %v9533_v16, %v9534_v57  ;;  %v8906_v27 = vshll.u32 %v8806_v54, 16  ;;  %v8914_v28 = vshll.u32 %v8807_v52, 16  ;;  %v20700_v50 = vld [vmem:[%s20591_s30 + $0x60] sm:$0xf0] }
 0x710   : >> { %16288 = vmatpush3.bf16.msra.mxu0 %v17674_v18  ;;  %16161 = vmatprep.subr.bf16.mxu1 %v17675_v59  ;;  %v8883_v18 = vor.u32 %v8882_v38, %v8879_v56  ;;  %v8899_v9 = vrot.slane %v8897_v23, 4  ;;  %v9536_v21 = vrot.slane %v20661_v34, 4  ;;  %v9537_v43 = vrot.slane %v20643_v26, 4  ;;  %v17688_v15 = vld [vmem:[%s21657_s7 + $0x1d8] sm:$0xff]   ;;  %v17689_v38 = vld [vmem:[%s21657_s7 + $0x20] sm:$0xff]   ;;  %s17832_s22 = scalar_lea.vmem (%p8788_p0), %s17831_s23, 2048 }
 0x711   : >> { %16289 = vmatprep.subr.bf16.mxu0 %v17676_v0  ;;  %v8908_v11 = vrot.slane %v8906_v27, 4  ;;  %v8916_v39 = vrot.slane %v8914_v28, 4  ;;  %v8920_v1 = vshrl.u32 %v8808_v14, 16  ;;  %v8923_v3 = vshll.u32 %v8808_v14, 16  ;;  %v8810_v16 = vld [vmem:[%s20591_s30 + $0x70] sm:$0xf8]  ;;  %p17834_p7 = scmp.lt.s32.totalorder (%p8788_p0), %s17832_s22, %s17826_s21 }
 0x712   : >> { %v20665_v13 = vsel %vm1323_vm4, %v8875_v36, %v8883_v18  ;;  %v8900_v5 = vor.u32 %v8899_v9, %v8896_v62  ;;  %v8928_v29 = vshrl.u32 %v20689_v60, 16  ;;  %v9540_v47 = vrot.slane %v8807_v52, 4  ;;  %v17690_v36 = vld [vmem:[%s21657_s7 + $0x1e0] sm:$0xff]   ;;  %v8811_v57 = vld [vmem:[%s20591_s30 + $0x78] sm:$0xf] }
 0x713   : >> { %16162 = vmatpush3.bf16.msra.mxu1 %v17675_v59  ;;  %v8888_v59 = vrot.slane %v8886_v33, 3  ;;  %v8931_v51 = vshll.u32 %v20689_v60, 16  ;;  %v8922_v10 = vrot.slane %v8920_v1, 3  ;;  %v8925_v41 = vrot.slane %v8923_v3, 4  ;;  %v8812_v62 = vld [vmem:[%s20591_s30 + $0x80] sm:$0xf8]  ;;  %p17835_p8 = por (%p8788_p0), %p17834_p7, %p17833_p4 }
 0x714   : >> { %16290 = vmatpush3.bf16.msra.mxu0 %v17676_v0  ;;  %16163 = vmatprep.subr.bf16.mxu1 %v17677_v49  ;;  %v8891_v0 = vrot.slane %v8889_v17, 4  ;;  %v9543_v58 = vrot.slane %v20689_v60, 4  ;;  %v8937_v12 = vshrl.u32 %v8810_v16, 16  ;;  %v8940_v23 = vshll.u32 %v8810_v16, 16 }
 0x715   : >> { %16291 = vmatprep.subr.bf16.mxu0 %v17678_v31  ;;  %v8933_v19 = vrot.slane %v8931_v51, 4  ;;  %v8926_v26 = vor.u32 %v8925_v41, %v8922_v10  ;;  %v8945_v18 = vshrl.u32 %v8811_v57, 16  ;;  %v8978_v54 = vshrl.u32 %v8812_v62, 16  ;;  %v20763_v10 = vld [vmem:[%s20591_s30 + $0x8] sm:$0xf]  ;;  %p17836_p9 = pnand (%p8788_p0), %p17835_p8, %p17829_p3 }
 0x716   : >> { %v8892_v61 = vor.u32 %v8891_v0, %v8888_v59  ;;  %v8948_v59 = vshll.u32 %v8811_v57, 16  ;;  %v8939_v9 = vrot.slane %v8937_v12, 3  ;;  %v8981_v27 = vshll.u32 %v8812_v62, 16  ;;  %v17697_v62 = vld [vmem:[%s21657_s7 + $0x180] sm:$0xff]  }
 0x717   : >> { %16164 = vmatpush3.bf16.msra.mxu1 %v17677_v49  ;;  %v8911_v49 = vshrl.u32 %v8807_v52, 16 }
 0x718   : >> { %16292 = vmatpush3.bf16.msra.mxu0 %v17678_v31  ;;  %16165 = vmatprep.subr.bf16.mxu1 %v17679_v8  ;;  %v20680_v31 = vld [vmem:[%s20591_s30 + $0x50] sm:$0xf0]  ;;  %v20683_v7 = vsel %vm1323_vm4, %v8892_v61, %v8900_v5  ;;  %v8942_v61 = vrot.slane %v8940_v23, 4  ;;  %v9546_v5 = vrot.slane %v8811_v57, 4  ;;  %v17695_v23 = vld [vmem:[%s21657_s7 + $0x38] sm:$0xff]  }
 0x719   : >> { %16293 = vmatprep.subr.bf16.mxu0 %v17680_v46  ;;  %v8913_v45 = vrot.slane %v8911_v49, 3  ;;  %v9539_v40 = vrot.slane %v20680_v31, 4  ;;  %v17691_v49 = vld [vmem:[%s21657_s7 + $0x28] sm:$0xff]  }
 0x71a   : >> { %v8943_v28 = vor.u32 %v8942_v61, %v8939_v9  ;;  %v17698_v9 = vld [vmem:[%s21657_s7 + $0x80] sm:$0xff]   ;;  %v17699_v61 = vld [vmem:[%s21657_s7 + $0x188] sm:$0xff]  }
 0x71b   : >> { %16166 = vmatpush3.bf16.msra.mxu1 %v17679_v8  ;;  %v8905_v8 = vrot.slane %v8903_v20, 3  ;;  %v8917_v55 = vor.u32 %v8916_v39, %v8913_v45  ;;  %v20719_v33 = vsel %vm1002_vm1, %v9539_v40, %v9540_v47  ;;  %v8950_v20 = vrot.slane %v8948_v59, 4  ;;  %v20747_v39 = vld [vmem:[%s20591_s30 + $0x80] sm:$0xf0]  ;;  %v17696_v59 = vld [vmem:[%s21657_s7 + $0x1f8] sm:$0xff]  }
 0x71c   : >> { %16294 = vmatpush3.bf16.msra.mxu0 %v17680_v46  ;;  %16183 = vmatprep.subr.bf16.mxu1 %v17681_v6  ;;  %v17687_v46 = vld [vmem:[%s21657_s7 + $0x18] sm:$0xff]   ;;  %v8983_v45 = vrot.slane %v8981_v27, 4  ;;  %v9736_v1 = vrot.slane %v20747_v39, 4  ;;  %v10102_v27 = vld [vmem:[%s20591_s30 + $0x8] sm:$0x1f] }
 0x71d   : >> { %16311 = vmatprep.subr.bf16.mxu0 %v17682_v30  ;;  %v8909_v35 = vor.u32 %v8908_v11, %v8905_v8  ;;  %v17692_v8 = vld [vmem:[%s21657_s7 + $0x1e8] sm:$0xff]  }
 0x71e   : >> { %16168 = vmatmul.mubr.bf16.vlgmr.msra.gmra.mrb[0].mxu1 %v20649_v37 }
 0x71f   : >> { %16296 = vmatmul.mubr.bf16.vlgmr.msra.gmra.mrb[0].mxu0 %v20658_v25  ;;  %16184 = vmatpush3.bf16.msra.mxu1 %v17681_v6  ;;  %v20703_v6 = vsel %vm1002_vm1, %v9536_v21, %v9537_v43  ;;  %v20711_v56 = vsel %vm1323_vm4, %v8909_v35, %v8917_v55  ;;  %v8980_v21 = vrot.slane %v8978_v54, 3  ;;  %v17693_v35 = vld [vmem:[%s21657_s7 + $0x30] sm:$0xff]  }
 0x720   : >> { %16312 = vmatpush3.bf16.msra.mxu0 %v17682_v30  ;;  %16185 = vmatprep.subr.bf16.mxu1 %v17683_v2  ;;  %v8930_v30 = vrot.slane %v8928_v29, 3  ;;  %v17702_v54 = vld [vmem:[%s21657_s7 + $0x90] sm:$0xff]  }
 0x721   : >> { %16313 = vmatprep.subr.bf16.mxu0 %v17684_v22  ;;  %16171 = vmatprep.mubr.bf16.mxu1 %v20665_v13  ;;  %v8984_v47 = vor.u32 %v8983_v45, %v8980_v21  ;;  %v17705_v21 = vld [vmem:[%s21657_s7 + $0x1a0] sm:$0xff]   ;;  %v10122_v45 = vshrl.u32 %v10102_v27, 16 }
 0x722   : >> { %16299 = vmatprep.mubr.bf16.mxu0 %v20668_v53  ;;  %v8934_v17 = vor.u32 %v8933_v19, %v8930_v30  ;;  %v8826_v19 = vshrl.u32 %v20763_v10, 16 }
 0x723   : >> { %16186 = vmatpush3.bf16.msra.mxu1 %v17683_v2  ;;  %v20726_v2 = vld [vmem:[%s20591_s30 + $0x70] sm:$0xf0] }
 0x724   : >> { %16314 = vmatpush3.bf16.msra.mxu0 %v17684_v22  ;;  %16187 = vmatprep.subr.bf16.mxu1 %v17685_v44  ;;  %v9542_v22 = vrot.slane %v20700_v50, 4  ;;  %v9545_v0 = vrot.slane %v20726_v2, 4  ;;  %v20735_v52 = vsel %vm1323_vm4, %v8926_v26, %v8934_v17  ;;  %v17694_v26 = vld [vmem:[%s21657_s7 + $0x1f0] sm:$0xff]   ;;  %v8828_v17 = vrot.slane %v8826_v19, 3 }
 0x725   : >> { %16315 = vmatprep.subr.bf16.mxu0 %v17686_v48 }
 0x726   : >> { %16172 = vmatmul.mubr.bf16.gmra.mrb[4].mxu1 %v20683_v7  ;;  %v20741_v60 = vsel %vm1002_vm1, %v9542_v22, %v9543_v58  ;;  %v20759_v55 = vsel %vm1002_vm1, %v9545_v0, %v9546_v5  ;;  %v8829_v58 = vshll.u32 %v20763_v10, 16  ;;  %v17700_v5 = vld [vmem:[%s21657_s7 + $0x88] sm:$0xff]  }
 0x727   : >> { %16300 = vmatmul.mubr.bf16.gmra.mrb[4].mxu0 %v20703_v6  ;;  %16188 = vmatpush3.bf16.msra.mxu1 %v17685_v44  ;;  %v8813_v44 = vld [vmem:[%s20591_s30 + $0x88] sm:$0xf] }
 0x728   : >> { %16316 = vmatpush3.bf16.msra.mxu0 %v17686_v48  ;;  %16189 = vmatprep.subr.bf16.mxu1 %v17687_v46  ;;  %v8947_v48 = vrot.slane %v8945_v18, 3  ;;  %v8986_v43 = vshrl.u32 %v8813_v44, 16  ;;  %v8989_v14 = vshll.u32 %v8813_v44, 16  ;;  %v9737_v3 = vrot.slane %v8813_v44, 4  ;;  %v17701_v44 = vld [vmem:[%s21657_s7 + $0x190] sm:$0xff]  }
 0x729   : >> { %16317 = vmatprep.subr.bf16.mxu0 %v17688_v15  ;;  %16175 = vmatprep.mubr.bf16.mxu1 %v20711_v56 }
 0x72a   : >> { %16303 = vmatprep.mubr.bf16.mxu0 %v20719_v33  ;;  %v8951_v11 = vor.u32 %v8950_v20, %v8947_v48  ;;  %v8991_v40 = vrot.slane %v8989_v14, 4  ;;  %v20776_v12 = vsel %vm1002_vm1, %v9736_v1, %v9737_v3  ;;  %v17704_v48 = vld [vmem:[%s21657_s7 + $0x98] sm:$0xff]   ;;  %v20818_v20 = vld [vmem:[%s20591_s30] sm:$0xf0]  ;;  %v10148_v14 = vshrl.u32 %v20616_v4, 16 }
 0x72b   : >> { %16190 = vmatpush3.bf16.msra.mxu1 %v17687_v46  ;;  %v8988_v46 = vrot.slane %v8986_v43, 3  ;;  %v17706_v43 = vld [vmem:[%s21657_s7 + $0xa0] sm:$0xff]   ;;  %v20842_v1 = vld [vmem:[%s20591_s30 + $0x90] sm:$0xf0]  ;;  %v10103_v3 = vld [vmem:[%s20591_s30 + $0x18] sm:$0x1f] }
 0x72c   : >> { %16318 = vmatpush3.bf16.msra.mxu0 %v17688_v15  ;;  %16191 = vmatprep.subr.bf16.mxu1 %v17689_v38  ;;  %v20752_v29 = vsel %vm1323_vm4, %v8943_v28, %v8951_v11  ;;  %v8796_v15 = vld [vmem:[%s20591_s30] sm:$0xf8]  ;;  %v10134_v28 = vshll.u32 %v20596_v24, 16  ;;  %v10117_v11 = vshll.u32 %v20818_v20, 16 }
 0x72d   : >> { %16319 = vmatprep.subr.bf16.mxu0 %v17690_v36  ;;  %v8992_v51 = vor.u32 %v8991_v40, %v8988_v46  ;;  %v8818_v41 = vshrl.u32 %v8796_v15, 16  ;;  %v8821_v30 = vshll.u32 %v8796_v15, 16  ;;  %v10125_v46 = vshll.u32 %v10102_v27, 16  ;;  %v20839_v40 = vld [vmem:[%s20591_s30 + $0x98] sm:$0xf] }
 0x72e   : >> { %16176 = vmatmul.mubr.bf16.gmra.mrb[8].mxu1 %v20735_v52  ;;  %v10105_v27 = vld [vmem:[%s20591_s30 + $0x38] sm:$0x1f] }
 0x72f   : >> { %16304 = vmatmul.mubr.bf16.gmra.mrb[8].mxu0 %v20741_v60  ;;  %16192 = vmatpush3.bf16.msra.mxu1 %v17689_v38  ;;  %v8820_v38 = vrot.slane %v8818_v41, 3  ;;  %v8823_v16 = vrot.slane %v8821_v30, 4  ;;  %v20773_v57 = vsel %vm1323_vm4, %v8984_v47, %v8992_v51  ;;  %v10151_v47 = vshll.u32 %v20616_v4, 16  ;;  %v17709_v51 = vld [vmem:[%s21657_s7 + $0x1b0] sm:$0xff]   ;;  %v10104_v4 = vld [vmem:[%s20591_s30 + $0x28] sm:$0x1f] }
 0x730   : >> { %16320 = vmatpush3.bf16.msra.mxu0 %v17690_v36  ;;  %16193 = vmatprep.subr.bf16.mxu1 %v17691_v49  ;;  %v8831_v36 = vrot.slane %v8829_v58, 4  ;;  %v10119_v41 = vrot.slane %v10117_v11, 5  ;;  %v10124_v30 = vrot.slane %v10122_v45, 4  ;;  %v10127_v19 = vrot.slane %v10125_v46, 5 }
 0x731   : >> { %16321 = vmatprep.subr.bf16.mxu0 %v17692_v8  ;;  %16179 = vmatprep.mubr.bf16.mxu1 %v20752_v29  ;;  %v8824_v22 = vor.u32 %v8823_v16, %v8820_v38  ;;  %v9920_v58 = vrot.slane %v20842_v1, 4  ;;  %v10139_v38 = vshrl.u32 %v10103_v3, 16  ;;  %v10142_v16 = vshll.u32 %v10103_v3, 16 }
 0x732   : >> { %16307 = vmatprep.mubr.bf16.mxu0 %v20759_v55  ;;  %v8832_v18 = vor.u32 %v8831_v36, %v8828_v17  ;;  %v17710_v17 = vld [vmem:[%s21657_s7 + $0xb0] sm:$0xff]   ;;  %v10165_v36 = vshrl.u32 %v20632_v42, 16  ;;  %v10173_v46 = vshrl.u32 %v10105_v27, 16  ;;  %v10176_v3 = vshll.u32 %v10105_v27, 16 }
 0x733   : >> { %16194 = vmatpush3.bf16.msra.mxu1 %v17691_v49  ;;  %v10131_v49 = vshrl.u32 %v20596_v24, 16  ;;  %v17707_v24 = vld [vmem:[%s21657_s7 + $0x1a8] sm:$0xff]  }
 0x734   : >> { %16322 = vmatpush3.bf16.msra.mxu0 %v17692_v8  ;;  %16195 = vmatprep.subr.bf16.mxu1 %v17693_v35  ;;  %v8833_v0 = vsel %vm1323_vm4, %v8824_v22, %v8832_v18  ;;  %v10114_v8 = vshrl.u32 %v20818_v20, 16  ;;  %v10182_v22 = vshrl.u32 %v20661_v34, 16 }
 0x735   : >> { %16323 = vmatprep.subr.bf16.mxu0 %v17694_v26 }
 0x736   : >> { %16180 = vmatmul.mubr.bf16.gmra.mrb[12].mxu1 %v20773_v57  ;;  %v10116_v15 = vrot.slane %v10114_v8, 4 }
 0x737   : >> { %16308 = vmatmul.mubr.bf16.gmra.mrb[12].mxu0 %v20776_v12  ;;  %16196 = vmatpush3.bf16.msra.mxu1 %v17693_v35  ;;  %v17708_v35 = vld [vmem:[%s21657_s7 + $0xa8] sm:$0xff]  }
 0x738   : >> { %16324 = vmatpush3.bf16.msra.mxu0 %v17694_v26  ;;  %16197 = vmatprep.subr.bf16.mxu1 %v17695_v23  ;;  %v9921_v26 = vrot.slane %v20839_v40, 4  ;;  %v10120_v18 = vor.u32 %v10119_v41, %v10116_v15 }
 0x739   : >> { %16325 = vmatprep.subr.bf16.mxu0 %v17696_v59  ;;  %16199 = vmatprep.mubr.bf16.mxu1 %v8833_v0  ;;  %v10185_v0 = vshll.u32 %v20661_v34, 16  ;;  %v17712_v34 = vld [vmem:[%s21657_s7 + $0xb8] sm:$0xff]  }
 0x73a   : >> { %16327 = vmatprep.mubr.bf16.mxu0 %v20658_v25 }
 0x73b   : >> { %16198 = vmatpush3.bf16.msra.mxu1 %v17695_v23  ;;  %v10168_v23 = vshll.u32 %v20632_v42, 16  ;;  %v9922_v42 = vsel %vm1002_vm1, %v9920_v58, %v9921_v26  ;;  %v20883_v8 = vrot.slane %v10185_v0, 5  ;;  %v10216_v58 = vshrl.u32 %v20700_v50, 16 }
 0x73c   : >> { %16326 = vmatpush3.bf16.msra.mxu0 %v17696_v59  ;;  %16215 = vmatprep.subr.bf16.mxu1 %v17697_v62  ;;  %v10128_v59 = vor.u32 %v10127_v19, %v10124_v30  ;;  %v10202_v30 = vshll.u32 %v20680_v31, 16  ;;  %v10107_v19 = vld [vmem:[%s20591_s30 + $0x58] sm:$0x1f] }
 0x73d   : >> { %16343 = vmatprep.subr.bf16.mxu0 %v17698_v9 }
 0x73e   : >> { %16200 = vmatmul.mubr.bf16.vlgmr.msra.gmra.mrb[0].mxu1 %v20622_v32  ;;  %v17703_v32 = vld [vmem:[%s21657_s7 + $0x198] sm:$0xff]  }
 0x73f   : >> { %16328 = vmatmul.mubr.bf16.vlgmr.msra.gmra.mrb[0].mxu0 %v20668_v53  ;;  %16216 = vmatpush3.bf16.msra.mxu1 %v17697_v62  ;;  %v10199_v62 = vshrl.u32 %v20680_v31, 16  ;;  %v17716_v31 = vld [vmem:[%s21657_s7 + $0x148] sm:$0xff]  }
 0x740   : >> { %16344 = vmatpush3.bf16.msra.mxu0 %v17698_v9  ;;  %16217 = vmatprep.subr.bf16.mxu1 %v17699_v61  ;;  %v10133_v9 = vrot.slane %v10131_v49, 4  ;;  %v10153_v49 = vrot.slane %v10151_v47, 5  ;;  %v17713_v47 = vld [vmem:[%s21657_s7 + $0x40] sm:$0xff]  }
 0x741   : >> { %16345 = vmatprep.subr.bf16.mxu0 %v17700_v5  ;;  %16203 = vmatprep.mubr.bf16.mxu1 %v20649_v37 }
 0x742   : >> { %16331 = vmatprep.mubr.bf16.mxu0 %v20703_v6 }
 0x743   : >> { %16218 = vmatpush3.bf16.msra.mxu1 %v17699_v61  ;;  %v10136_v61 = vrot.slane %v10134_v28, 5  ;;  %v20875_v28 = vrot.slane %v10165_v36, 4  ;;  %v10178_v36 = vrot.slane %v10176_v3, 5 }
 0x744   : >> { %16346 = vmatpush3.bf16.msra.mxu0 %v17700_v5  ;;  %16219 = vmatprep.subr.bf16.mxu1 %v17701_v44  ;;  %v10156_v5 = vshrl.u32 %v10104_v4, 16 }
 0x745   : >> { %16347 = vmatprep.subr.bf16.mxu0 %v17702_v54  ;;  %v10137_v15 = vor.u32 %v10136_v61, %v10133_v9  ;;  %v10108_v9 = vld [vmem:[%s20591_s30 + $0x68] sm:$0x1f]  ;;  %v17717_v61 = vld [vmem:[%s21657_s7 + $0x50] sm:$0xff]  }
 0x746   : >> { %16204 = vmatmul.mubr.bf16.gmra.mrb[4].mxu1 %v20665_v13  ;;  %v10158_v11 = vrot.slane %v10156_v5, 4 }
 0x747   : >> { %16332 = vmatmul.mubr.bf16.gmra.mrb[4].mxu0 %v20719_v33  ;;  %16220 = vmatpush3.bf16.msra.mxu1 %v17701_v44  ;;  %v10159_v44 = vshll.u32 %v10104_v4, 16 }
 0x748   : >> { %16348 = vmatpush3.bf16.msra.mxu0 %v17702_v54  ;;  %16221 = vmatprep.subr.bf16.mxu1 %v17703_v32  ;;  %v10141_v54 = vrot.slane %v10139_v38, 4 }
 0x749   : >> { %16349 = vmatprep.subr.bf16.mxu0 %v17704_v48  ;;  %16207 = vmatprep.mubr.bf16.mxu1 %v20683_v7  ;;  %v10161_v45 = vrot.slane %v10159_v44, 5  ;;  %v10204_v44 = vrot.slane %v10202_v30, 5  ;;  %v10233_v30 = vshrl.u32 %v20726_v2, 16 }
 0x74a   : >> { %16335 = vmatprep.mubr.bf16.mxu0 %v20741_v60 }
 0x74b   : >> { %16222 = vmatpush3.bf16.msra.mxu1 %v17703_v32  ;;  %v10144_v32 = vrot.slane %v10142_v16, 5  ;;  %v17715_v16 = vld [vmem:[%s21657_s7 + $0x48] sm:$0xff]   ;;  %v10162_v4 = vor.u32 %v10161_v45, %v10158_v11  ;;  %v10109_v11 = vld [vmem:[%s20591_s30 + $0x78] sm:$0x1f] }
 0x74c   : >> { %16350 = vmatpush3.bf16.msra.mxu0 %v17704_v48  ;;  %16223 = vmatprep.subr.bf16.mxu1 %v17705_v21  ;;  %v10150_v48 = vrot.slane %v10148_v14, 4  ;;  %v20885_v14 = vrot.slane %v10199_v62, 4 }
 0x74d   : >> { %16351 = vmatprep.subr.bf16.mxu0 %v17706_v43  ;;  %v10145_v41 = vor.u32 %v10144_v32, %v10141_v54  ;;  %v10219_v32 = vshll.u32 %v20700_v50, 16  ;;  %v17719_v50 = vld [vmem:[%s21657_s7 + $0x58] sm:$0xff]  }
 0x74e   : >> { %16208 = vmatmul.mubr.bf16.gmra.mrb[8].mxu1 %v20711_v56 }
 0x74f   : >> { %16336 = vmatmul.mubr.bf16.gmra.mrb[8].mxu0 %v20759_v55  ;;  %16224 = vmatpush3.bf16.msra.mxu1 %v17705_v21  ;;  %v20877_v21 = vrot.slane %v10168_v23, 5  ;;  %v20905_v23 = vsel %vm2599_vm5, %v10137_v15, %v10145_v41 }
 0x750   : >> { %16352 = vmatpush3.bf16.msra.mxu0 %v17706_v43  ;;  %16225 = vmatprep.subr.bf16.mxu1 %v17707_v24  ;;  %v10129_v43 = vsel %vm2599_vm5, %v10120_v18, %v10128_v59  ;;  %v10210_v18 = vshll.u32 %v10107_v19, 16 }
 0x751   : >> { %16353 = vmatprep.subr.bf16.mxu0 %v17708_v35  ;;  %16211 = vmatprep.mubr.bf16.mxu1 %v20735_v52  ;;  %v10171_v5 = vor.u32 %v20877_v21, %v20875_v28  ;;  %v8814_v28 = vld [vmem:[%s20591_s30 + $0x90] sm:$0xf8]  ;;  %v17720_v21 = vld [vmem:[%s21657_s7 + $0x158] sm:$0xff]  }
 0x752   : >> { %16339 = vmatprep.mubr.bf16.mxu0 %v20776_v12  ;;  %v17711_v12 = vld [vmem:[%s21657_s7 + $0x1b8] sm:$0xff]   ;;  %v10212_v54 = vrot.slane %v10210_v18, 5  ;;  %v9303_v3 = vshrl.u32 %v8814_v28, 16 }
 0x753   : >> { %16226 = vmatpush3.bf16.msra.mxu1 %v17707_v24  ;;  %v20881_v24 = vrot.slane %v10182_v22, 4  ;;  %v10207_v22 = vshrl.u32 %v10107_v19, 16  ;;  %v10241_v19 = vshrl.u32 %v10109_v11, 16 }
 0x754   : >> { %16354 = vmatpush3.bf16.msra.mxu0 %v17708_v35  ;;  %16227 = vmatprep.subr.bf16.mxu1 %v17709_v51  ;;  %v10106_v35 = vld [vmem:[%s20591_s30 + $0x48] sm:$0x1f] }
 0x755   : >> { %16355 = vmatprep.subr.bf16.mxu0 %v17710_v17  ;;  %v10190_v26 = vshrl.u32 %v10106_v35, 16  ;;  %v10193_v38 = vshll.u32 %v10106_v35, 16  ;;  %v9306_v35 = vshll.u32 %v8814_v28, 16  ;;  %v10439_v28 = vshll.u32 %v20747_v39, 16 }
 0x756   : >> { %16212 = vmatmul.mubr.bf16.gmra.mrb[12].mxu1 %v20752_v29 }
 0x757   : >> { %16340 = vmatmul.mubr.bf16.gmra.mrb[12].mxu0 %v9922_v42  ;;  %16228 = vmatpush3.bf16.msra.mxu1 %v17709_v51  ;;  %v17714_v51 = vld [vmem:[%s21657_s7 + $0x140] sm:$0xff]   ;;  %v10192_v59 = vrot.slane %v10190_v26, 4  ;;  %v10195_v0 = vrot.slane %v10193_v38, 5  ;;  %v17718_v42 = vld [vmem:[%s21657_s7 + $0x150] sm:$0xff]   ;;  %v9305_v38 = vrot.slane %v9303_v3, 3  ;;  %v17736_v3 = vld [vmem:[%s21657_s7 + $0x238] sm:$0xff]  }
 0x758   : >> { %16356 = vmatpush3.bf16.msra.mxu0 %v17710_v17  ;;  %16229 = vmatprep.subr.bf16.mxu1 %v17711_v12  ;;  %v10175_v17 = vrot.slane %v10173_v46, 4  ;;  %v10221_v46 = vrot.slane %v10219_v32, 5  ;;  %v17722_v26 = vld [vmem:[%s21657_s7 + $0x160] sm:$0xff]  }
 0x759   : >> { %16357 = vmatprep.subr.bf16.mxu0 %v17712_v34  ;;  %16231 = vmatprep.mubr.bf16.mxu1 %v20649_v37  ;;  %v10154_v37 = vor.u32 %v10153_v49, %v10150_v48  ;;  %v10188_v48 = vor.u32 %v20883_v8, %v20881_v24  ;;  %v10196_v27 = vor.u32 %v10195_v0, %v10192_v59  ;;  %v10227_v49 = vshll.u32 %v10108_v9, 16  ;;  %v17724_v59 = vld [vmem:[%s21657_s7 + $0x168] sm:$0xff]  }
 0x75a   : >> { %16359 = vmatprep.mubr.bf16.mxu0 %v10129_v43  ;;  %v10205_v43 = vor.u32 %v10204_v44, %v20885_v14  ;;  %v10218_v24 = vrot.slane %v10216_v58, 4  ;;  %v9311_v8 = vshrl.u32 %v20839_v40, 16  ;;  %v9314_v14 = vshll.u32 %v20839_v40, 16 }
 0x75b   : >> { %16230 = vmatpush3.bf16.msra.mxu1 %v17711_v12  ;;  %v20910_v62 = vsel %vm2599_vm5, %v10154_v37, %v10162_v4  ;;  %v10209_v12 = vrot.slane %v10207_v22, 4  ;;  %v20941_v45 = vsel %vm2599_vm5, %v10188_v48, %v10196_v27  ;;  %v10229_v41 = vrot.slane %v10227_v49, 5  ;;  %v17728_v48 = vld [vmem:[%s21657_s7 + $0x178] sm:$0xff]   ;;  %v17730_v27 = vld [vmem:[%s21657_s7 + $0x208] sm:$0xff]  }
 0x75c   : >> { %16358 = vmatpush3.bf16.msra.mxu0 %v17712_v34  ;;  %16247 = vmatprep.subr.bf16.mxu1 %v17713_v47  ;;  %v10224_v34 = vshrl.u32 %v10108_v9, 16  ;;  %v10244_v58 = vshll.u32 %v10109_v11, 16  ;;  %v10222_v40 = vor.u32 %v10221_v46, %v10218_v24  ;;  %v9316_v4 = vrot.slane %v9314_v14, 4  ;;  %v17735_v46 = vld [vmem:[%s21657_s7 + $0x230] sm:$0xff]  }
 0x75d   : >> { %16375 = vmatprep.subr.bf16.mxu0 %v17714_v51  ;;  %v10243_v22 = vrot.slane %v10241_v19, 4  ;;  %v10436_v49 = vshrl.u32 %v20747_v39, 16  ;;  %v10441_v24 = vrot.slane %v10439_v28, 5 }
 0x75e   : >> { %16232 = vmatmul.mubr.bf16.vlgmr.msra.gmra.mrb[0].mxu1 %v20665_v13  ;;  %v10179_v13 = vor.u32 %v10178_v36, %v10175_v17  ;;  %v10226_v15 = vrot.slane %v10224_v34, 4  ;;  %v10235_v17 = vrot.slane %v10233_v30, 4  ;;  %v10246_v18 = vrot.slane %v10244_v58, 5  ;;  %v10110_v34 = vld [vmem:[%s20591_s30 + $0x88] sm:$0x1f] }
 0x75f   : >> { %16360 = vmatmul.mubr.bf16.vlgmr.msra.gmra.mrb[0].mxu0 %v20905_v23  ;;  %16248 = vmatpush3.bf16.msra.mxu1 %v17713_v47  ;;  %v10213_v47 = vor.u32 %v10212_v54, %v10209_v12  ;;  %v9525_v12 = vrot.slane %v20763_v10, 4 }
 0x760   : >> { %16376 = vmatpush3.bf16.msra.mxu0 %v17714_v51  ;;  %16249 = vmatprep.subr.bf16.mxu1 %v17715_v16  ;;  %v10236_v51 = vshll.u32 %v20726_v2, 16  ;;  %v10230_v37 = vor.u32 %v10229_v41, %v10226_v15  ;;  %v9308_v2 = vrot.slane %v9306_v35, 4  ;;  %v10247_v44 = vor.u32 %v10246_v18, %v10243_v22  ;;  %v10111_v35 = vld [vmem:[%s20591_s30 + $0x98] sm:$0x1f]  ;;  %s14290_s30 = sshll.u32 (%p8788_p0), %s18017_s29, 10  ;;  %s21679_s29 = sand.u32 (%p8788_p0), 1, %s17896_s26  }
 0x761   : >> { %16377 = vmatprep.subr.bf16.mxu0 %v17716_v31  ;;  %16235 = vmatprep.mubr.bf16.mxu1 %v20683_v7  ;;  %v20928_v7 = vsel %vm2599_vm5, %v10171_v5, %v10179_v13  ;;  %v17725_v5 = vld [vmem:[%s21657_s7 + $0x70] sm:$0xff]   ;;  %v10640_v15 = vshrl.u32 %v10111_v35, 16  ;;  %v10643_v41 = vshll.u32 %v10111_v35, 16  ;;  %s21597_s17 = scalar_lea.hbm (%p8788_p0), %s21663_s13, %s14290_s30  ;;  %s21609_s0 = scalar_lea.sflag (%p8788_p0), [#allocation8], %s21679_s29 }
 0x762   : >> { %16363 = vmatprep.mubr.bf16.mxu0 %v20910_v62  ;;  %v10238_v36 = vrot.slane %v10236_v51, 5  ;;  %v20967_v0 = vsel %vm2599_vm5, %v10222_v40, %v10230_v37  ;;  %v9309_v9 = vor.u32 %v9308_v2, %v9305_v38 }
 0x763   : >> { %16250 = vmatpush3.bf16.msra.mxu1 %v17715_v16  ;;  %v9313_v16 = vrot.slane %v9311_v8, 3  ;;  %v10642_v30 = vrot.slane %v10640_v15, 4 }
 0x764   : >> { %16378 = vmatpush3.bf16.msra.mxu0 %v17716_v31  ;;  %16251 = vmatprep.subr.bf16.mxu1 %v17717_v61  ;;  %v20956_v31 = vsel %vm2599_vm5, %v10205_v43, %v10213_v47  ;;  %v10239_v13 = vor.u32 %v10238_v36, %v10235_v17  ;;  %v10438_v43 = vrot.slane %v10436_v49, 4  ;;  %v10632_v47 = vshrl.u32 %v20842_v1, 16 }
 0x765   : >> { %16379 = vmatprep.subr.bf16.mxu0 %v17718_v42 }
 0x766   : >> { %16236 = vmatmul.mubr.bf16.gmra.mrb[4].mxu1 %v20711_v56  ;;  %v17721_v56 = vld [vmem:[%s21657_s7 + $0x60] sm:$0xff]   ;;  %v20981_v32 = vsel %vm2599_vm5, %v10239_v13, %v10247_v44  ;;  %v10634_v14 = vrot.slane %v10632_v47, 4 }
 0x767   : >> { %16364 = vmatmul.mubr.bf16.gmra.mrb[4].mxu0 %v20928_v7  ;;  %16252 = vmatpush3.bf16.msra.mxu1 %v17717_v61  ;;  %v9317_v61 = vor.u32 %v9316_v4, %v9313_v16 }
 0x768   : >> { %16380 = vmatpush3.bf16.msra.mxu0 %v17718_v42  ;;  %16253 = vmatprep.subr.bf16.mxu1 %v17719_v50  ;;  %v9524_v42 = vrot.slane %v20818_v20, 4  ;;  %v17729_v20 = vld [vmem:[%s21657_s7 + $0x200] sm:$0xff]  }
 0x769   : >> { %16381 = vmatprep.subr.bf16.mxu0 %v17720_v21  ;;  %16239 = vmatprep.mubr.bf16.mxu1 %v20735_v52  ;;  %v17723_v52 = vld [vmem:[%s21657_s7 + $0x68] sm:$0xff]   ;;  %v9318_v54 = vsel %vm1323_vm4, %v9309_v9, %v9317_v61 }
 0x76a   : >> { %16367 = vmatprep.mubr.bf16.mxu0 %v20941_v45  ;;  %v9526_v10 = vsel %vm1002_vm1, %v9524_v42, %v9525_v12 }
 0x76b   : >> { %16254 = vmatpush3.bf16.msra.mxu1 %v17719_v50  ;;  %v10444_v50 = vshrl.u32 %v10110_v34, 16 }
 0x76c   : >> { %16382 = vmatpush3.bf16.msra.mxu0 %v17720_v21  ;;  %16255 = vmatprep.subr.bf16.mxu1 %v17721_v56  ;;  %v10447_v21 = vshll.u32 %v10110_v34, 16 }
 0x76d   : >> { %16383 = vmatprep.subr.bf16.mxu0 %v17722_v26  ;;  %v10446_v8 = vrot.slane %v10444_v50, 4 }
 0x76e   : >> { %16240 = vmatmul.mubr.bf16.gmra.mrb[8].mxu1 %v20752_v29  ;;  %v17726_v29 = vld [vmem:[%s21657_s7 + $0x170] sm:$0xff]   ;;  %v10449_v11 = vrot.slane %v10447_v21, 5 }
 0x76f   : >> { %16368 = vmatmul.mubr.bf16.gmra.mrb[8].mxu0 %v20956_v31  ;;  %16256 = vmatpush3.bf16.msra.mxu1 %v17721_v56 }
 0x770   : >> { %16384 = vmatpush3.bf16.msra.mxu0 %v17722_v26  ;;  %16257 = vmatprep.subr.bf16.mxu1 %v17723_v52  ;;  %v10450_v39 = vor.u32 %v10449_v11, %v10446_v8 }
 0x771   : >> { %16385 = vmatprep.subr.bf16.mxu0 %v17724_v59  ;;  %16243 = vmatprep.mubr.bf16.mxu1 %v20773_v57  ;;  %v17727_v57 = vld [vmem:[%s21657_s7 + $0x78] sm:$0xff]  }
 0x772   : >> { %16371 = vmatprep.mubr.bf16.mxu0 %v20967_v0 }
 0x773   : >> { %16258 = vmatpush3.bf16.msra.mxu1 %v17723_v52 }
 0x774   : >> { %16386 = vmatpush3.bf16.msra.mxu0 %v17724_v59  ;;  %16259 = vmatprep.subr.bf16.mxu1 %v17725_v5 }
 0x775   : >> { %16387 = vmatprep.subr.bf16.mxu0 %v17726_v29 }
 0x776   : >> { %16244 = vmatmul.mubr.bf16.gmra.mrb[12].mxu1 %v9318_v54 }
 0x777   : >> { %16372 = vmatmul.mubr.bf16.gmra.mrb[12].mxu0 %v20981_v32  ;;  %16260 = vmatpush3.bf16.msra.mxu1 %v17725_v5 }
 0x778   : >> { %16388 = vmatpush3.bf16.msra.mxu0 %v17726_v29  ;;  %16261 = vmatprep.subr.bf16.mxu1 %v17727_v57 }
 0x779   : >> { %16389 = vmatprep.subr.bf16.mxu0 %v17728_v48  ;;  %16263 = vmatprep.mubr.bf16.mxu1 %v9526_v10 }
 0x77a   : >> { %16391 = vmatprep.mubr.bf16.mxu0 %v20905_v23  ;;  %v17731_v23 = vld [vmem:[%s21657_s7 + $0x210] sm:$0xff]  }
 0x77b   : >> { %16262 = vmatpush3.bf16.msra.mxu1 %v17727_v57 }
 0x77c   : >> { %16390 = vmatpush3.bf16.msra.mxu0 %v17728_v48  ;;  %17135 = vmatprep.subr.bf16.mxu1 %v17729_v20 }
 0x77d   : >> { %16407 = vmatprep.subr.bf16.mxu0 %v17729_v20 }
 0x77e   : >> { %16264 = vmatmul.mubr.bf16.vlgmr.msra.gmra.mrb[0].mxu1 %v20607_v63  ;;  %v17732_v63 = vld [vmem:[%s21657_s7 + $0x218] sm:$0xff]  }
 0x77f   : >> { %16392 = vmatmul.mubr.bf16.vlgmr.msra.gmra.mrb[0].mxu0 %v20910_v62  ;;  %17143 = vmatpush3.bf16.msra.mxu1 %v17729_v20 }
 0x780   : >> { %16408 = vmatpush3.bf16.msra.mxu0 %v17729_v20  ;;  %17136 = vmatprep.subr.bf16.mxu1 %v17730_v27  ;;  %v21058_v20 = vld [vmem:[%s21658_s8] ss:$0 sm:$0xff] }
 0x781   : >> { %16409 = vmatprep.subr.bf16.mxu0 %v17730_v27  ;;  %16267 = vmatprep.mubr.bf16.mxu1 %v20658_v25  ;;  %v17733_v25 = vld [vmem:[%s21657_s7 + $0x220] sm:$0xff]  }
 0x782   : >> { %16395 = vmatprep.mubr.bf16.mxu0 %v20928_v7 }
 0x783   : >> { %17144 = vmatpush3.bf16.msra.mxu1 %v17730_v27 }
 0x784   : >> { %16410 = vmatpush3.bf16.msra.mxu0 %v17730_v27  ;;  %17137 = vmatprep.subr.bf16.mxu1 %v17731_v23 }
 0x785   : >> { %16411 = vmatprep.subr.bf16.mxu0 %v17731_v23 }
 0x786   : >> { %16268 = vmatmul.mubr.bf16.gmra.mrb[4].mxu1 %v20668_v53  ;;  %v17734_v53 = vld [vmem:[%s21657_s7 + $0x228] sm:$0xff]  }
 0x787   : >> { %16396 = vmatmul.mubr.bf16.gmra.mrb[4].mxu0 %v20941_v45  ;;  %17145 = vmatpush3.bf16.msra.mxu1 %v17731_v23 }
 0x788   : >> { %16412 = vmatpush3.bf16.msra.mxu0 %v17731_v23  ;;  %17138 = vmatprep.subr.bf16.mxu1 %v17732_v63 }
 0x789   : >> { %16413 = vmatprep.subr.bf16.mxu0 %v17732_v63  ;;  %16271 = vmatprep.mubr.bf16.mxu1 %v20703_v6  ;;  %v10442_v6 = vor.u32 %v10441_v24, %v10438_v43 }
 0x78a   : >> { %16399 = vmatprep.mubr.bf16.mxu0 %v20956_v31 }
 0x78b   : >> { %17146 = vmatpush3.bf16.msra.mxu1 %v17732_v63 }
 0x78c   : >> { %16414 = vmatpush3.bf16.msra.mxu0 %v17732_v63  ;;  %17139 = vmatprep.subr.bf16.mxu1 %v17733_v25 }
 0x78d   : >> { %16415 = vmatprep.subr.bf16.mxu0 %v17733_v25 }
 0x78e   : >> { %16272 = vmatmul.mubr.bf16.gmra.mrb[8].mxu1 %v20719_v33  ;;  %v10451_v33 = vsel %vm2599_vm5, %v10442_v6, %v10450_v39 }
 0x78f   : >> { %16400 = vmatmul.mubr.bf16.gmra.mrb[8].mxu0 %v20967_v0  ;;  %17147 = vmatpush3.bf16.msra.mxu1 %v17733_v25 }
 0x790   : >> { %16416 = vmatpush3.bf16.msra.mxu0 %v17733_v25  ;;  %17140 = vmatprep.subr.bf16.mxu1 %v17734_v53 }
 0x791   : >> { %16417 = vmatprep.subr.bf16.mxu0 %v17734_v53  ;;  %16275 = vmatprep.mubr.bf16.mxu1 %v20741_v60  ;;  %v10635_v60 = vshll.u32 %v20842_v1, 16 }
 0x792   : >> { %16403 = vmatprep.mubr.bf16.mxu0 %v20981_v32 }
 0x793   : >> { %17148 = vmatpush3.bf16.msra.mxu1 %v17734_v53  ;;  %v10637_v56 = vrot.slane %v10635_v60, 5 }
 0x794   : >> { %16418 = vmatpush3.bf16.msra.mxu0 %v17734_v53  ;;  %17141 = vmatprep.subr.bf16.mxu1 %v17735_v46 }
 0x795   : >> { %16419 = vmatprep.subr.bf16.mxu0 %v17735_v46  ;;  %v10638_v1 = vor.u32 %v10637_v56, %v10634_v14 }
 0x796   : >> { %16276 = vmatmul.mubr.bf16.gmra.mrb[12].mxu1 %v20759_v55  ;;  %v10645_v55 = vrot.slane %v10643_v41, 5 }
 0x797   : >> { %16404 = vmatmul.mubr.bf16.gmra.mrb[12].mxu0 %v10451_v33  ;;  %17149 = vmatpush3.bf16.msra.mxu1 %v17735_v46 }
 0x798   : >> { %16420 = vmatpush3.bf16.msra.mxu0 %v17735_v46  ;;  %17142 = vmatprep.subr.bf16.mxu1 %v17736_v3  ;;  %v10646_v51 = vor.u32 %v10645_v55, %v10642_v30 }
 0x799   : >> { %16421 = vmatprep.subr.bf16.mxu0 %v17736_v3  ;;  %16423 = vmatprep.mubr.bf16.mxu0 %v20910_v62 }
 0x79a   : >> { %16431 = vmatprep.mubr.bf16.mxu1 %v20967_v0  ;;  %v10647_v19 = vsel %vm2599_vm5, %v10638_v1, %v10646_v51 }
 0x79b   : >> { %17150 = vmatpush3.bf16.msra.mxu1 %v17736_v3 }
 0x79c   : >> { %16422 = vmatpush3.bf16.msra.mxu0 %v17736_v3 }
 0x79e   : >> { %16432 = vmatmul.mubr.bf16.vlgmr.msra.gmra.mrb[16].mxu1 %v20981_v32 }
 0x79f   : >> { %16424 = vmatmul.mubr.bf16.vlgmr.msra.gmra.mrb[0].mxu0 %v20928_v7  ;;  %16435 = vmatprep.mubr.bf16.mxu1 %v10451_v33 }
 0x7a0   : >> { %16427 = vmatprep.mubr.bf16.mxu0 %v20941_v45 }
 0x7a6   : >> { %16436 = vmatmul.mubr.bf16.gmra.mrb[20].mxu1 %v10647_v19 }
 0x7a7   : >> { %16428 = vmatmul.mubr.bf16.gmra.mrb[4].mxu0 %v20956_v31 }
 0x851   : >> { %v16265_v62 = vpop.f32.mrb[0].mxu1 }
 0x852   : >> { %v9655_v58 = vpop.f32.mrb[1].mxu1 }
 0x853   : >> { %v16266_v26 = vpop.f32.mrb[2].mxu1 }
 0x854   : >> { %v9658_v40 = vpop.f32.mrb[3].mxu1 }
 0x859   : >> { %v21043_v38 = vpop.f32.mrb[4].mxu1 }
 0x85a   : >> { %v21045_v16 = vpop.f32.mrb[5].mxu1 }
 0x85b   : >> { %v21047_v37 = vpop.f32.mrb[6].mxu1 }
 0x85c   : >> { %v21049_v7 = vpop.f32.mrb[7].mxu1 }
 0x861   : >> { %v16273_v2 = vpop.f32.mrb[8].mxu1 }
 0x862   : >> { %v16401_v4 = vpop.f32.mrb[8].mxu0  ;;  %v9687_v45 = vpop.f32.mrb[9].mxu1 }
 0x863   : >> { %v17159_v52 = vadd.f32 %v16401_v4, %v16273_v2  ;;  %v10584_v17 = vpop.f32.mrb[9].mxu0  ;;  %v16274_v36 = vpop.f32.mrb[10].mxu1 }
 0x864   : >> { %v17161_v22 = vadd.f32 %v10584_v17, %v9687_v45  ;;  %v16402_v31 = vpop.f32.mrb[10].mxu0  ;;  %v9690_v18 = vpop.f32.mrb[11].mxu1 }
 0x865   : >> { %v17163_v59 = vadd.f32 %v16402_v31, %v16274_v36  ;;  %v10587_v0 = vpop.f32.mrb[11].mxu0 }
 0x866   : >> { %v17165_v9 = vadd.f32 %v10587_v0, %v9690_v18 }
 0x869   : >> { %v16277_v61 = vpop.f32.mrb[12].mxu1 }
 0x86a   : >> { %v16405_v5 = vpop.f32.mrb[12].mxu0  ;;  %v9703_v13 = vpop.f32.mrb[13].mxu1 }
 0x86b   : >> { %v17167_v44 = vadd.f32 %v16405_v5, %v16277_v61  ;;  %v10600_v29 = vpop.f32.mrb[13].mxu0  ;;  %v16278_v42 = vpop.f32.mrb[14].mxu1 }
 0x86c   : >> { %v17169_v12 = vadd.f32 %v10600_v29, %v9703_v13  ;;  %v16406_v54 = vpop.f32.mrb[14].mxu0  ;;  %v9706_v32 = vpop.f32.mrb[15].mxu1 }
 0x86d   : >> { %v21051_v57 = vadd.f32 %v16406_v54, %v16278_v42  ;;  %v10603_v48 = vpop.f32.mrb[15].mxu0 }
 0x86e   : >> { %v21053_v10 = vadd.f32 %v10603_v48, %v9706_v32 }
 0x871   : >> { %v16433_v27 = vpop.f32.mrb[16].mxu1 }
 0x872   : >> { %v16425_v23 = vpop.f32.mrb[0].mxu0  ;;  %v17160_v63 = vadd.f32 %v17159_v52, %v16433_v27  ;;  %v10780_v34 = vpop.f32.mrb[17].mxu1 }
 0x873   : >> { %v17151_v25 = vadd.f32 %v16425_v23, %v16265_v62  ;;  %v10748_v49 = vpop.f32.mrb[1].mxu0  ;;  %v17162_v28 = vadd.f32 %v17161_v22, %v10780_v34  ;;  %v16434_v50 = vpop.f32.mrb[18].mxu1 }
 0x874   : >> { %v10844_v21 = vadd.f32 %v17160_v63, %v21058_v20  ;;  %v17152_v53 = vadd.f32 %v10748_v49, %v9655_v58  ;;  %v16426_v43 = vpop.f32.mrb[2].mxu0  ;;  %v17164_v24 = vadd.f32 %v17163_v59, %v16434_v50  ;;  %v10783_v8 = vpop.f32.mrb[19].mxu1 }
 0x875   : >> { %v10836_v11 = vadd.f32 %v17151_v25, %v21058_v20  ;;  %v10842_v6 = vadd.f32 %v17162_v28, %v21058_v20  ;;  %v17153_v39 = vadd.f32 %v16426_v43, %v16266_v26  ;;  %v10751_v46 = vpop.f32.mrb[3].mxu0  ;;  %v17166_v33 = vadd.f32 %v17165_v9, %v10783_v8 }
 0x876   : >> { %v10834_v3 = vadd.f32 %v17152_v53, %v21058_v20  ;;  %v10845_v35 = vadd.f32 %v17164_v24, %v21058_v20  ;;  %v17154_v47 = vadd.f32 %v10751_v46, %v9658_v40  ;;  %v10860_v41 = vmax.f32 %v10844_v21, 0.0 }
 0x877   : >> { %v10837_v60 = vadd.f32 %v17153_v39, %v21058_v20  ;;  %v10843_v15 = vadd.f32 %v17166_v33, %v21058_v20  ;;  %v10852_v30 = vmax.f32 %v10836_v11, 0.0  ;;  %v10858_v55 = vmax.f32 %v10842_v6, 0.0 }
 0x878   : >> { %v10861_v14 = vmax.f32 %v10845_v35, 0.0  ;;  %v10835_v56 = vadd.f32 %v17154_v47, %v21058_v20  ;;  %v10850_v62 = vmax.f32 %v10834_v3, 0.0 }
 0x879   : >> { %v10853_v1 = vmax.f32 %v10837_v60, 0.0  ;;  %v10859_v51 = vmax.f32 %v10843_v15, 0.0  ;;  %v16437_v19 = vpop.f32.mrb[20].mxu1 }
 0x87a   : >> { %v10871_v58 = vpack.c.bf16 %v10861_v14, %v10860_v41  ;;  %v10851_v26 = vmax.f32 %v10835_v56, 0.0  ;;  %v16429_v2 = vpop.f32.mrb[4].mxu0  ;;  %v17168_v4 = vadd.f32 %v17167_v44, %v16437_v19  ;;  %v10796_v40 = vpop.f32.mrb[21].mxu1 }
 0x87b   : >> { %v10867_v45 = vpack.c.bf16 %v10853_v1, %v10852_v30  ;;  %v10870_v52 = vpack.c.bf16 %v10859_v51, %v10858_v55  ;;  %v17155_v17 = vadd.f32 %v16429_v2, %v21043_v38  ;;  %v10764_v36 = vpop.f32.mrb[5].mxu0  ;;  %v17170_v22 = vadd.f32 %v17169_v12, %v10796_v40  ;;  %v16438_v31 = vpop.f32.mrb[22].mxu1 }
 0x87c   : >> { %v10888_v18 = vrot.slane %v10871_v58, 4  ;;  %v10866_v59 = vpack.c.bf16 %v10851_v26, %v10850_v62  ;;  %v17156_v0 = vadd.f32 %v10764_v36, %v21045_v16  ;;  %v16430_v9 = vpop.f32.mrb[6].mxu0  ;;  %v10799_v61 = vpop.f32.mrb[23].mxu1  ;;  %v10848_v16 = vadd.f32 %v17168_v4, %v21058_v20  ;;  %v17737_v58 = vld [vmem:[%s21661_s11] sm:$0xff] (%p8788_p0)  }
 0x87d   : >> { %v10884_v5 = vrot.slane %v10867_v45, 4  ;;  %v10887_v13 = vrot.slane %v10870_v52, 4  ;;  %v10767_v29 = vpop.f32.mrb[7].mxu0  ;;  %v10840_v44 = vadd.f32 %v17155_v17, %v21058_v20  ;;  %v17157_v42 = vadd.f32 %v16430_v9, %v21047_v37  ;;  %16447 = vmatprep.mubr.msk.bf16.mxu1 (%p8788_p0), %vm10980_vm6, %v17737_v58  ;;  %v17745_v58 = vld [vmem:[%s21659_s9 + $0x100] sm:$0xff] (%p8788_p0)  }
 0x87e   : >> { %14016 = vst [vmem:[%s21072_s20 + $0x68] ss:$-4 sps:$4 sm:$0xff] %v10888_v18   ;;  %v10883_v38 = vrot.slane %v10866_v59, 4  ;;  %v10838_v12 = vadd.f32 %v17156_v0, %v21058_v20  ;;  %v17172_v54 = vadd.f32 %v21051_v57, %v16438_v31  ;;  %v17158_v32 = vadd.f32 %v10767_v29, %v21049_v7 }
 0x87f   : >> { %14008 = vst [vmem:[%s21072_s20 + $0x28] ss:$-4 sps:$4 sm:$0xff] %v10884_v5   ;;  %14014 = vst [vmem:[%s21072_s20 + $0x58] ss:$-4 sps:$4 sm:$0xff] %v10887_v13   ;;  %v10846_v48 = vadd.f32 %v17170_v22, %v21058_v20  ;;  %v10841_v27 = vadd.f32 %v17157_v42, %v21058_v20  ;;  %v17174_v23 = vadd.f32 %v21053_v10, %v10799_v61  ;;  %v10856_v34 = vmax.f32 %v10840_v44, 0.0 }
 0x880   : >> { %14006 = vst [vmem:[%s21072_s20 + $0x18] ss:$-4 sps:$4 sm:$0xff] %v10883_v38   ;;  %v10849_v63 = vadd.f32 %v17172_v54, %v21058_v20  ;;  %v10839_v37 = vadd.f32 %v17158_v32, %v21058_v20  ;;  %v10864_v57 = vmax.f32 %v10848_v16, 0.0  ;;  %v10854_v7 = vmax.f32 %v10838_v12, 0.0  ;;  %v17741_v38 = vld [vmem:[%s21661_s11] sm:$0xff] (%p8788_p0)  }
 0x881   : >> { %v10857_v25 = vmax.f32 %v10841_v27, 0.0  ;;  %v10847_v49 = vadd.f32 %v17174_v23, %v21058_v20  ;;  %v10862_v21 = vmax.f32 %v10846_v48, 0.0  ;;  %16471 = vmatprep.mubr.msk.bf16.mxu0 (%p8788_p0), %vm10980_vm6, %v17741_v38 }
 0x882   : >> { %v10865_v28 = vmax.f32 %v10849_v63, 0.0  ;;  %v10855_v50 = vmax.f32 %v10839_v37, 0.0 }
 0x883   : >> { %v10869_v53 = vpack.c.bf16 %v10857_v25, %v10856_v34  ;;  %v10863_v43 = vmax.f32 %v10847_v49, 0.0  ;;  %8790 = sbr.rel (!%p8788_p0) target bundleno = 1789 (0x6fd), region = 226 }
 0x884   : >> { %v10873_v10 = vpack.c.bf16 %v10865_v28, %v10864_v57  ;;  %v10868_v24 = vpack.c.bf16 %v10855_v50, %v10854_v7 }
 0x885   : >> { %v10886_v8 = vrot.slane %v10869_v53, 4  ;;  %v10872_v11 = vpack.c.bf16 %v10863_v43, %v10862_v21 }
 0x886   : >> { %v10890_v6 = vrot.slane %v10873_v10, 4  ;;  %v10885_v39 = vrot.slane %v10868_v24, 4 }
 0x887   : >> { %14012 = vst [vmem:[%s21072_s20 + $0x48] ss:$-4 sps:$4 sm:$0xff] %v10886_v8   ;;  %v10889_v46 = vrot.slane %v10872_v11, 4 }
 0x888   : >> { %14020 = vst [vmem:[%s21072_s20 + $0x88] ss:$-4 sps:$4 sm:$0xff] %v10890_v6   ;;  %14010 = vst [vmem:[%s21072_s20 + $0x38] ss:$-4 sps:$4 sm:$0xff] %v10885_v39  }
 0x889   : >> { %14018 = vst [vmem:[%s21072_s20 + $0x78] ss:$-4 sps:$4 sm:$0xff] %v10889_v46  }
 0x890   : > { %v10918_v20 = vld [vmem:[#allocation4 + $0x10] sm:$0xf0]  ;;  %v10919_v33 = vld [vmem:[#allocation4 + $0x18] sm:$0xf]  ;;  %v10920_v3 = vld [vmem:[#allocation4 + $0x20] sm:$0xf0] }
 0x891   : > { %v10921_v35 = vld [vmem:[#allocation4 + $0x28] sm:$0xf]  ;;  %v10934_v47 = vmax.bf16 %v10920_v3, %v10918_v20  ;;  %v10922_v60 = vld [vmem:[#allocation4 + $0x30] sm:$0xf0]  ;;  %v10923_v15 = vld [vmem:[#allocation4 + $0x38] sm:$0xf] }
 0x892   : > { %v10935_v41 = vmax.bf16 %v10921_v35, %v10919_v33  ;;  %v10924_v14 = vld [vmem:[#allocation4 + $0x40] sm:$0xf0]  ;;  %v10925_v56 = vld [vmem:[#allocation4 + $0x48] sm:$0xf]  ;;  %v10926_v30 = vld [vmem:[#allocation4 + $0x50] sm:$0xf0] }
 0x893   : > { %v10950_v55 = vrot.slane %v10934_v47, 4  ;;  %v10936_v1 = vmax.bf16 %v10924_v14, %v10922_v60  ;;  %v10937_v51 = vmax.bf16 %v10925_v56, %v10923_v15  ;;  %v10927_v19 = vld [vmem:[#allocation4 + $0x58] sm:$0xf]  ;;  %v10928_v62 = vld [vmem:[#allocation4 + $0x60] sm:$0xf0]  ;;  %v17738_v35 = vld [vmem:[%s21661_s11 + $0x8] sm:$0xff]  }
 0x894   : > { %v10951_v26 = vrot.slane %v10935_v41, 4  ;;  %v10929_v2 = vld [vmem:[#allocation4 + $0x68] sm:$0xf]  ;;  %v10938_v4 = vmax.bf16 %v10928_v62, %v10926_v30  ;;  %v10930_v40 = vld [vmem:[#allocation4 + $0x70] sm:$0xf0]  ;;  %v17739_v41 = vld [vmem:[%s21662_s12] sm:$0xff]  }
 0x895   : > { %v10953_v45 = vrot.slane %v10936_v1, 4  ;;  %v10954_v52 = vrot.slane %v10937_v51, 4  ;;  %v10939_v17 = vmax.bf16 %v10929_v2, %v10927_v19  ;;  %v10931_v36 = vld [vmem:[#allocation4 + $0x78] sm:$0xf]  ;;  %v10932_v22 = vld [vmem:[#allocation4 + $0x80] sm:$0xf0] }
 0x896   : > { %v21102_v31 = vsel %vm1002_vm1, %v10950_v55, %v10951_v26  ;;  %v10956_v18 = vrot.slane %v10938_v4, 4  ;;  %v10933_v59 = vld [vmem:[#allocation4 + $0x88] sm:$0xf]  ;;  %v10940_v0 = vmax.bf16 %v10932_v22, %v10930_v40  ;;  %v11118_v42 = vld [vmem:[#allocation4 + $0x90] sm:$0xf0]  ;;  %v17742_v19 = vld [vmem:[%s21662_s12] sm:$0xff]  }
 0x897   : > { %16439 = vmatprep.subr.bf16.mxu1 %v21102_v31  ;;  %v21106_v9 = vsel %vm1002_vm1, %v10953_v45, %v10954_v52  ;;  %v10957_v61 = vrot.slane %v10939_v17, 4  ;;  %v10941_v5 = vmax.bf16 %v10933_v59, %v10931_v36  ;;  %v11119_v16 = vld [vmem:[#allocation4 + $0x98] sm:$0xf]  ;;  %v11120_v12 = vld [vmem:[#allocation4 + $0xa0] sm:$0xf0]  ;;  %v17743_v1 = vld [vmem:[%s21661_s11 + $0x8] sm:$0xff]  }
 0x898   : > { %16440 = vmatpush3.bf16.msra.mxu1 %v21102_v31  ;;  %v10959_v13 = vrot.slane %v10940_v0, 4  ;;  %v11121_v54 = vld [vmem:[#allocation4 + $0xa8] sm:$0xf]  ;;  %v11122_v32 = vld [vmem:[#allocation4 + $0xb0] sm:$0xf0]  ;;  %v11134_v48 = vmax.bf16 %v11120_v12, %v11118_v42  ;;  %v17747_v2 = vld [vmem:[%s21659_s9 + $0xc0] sm:$0xff]  }
 0x899   : > { %16441 = vmatprep.subr.bf16.mxu1 %v21106_v9  ;;  %v10960_v29 = vrot.slane %v10941_v5, 4  ;;  %v10958_v44 = vsel %vm1002_vm1, %v10956_v18, %v10957_v61  ;;  %v11135_v27 = vmax.bf16 %v11121_v54, %v11119_v16  ;;  %v11123_v23 = vld [vmem:[#allocation4 + $0xb8] sm:$0xf]  ;;  %v11124_v63 = vld [vmem:[#allocation4 + $0xc0] sm:$0xf0]  ;;  %v17740_v51 = vld [vmem:[%s21662_s12 + $0x8] sm:$0xff]  }
 0x89a   : > { %v11125_v37 = vld [vmem:[#allocation4 + $0xc8] sm:$0xf]  ;;  %v11136_v34 = vmax.bf16 %v11124_v63, %v11122_v32  ;;  %v11126_v49 = vld [vmem:[#allocation4 + $0xd0] sm:$0xf0]  ;;  %v11127_v57 = vld [vmem:[#allocation4 + $0xd8] sm:$0xf] }
 0x89b   : > { %v11137_v25 = vmax.bf16 %v11125_v37, %v11123_v23  ;;  %v11128_v7 = vld [vmem:[#allocation4 + $0xe0] sm:$0xf0]  ;;  %v10961_v28 = vsel %vm1002_vm1, %v10959_v13, %v10960_v29  ;;  %v11150_v50 = vrot.slane %v11134_v48, 4  ;;  %v11151_v21 = vrot.slane %v11135_v27, 4  ;;  %v11129_v53 = vld [vmem:[#allocation4 + $0xe8] sm:$0xf] }
 0x89c   : > { %16442 = vmatpush3.bf16.msra.mxu1 %v21106_v9  ;;  %v11138_v43 = vmax.bf16 %v11128_v7, %v11126_v49  ;;  %v11130_v10 = vld [vmem:[#allocation4 + $0xf0] sm:$0xf0]  ;;  %v11153_v24 = vrot.slane %v11136_v34, 4  ;;  %v11139_v11 = vmax.bf16 %v11129_v53, %v11127_v57  ;;  %v11131_v6 = vld [vmem:[#allocation4 + $0xf8] sm:$0xf]  ;;  %v17744_v62 = vld [vmem:[%s21662_s12 + $0x8] sm:$0xff]  }
 0x89d   : > { %16443 = vmatprep.subr.bf16.mxu1 %v10958_v44  ;;  %v11154_v8 = vrot.slane %v11137_v25, 4  ;;  %v11132_v39 = vld [vmem:[#allocation4 + $0x100] sm:$0xf0]  ;;  %v11152_v46 = vsel %vm1002_vm1, %v11150_v50, %v11151_v21  ;;  %v11133_v33 = vld [vmem:[#allocation4 + $0x108] sm:$0xf]  ;;  %v17748_v4 = vld [vmem:[%s21659_s9 + $0x110] sm:$0xff]  }
 0x89e   : > { %v11156_v20 = vrot.slane %v11138_v43, 4  ;;  %v11140_v3 = vmax.bf16 %v11132_v39, %v11130_v10  ;;  %16463 = vmatprep.subr.bf16.mxu0 %v11152_v46  ;;  %v11157_v60 = vrot.slane %v11139_v11, 4  ;;  %v11141_v15 = vmax.bf16 %v11133_v33, %v11131_v6  ;;  %v17746_v26 = vld [vmem:[%s21659_s9 + $0x108] sm:$0xff]   ;;  %v17750_v45 = vld [vmem:[%s21659_s9 + $0x118] sm:$0xff]   ;;  %v17751_v52 = vld [vmem:[%s21659_s9 + $0xd0] sm:$0xff]  }
 0x89f   : > { %v11155_v47 = vsel %vm1002_vm1, %v11153_v24, %v11154_v8  ;;  %16464 = vmatpush3.bf16.msra.mxu0 %v11152_v46  ;;  %v17749_v40 = vld [vmem:[%s21659_s9 + $0xc8] sm:$0xff]   ;;  %v17752_v17 = vld [vmem:[%s21659_s9 + $0x120] sm:$0xff]   ;;  %v17753_v36 = vld [vmem:[%s21659_s9 + $0xd8] sm:$0xff]  }
 0x8a0   : > { %16444 = vmatpush3.bf16.msra.mxu1 %v10958_v44  ;;  %16465 = vmatprep.subr.bf16.mxu0 %v11155_v47  ;;  %v11159_v14 = vrot.slane %v11140_v3, 4  ;;  %v11160_v56 = vrot.slane %v11141_v15, 4  ;;  %v11158_v30 = vsel %vm1002_vm1, %v11156_v20, %v11157_v60  ;;  %v17754_v22 = vld [vmem:[%s21659_s9 + $0x128] sm:$0xff]   ;;  %v17756_v18 = vld [vmem:[%s21659_s9 + $0x130] sm:$0xff]   ;;  %v17758_v0 = vld [vmem:[%s21659_s9 + $0x138] sm:$0xff]  }
 0x8a1   : > { %16445 = vmatprep.subr.bf16.mxu1 %v10961_v28  ;;  %v17757_v59 = vld [vmem:[%s21659_s9 + $0xe8] sm:$0xff]   ;;  %v21197_v61 = vld [vmem:[%s21659_s9 + $0x1c0] sm:$0xff]   ;;  %v17763_v5 = vld [vmem:[%s21659_s9 + $0xf8] sm:$0xff]  }
 0x8a2   : > { %v11161_v55 = vsel %vm1002_vm1, %v11159_v14, %v11160_v56  ;;  %v21206_v13 = vld [vmem:[%s21659_s9] sm:$0xff]   ;;  %v11319_v21 = vld [vmem:[#allocation6 + $0xc] sm:$0x8]  ;;  %v11321_v53 = vld [vmem:[#allocation6 + $0x18] sm:$0x8] }
 0x8a3   : > { %16466 = vmatpush3.bf16.msra.mxu0 %v11155_v47  ;;  %v11323_v43 = vld [vmem:[#allocation6 + $0x24] sm:$0x8]  ;;  %v11325_v10 = vld [vmem:[#allocation6 + $0x30] sm:$0x8]  ;;  %v11354_v24 = vshrl.u32 %v11319_v21, 16  ;;  %v11367_v8 = vshrl.u32 %v11321_v53, 16 }
 0x8a4   : > { %16446 = vmatpush3.bf16.msra.mxu1 %v10961_v28  ;;  %16467 = vmatprep.subr.bf16.mxu0 %v11158_v30  ;;  %v11380_v11 = vshrl.u32 %v11323_v43, 16  ;;  %v11393_v6 = vshrl.u32 %v11325_v10, 16  ;;  %v17768_v21 = vld [vmem:[%s21659_s9 + $0x1d8] sm:$0xff]   ;;  %v11333_v43 = vld [vmem:[#allocation6 + $0x60] sm:$0x8] }
 0x8a5   : > { %16451 = vmatprep.subr.bf16.mxu1 %v21102_v31  ;;  %v14039_v3 = vrot.slane %v11354_v24, 11  ;;  %v11327_v53 = vld [vmem:[#allocation6 + $0x3c] sm:$0x8]  ;;  %v11329_v24 = vld [vmem:[#allocation6 + $0x48] sm:$0x8] }
 0x8a6   : > { %v14041_v60 = vrot.slane %v11380_v11, 11  ;;  %v14042_v56 = vrot.slane %v11393_v6, 11  ;;  %v17771_v11 = vld [vmem:[%s21659_s9 + $0x1e0] sm:$0xff]  }
 0x8a7   : > { %16448 = vmatmul.mubr.msk.bf16.vlgmr.msra.gmra.mrb[0].mxu1 %vm10980_vm6, %v17738_v35  ;;  %16468 = vmatpush3.bf16.msra.mxu0 %v11158_v30 }
 0x8a8   : > { %16452 = vmatpush3.bf16.msra.mxu1 %v21102_v31  ;;  %16459 = vmatprep.mubr.msk.bf16.mxu1 %vm10980_vm6, %v17739_v41  ;;  %v17755_v31 = vld [vmem:[%s21659_s9 + $0xe0] sm:$0xff]  }
 0x8a9   : > { %16453 = vmatprep.subr.bf16.mxu1 %v21106_v9  ;;  %16469 = vmatprep.subr.bf16.mxu0 %v11161_v55 }
 0x8ab   : > { %16470 = vmatpush3.bf16.msra.mxu0 %v11161_v55 }
 0x8ac   : > { %16454 = vmatpush3.bf16.msra.mxu1 %v21106_v9  ;;  %16583 = vmatprep.subr.bf16.mxu0 %v17745_v58  ;;  %v17759_v9 = vld [vmem:[%s21659_s9 + $0xf0] sm:$0xff]  }
 0x8ad   : > { %16455 = vmatprep.subr.bf16.mxu1 %v10958_v44 }
 0x8ae   : > { %16472 = vmatmul.mubr.msk.bf16.vlgmr.msra.gmra.mrb[0].mxu0 %vm10980_vm6, %v17743_v1 }
 0x8af   : > { %16584 = vmatpush3.bf16.msra.mxu0 %v17745_v58 }
 0x8b0   : > { %16456 = vmatpush3.bf16.msra.mxu1 %v10958_v44  ;;  %16585 = vmatprep.subr.bf16.mxu0 %v17746_v26 }
 0x8b1   : > { %16457 = vmatprep.subr.bf16.mxu1 %v10961_v28 }
 0x8b3   : > { %16586 = vmatpush3.bf16.msra.mxu0 %v17746_v26 }
 0x8b4   : > { %16458 = vmatpush3.bf16.msra.mxu1 %v10961_v28  ;;  %16587 = vmatprep.subr.bf16.mxu0 %v17748_v4 }
 0x8b5   : > { %16475 = vmatprep.subr.bf16.mxu1 %v11152_v46 }
 0x8b7   : > { %16460 = vmatmul.mubr.msk.bf16.vlgmr.msra.gmra.mrb[4].mxu1 %vm10980_vm6, %v17740_v51  ;;  %16588 = vmatpush3.bf16.msra.mxu0 %v17748_v4  ;;  %v17764_v4 = vld [vmem:[%s21659_s9 + $0x1c8] sm:$0xff]  }
 0x8b8   : > { %16476 = vmatpush3.bf16.msra.mxu1 %v11152_v46  ;;  %16483 = vmatprep.mubr.msk.bf16.mxu1 %vm10980_vm6, %v17742_v19 }
 0x8b9   : > { %16477 = vmatprep.subr.bf16.mxu1 %v11155_v47  ;;  %16589 = vmatprep.subr.bf16.mxu0 %v17750_v45 }
 0x8bb   : > { %16590 = vmatpush3.bf16.msra.mxu0 %v17750_v45 }
 0x8bc   : > { %16478 = vmatpush3.bf16.msra.mxu1 %v11155_v47  ;;  %16591 = vmatprep.subr.bf16.mxu0 %v17752_v17  ;;  %v14040_v47 = vrot.slane %v11367_v8, 11  ;;  %v17769_v8 = vld [vmem:[%s21659_s9 + $0x10] sm:$0xff]  }
 0x8bd   : > { %16479 = vmatprep.subr.bf16.mxu1 %v11158_v30 }
 0x8bf   : > { %16592 = vmatpush3.bf16.msra.mxu0 %v17752_v17 }
 0x8c0   : > { %16480 = vmatpush3.bf16.msra.mxu1 %v11158_v30  ;;  %16593 = vmatprep.subr.bf16.mxu0 %v17754_v22 }
 0x8c1   : > { %16481 = vmatprep.subr.bf16.mxu1 %v11161_v55 }
 0x8c3   : > { %16594 = vmatpush3.bf16.msra.mxu0 %v17754_v22 }
 0x8c4   : > { %16482 = vmatpush3.bf16.msra.mxu1 %v11161_v55  ;;  %16595 = vmatprep.subr.bf16.mxu0 %v17756_v18 }
 0x8c5   : > { %16487 = vmatprep.subr.bf16.mxu1 %v17747_v2 }
 0x8c7   : > { %16484 = vmatmul.mubr.msk.bf16.vlgmr.msra.gmra.mrb[8].mxu1 %vm10980_vm6, %v17744_v62  ;;  %16596 = vmatpush3.bf16.msra.mxu0 %v17756_v18 }
 0x8c8   : > { %16488 = vmatpush3.bf16.msra.mxu1 %v17747_v2  ;;  %16597 = vmatprep.subr.bf16.mxu0 %v17758_v0 }
 0x8c9   : > { %16489 = vmatprep.subr.bf16.mxu1 %v17749_v40 }
 0x8cb   : > { %16598 = vmatpush3.bf16.msra.mxu0 %v17758_v0 }
 0x8cc   : > { %16490 = vmatpush3.bf16.msra.mxu1 %v17749_v40  ;;  %16607 = vmatprep.subr.bf16.mxu0 %v21197_v61 }
 0x8cd   : > { %16491 = vmatprep.subr.bf16.mxu1 %v17751_v52 }
 0x8d0   : > { %16492 = vmatpush3.bf16.msra.mxu1 %v17751_v52  ;;  %v21233_v52 = vld [vmem:[#allocation6 + $0x4] sm:$0xf] }
 0x8d1   : > { %16493 = vmatprep.subr.bf16.mxu1 %v17753_v36 }
 0x8d4   : > { %16494 = vmatpush3.bf16.msra.mxu1 %v17753_v36 }
 0x8d5   : > { %16495 = vmatprep.subr.bf16.mxu1 %v17755_v31 }
 0x8d8   : > { %16496 = vmatpush3.bf16.msra.mxu1 %v17755_v31 }
 0x8d9   : > { %16497 = vmatprep.subr.bf16.mxu1 %v17757_v59 }
 0x8dc   : > { %16498 = vmatpush3.bf16.msra.mxu1 %v17757_v59 }
 0x8dd   : > { %16499 = vmatprep.subr.bf16.mxu1 %v17759_v9 }
 0x8e0   : > { %16500 = vmatpush3.bf16.msra.mxu1 %v17759_v9 }
 0x8e1   : > { %16501 = vmatprep.subr.bf16.mxu1 %v17763_v5 }
 0x8e4   : > { %16502 = vmatpush3.bf16.msra.mxu1 %v17763_v5  ;;  %v17811_v5 = vld [vmem:[%s21659_s9 + $0x168] sm:$0xff]  }
 0x8e5   : > { %16511 = vmatprep.subr.bf16.mxu1 %v21206_v13 }
 0x97a   : > { %v16449_v29 = vpop.f32.mrb[0].mxu1 }
 0x97b   : > { %v11021_v38 = vpop.f32.mrb[1].mxu1 }
 0x97c   : > { %v16450_v44 = vpop.f32.mrb[2].mxu1 }
 0x97d   : > { %v11024_v42 = vpop.f32.mrb[3].mxu1 }
 0x981   : > { %v16473_v16 = vpop.f32.mrb[0].mxu0 }
 0x982   : > { %v11220_v12 = vpop.f32.mrb[1].mxu0 }
 0x983   : > { %v16474_v54 = vpop.f32.mrb[2].mxu0 }
 0x984   : > { %v21209_v32 = vpop.f32.mrb[3].mxu0 }
 0x98a   : > { %v16461_v48 = vpop.f32.mrb[4].mxu1 }
 0x98b   : > { %v11107_v27 = vmax.f32 %v16449_v29, %v16461_v48  ;;  %v11090_v23 = vpop.f32.mrb[5].mxu1 }
 0x98c   : > { %v11105_v63 = vmax.f32 %v11021_v38, %v11090_v23  ;;  %v16462_v37 = vpop.f32.mrb[6].mxu1  ;;  %v11317_v23 = vld [vmem:[#allocation6] sm:$0x8] }
 0x98d   : > { %v11111_v34 = vpack.c.bf16 %v11107_v27, %v11107_v27  ;;  %v11108_v25 = vmax.f32 %v16450_v44, %v16462_v37  ;;  %v11093_v49 = vpop.f32.mrb[7].mxu1  ;;  %v17766_v27 = vld [vmem:[%s21659_s9 + $0x1d0] sm:$0xff]  }
 0x98e   : > { %v11109_v57 = vpack.c.bf16 %v11105_v63, %v11105_v63  ;;  %v11106_v7 = vmax.f32 %v11024_v42, %v11093_v49 }
 0x98f   : > { %11116 = vst [vmem:[#allocation6 + $0x28] sm:$0xf] %v11111_v34  ;;  %v11112_v28 = vpack.c.bf16 %v11108_v25, %v11108_v25  ;;  %v11331_v25 = vld [vmem:[#allocation6 + $0x54] sm:$0x8] }
 0x990   : > { %11114 = vst [vmem:[#allocation6 + $0x10] sm:$0xf] %v11109_v57  ;;  %v11110_v50 = vpack.c.bf16 %v11106_v7, %v11106_v7  ;;  %v17767_v57 = vld [vmem:[%s21659_s9 + $0x8] sm:$0xff]   ;;  %v11341_v7 = vshrl.u32 %v11317_v23, 16  ;;  %v11432_v10 = vshrl.u32 %v11331_v25, 16 }
 0x991   : > { %11117 = vst [vmem:[#allocation6 + $0x34] sm:$0xf] %v11112_v28 }
 0x992   : > { %11115 = vst [vmem:[#allocation6 + $0x1c] sm:$0xf] %v11110_v50  ;;  %v11349_v50 = vshll.u32 %v21233_v52, 16 }
 0x996   : > { %v21211_v39 = vld [vmem:[#allocation6 + $0x28] sm:$0xf] }
 0x997   : > { %v21213_v46 = vld [vmem:[#allocation6 + $0x10] sm:$0xf]  ;;  %v11385_v20 = vshrl.u32 %v21211_v39, 16  ;;  %v11388_v14 = vshll.u32 %v21211_v39, 16 }
 0x998   : > { %v21216_v33 = vld [vmem:[#allocation6 + $0x34] sm:$0xf]  ;;  %v11359_v35 = vshrl.u32 %v21213_v46, 16  ;;  %v11362_v19 = vshll.u32 %v21213_v46, 16 }
 0x999   : > { %v21219_v15 = vld [vmem:[#allocation6 + $0x1c] sm:$0xf]  ;;  %v11387_v41 = vrot.slane %v11385_v20, 7  ;;  %v11398_v30 = vshrl.u32 %v21216_v33, 16  ;;  %v14158_v2 = vcombine.low %v21211_v39, %v21216_v33  ;;  %v11401_v45 = vshll.u32 %v21216_v33, 16 }
 0x99a   : > { %v16485_v55 = vpop.f32.mrb[8].mxu1  ;;  %v14157_v1 = vcombine.low %v21213_v46, %v21219_v15  ;;  %v11361_v51 = vrot.slane %v11359_v35, 7  ;;  %v11372_v62 = vshrl.u32 %v21219_v15, 16  ;;  %v11375_v18 = vshll.u32 %v21219_v15, 16 }
 0x99b   : > { %v11306_v58 = vmax.f32 %v16473_v16, %v16485_v55  ;;  %v11289_v26 = vpop.f32.mrb[9].mxu1  ;;  %v11400_v40 = vrot.slane %v11398_v30, 7  ;;  %v11390_v29 = vor.u32 %v11388_v14, %v11387_v41  ;;  %v21284_v20 = vrot.slane %v11341_v7, 11 }
 0x99c   : > { %v11304_v17 = vmax.f32 %v11220_v12, %v11289_v26  ;;  %v16486_v36 = vpop.f32.mrb[10].mxu1  ;;  %16599 = vmatprep.mubr.bf16.mxu0 %v14157_v1  ;;  %v11364_v22 = vor.u32 %v11362_v19, %v11361_v51  ;;  %v11374_v31 = vrot.slane %v11372_v62, 7  ;;  %v11346_v12 = vshrl.u32 %v21233_v52, 16 }
 0x99d   : > { %v11310_v59 = vpack.c.bf16 %v11306_v58, %v11306_v58  ;;  %v11307_v0 = vmax.f32 %v16474_v54, %v16486_v36  ;;  %v11292_v9 = vpop.f32.mrb[11].mxu1  ;;  %16600 = vmatmul.mubr.bf16.vlgmr.msra.gmra.mrb[4].mxu0 %v14158_v2  ;;  %v11403_v38 = vor.u32 %v11401_v45, %v11400_v40  ;;  %v21262_v37 = vsel %vm21238_vm9, %v14041_v60, %v11390_v29  ;;  %v17775_v36 = vld [vmem:[%s21659_s9 + $0x1e8] sm:$0xff]  }
 0x99e   : > { %v11308_v44 = vpack.c.bf16 %v11304_v17, %v11304_v17  ;;  %v11305_v42 = vmax.f32 %v21209_v32, %v11292_v9  ;;  %16608 = vmatpush3.bf16.msra.mxu0 %v21197_v61  ;;  %v11377_v16 = vor.u32 %v11375_v18, %v11374_v31  ;;  %v21254_v61 = vsel %vm21238_vm9, %v14039_v3, %v11364_v22  ;;  %v17774_v17 = vld [vmem:[%s21659_s9 + $0x18] sm:$0xff]  }
 0x99f   : > { %11315 = vst [vmem:[#allocation6 + $0x58] sm:$0xf] %v11310_v59  ;;  %v11311_v54 = vpack.c.bf16 %v11307_v0, %v11307_v0  ;;  %16609 = vmatprep.subr.bf16.mxu0 %v17764_v4  ;;  %v21247_v48 = vsel %vm21238_vm9, %v14042_v56, %v11403_v38  ;;  %v11348_v28 = vrot.slane %v11346_v12, 7  ;;  %v11461_v41 = vshrl.u32 %v11333_v43, 16  ;;  %v17776_v12 = vld [vmem:[%s21659_s9 + $0x20] sm:$0xff]   ;;  %v17779_v43 = vld [vmem:[%s21659_s9 + $0x1f8] sm:$0xff]  }
 0x9a0   : > { %11313 = vst [vmem:[#allocation6 + $0x40] sm:$0xf] %v11308_v44  ;;  %v11309_v63 = vpack.c.bf16 %v11305_v42, %v11305_v42  ;;  %v21258_v32 = vsel %vm21238_vm9, %v14040_v47, %v11377_v16  ;;  %v14064_v49 = vcombine.low %v21262_v37, %v21247_v48  ;;  %v11419_v55 = vshrl.u32 %v11329_v24, 16 }
 0x9a1   : > { %11316 = vst [vmem:[#allocation6 + $0x64] sm:$0xf] %v11311_v54  ;;  %v14063_v34 = vcombine.low %v21254_v61, %v21258_v32  ;;  %v21286_v3 = vor.u32 %v11349_v50, %v11348_v28  ;;  %v14045_v1 = vrot.slane %v11432_v10, 11  ;;  %v14046_v18 = vrot.slane %v11461_v41, 11  ;;  %v12347_v54 = vld [vmem:[#allocation6 + $0x4] sm:$0xf] }
 0x9a2   : > { %11314 = vst [vmem:[#allocation6 + $0x4c] sm:$0xf] %v11309_v63  ;;  %16610 = vmatpush3.bf16.msra.mxu0 %v17764_v4  ;;  %v21314_v0 = vcombine.low %v21219_v15, %v21211_v39  ;;  %v14044_v29 = vrot.slane %v11419_v55, 11  ;;  %v17777_v15 = vld [vmem:[%s21659_s9 + $0x1f0] sm:$0xff]   ;;  %v12371_v7 = vshrl.u32 %v12347_v54, 16  ;;  %v12374_v28 = vshll.u32 %v12347_v54, 16 }
 0x9a3   : > { %16503 = vmatprep.mubr.bf16.mxu1 %v14063_v34  ;;  %16611 = vmatprep.subr.bf16.mxu0 %v17766_v27  ;;  %v11352_v25 = vsel %vm21238_vm9, %v21284_v20, %v21286_v3  ;;  %v17780_v10 = vld [vmem:[%s21659_s9 + $0x30] sm:$0xff]   ;;  %v12348_v3 = vld [vmem:[#allocation6 + $0x8] sm:$0x1]  ;;  %v17784_v55 = vld [vmem:[%s21659_s9 + $0x38] sm:$0xff]  }
 0x9a4   : > { %16504 = vmatmul.mubr.bf16.vlgmr.msra.gmra.mrb[12].mxu1 %v14064_v49  ;;  %v12373_v24 = vrot.slane %v12371_v7, 4 }
 0x9a5   : > { %16512 = vmatpush3.bf16.msra.mxu1 %v21206_v13  ;;  %v11406_v13 = vshrl.u32 %v11327_v53, 16  ;;  %v14075_v53 = vcombine.low %v11352_v25, %v21254_v61  ;;  %v17782_v61 = vld [vmem:[%s21659_s9 + $0x80] sm:$0xff]  }
 0x9a6   : > { %16612 = vmatpush3.bf16.msra.mxu0 %v17766_v27  ;;  %16513 = vmatprep.subr.bf16.mxu1 %v17767_v57  ;;  %v21282_v6 = vld [vmem:[#allocation6 + $0x58] sm:$0xf]  ;;  %v12349_v27 = vld [vmem:[#allocation6 + $0x10] sm:$0xf] }
 0x9a7   : > { %16613 = vmatprep.subr.bf16.mxu0 %v17768_v21  ;;  %v21288_v35 = vld [vmem:[#allocation6 + $0x40] sm:$0xf]  ;;  %v11437_v47 = vshrl.u32 %v21282_v6, 16  ;;  %v11440_v60 = vshll.u32 %v21282_v6, 16  ;;  %v14043_v22 = vrot.slane %v11406_v13, 11  ;;  %v12385_v50 = vshrl.u32 %v12349_v27, 16 }
 0x9a8   : > { %v21292_v14 = vld [vmem:[#allocation6 + $0x64] sm:$0xf]  ;;  %v11411_v56 = vshrl.u32 %v21288_v35, 16  ;;  %v11414_v30 = vshll.u32 %v21288_v35, 16  ;;  %v12350_v13 = vld [vmem:[#allocation6 + $0x14] sm:$0x1] }
 0x9a9   : > { %16514 = vmatpush3.bf16.msra.mxu1 %v17767_v57  ;;  %v21296_v51 = vld [vmem:[#allocation6 + $0x4c] sm:$0xf]  ;;  %v14160_v19 = vcombine.low %v21282_v6, %v21292_v14  ;;  %v11439_v62 = vrot.slane %v11437_v47, 7  ;;  %v11466_v58 = vshrl.u32 %v21292_v14, 16  ;;  %v11469_v26 = vshll.u32 %v21292_v14, 16 }
 0x9aa   : > { %16614 = vmatpush3.bf16.msra.mxu0 %v17768_v21  ;;  %16515 = vmatprep.subr.bf16.mxu1 %v17769_v8  ;;  %v14159_v2 = vcombine.low %v21288_v35, %v21296_v51  ;;  %v11413_v4 = vrot.slane %v11411_v56, 7  ;;  %v11424_v40 = vshrl.u32 %v21296_v51, 16  ;;  %v11427_v45 = vshll.u32 %v21296_v51, 16  ;;  %v17778_v57 = vld [vmem:[%s21659_s9 + $0x28] sm:$0xff]  }
 0x9ab   : > { %16615 = vmatprep.subr.bf16.mxu0 %v17771_v11  ;;  %v11442_v31 = vor.u32 %v11440_v60, %v11439_v62  ;;  %v11468_v59 = vrot.slane %v11466_v58, 7  ;;  %v12388_v21 = vshll.u32 %v12349_v27, 16  ;;  %v12380_v60 = vshll.u32 %v12348_v3, 16 }
 0x9ac   : > { %16603 = vmatprep.mubr.bf16.mxu0 %v14159_v2  ;;  %v11416_v9 = vor.u32 %v11414_v30, %v11413_v4  ;;  %v11426_v38 = vrot.slane %v11424_v40, 7  ;;  %v12394_v56 = vshll.u32 %v12350_v13, 16  ;;  %v21362_v30 = vcombine.low %v21216_v33, %v21288_v35  ;;  %v17786_v33 = vld [vmem:[%s21659_s9 + $0x180] sm:$0xff]   ;;  %v12356_v13 = vld [vmem:[#allocation6 + $0x38] sm:$0x1] }
 0x9ad   : > { %16516 = vmatpush3.bf16.msra.mxu1 %v17769_v8  ;;  %16604 = vmatmul.mubr.bf16.gmra.mrb[8].mxu0 %v14160_v19  ;;  %v21318_v44 = vsel %vm21238_vm9, %v14045_v1, %v11442_v31  ;;  %v11471_v42 = vor.u32 %v11469_v26, %v11468_v59  ;;  %v12376_v8 = vrot.slane %v12374_v28, 5  ;;  %v12390_v20 = vrot.slane %v12388_v21, 5  ;;  %v17785_v1 = vld [vmem:[%s21659_s9 + $0x88] sm:$0xff]   ;;  %v12351_v31 = vld [vmem:[#allocation6 + $0x1c] sm:$0xf] }
 0x9ae   : > { %16616 = vmatpush3.bf16.msra.mxu0 %v17771_v11  ;;  %16623 = vmatprep.mubr.bf16.mxu0 %v21314_v0  ;;  %v11429_v16 = vor.u32 %v11427_v45, %v11426_v38  ;;  %v21333_v23 = vsel %vm21238_vm9, %v14043_v22, %v11416_v9  ;;  %v12387_v11 = vrot.slane %v12385_v50, 4  ;;  %v21372_v19 = vcombine.low %v21296_v51, %v21282_v6  ;;  %v17788_v6 = vld [vmem:[%s21659_s9 + $0x90] sm:$0xff]   ;;  %v17789_v45 = vld [vmem:[%s21659_s9 + $0x188] sm:$0xff]   ;;  %v12361_v21 = vld [vmem:[#allocation6 + $0x58] sm:$0xf] }
 0x9af   : > { %16517 = vmatprep.subr.bf16.mxu1 %v17774_v17  ;;  %16617 = vmatprep.subr.bf16.mxu0 %v17775_v36  ;;  %v21326_v39 = vsel %vm21238_vm9, %v14046_v18, %v11471_v42  ;;  %v12377_v47 = vor.u32 %v12376_v8, %v12373_v24  ;;  %v12382_v62 = vrot.slane %v12380_v60, 5  ;;  %v12396_v26 = vrot.slane %v12394_v56, 5  ;;  %v12357_v18 = vld [vmem:[#allocation6 + $0x40] sm:$0xf]  ;;  %v12353_v59 = vld [vmem:[#allocation6 + $0x28] sm:$0xf] }
 0x9b0   : > { %v21337_v63 = vsel %vm21238_vm9, %v14044_v29, %v11429_v16  ;;  %v14066_v34 = vcombine.low %v21318_v44, %v21326_v39  ;;  %v12391_v41 = vor.u32 %v12390_v20, %v12387_v11  ;;  %v14076_v2 = vcombine.low %v21258_v32, %v21262_v37  ;;  %v17790_v37 = vld [vmem:[%s21659_s9 + $0x98] sm:$0xff]   ;;  %v12355_v38 = vld [vmem:[#allocation6 + $0x34] sm:$0xf]  ;;  %v12359_v50 = vld [vmem:[#allocation6 + $0x4c] sm:$0xf] }
 0x9b1   : > { %16518 = vmatpush3.bf16.msra.mxu1 %v17774_v17  ;;  %v14065_v49 = vcombine.low %v21333_v23, %v21337_v63  ;;  %v12378_v35 = vrot.slane %v12377_v47, 4  ;;  %v21400_v17 = vcombine.low %v21247_v48, %v21333_v23  ;;  %v17791_v48 = vld [vmem:[%s21659_s9 + $0x190] sm:$0xff]   ;;  %v12399_v9 = vshrl.u32 %v12351_v31, 16  ;;  %v17793_v16 = vld [vmem:[%s21659_s9 + $0x198] sm:$0xff]   ;;  %v17794_v23 = vld [vmem:[%s21659_s9 + $0xa8] sm:$0xff]  }
 0x9b2   : > { %16618 = vmatpush3.bf16.msra.mxu0 %v17775_v36  ;;  %16519 = vmatprep.subr.bf16.mxu1 %v17776_v12  ;;  %v12392_v58 = vrot.slane %v12391_v41, 4  ;;  %v21402_v36 = vld [vmem:[#allocation6 + $0x70] sm:$0xf]  ;;  %v12402_v29 = vshll.u32 %v12351_v31, 16  ;;  %v21419_v42 = vcombine.low %v21337_v63, %v21318_v44  ;;  %v12413_v54 = vshrl.u32 %v12353_v59, 16 }
 0x9b3   : > { %16507 = vmatprep.mubr.bf16.mxu1 %v14065_v49  ;;  %16619 = vmatprep.subr.bf16.mxu0 %v17777_v15  ;;  %v12383_v4 = vsel %vm21383_vm11, %v12378_v35, %v12382_v62  ;;  %v14185_v32 = vcombine.low %v21292_v14, %v21402_v36  ;;  %v17792_v14 = vld [vmem:[%s21659_s9 + $0xa0] sm:$0xff]   ;;  %v12416_v27 = vshll.u32 %v12353_v59, 16  ;;  %v12427_v63 = vshrl.u32 %v12355_v38, 16  ;;  %v17796_v24 = vld [vmem:[%s21659_s9 + $0xb0] sm:$0xff]   ;;  %v12354_v8 = vld [vmem:[#allocation6 + $0x2c] sm:$0x1] }
 0x9b4   : > { %16508 = vmatmul.mubr.bf16.gmra.mrb[16].mxu1 %v14066_v34  ;;  %v21393_v40 = vsel %vm21383_vm11, %v12392_v58, %v12396_v26  ;;  %v12401_v34 = vrot.slane %v12399_v9, 4  ;;  %v12404_v44 = vrot.slane %v12402_v29, 5  ;;  %v12430_v25 = vshll.u32 %v12355_v38, 16  ;;  %v17795_v49 = vld [vmem:[%s21659_s9 + $0x1a0] sm:$0xff]   ;;  %v17798_v58 = vld [vmem:[%s21659_s9 + $0xb8] sm:$0xff]  }
 0x9b5   : > { %16520 = vmatpush3.bf16.msra.mxu1 %v17776_v12  ;;  %16527 = vmatprep.mubr.bf16.mxu1 %v14075_v53  ;;  %v14210_v22 = vcombine.low %v12383_v4, %v21393_v40  ;;  %v12441_v12 = vshrl.u32 %v12357_v18, 16  ;;  %v12415_v53 = vrot.slane %v12413_v54, 4  ;;  %v12455_v47 = vshrl.u32 %v12359_v50, 16  ;;  %v12362_v59 = vld [vmem:[#allocation6 + $0x5c] sm:$0x1]  ;;  %v17800_v38 = vld [vmem:[%s21659_s9 + $0x140] sm:$0xff]  }
 0x9b6   : > { %16620 = vmatpush3.bf16.msra.mxu0 %v17777_v15  ;;  %16521 = vmatprep.subr.bf16.mxu1 %v17778_v57  ;;  %v12444_v15 = vshll.u32 %v12357_v18, 16  ;;  %v12405_v11 = vor.u32 %v12404_v44, %v12401_v34  ;;  %v12432_v3 = vrot.slane %v12430_v25, 5  ;;  %v12458_v60 = vshll.u32 %v12359_v50, 16 }
 0x9b7   : > { %16621 = vmatprep.subr.bf16.mxu0 %v17779_v43  ;;  %v12443_v7 = vrot.slane %v12441_v12, 4  ;;  %v12469_v41 = vshrl.u32 %v12361_v21, 16  ;;  %v12472_v56 = vshll.u32 %v12361_v21, 16  ;;  %v12422_v62 = vshll.u32 %v12354_v8, 16  ;;  %v11335_v21 = vld [vmem:[#allocation6 + $0x6c] sm:$0x8] }
 0x9b8   : > { %v12446_v28 = vrot.slane %v12444_v15, 5  ;;  %v12406_v26 = vrot.slane %v12405_v11, 4  ;;  %v12436_v4 = vshll.u32 %v12356_v13, 16  ;;  %v12478_v34 = vshll.u32 %v12362_v59, 16  ;;  %v17803_v8 = vld [vmem:[%s21659_s9 + $0x40] sm:$0xff]   ;;  %v17819_v59 = vld [vmem:[%s21659_s9 + $0x208] sm:$0xff]  }
 0x9b9   : > { %16522 = vmatpush3.bf16.msra.mxu1 %v17778_v57  ;;  %v12352_v57 = vld [vmem:[#allocation6 + $0x20] sm:$0x1]  ;;  %v12474_v31 = vrot.slane %v12472_v56, 5  ;;  %v12424_v29 = vrot.slane %v12422_v62, 5  ;;  %v11747_v25 = vshrl.u32 %v21402_v36, 16  ;;  %v14129_v62 = vcombine.low %v21233_v52, %v21213_v46  ;;  %v17813_v46 = vld [vmem:[%s21659_s9 + $0x170] sm:$0xff]  }
 0x9ba   : > { %16622 = vmatpush3.bf16.msra.mxu0 %v17779_v43  ;;  %16523 = vmatprep.subr.bf16.mxu1 %v17780_v10  ;;  %v12418_v43 = vrot.slane %v12416_v27, 5  ;;  %v12408_v20 = vshll.u32 %v12352_v57, 16  ;;  %v12438_v12 = vrot.slane %v12436_v4, 5 }
 0x9bb   : > { %16631 = vmatprep.subr.bf16.mxu0 %v17782_v61  ;;  %v11749_v11 = vrot.slane %v11747_v25, 7 }
 0x9bc   : > { %v12419_v35 = vor.u32 %v12418_v43, %v12415_v53 }
 0x9bd   : > { %16524 = vmatpush3.bf16.msra.mxu1 %v17780_v10  ;;  %16624 = vmatmul.mubr.bf16.vlgmr.msra.gmra.mrb[4].mxu0 %v21362_v30  ;;  %v12358_v10 = vld [vmem:[#allocation6 + $0x44] sm:$0x1] }
 0x9be   : > { %16627 = vmatprep.mubr.bf16.mxu0 %v21372_v19  ;;  %16632 = vmatpush3.bf16.msra.mxu0 %v17782_v61  ;;  %v12429_v61 = vrot.slane %v12427_v63, 4  ;;  %v12420_v9 = vrot.slane %v12419_v35, 4  ;;  %v17801_v63 = vld [vmem:[%s21659_s9 + $0x1b8] sm:$0xff]  }
 0x9bf   : > { %16525 = vmatprep.subr.bf16.mxu1 %v17784_v55  ;;  %16633 = vmatprep.subr.bf16.mxu0 %v17785_v1  ;;  %v17810_v35 = vld [vmem:[%s21659_s9 + $0x58] sm:$0xff]  }
 0x9c1   : > { %16526 = vmatpush3.bf16.msra.mxu1 %v17784_v55  ;;  %v17797_v55 = vld [vmem:[%s21659_s9 + $0x1a8] sm:$0xff]  }
 0x9c2   : > { %16634 = vmatpush3.bf16.msra.mxu0 %v17785_v1  ;;  %16535 = vmatprep.subr.bf16.mxu1 %v17786_v33  ;;  %v12447_v1 = vor.u32 %v12446_v28, %v12443_v7  ;;  %v17802_v28 = vld [vmem:[%s21659_s9 + $0x148] sm:$0xff]  }
 0x9c3   : > { %16635 = vmatprep.subr.bf16.mxu0 %v17788_v6 }
 0x9c4   : > { %16528 = vmatmul.mubr.bf16.vlgmr.msra.gmra.mrb[12].mxu1 %v14076_v2  ;;  %v12448_v18 = vrot.slane %v12447_v1, 4 }
 0x9c5   : > { %16531 = vmatprep.mubr.bf16.mxu1 %v21400_v17  ;;  %16536 = vmatpush3.bf16.msra.mxu1 %v17786_v33  ;;  %v12450_v33 = vshll.u32 %v12358_v10, 16 }
 0x9c6   : > { %16628 = vmatmul.mubr.bf16.gmra.mrb[8].mxu0 %v14185_v32  ;;  %16537 = vmatprep.subr.bf16.mxu1 %v17789_v45  ;;  %v12457_v32 = vrot.slane %v12455_v47, 4 }
 0x9c7   : > { %16636 = vmatpush3.bf16.msra.mxu0 %v17788_v6  ;;  %16647 = vmatprep.mubr.bf16.mxu0 %v14210_v22  ;;  %v12410_v6 = vrot.slane %v12408_v20, 5  ;;  %v12471_v22 = vrot.slane %v12469_v41, 4  ;;  %v11750_v20 = vshll.u32 %v21402_v36, 16  ;;  %v17805_v36 = vld [vmem:[%s21659_s9 + $0x48] sm:$0xff]  }
 0x9c8   : > { %16637 = vmatprep.subr.bf16.mxu0 %v17790_v37 }
 0x9c9   : > { %16538 = vmatpush3.bf16.msra.mxu1 %v17789_v45  ;;  %v12360_v45 = vld [vmem:[#allocation6 + $0x50] sm:$0x1]  ;;  %v12411_v54 = vsel %vm21383_vm11, %v12406_v26, %v12410_v6  ;;  %v11752_v41 = vor.u32 %v11750_v20, %v11749_v11  ;;  %v17814_v6 = vld [vmem:[%s21659_s9 + $0x68] sm:$0xff]  }
 0x9ca   : > { %16539 = vmatprep.subr.bf16.mxu1 %v17791_v48  ;;  %v12464_v15 = vshll.u32 %v12360_v45, 16  ;;  %v14238_v1 = vcombine.low %v21393_v40, %v12411_v54 }
 0x9cb   : > { %16638 = vmatpush3.bf16.msra.mxu0 %v17790_v37  ;;  %v12460_v37 = vrot.slane %v12458_v60, 5 }
 0x9cc   : > { %16532 = vmatmul.mubr.bf16.gmra.mrb[16].mxu1 %v21419_v42  ;;  %16639 = vmatprep.subr.bf16.mxu0 %v17792_v14  ;;  %v12466_v50 = vrot.slane %v12464_v15, 5 }
 0x9cd   : > { %16540 = vmatpush3.bf16.msra.mxu1 %v17791_v48  ;;  %16551 = vmatprep.mubr.bf16.mxu1 %v14076_v2  ;;  %v12433_v2 = vor.u32 %v12432_v3, %v12429_v61  ;;  %v17799_v48 = vld [vmem:[%s21659_s9 + $0x1b0] sm:$0xff]   ;;  %v12461_v27 = vor.u32 %v12460_v37, %v12457_v32  ;;  %v11742_v61 = vshrl.u32 %v11335_v21, 16  ;;  %v12364_v37 = vld [vmem:[#allocation6 + $0x68] sm:$0x1] }
 0x9ce   : > { %16541 = vmatprep.subr.bf16.mxu1 %v17793_v16  ;;  %v17804_v3 = vld [vmem:[%s21659_s9 + $0x150] sm:$0xff]  }
 0x9cf   : > { %16640 = vmatpush3.bf16.msra.mxu0 %v17792_v14  ;;  %v12452_v14 = vrot.slane %v12450_v33, 5  ;;  %v12462_v43 = vrot.slane %v12461_v27, 4  ;;  %v14087_v60 = vrot.slane %v11742_v61, 11  ;;  %v17816_v32 = vld [vmem:[%s21659_s9 + $0x70] sm:$0xff]   ;;  %v17822_v27 = vld [vmem:[%s21659_s9 + $0x220] sm:$0xff]  }
 0x9d0   : > { %16641 = vmatprep.subr.bf16.mxu0 %v17794_v23 }
 0x9d1   : > { %16542 = vmatpush3.bf16.msra.mxu1 %v17793_v16  ;;  %v12434_v16 = vrot.slane %v12433_v2, 4  ;;  %v21450_v44 = vsel %vm21383_vm11, %v12448_v18, %v12452_v14  ;;  %v21485_v13 = vsel %vm21383_vm11, %v12462_v43, %v12466_v50  ;;  %v11753_v33 = vsel %vm21238_vm9, %v14087_v60, %v11752_v41  ;;  %v17815_v2 = vld [vmem:[%s21659_s9 + $0x178] sm:$0xff]  }
 0x9d2   : > { %16543 = vmatprep.subr.bf16.mxu1 %v17795_v49  ;;  %v14104_v40 = vcombine.low %v21326_v39, %v11753_v33  ;;  %v17812_v39 = vld [vmem:[%s21659_s9 + $0x60] sm:$0xff]   ;;  %v17818_v18 = vld [vmem:[%s21659_s9 + $0x78] sm:$0xff]  }
 0x9d3   : > { %16642 = vmatpush3.bf16.msra.mxu0 %v17794_v23  ;;  %v12475_v23 = vor.u32 %v12474_v31, %v12471_v22  ;;  %v21465_v7 = vsel %vm21383_vm11, %v12434_v16, %v12438_v12  ;;  %v17817_v22 = vld [vmem:[%s21659_s9 + $0x200] sm:$0xff]   ;;  %v17820_v16 = vld [vmem:[%s21659_s9 + $0x210] sm:$0xff]  }
 0x9d4   : > { %16643 = vmatprep.subr.bf16.mxu0 %v17796_v24  ;;  %v21472_v53 = vcombine.low %v21465_v7, %v21450_v44 }
 0x9d5   : > { %16544 = vmatpush3.bf16.msra.mxu1 %v17795_v49  ;;  %v21458_v49 = vsel %vm21383_vm11, %v12420_v9, %v12424_v29  ;;  %v12476_v10 = vrot.slane %v12475_v23, 4  ;;  %v14240_v9 = vcombine.low %v21450_v44, %v21485_v13  ;;  %v12365_v23 = vld [vmem:[#allocation6 + $0x70] sm:$0xf] }
 0x9d6   : > { %16545 = vmatprep.subr.bf16.mxu1 %v17797_v55  ;;  %v21461_v57 = vcombine.low %v12411_v54, %v21458_v49  ;;  %v14239_v14 = vcombine.low %v21458_v49, %v21465_v7  ;;  %v17821_v54 = vld [vmem:[%s21659_s9 + $0x218] sm:$0xff]   ;;  %v12801_v44 = vshll.u32 %v12365_v23, 16  ;;  %v12366_v49 = vld [vmem:[#allocation6 + $0x74] sm:$0x1] }
 0x9d7   : > { %16644 = vmatpush3.bf16.msra.mxu0 %v17796_v24  ;;  %v12480_v24 = vrot.slane %v12478_v34, 5  ;;  %v12798_v34 = vshrl.u32 %v12365_v23, 16  ;;  %v12807_v7 = vshll.u32 %v12366_v49, 16 }
 0x9d8   : > { %16645 = vmatprep.subr.bf16.mxu0 %v17798_v58  ;;  %v12803_v25 = vrot.slane %v12801_v44, 5 }
 0x9d9   : > { %16546 = vmatpush3.bf16.msra.mxu1 %v17797_v55  ;;  %v21489_v47 = vsel %vm21383_vm11, %v12476_v10, %v12480_v24  ;;  %v17806_v55 = vld [vmem:[%s21659_s9 + $0x158] sm:$0xff]   ;;  %v12809_v50 = vrot.slane %v12807_v7, 5 }
 0x9da   : > { %16547 = vmatprep.subr.bf16.mxu1 %v17799_v48  ;;  %v21497_v56 = vcombine.low %v21485_v13, %v21489_v47 }
 0x9db   : > { %16646 = vmatpush3.bf16.msra.mxu0 %v17798_v58  ;;  %v12363_v58 = vld [vmem:[#allocation6 + $0x64] sm:$0xf] }
 0x9dc   : > { %16655 = vmatprep.subr.bf16.mxu0 %v17800_v38  ;;  %v12637_v52 = vshrl.u32 %v12363_v58, 16  ;;  %v12640_v26 = vshll.u32 %v12363_v58, 16 }
 0x9dd   : > { %16548 = vmatpush3.bf16.msra.mxu1 %v17799_v48  ;;  %v12646_v48 = vshll.u32 %v12364_v37, 16 }
 0x9de   : > { %16648 = vmatmul.mubr.bf16.vlgmr.msra.gmra.mrb[4].mxu0 %v21461_v57  ;;  %16549 = vmatprep.subr.bf16.mxu1 %v17801_v63  ;;  %v12639_v4 = vrot.slane %v12637_v52, 4  ;;  %v12642_v45 = vrot.slane %v12640_v26, 5 }
 0x9df   : > { %16651 = vmatprep.mubr.bf16.mxu0 %v21472_v53  ;;  %16656 = vmatpush3.bf16.msra.mxu0 %v17800_v38  ;;  %v12648_v38 = vrot.slane %v12646_v48, 5 }
 0x9e0   : > { %16657 = vmatprep.subr.bf16.mxu0 %v17802_v28  ;;  %v12643_v31 = vor.u32 %v12642_v45, %v12639_v4 }
 0x9e1   : > { %16550 = vmatpush3.bf16.msra.mxu1 %v17801_v63  ;;  %v12800_v63 = vrot.slane %v12798_v34, 4 }
 0x9e2   : > { %16559 = vmatprep.subr.bf16.mxu1 %v17803_v8  ;;  %v12644_v29 = vrot.slane %v12643_v31, 4 }
 0x9e3   : > { %16658 = vmatpush3.bf16.msra.mxu0 %v17802_v28 }
 0x9e4   : > { %16552 = vmatmul.mubr.bf16.vlgmr.msra.gmra.mrb[12].mxu1 %v21400_v17  ;;  %16659 = vmatprep.subr.bf16.mxu0 %v17804_v3  ;;  %v17807_v17 = vld [vmem:[%s21659_s9 + $0x50] sm:$0xff]   ;;  %v12649_v12 = vsel %vm21383_vm11, %v12644_v29, %v12648_v38 }
 0x9e5   : > { %16555 = vmatprep.mubr.bf16.mxu1 %v21419_v42  ;;  %16560 = vmatpush3.bf16.msra.mxu1 %v17803_v8  ;;  %v17809_v42 = vld [vmem:[%s21659_s9 + $0x160] sm:$0xff]   ;;  %v14241_v15 = vcombine.low %v21489_v47, %v12649_v12 }
 0x9e6   : > { %16652 = vmatmul.mubr.bf16.gmra.mrb[8].mxu0 %v21497_v56  ;;  %16561 = vmatprep.subr.bf16.mxu1 %v17805_v36 }
 0x9e7   : > { %16660 = vmatpush3.bf16.msra.mxu0 %v17804_v3  ;;  %16671 = vmatprep.mubr.bf16.mxu0 %v14238_v1 }
 0x9e8   : > { %16661 = vmatprep.subr.bf16.mxu0 %v17806_v55 }
 0x9e9   : > { %16562 = vmatpush3.bf16.msra.mxu1 %v17805_v36 }
 0x9ea   : > { %16563 = vmatprep.subr.bf16.mxu1 %v17807_v17 }
 0x9eb   : > { %16662 = vmatpush3.bf16.msra.mxu0 %v17806_v55 }
 0x9ec   : > { %16556 = vmatmul.mubr.bf16.gmra.mrb[16].mxu1 %v14104_v40  ;;  %16663 = vmatprep.subr.bf16.mxu0 %v17809_v42 }
 0x9ed   : > { %16564 = vmatpush3.bf16.msra.mxu1 %v17807_v17  ;;  %16575 = vmatprep.mubr.bf16.mxu1 %v14129_v62 }
 0x9ee   : > { %16565 = vmatprep.subr.bf16.mxu1 %v17810_v35 }
 0x9ef   : > { %16664 = vmatpush3.bf16.msra.mxu0 %v17809_v42 }
 0x9f0   : > { %16665 = vmatprep.subr.bf16.mxu0 %v17811_v5 }
 0x9f1   : > { %16566 = vmatpush3.bf16.msra.mxu1 %v17810_v35 }
 0x9f2   : > { %16567 = vmatprep.subr.bf16.mxu1 %v17812_v39 }
 0x9f3   : > { %16666 = vmatpush3.bf16.msra.mxu0 %v17811_v5 }
 0x9f4   : > { %16667 = vmatprep.subr.bf16.mxu0 %v17813_v46 }
 0x9f5   : > { %16568 = vmatpush3.bf16.msra.mxu1 %v17812_v39 }
 0x9f6   : > { %16569 = vmatprep.subr.bf16.mxu1 %v17814_v6 }
 0x9f7   : > { %16668 = vmatpush3.bf16.msra.mxu0 %v17813_v46 }
 0x9f8   : > { %16669 = vmatprep.subr.bf16.mxu0 %v17815_v2 }
 0x9f9   : > { %16570 = vmatpush3.bf16.msra.mxu1 %v17814_v6 }
 0x9fa   : > { %16571 = vmatprep.subr.bf16.mxu1 %v17816_v32 }
 0x9fb   : > { %16670 = vmatpush3.bf16.msra.mxu0 %v17815_v2 }
 0x9fc   : > { %16679 = vmatprep.subr.bf16.mxu0 %v17817_v22 }
 0x9fd   : > { %16572 = vmatpush3.bf16.msra.mxu1 %v17816_v32 }
 0x9fe   : > { %16672 = vmatmul.mubr.bf16.vlgmr.msra.gmra.mrb[4].mxu0 %v14239_v14  ;;  %16573 = vmatprep.subr.bf16.mxu1 %v17818_v18 }
 0x9ff   : > { %16675 = vmatprep.mubr.bf16.mxu0 %v14240_v9  ;;  %16680 = vmatpush3.bf16.msra.mxu0 %v17817_v22 }
 0xa00   : > { %16681 = vmatprep.subr.bf16.mxu0 %v17819_v59 }
 0xa01   : > { %16574 = vmatpush3.bf16.msra.mxu1 %v17818_v18 }
 0xa03   : > { %16682 = vmatpush3.bf16.msra.mxu0 %v17819_v59 }
 0xa04   : > { %16576 = vmatmul.mubr.bf16.vlgmr.msra.gmra.mrb[12].mxu1 %v21314_v0  ;;  %16683 = vmatprep.subr.bf16.mxu0 %v17820_v16  ;;  %v17823_v0 = vld [vmem:[%s21659_s9 + $0x228] sm:$0xff]  }
 0xa05   : > { %16579 = vmatprep.mubr.bf16.mxu1 %v21362_v30  ;;  %v17824_v30 = vld [vmem:[%s21659_s9 + $0x230] sm:$0xff]  }
 0xa06   : > { %16676 = vmatmul.mubr.bf16.gmra.mrb[8].mxu0 %v14241_v15 }
 0xa07   : > { %16684 = vmatpush3.bf16.msra.mxu0 %v17820_v16  ;;  %16695 = vmatprep.mubr.bf16.mxu0 %v21461_v57  ;;  %v12804_v57 = vor.u32 %v12803_v25, %v12800_v63 }
 0xa08   : > { %16685 = vmatprep.subr.bf16.mxu0 %v17821_v54 }
 0xa09   : > { %v12805_v28 = vrot.slane %v12804_v57, 4 }
 0xa0b   : > { %16686 = vmatpush3.bf16.msra.mxu0 %v17821_v54  ;;  %v12810_v21 = vsel %vm21383_vm11, %v12805_v28, %v12809_v50 }
 0xa0c   : > { %16580 = vmatmul.mubr.bf16.gmra.mrb[16].mxu1 %v21372_v19  ;;  %16687 = vmatprep.subr.bf16.mxu0 %v17822_v27  ;;  %v17825_v19 = vld [vmem:[%s21659_s9 + $0x238] sm:$0xff]   ;;  %v14266_v43 = vcombine.low %v12649_v12, %v12810_v21 }
 0xa0f   : > { %16688 = vmatpush3.bf16.msra.mxu0 %v17822_v27 }
 0xa10   : > { %16689 = vmatprep.subr.bf16.mxu0 %v17823_v0 }
 0xa13   : > { %16690 = vmatpush3.bf16.msra.mxu0 %v17823_v0 }
 0xa14   : > { %16691 = vmatprep.subr.bf16.mxu0 %v17824_v30 }
 0xa17   : > { %16692 = vmatpush3.bf16.msra.mxu0 %v17824_v30 }
 0xa18   : > { %16693 = vmatprep.subr.bf16.mxu0 %v17825_v19 }
 0xa1b   : > { %16694 = vmatpush3.bf16.msra.mxu0 %v17825_v19 }
 0xa1e   : > { %16696 = vmatmul.mubr.bf16.vlgmr.msra.gmra.mrb[4].mxu0 %v21472_v53  ;;  %v14275_v53 = vld [vmem:[%s21660_s10] ss:$0 sm:$0xff] }
 0xa1f   : > { %16699 = vmatprep.mubr.bf16.mxu0 %v21497_v56 }
 0xa26   : > { %16700 = vmatmul.mubr.bf16.gmra.mrb[8].mxu0 %v14266_v43 }
 0xad7   : > { %v16577_v10 = vpop.f32.mrb[12].mxu1 }
 0xad8   : > { %v12018_v24 = vpop.f32.mrb[13].mxu1 }
 0xad9   : > { %v16578_v8 = vpop.f32.mrb[14].mxu1 }
 0xada   : > { %v12021_v11 = vpop.f32.mrb[15].mxu1 }
 0xadf   : > { %v16581_v20 = vpop.f32.mrb[16].mxu1 }
 0xae0   : > { %v12034_v61 = vpop.f32.mrb[17].mxu1 }
 0xae1   : > { %v16582_v3 = vpop.f32.mrb[18].mxu1 }
 0xae2   : > { %v12037_v13 = vpop.f32.mrb[19].mxu1 }
 0xaf1   : > { %v16697_v47 = vpop.f32.mrb[4].mxu0 }
 0xaf2   : > { %v17279_v36 = vadd.f32 %v16697_v47, %v16577_v10  ;;  %v12913_v51 = vpop.f32.mrb[5].mxu0 }
 0xaf3   : > { %v17280_v60 = vadd.f32 %v12913_v51, %v12018_v24  ;;  %v16698_v41 = vpop.f32.mrb[6].mxu0 }
 0xaf4   : > { %v12961_v56 = vadd.f32 %v17279_v36, %v14275_v53  ;;  %v17281_v55 = vadd.f32 %v16698_v41, %v16578_v8  ;;  %v12916_v1 = vpop.f32.mrb[7].mxu0 }
 0xaf5   : > { %v12959_v17 = vadd.f32 %v17280_v60, %v14275_v53  ;;  %v17282_v33 = vadd.f32 %v12916_v1, %v12021_v11 }
 0xaf6   : > { %v12969_v42 = vmax.f32 %v12961_v56, 0.0  ;;  %v12962_v40 = vadd.f32 %v17281_v55, %v14275_v53 }
 0xaf7   : > { %v12967_v35 = vmax.f32 %v12959_v17, 0.0  ;;  %v12960_v62 = vadd.f32 %v17282_v33, %v14275_v53 }
 0xaf8   : > { %12977 = vst.msk [vmem:[%s18621_s16 + $0x10] sm:$0xff] %vm10980_vm6, %v12969_v42  ;;  %v12970_v5 = vmax.f32 %v12962_v40, 0.0 }
 0xaf9   : > { %12975 = vst.msk [vmem:[%s18621_s16] sm:$0xff] %vm10980_vm6, %v12967_v35  ;;  %v12968_v39 = vmax.f32 %v12960_v62, 0.0  ;;  %v16701_v58 = vpop.f32.mrb[8].mxu0 }
 0xafa   : > { %12978 = vst.msk [vmem:[%s18621_s16 + $0x18] sm:$0xff] %vm10980_vm6, %v12970_v5  ;;  %v17283_v46 = vadd.f32 %v16701_v58, %v16581_v20  ;;  %v12929_v52 = vpop.f32.mrb[9].mxu0 }
 0xafb   : > { %12976 = vst.msk [vmem:[%s18621_s16 + $0x8] sm:$0xff] %vm10980_vm6, %v12968_v39  ;;  %v17284_v26 = vadd.f32 %v12929_v52, %v12034_v61  ;;  %v16702_v6 = vpop.f32.mrb[10].mxu0 }
 0xafc   : > { %v12965_v2 = vadd.f32 %v17283_v46, %v14275_v53  ;;  %v17285_v4 = vadd.f32 %v16702_v6, %v16582_v3  ;;  %v12932_v45 = vpop.f32.mrb[11].mxu0 }
 0xafd   : > { %v12963_v32 = vadd.f32 %v17284_v26, %v14275_v53  ;;  %v17286_v37 = vadd.f32 %v12932_v45, %v12037_v13 }
 0xafe   : > { %v12973_v22 = vmax.f32 %v12965_v2, 0.0  ;;  %v12966_v31 = vadd.f32 %v17285_v4, %v14275_v53 }
 0xaff   : > { %v12971_v48 = vmax.f32 %v12963_v32, 0.0  ;;  %v12964_v18 = vadd.f32 %v17286_v37, %v14275_v53 }
 0xb00   : > { %12981 = vst.msk [vmem:[%s18621_s16 + $0x30] sm:$0xff] %vm10980_vm6, %v12973_v22  ;;  %v12974_v14 = vmax.f32 %v12966_v31, 0.0 }
 0xb01   : > { %12979 = vst.msk [vmem:[%s18621_s16 + $0x20] sm:$0xff] %vm10980_vm6, %v12971_v48  ;;  %v12972_v59 = vmax.f32 %v12964_v18, 0.0 }
 0xb02   : > { %12982 = vst.msk [vmem:[%s18621_s16 + $0x38] sm:$0xff] %vm10980_vm6, %v12974_v14 }
 0xb03   : > { %12980 = vst.msk [vmem:[%s18621_s16 + $0x28] sm:$0xff] %vm10980_vm6, %v12972_v59 }
 0xb04   : > { %17839 = shalt.err (!%p17836_p9)
}
 0xb05   : > { %s17840_s16 = scalar_lea.hbm %s21597_s17, 1024  ;;  %s17844_s20 = scalar_lea.hbm %s21663_s13, 2048 }
 0xb06   : > { %p17841_p10 = scmp.ne.s32.totalorder %s21597_s17, %s17840_s16  ;;  %p17845_p13 = scmp.lt.u32.totalorder %s21597_s17, %s21663_s13 }
 0xb07   : > { %p17846_p0 = scmp.lt.u32.totalorder %s17844_s20, %s17840_s16  ;;  %p17848_p2 = scmp.lt.u32.totalorder %s17840_s16, %s21597_s17 }
 0xb08   : > { %p17842_p11 = pnand %p17841_p10, %p18034_p5 }
 0xb09   : > { %p17847_p1 = por %p17846_p0, %p17845_p13 }
 0xb0a   : > { %p17843_p12 = pneg %p17842_p11 }
 0xb0b   : > { %p17849_p3 = por %p17848_p2, %p17847_p1 }
 0xb0d   : > { %p17850_p4 = pnand %p17849_p3, %p17843_p12 }
 0xb0f   : > { %17853 = shalt.err (!%p17850_p4)
}
 0xb10   : > { %s17924_s21 = smov 128   ;;  %s17925_s27 = smov 8  }
 0xb11   : > { %17343 = dma.vmem_to_hbm [thread:$0]  (%p18034_p5), %s21599_s15, 1024, %s21597_s17, %s21609_s0, %s17924_s21, %s17924_s21, %s17925_s27  }
 0xb12 PF: > { %p17349_p7 = scmp.ge.s32.totalorder %s17904_s28, 2  ;;  %s13012_s23 = sand.u32 1, %s17892_s25  }
 0xb13   : > { %s13013_s22 = scalar_lea.sflag [#allocation8], %s13012_s23 }
 0xb14   : > { %p17346_p8 = pnand %p17349_p7, %p18038_p6 }
 0xb16   : > { %17887 = dma.done.wait (!%p17346_p8), %s13013_s22, 1024  }
 0xb17   : > { %17889 = vsyncadd (!%p17346_p8), %s13013_s22, 4294966272  ;;  %s21680_s28 = sld [smem:[#allocation11_spill]]  ;;  %s21681_s16 = sld [smem:[#allocation10_spill]] }
 0xb18   : > { %s21682_s27 = sld [smem:[#allocation12_spill]]  ;;  %s21683_s25 = smov %s17896_s26 }
 0xb1d   : > { %p23_p9 = scmp.ge.s32.totalorder %s21680_s28, 4   ;;  %s21684_s26 = smov %s21681_s16 }
 0xb1f   :  { %25 = sbr.rel (!%p23_p9) target bundleno = 5 (0x5), region = 237 }
 0xb26   :  { %13018 = vsyncpa [#allocation8], 1 }
 0xb27   :  { %13020 = vsyncpa [#allocation8 + $0x1], 1 }

</bundles_post_ra>
